<compile_context>
chip_gen: v6e
topology: v6e:2x2x1
jax: 0.10.0
libtpu: 0.0.40
codegen_flags: <defaults>
</compile_context>

<pallas_src>
import functools

import jax
import jax.numpy as jnp
from jax import lax
from jax.experimental import pallas as pl
from jax.experimental.pallas import tpu as pltpu

_EPS = 1e-5                        # nn.BatchNorm2d default eps
_LANE = 128                        # TPU lane width: pad channel dims to this
_MXU_DTYPE = jnp.bfloat16          # MXU LHS/RHS + slab dtype (f32 accumulation)
_IO_DTYPE = jnp.bfloat16           # HBM dtype of the inter-conv intermediates
_VMEM_LIMIT_BYTES = 48 * 1024 * 1024


def _round_up(x, m):
    return (x + m - 1) // m * m


def _pad_vec(v, c_pad):
    """1-D parameter -> zero-padded, lane-dense (1, c_pad) f32 row."""
    return jnp.pad(v.astype(jnp.float32), (0, c_pad - v.shape[0]))[None, :]


def _prep_weight(w_oihw, cin_p, cout_p):
    """PyTorch (Cout,Cin,3,3) -> (3, 3*Cin_pad, Cout_pad): ky-major, kx folded
    into the contraction dim (lane block kx occupies K[kx*Cin_pad:(kx+1)*Cin_pad])."""
    co, ci, kh, kw = w_oihw.shape
    w = jnp.transpose(w_oihw, (2, 3, 1, 0))                       # (3,3,ci,co)
    w = jnp.pad(w, ((0, 0), (0, 0), (0, cin_p - ci), (0, cout_p - co)))
    return w.reshape(kh, kw * cin_p, cout_p).astype(_MXU_DTYPE)


# ---------------------------------------------------------------------------
# Kernel: fused [affine(+ReLU) of the previous stage] -> kx-grouped, zero-
# haloed activation slab in VMEM -> 3x3 conv as 3 MXU matmuls (K = 3*Cin_pad)
# -> bf16 conv output + exact masked per-channel partial sums for BatchNorm.
# ---------------------------------------------------------------------------
def _norm_conv_stats_kernel(z_ref, scale_ref, shift_ref, w_ref, mask_ref,
                            y_ref, psum_ref, psq_ref, buf_ref,
                            *, wp, halo, apply_relu):
    r = z_ref.shape[1]                      # rows of the padded (Hp*Wp) grid
    kgrp = w_ref.shape[1]                   # 3 * cin_p
    cin = kgrp // 3
    mask = mask_ref[...]                    # (r, 1): 1 at real pixels, 0 at border

    # fused normalize(+ReLU) of the previous stage, in f32, masked to interior
    act = z_ref[0].astype(jnp.float32) * scale_ref[...] + shift_ref[...]
    if apply_relu:
        act = jnp.maximum(act, 0.0)
    act = (act * mask).astype(buf_ref.dtype)                 # (r, cin_p) bf16

    # halo-only zeroing: only rows the shifted tap reads can touch outside the
    # written region (bottom halo + a small top band); the rest is overwritten.
    rh = buf_ref.shape[0]
    top = halo + r - 2
    buf_ref[pl.ds(0, halo), :] = jnp.zeros((halo, kgrp), buf_ref.dtype)
    buf_ref[pl.ds(top, rh - top), :] = jnp.zeros((rh - top, kgrp), buf_ref.dtype)

    # lane-concatenated kx-shifted copies: buf[p, kx*cin:(kx+1)*cin] = act[p-halo+kx]
    for kx in range(3):
        buf_ref[pl.ds(halo - kx, r), pl.ds(kx * cin, cin)] = act

    # 3x3 conv: 3 accumulating MXU matmuls over constant row shifts, K=3*cin_p
    off0 = halo - wp - 1                    # static, >= 0 by construction
    acc = jnp.zeros((r, w_ref.shape[2]), jnp.float32)
    for ky in range(3):                     # static unroll (LLO-visible)
        xs = buf_ref[pl.ds(off0 + ky * wp, r), :]            # (r, 3*cin_p)
        acc = acc + jnp.dot(xs, w_ref[ky], preferred_element_type=jnp.float32)
    # NOTE: conv bias is intentionally omitted — training-mode BN subtracts the
    # per-channel mean, so the bias cancels exactly in the normalized output.

    y_ref[0] = acc.astype(y_ref.dtype)                       # pre-BN conv output
    am = acc * mask                                          # masked, reused
    psum_ref[0] = jnp.sum(am, axis=0, keepdims=True)
    psq_ref[0] = jnp.sum(am * am, axis=0, keepdims=True)


def _norm_conv_stats(z, scale, shift, w, mask, *, wp, halo, apply_relu):
    n, r, cin_p = z.shape
    kgrp, cout_p = w.shape[1], w.shape[2]
    rh = r + 2 * halo
    kern = functools.partial(_norm_conv_stats_kernel, wp=wp, halo=halo,
                             apply_relu=apply_relu)
    return pl.pallas_call(
        kern,
        grid=(n,),
        in_specs=[
            pl.BlockSpec((1, r, cin_p), lambda i: (i, 0, 0)),       # activation
            pl.BlockSpec((1, cin_p), lambda i: (0, 0)),             # BN scale
            pl.BlockSpec((1, cin_p), lambda i: (0, 0)),             # BN shift
            pl.BlockSpec((3, kgrp, cout_p), lambda i: (0, 0, 0)),   # weights
            pl.BlockSpec((r, 1), lambda i: (0, 0)),                 # interior mask
        ],
        out_specs=(
            pl.BlockSpec((1, r, cout_p), lambda i: (i, 0, 0)),      # conv out
            pl.BlockSpec((1, 1, cout_p), lambda i: (i, 0, 0)),      # per-image sum
            pl.BlockSpec((1, 1, cout_p), lambda i: (i, 0, 0)),      # per-image sumsq
        ),
        out_shape=(
            jax.ShapeDtypeStruct((n, r, cout_p), _IO_DTYPE),
            jax.ShapeDtypeStruct((n, 1, cout_p), jnp.float32),
            jax.ShapeDtypeStruct((n, 1, cout_p), jnp.float32),
        ),
        scratch_shapes=[pltpu.VMEM((rh, kgrp), _MXU_DTYPE)],        # haloed slab
        compiler_params=pltpu.CompilerParams(
            dimension_semantics=("parallel",),
            vmem_limit_bytes=_VMEM_LIMIT_BYTES,
        ),
    )(z, scale, shift, w, mask)


def _fold_bn(psum, psq, gamma, beta, count, c_pad):
    """Tiny (1,C) wrapper math: batch stats -> fused BN scale/shift."""
    s = jnp.sum(psum, axis=0)                       # (1, c_pad)
    sq = jnp.sum(psq, axis=0)                       # (1, c_pad)
    mean = s / count
    var = jnp.maximum(sq / count - mean * mean, 0.0)
    rstd = lax.rsqrt(var + _EPS)
    scale = _pad_vec(gamma, c_pad) * rstd
    shift = _pad_vec(beta, c_pad) - mean * scale
    return scale, shift


# ---------------------------------------------------------------------------
# Public wrapper: NCHW in / NCHW out, PyTorch training-mode BN semantics.
# ---------------------------------------------------------------------------
def double_conv(x_nchw, params):
    n, c_in, h, w = x_nchw.shape
    c_mid = params["w1"].shape[0]
    c_out = params["w2"].shape[0]

    hp, wp = h + 2, w + 2
    r = hp * wp                              # pixels of the padded grid
    halo = _round_up(wp + 1, 8)              # sublane-aligned row halo
    count = n * h * w                        # BN reduction size (real pixels)

    cin_p = _round_up(c_in, _LANE)
    cmid_p = _round_up(c_mid, _LANE)
    cout_p = _round_up(c_out, _LANE)

    # NCHW -> NHWC, zero-pad spatial (the conv padding) and channels (lanes),
    # flatten the padded (Hp, Wp) grid into rows: (N, R, Cin_pad), bf16.
    x = jnp.transpose(x_nchw, (0, 2, 3, 1))
    x = jnp.pad(x, ((0, 0), (1, 1), (1, 1), (0, cin_p - c_in)))
    z0 = x.reshape(n, r, cin_p).astype(_IO_DTYPE)

    # interior mask over the padded grid (1 at real image pixels, 0 at border)
    row_in = (jnp.arange(hp) >= 1) & (jnp.arange(hp) <= h)
    col_in = (jnp.arange(wp) >= 1) & (jnp.arange(wp) <= w)
    mask = (row_in[:, None] & col_in[None, :]).reshape(r, 1).astype(jnp.float32)

    ones = jnp.ones((1, cin_p), jnp.float32)
    zeros = jnp.zeros((1, cin_p), jnp.float32)

    # ---- conv1 (input already padded: identity "normalize", no ReLU) --------
    w1 = _prep_weight(params["w1"], cin_p, cmid_p)
    y1, ps1, pq1 = _norm_conv_stats(z0, ones, zeros, w1, mask,
                                    wp=wp, halo=halo, apply_relu=False)
    scale1, shift1 = _fold_bn(ps1, pq1, params["g1"], params["beta1"],
                              count, cmid_p)

    # ---- conv2 (BN1 + ReLU of y1 fused into this kernel's slab build) -------
    w2 = _prep_weight(params["w2"], cmid_p, cout_p)
    y2, ps2, pq2 = _norm_conv_stats(y1, scale1, shift1, w2, mask,
                                    wp=wp, halo=halo, apply_relu=True)
    scale2, shift2 = _fold_bn(ps2, pq2, params["g2"], params["beta2"],
                              count, cout_p)

    # ---- BN2 + ReLU epilogue as plain jnp: XLA fuses it into the final
    # slice/transpose layout copy (no extra HBM round trip) --------------------
    out = jnp.maximum(y2.astype(jnp.float32) * scale2 + shift2, 0.0)
    out = out.reshape(n, hp, wp, cout_p)[:, 1:h + 1, 1:w + 1, :c_out]
    return jnp.transpose(out, (0, 3, 1, 2))


# ---------------------------------------------------------------------------
# Plain-JAX reference (PyTorch training-mode semantics) + param helper.
# ---------------------------------------------------------------------------
def _reference(x_nchw, params):
    def conv(x, w, b):
        y = lax.conv_general_dilated(x, w, (1, 1), ((1, 1), (1, 1)),
                                     dimension_numbers=("NCHW", "OIHW", "NCHW"))
        return y + b[None, :, None, None]

    def bn_relu(x, g, beta):
        mean = jnp.mean(x, axis=(0, 2, 3), keepdims=True)
        var = jnp.mean((x - mean) ** 2, axis=(0, 2, 3), keepdims=True)
        y = (x - mean) * lax.rsqrt(var + _EPS)
        y = y * g[None, :, None, None] + beta[None, :, None, None]
        return jnp.maximum(y, 0.0)

    h1 = bn_relu(conv(x_nchw, params["w1"], params["b1"]),
                 params["g1"], params["beta1"])
    h2 = bn_relu(conv(h1, params["w2"], params["b2"]),
                 params["g2"], params["beta2"])
    return h2


def make_params(key, c_in, c_out, c_mid=None):
    if c_mid is None:
        c_mid = c_out              # DoubleConv default: mid_features = out_features
    ks = jax.random.split(key, 8)
    f32 = jnp.float32
    return {
        "w1": 0.1 * jax.random.normal(ks[0], (c_mid, c_in, 3, 3), f32),
        "b1": 0.1 * jax.random.normal(ks[1], (c_mid,), f32),
        "g1": 1.0 + 0.1 * jax.random.normal(ks[2], (c_mid,), f32),
        "beta1": 0.1 * jax.random.normal(ks[3], (c_mid,), f32),
        "w2": 0.1 * jax.random.normal(ks[4], (c_out, c_mid, 3, 3), f32),
        "b2": 0.1 * jax.random.normal(ks[5], (c_out,), f32),
        "g2": 1.0 + 0.1 * jax.random.normal(ks[6], (c_out,), f32),
        "beta2": 0.1 * jax.random.normal(ks[7], (c_out,), f32),
    }


if __name__ == "__main__":
    key = jax.random.PRNGKey(0)
    kx, kp = jax.random.split(key)
    N, C_IN, C_OUT, H, W = 2, 4, 8, 16, 16
    x = jax.random.normal(kx, (N, C_IN, H, W), jnp.float32)
    params = make_params(kp, C_IN, C_OUT)

    out = jax.block_until_ready(jax.jit(double_conv)(x, params))

    ref = _reference(x, params)
    assert out.shape == (N, C_OUT, H, W)
    err = float(jnp.max(jnp.abs(out - ref)))
    # bf16 MXU inputs + bf16 HBM intermediates -> 5e-2 tolerance vs f32 ref.
    assert jnp.allclose(out, ref, rtol=5e-2, atol=5e-2), err
    print("KERNEL_OK")
</pallas_src>

<mosaic_0001>
module attributes {stable_mosaic.version = 11 : i64} {
  func.func @_norm_conv_stats_kernel(%arg0: i32, %arg1: memref<1x324x128xbf16, #tpu.memory_space<vmem>>, %arg2: memref<1x128xf32, #tpu.memory_space<vmem>>, %arg3: memref<1x128xf32, #tpu.memory_space<vmem>>, %arg4: memref<3x384x128xbf16, #tpu.memory_space<vmem>>, %arg5: memref<324x1xf32, #tpu.memory_space<vmem>>, %arg6: memref<1x324x128xbf16, #tpu.memory_space<vmem>>, %arg7: memref<1x1x128xf32, #tpu.memory_space<vmem>>, %arg8: memref<1x1x128xf32, #tpu.memory_space<vmem>>, %arg9: memref<372x384xbf16, #tpu.memory_space<vmem>>) attributes {dimension_semantics = [#tpu.dimension_semantics<parallel>], iteration_bounds = array<i64: 2>, scalar_prefetch = 0 : i64, scratch_operands = 1 : i64, tpu.core_type = #tpu.core_type<tc>, window_params = [{transform_indices = @transform_0, window_bounds = array<i64: 1, 324, 128>}, {pipeline_mode = #tpu.pipeline_mode<synchronous>, transform_indices = @transform_1, window_bounds = array<i64: 1, 128>}, {pipeline_mode = #tpu.pipeline_mode<synchronous>, transform_indices = @transform_2, window_bounds = array<i64: 1, 128>}, {pipeline_mode = #tpu.pipeline_mode<synchronous>, transform_indices = @transform_3, window_bounds = array<i64: 3, 384, 128>}, {pipeline_mode = #tpu.pipeline_mode<synchronous>, transform_indices = @transform_4, window_bounds = array<i64: 324, 1>}, {transform_indices = @transform_5, window_bounds = array<i64: 1, 324, 128>}, {transform_indices = @transform_6, window_bounds = array<i64: 1, 1, 128>}, {transform_indices = @transform_7, window_bounds = array<i64: 1, 1, 128>}]} {
    %c0 = arith.constant 0 : index
    %c0_0 = arith.constant 0 : index
    %0 = vector.load %arg5[%c0, %c0_0] : memref<324x1xf32, #tpu.memory_space<vmem>>, vector<324x1xf32>
    %c0_1 = arith.constant 0 : index
    %c0_2 = arith.constant 0 : index
    %c0_3 = arith.constant 0 : index
    %1 = vector.load %arg1[%c0_1, %c0_2, %c0_3] : memref<1x324x128xbf16, #tpu.memory_space<vmem>>, vector<1x324x128xbf16>
    %2 = vector.shape_cast %1 : vector<1x324x128xbf16> to vector<324x128xbf16>
    %3 = arith.extf %2 : vector<324x128xbf16> to vector<324x128xf32>
    %c0_4 = arith.constant 0 : index
    %c0_5 = arith.constant 0 : index
    %4 = vector.load %arg2[%c0_4, %c0_5] : memref<1x128xf32, #tpu.memory_space<vmem>>, vector<1x128xf32>
    %5 = vector.broadcast %4 : vector<1x128xf32> to vector<324x128xf32>
    %6 = arith.mulf %3, %5 : vector<324x128xf32>
    %c0_6 = arith.constant 0 : index
    %c0_7 = arith.constant 0 : index
    %7 = vector.load %arg3[%c0_6, %c0_7] : memref<1x128xf32, #tpu.memory_space<vmem>>, vector<1x128xf32>
    %8 = vector.broadcast %7 : vector<1x128xf32> to vector<324x128xf32>
    %9 = arith.addf %6, %8 : vector<324x128xf32>
    %10 = vector.broadcast %0 : vector<324x1xf32> to vector<324x128xf32>
    %11 = arith.mulf %9, %10 : vector<324x128xf32>
    %12 = arith.truncf %11 : vector<324x128xf32> to vector<324x128xbf16>
    %cst = arith.constant 0.000000e+00 : bf16
    %13 = vector.broadcast %cst : bf16 to vector<24x384xbf16>
    %c0_8 = arith.constant 0 : index
    %c0_9 = arith.constant 0 : index
    %14 = vector.load %arg9[%c0_8, %c0_9] : memref<372x384xbf16, #tpu.memory_space<vmem>>, vector<24x384xbf16>
    tpu.vector_store %arg9[%c0_8, %c0_9], %13 {strides = array<i32>} : memref<372x384xbf16, #tpu.memory_space<vmem>>, vector<24x384xbf16>,
    %cst_10 = arith.constant 0.000000e+00 : bf16
    %15 = vector.broadcast %cst_10 : bf16 to vector<26x384xbf16>
    %c346 = arith.constant 346 : index
    %c0_11 = arith.constant 0 : index
    %16 = vector.load %arg9[%c346, %c0_11] : memref<372x384xbf16, #tpu.memory_space<vmem>>, vector<26x384xbf16>
    tpu.vector_store %arg9[%c346, %c0_11], %15 {strides = array<i32>} : memref<372x384xbf16, #tpu.memory_space<vmem>>, vector<26x384xbf16>,
    %c24 = arith.constant 24 : index
    %c0_12 = arith.constant 0 : index
    %17 = vector.load %arg9[%c24, %c0_12] : memref<372x384xbf16, #tpu.memory_space<vmem>>, vector<324x128xbf16>
    tpu.vector_store %arg9[%c24, %c0_12], %12 {strides = array<i32>} : memref<372x384xbf16, #tpu.memory_space<vmem>>, vector<324x128xbf16>,
    %c23 = arith.constant 23 : index
    %c128 = arith.constant 128 : index
    %18 = vector.load %arg9[%c23, %c128] : memref<372x384xbf16, #tpu.memory_space<vmem>>, vector<324x128xbf16>
    tpu.vector_store %arg9[%c23, %c128], %12 {strides = array<i32>} : memref<372x384xbf16, #tpu.memory_space<vmem>>, vector<324x128xbf16>,
    %c22 = arith.constant 22 : index
    %c256 = arith.constant 256 : index
    %19 = vector.load %arg9[%c22, %c256] : memref<372x384xbf16, #tpu.memory_space<vmem>>, vector<324x128xbf16>
    tpu.vector_store %arg9[%c22, %c256], %12 {strides = array<i32>} : memref<372x384xbf16, #tpu.memory_space<vmem>>, vector<324x128xbf16>,
    %cst_13 = arith.constant 0.000000e+00 : f32
    %20 = vector.broadcast %cst_13 : f32 to vector<324x128xf32>
    %c5 = arith.constant 5 : index
    %c0_14 = arith.constant 0 : index
    %21 = vector.load %arg9[%c5, %c0_14] : memref<372x384xbf16, #tpu.memory_space<vmem>>, vector<324x384xbf16>
    %c0_15 = arith.constant 0 : index
    %c0_16 = arith.constant 0 : index
    %c0_17 = arith.constant 0 : index
    %22 = vector.load %arg4[%c0_15, %c0_16, %c0_17] : memref<3x384x128xbf16, #tpu.memory_space<vmem>>, vector<1x384x128xbf16>
    %23 = vector.shape_cast %22 : vector<1x384x128xbf16> to vector<384x128xbf16>
    %cst_18 = arith.constant dense<0.000000e+00> : vector<324x128xf32>
    %24 = tpu.matmul %21, %23, %cst_18 {dimension_numbers = #tpu.dot_dimension_numbers<[1], [0], [0], [1], [0, 0, 1, 1], [], []>} : vector<324x384xbf16>, vector<384x128xbf16>, vector<324x128xf32> -> vector<324x128xf32>
    %25 = arith.addf %20, %24 : vector<324x128xf32>
    %c23_19 = arith.constant 23 : index
    %c0_20 = arith.constant 0 : index
    %26 = vector.load %arg9[%c23_19, %c0_20] : memref<372x384xbf16, #tpu.memory_space<vmem>>, vector<324x384xbf16>
    %c1 = arith.constant 1 : index
    %c0_21 = arith.constant 0 : index
    %c0_22 = arith.constant 0 : index
    %27 = vector.load %arg4[%c1, %c0_21, %c0_22] : memref<3x384x128xbf16, #tpu.memory_space<vmem>>, vector<1x384x128xbf16>
    %28 = vector.shape_cast %27 : vector<1x384x128xbf16> to vector<384x128xbf16>
    %cst_23 = arith.constant dense<0.000000e+00> : vector<324x128xf32>
    %29 = tpu.matmul %26, %28, %cst_23 {dimension_numbers = #tpu.dot_dimension_numbers<[1], [0], [0], [1], [0, 0, 1, 1], [], []>} : vector<324x384xbf16>, vector<384x128xbf16>, vector<324x128xf32> -> vector<324x128xf32>
    %30 = arith.addf %25, %29 : vector<324x128xf32>
    %c41 = arith.constant 41 : index
    %c0_24 = arith.constant 0 : index
    %31 = vector.load %arg9[%c41, %c0_24] : memref<372x384xbf16, #tpu.memory_space<vmem>>, vector<324x384xbf16>
    %c2 = arith.constant 2 : index
    %c0_25 = arith.constant 0 : index
    %c0_26 = arith.constant 0 : index
    %32 = vector.load %arg4[%c2, %c0_25, %c0_26] : memref<3x384x128xbf16, #tpu.memory_space<vmem>>, vector<1x384x128xbf16>
    %33 = vector.shape_cast %32 : vector<1x384x128xbf16> to vector<384x128xbf16>
    %cst_27 = arith.constant dense<0.000000e+00> : vector<324x128xf32>
    %34 = tpu.matmul %31, %33, %cst_27 {dimension_numbers = #tpu.dot_dimension_numbers<[1], [0], [0], [1], [0, 0, 1, 1], [], []>} : vector<324x384xbf16>, vector<384x128xbf16>, vector<324x128xf32> -> vector<324x128xf32>
    %35 = arith.addf %30, %34 : vector<324x128xf32>
    %36 = arith.truncf %35 : vector<324x128xf32> to vector<324x128xbf16>
    %c0_28 = arith.constant 0 : index
    %c0_29 = arith.constant 0 : index
    %c0_30 = arith.constant 0 : index
    %37 = vector.load %arg6[%c0_28, %c0_29, %c0_30] : memref<1x324x128xbf16, #tpu.memory_space<vmem>>, vector<1x324x128xbf16>
    %38 = vector.shape_cast %37 : vector<1x324x128xbf16> to vector<324x128xbf16>
    %39 = vector.shape_cast %36 : vector<324x128xbf16> to vector<1x324x128xbf16>
    tpu.vector_store %arg6[%c0_28, %c0_29, %c0_30], %39 {strides = array<i32>} : memref<1x324x128xbf16, #tpu.memory_space<vmem>>, vector<1x324x128xbf16>,
    %40 = vector.broadcast %0 : vector<324x1xf32> to vector<324x128xf32>
    %41 = arith.mulf %35, %40 : vector<324x128xf32>
    %cst_31 = arith.constant dense<0.000000e+00> : vector<128xf32>
    %42 = vector.multi_reduction <add>, %41, %cst_31 [0] : vector<324x128xf32> to vector<128xf32>
    %43 = vector.shape_cast %42 : vector<128xf32> to vector<1x128xf32>
    %c0_32 = arith.constant 0 : index
    %c0_33 = arith.constant 0 : index
    %c0_34 = arith.constant 0 : index
    %44 = vector.load %arg7[%c0_32, %c0_33, %c0_34] : memref<1x1x128xf32, #tpu.memory_space<vmem>>, vector<1x1x128xf32>
    %45 = vector.shape_cast %44 : vector<1x1x128xf32> to vector<1x128xf32>
    %46 = vector.shape_cast %43 : vector<1x128xf32> to vector<1x1x128xf32>
    tpu.vector_store %arg7[%c0_32, %c0_33, %c0_34], %46 {strides = array<i32>} : memref<1x1x128xf32, #tpu.memory_space<vmem>>, vector<1x1x128xf32>,
    %47 = arith.mulf %41, %41 : vector<324x128xf32>
    %cst_35 = arith.constant dense<0.000000e+00> : vector<128xf32>
    %48 = vector.multi_reduction <add>, %47, %cst_35 [0] : vector<324x128xf32> to vector<128xf32>
    %49 = vector.shape_cast %48 : vector<128xf32> to vector<1x128xf32>
    %c0_36 = arith.constant 0 : index
    %c0_37 = arith.constant 0 : index
    %c0_38 = arith.constant 0 : index
    %50 = vector.load %arg8[%c0_36, %c0_37, %c0_38] : memref<1x1x128xf32, #tpu.memory_space<vmem>>, vector<1x1x128xf32>
    %51 = vector.shape_cast %50 : vector<1x1x128xf32> to vector<1x128xf32>
    %52 = vector.shape_cast %49 : vector<1x128xf32> to vector<1x1x128xf32>
    tpu.vector_store %arg8[%c0_36, %c0_37, %c0_38], %52 {strides = array<i32>} : memref<1x1x128xf32, #tpu.memory_space<vmem>>, vector<1x1x128xf32>,
    return
  }
  func.func @transform_0(%arg0: i32) -> (i32, i32, i32) {
    %c0_i32 = arith.constant 0 : i32
    %c0_i32_0 = arith.constant 0 : i32
    %c0_i32_1 = arith.constant 0 : i32
    return %arg0, %c0_i32, %c0_i32_0 : i32, i32, i32
  }
  func.func @transform_1(%arg0: i32) -> (i32, i32) {
    %c0_i32 = arith.constant 0 : i32
    %c0_i32_0 = arith.constant 0 : i32
    %c0_i32_1 = arith.constant 0 : i32
    return %c0_i32, %c0_i32_0 : i32, i32
  }
  func.func @transform_2(%arg0: i32) -> (i32, i32) {
    %c0_i32 = arith.constant 0 : i32
    %c0_i32_0 = arith.constant 0 : i32
    %c0_i32_1 = arith.constant 0 : i32
    return %c0_i32, %c0_i32_0 : i32, i32
  }
  func.func @transform_3(%arg0: i32) -> (i32, i32, i32) {
    %c0_i32 = arith.constant 0 : i32
    %c0_i32_0 = arith.constant 0 : i32
    %c0_i32_1 = arith.constant 0 : i32
    %c0_i32_2 = arith.constant 0 : i32
    return %c0_i32, %c0_i32_0, %c0_i32_1 : i32, i32, i32
  }
  func.func @transform_4(%arg0: i32) -> (i32, i32) {
    %c0_i32 = arith.constant 0 : i32
    %c0_i32_0 = arith.constant 0 : i32
    %c0_i32_1 = arith.constant 0 : i32
    return %c0_i32, %c0_i32_0 : i32, i32
  }
  func.func @transform_5(%arg0: i32) -> (i32, i32, i32) {
    %c0_i32 = arith.constant 0 : i32
    %c0_i32_0 = arith.constant 0 : i32
    %c0_i32_1 = arith.constant 0 : i32
    return %arg0, %c0_i32, %c0_i32_0 : i32, i32, i32
  }
  func.func @transform_6(%arg0: i32) -> (i32, i32, i32) {
    %c0_i32 = arith.constant 0 : i32
    %c0_i32_0 = arith.constant 0 : i32
    %c0_i32_1 = arith.constant 0 : i32
    return %arg0, %c0_i32, %c0_i32_0 : i32, i32, i32
  }
  func.func @transform_7(%arg0: i32) -> (i32, i32, i32) {
    %c0_i32 = arith.constant 0 : i32
    %c0_i32_0 = arith.constant 0 : i32
    %c0_i32_1 = arith.constant 0 : i32
    return %arg0, %c0_i32, %c0_i32_0 : i32, i32, i32
  }
}

module attributes {stable_mosaic.version = 11 : i64} {
  func.func @_norm_conv_stats_kernel(%arg0: i32, %arg1: memref<1x324x128xbf16, #tpu.memory_space<vmem>>, %arg2: memref<1x128xf32, #tpu.memory_space<vmem>>, %arg3: memref<1x128xf32, #tpu.memory_space<vmem>>, %arg4: memref<3x384x128xbf16, #tpu.memory_space<vmem>>, %arg5: memref<324x1xf32, #tpu.memory_space<vmem>>, %arg6: memref<1x324x128xbf16, #tpu.memory_space<vmem>>, %arg7: memref<1x1x128xf32, #tpu.memory_space<vmem>>, %arg8: memref<1x1x128xf32, #tpu.memory_space<vmem>>, %arg9: memref<372x384xbf16, #tpu.memory_space<vmem>>) attributes {dimension_semantics = [#tpu.dimension_semantics<parallel>], iteration_bounds = array<i64: 2>, scalar_prefetch = 0 : i64, scratch_operands = 1 : i64, tpu.core_type = #tpu.core_type<tc>, window_params = [{transform_indices = @transform_0, window_bounds = array<i64: 1, 324, 128>}, {pipeline_mode = #tpu.pipeline_mode<synchronous>, transform_indices = @transform_1, window_bounds = array<i64: 1, 128>}, {pipeline_mode = #tpu.pipeline_mode<synchronous>, transform_indices = @transform_2, window_bounds = array<i64: 1, 128>}, {pipeline_mode = #tpu.pipeline_mode<synchronous>, transform_indices = @transform_3, window_bounds = array<i64: 3, 384, 128>}, {pipeline_mode = #tpu.pipeline_mode<synchronous>, transform_indices = @transform_4, window_bounds = array<i64: 324, 1>}, {transform_indices = @transform_5, window_bounds = array<i64: 1, 324, 128>}, {transform_indices = @transform_6, window_bounds = array<i64: 1, 1, 128>}, {transform_indices = @transform_7, window_bounds = array<i64: 1, 1, 128>}]} {
    %c0 = arith.constant 0 : index
    %c0_0 = arith.constant 0 : index
    %0 = vector.load %arg5[%c0, %c0_0] : memref<324x1xf32, #tpu.memory_space<vmem>>, vector<324x1xf32>
    %c0_1 = arith.constant 0 : index
    %c0_2 = arith.constant 0 : index
    %c0_3 = arith.constant 0 : index
    %1 = vector.load %arg1[%c0_1, %c0_2, %c0_3] : memref<1x324x128xbf16, #tpu.memory_space<vmem>>, vector<1x324x128xbf16>
    %2 = vector.shape_cast %1 : vector<1x324x128xbf16> to vector<324x128xbf16>
    %3 = arith.extf %2 : vector<324x128xbf16> to vector<324x128xf32>
    %c0_4 = arith.constant 0 : index
    %c0_5 = arith.constant 0 : index
    %4 = vector.load %arg2[%c0_4, %c0_5] : memref<1x128xf32, #tpu.memory_space<vmem>>, vector<1x128xf32>
    %5 = vector.broadcast %4 : vector<1x128xf32> to vector<324x128xf32>
    %6 = arith.mulf %3, %5 : vector<324x128xf32>
    %c0_6 = arith.constant 0 : index
    %c0_7 = arith.constant 0 : index
    %7 = vector.load %arg3[%c0_6, %c0_7] : memref<1x128xf32, #tpu.memory_space<vmem>>, vector<1x128xf32>
    %8 = vector.broadcast %7 : vector<1x128xf32> to vector<324x128xf32>
    %9 = arith.addf %6, %8 : vector<324x128xf32>
    %cst = arith.constant 0.000000e+00 : f32
    %10 = vector.broadcast %cst : f32 to vector<324x128xf32>
    %11 = arith.maximumf %9, %10 : vector<324x128xf32>
    %12 = vector.broadcast %0 : vector<324x1xf32> to vector<324x128xf32>
    %13 = arith.mulf %11, %12 : vector<324x128xf32>
    %14 = arith.truncf %13 : vector<324x128xf32> to vector<324x128xbf16>
    %cst_8 = arith.constant 0.000000e+00 : bf16
    %15 = vector.broadcast %cst_8 : bf16 to vector<24x384xbf16>
    %c0_9 = arith.constant 0 : index
    %c0_10 = arith.constant 0 : index
    %16 = vector.load %arg9[%c0_9, %c0_10] : memref<372x384xbf16, #tpu.memory_space<vmem>>, vector<24x384xbf16>
    tpu.vector_store %arg9[%c0_9, %c0_10], %15 {strides = array<i32>} : memref<372x384xbf16, #tpu.memory_space<vmem>>, vector<24x384xbf16>,
    %cst_11 = arith.constant 0.000000e+00 : bf16
    %17 = vector.broadcast %cst_11 : bf16 to vector<26x384xbf16>
    %c346 = arith.constant 346 : index
    %c0_12 = arith.constant 0 : index
    %18 = vector.load %arg9[%c346, %c0_12] : memref<372x384xbf16, #tpu.memory_space<vmem>>, vector<26x384xbf16>
    tpu.vector_store %arg9[%c346, %c0_12], %17 {strides = array<i32>} : memref<372x384xbf16, #tpu.memory_space<vmem>>, vector<26x384xbf16>,
    %c24 = arith.constant 24 : index
    %c0_13 = arith.constant 0 : index
    %19 = vector.load %arg9[%c24, %c0_13] : memref<372x384xbf16, #tpu.memory_space<vmem>>, vector<324x128xbf16>
    tpu.vector_store %arg9[%c24, %c0_13], %14 {strides = array<i32>} : memref<372x384xbf16, #tpu.memory_space<vmem>>, vector<324x128xbf16>,
    %c23 = arith.constant 23 : index
    %c128 = arith.constant 128 : index
    %20 = vector.load %arg9[%c23, %c128] : memref<372x384xbf16, #tpu.memory_space<vmem>>, vector<324x128xbf16>
    tpu.vector_store %arg9[%c23, %c128], %14 {strides = array<i32>} : memref<372x384xbf16, #tpu.memory_space<vmem>>, vector<324x128xbf16>,
    %c22 = arith.constant 22 : index
    %c256 = arith.constant 256 : index
    %21 = vector.load %arg9[%c22, %c256] : memref<372x384xbf16, #tpu.memory_space<vmem>>, vector<324x128xbf16>
    tpu.vector_store %arg9[%c22, %c256], %14 {strides = array<i32>} : memref<372x384xbf16, #tpu.memory_space<vmem>>, vector<324x128xbf16>,
    %cst_14 = arith.constant 0.000000e+00 : f32
    %22 = vector.broadcast %cst_14 : f32 to vector<324x128xf32>
    %c5 = arith.constant 5 : index
    %c0_15 = arith.constant 0 : index
    %23 = vector.load %arg9[%c5, %c0_15] : memref<372x384xbf16, #tpu.memory_space<vmem>>, vector<324x384xbf16>
    %c0_16 = arith.constant 0 : index
    %c0_17 = arith.constant 0 : index
    %c0_18 = arith.constant 0 : index
    %24 = vector.load %arg4[%c0_16, %c0_17, %c0_18] : memref<3x384x128xbf16, #tpu.memory_space<vmem>>, vector<1x384x128xbf16>
    %25 = vector.shape_cast %24 : vector<1x384x128xbf16> to vector<384x128xbf16>
    %cst_19 = arith.constant dense<0.000000e+00> : vector<324x128xf32>
    %26 = tpu.matmul %23, %25, %cst_19 {dimension_numbers = #tpu.dot_dimension_numbers<[1], [0], [0], [1], [0, 0, 1, 1], [], []>} : vector<324x384xbf16>, vector<384x128xbf16>, vector<324x128xf32> -> vector<324x128xf32>
    %27 = arith.addf %22, %26 : vector<324x128xf32>
    %c23_20 = arith.constant 23 : index
    %c0_21 = arith.constant 0 : index
    %28 = vector.load %arg9[%c23_20, %c0_21] : memref<372x384xbf16, #tpu.memory_space<vmem>>, vector<324x384xbf16>
    %c1 = arith.constant 1 : index
    %c0_22 = arith.constant 0 : index
    %c0_23 = arith.constant 0 : index
    %29 = vector.load %arg4[%c1, %c0_22, %c0_23] : memref<3x384x128xbf16, #tpu.memory_space<vmem>>, vector<1x384x128xbf16>
    %30 = vector.shape_cast %29 : vector<1x384x128xbf16> to vector<384x128xbf16>
    %cst_24 = arith.constant dense<0.000000e+00> : vector<324x128xf32>
    %31 = tpu.matmul %28, %30, %cst_24 {dimension_numbers = #tpu.dot_dimension_numbers<[1], [0], [0], [1], [0, 0, 1, 1], [], []>} : vector<324x384xbf16>, vector<384x128xbf16>, vector<324x128xf32> -> vector<324x128xf32>
    %32 = arith.addf %27, %31 : vector<324x128xf32>
    %c41 = arith.constant 41 : index
    %c0_25 = arith.constant 0 : index
    %33 = vector.load %arg9[%c41, %c0_25] : memref<372x384xbf16, #tpu.memory_space<vmem>>, vector<324x384xbf16>
    %c2 = arith.constant 2 : index
    %c0_26 = arith.constant 0 : index
    %c0_27 = arith.constant 0 : index
    %34 = vector.load %arg4[%c2, %c0_26, %c0_27] : memref<3x384x128xbf16, #tpu.memory_space<vmem>>, vector<1x384x128xbf16>
    %35 = vector.shape_cast %34 : vector<1x384x128xbf16> to vector<384x128xbf16>
    %cst_28 = arith.constant dense<0.000000e+00> : vector<324x128xf32>
    %36 = tpu.matmul %33, %35, %cst_28 {dimension_numbers = #tpu.dot_dimension_numbers<[1], [0], [0], [1], [0, 0, 1, 1], [], []>} : vector<324x384xbf16>, vector<384x128xbf16>, vector<324x128xf32> -> vector<324x128xf32>
    %37 = arith.addf %32, %36 : vector<324x128xf32>
    %38 = arith.truncf %37 : vector<324x128xf32> to vector<324x128xbf16>
    %c0_29 = arith.constant 0 : index
    %c0_30 = arith.constant 0 : index
    %c0_31 = arith.constant 0 : index
    %39 = vector.load %arg6[%c0_29, %c0_30, %c0_31] : memref<1x324x128xbf16, #tpu.memory_space<vmem>>, vector<1x324x128xbf16>
    %40 = vector.shape_cast %39 : vector<1x324x128xbf16> to vector<324x128xbf16>
    %41 = vector.shape_cast %38 : vector<324x128xbf16> to vector<1x324x128xbf16>
    tpu.vector_store %arg6[%c0_29, %c0_30, %c0_31], %41 {strides = array<i32>} : memref<1x324x128xbf16, #tpu.memory_space<vmem>>, vector<1x324x128xbf16>,
    %42 = vector.broadcast %0 : vector<324x1xf32> to vector<324x128xf32>
    %43 = arith.mulf %37, %42 : vector<324x128xf32>
    %cst_32 = arith.constant dense<0.000000e+00> : vector<128xf32>
    %44 = vector.multi_reduction <add>, %43, %cst_32 [0] : vector<324x128xf32> to vector<128xf32>
    %45 = vector.shape_cast %44 : vector<128xf32> to vector<1x128xf32>
    %c0_33 = arith.constant 0 : index
    %c0_34 = arith.constant 0 : index
    %c0_35 = arith.constant 0 : index
    %46 = vector.load %arg7[%c0_33, %c0_34, %c0_35] : memref<1x1x128xf32, #tpu.memory_space<vmem>>, vector<1x1x128xf32>
    %47 = vector.shape_cast %46 : vector<1x1x128xf32> to vector<1x128xf32>
    %48 = vector.shape_cast %45 : vector<1x128xf32> to vector<1x1x128xf32>
    tpu.vector_store %arg7[%c0_33, %c0_34, %c0_35], %48 {strides = array<i32>} : memref<1x1x128xf32, #tpu.memory_space<vmem>>, vector<1x1x128xf32>,
    %49 = arith.mulf %43, %43 : vector<324x128xf32>
    %cst_36 = arith.constant dense<0.000000e+00> : vector<128xf32>
    %50 = vector.multi_reduction <add>, %49, %cst_36 [0] : vector<324x128xf32> to vector<128xf32>
    %51 = vector.shape_cast %50 : vector<128xf32> to vector<1x128xf32>
    %c0_37 = arith.constant 0 : index
    %c0_38 = arith.constant 0 : index
    %c0_39 = arith.constant 0 : index
    %52 = vector.load %arg8[%c0_37, %c0_38, %c0_39] : memref<1x1x128xf32, #tpu.memory_space<vmem>>, vector<1x1x128xf32>
    %53 = vector.shape_cast %52 : vector<1x1x128xf32> to vector<1x128xf32>
    %54 = vector.shape_cast %51 : vector<1x128xf32> to vector<1x1x128xf32>
    tpu.vector_store %arg8[%c0_37, %c0_38, %c0_39], %54 {strides = array<i32>} : memref<1x1x128xf32, #tpu.memory_space<vmem>>, vector<1x1x128xf32>,
    return
  }
  func.func @transform_0(%arg0: i32) -> (i32, i32, i32) {
    %c0_i32 = arith.constant 0 : i32
    %c0_i32_0 = arith.constant 0 : i32
    %c0_i32_1 = arith.constant 0 : i32
    return %arg0, %c0_i32, %c0_i32_0 : i32, i32, i32
  }
  func.func @transform_1(%arg0: i32) -> (i32, i32) {
    %c0_i32 = arith.constant 0 : i32
    %c0_i32_0 = arith.constant 0 : i32
    %c0_i32_1 = arith.constant 0 : i32
    return %c0_i32, %c0_i32_0 : i32, i32
  }
  func.func @transform_2(%arg0: i32) -> (i32, i32) {
    %c0_i32 = arith.constant 0 : i32
    %c0_i32_0 = arith.constant 0 : i32
    %c0_i32_1 = arith.constant 0 : i32
    return %c0_i32, %c0_i32_0 : i32, i32
  }
  func.func @transform_3(%arg0: i32) -> (i32, i32, i32) {
    %c0_i32 = arith.constant 0 : i32
    %c0_i32_0 = arith.constant 0 : i32
    %c0_i32_1 = arith.constant 0 : i32
    %c0_i32_2 = arith.constant 0 : i32
    return %c0_i32, %c0_i32_0, %c0_i32_1 : i32, i32, i32
  }
  func.func @transform_4(%arg0: i32) -> (i32, i32) {
    %c0_i32 = arith.constant 0 : i32
    %c0_i32_0 = arith.constant 0 : i32
    %c0_i32_1 = arith.constant 0 : i32
    return %c0_i32, %c0_i32_0 : i32, i32
  }
  func.func @transform_5(%arg0: i32) -> (i32, i32, i32) {
    %c0_i32 = arith.constant 0 : i32
    %c0_i32_0 = arith.constant 0 : i32
    %c0_i32_1 = arith.constant 0 : i32
    return %arg0, %c0_i32, %c0_i32_0 : i32, i32, i32
  }
  func.func @transform_6(%arg0: i32) -> (i32, i32, i32) {
    %c0_i32 = arith.constant 0 : i32
    %c0_i32_0 = arith.constant 0 : i32
    %c0_i32_1 = arith.constant 0 : i32
    return %arg0, %c0_i32, %c0_i32_0 : i32, i32, i32
  }
  func.func @transform_7(%arg0: i32) -> (i32, i32, i32) {
    %c0_i32 = arith.constant 0 : i32
    %c0_i32_0 = arith.constant 0 : i32
    %c0_i32_1 = arith.constant 0 : i32
    return %arg0, %c0_i32, %c0_i32_0 : i32, i32, i32
  }
}

</mosaic_0001>

<bundles_post_ra>
// kernel: double_conv.3
= control target key start
LH: loop header
LB: loop body
LE: loop exit
PB: predicated region body
PF: predicated region fallthrough
CT: control target
= control target key end

     0   :  { %s7767_s24 = smov 0   ;;  %s10569_s0 = inlined_call_operand.vmem [shape: bf16[2,324,128], index: 0, kind: input, shape index: {}]   ;;  %s10570_s1 = inlined_call_operand.vmem [shape: f32[1,128], index: 1, kind: input, shape index: {}]   ;;  %s10571_s2 = inlined_call_operand.vmem [shape: f32[1,128], index: 2, kind: input, shape index: {}]   ;;  %s10572_s3 = inlined_call_operand.vmem [shape: bf16[3,384,128], index: 3, kind: input, shape index: {}]   ;;  %s10573_s4 = inlined_call_operand.vmem [shape: f32[324,1], index: 4, kind: input, shape index: {}]   ;;  %s10574_s5 = inlined_call_operand.vmem [shape: bf16[2,324,128], index: 5, kind: output, shape index: {0}]   ;;  %s10575_s6 = inlined_call_operand.vmem [shape: f32[2,1,128], index: 6, kind: output, shape index: {1}]   ;;  %s10576_s7 = inlined_call_operand.vmem [shape: f32[2,1,128], index: 7, kind: output, shape index: {2}]  }
   0x1 LB: > { %s6342_s25 = sadd.s32 4294967295, %s7722_s24   ;;  %p6346_p0 = scmp.ge.s32.totalorder %s7722_s24, 1  ;;  %s7722_s24 = sphi %s7767_s24, %s18_s24  }
   0x2   : > { %p242_p1 = scmp.lt.s32.totalorder %s7722_s24, 3 }
   0x4   : > { %p243_p2 = pnand %p6346_p0, %p242_p1 }
   0x6   : > { %246 = sbr.rel (%p243_p2) target bundleno = 999 (0x3e7), region = 40 }
   0xb   : > { %v299_v0 = vld [vmem:[%s10573_s4 + $0x10] sm:$0xff]  ;;  %v297_v1 = vld [vmem:[%s10573_s4] sm:$0xff]  ;;  %v7724_v2 = vmov 0   ;;  %v300_v3 = vld [vmem:[%s10573_s4 + $0x18] sm:$0xff]  ;;  %v10577_v5 = vmov 0.0   ;;  %vm7726_vm0 = vmmov 0  }
   0xc   : > { %7454 = vset.pattern.permute.xlu1 %v7724_v2  ;;  %824 = vst [vmem:[#allocation2] sm:$0xff] %v7724_v2  ;;  %825 = vst [vmem:[#allocation2 + $0x8] sm:$0xf] %v7724_v2  ;;  %7453 = vset.pattern.permute.xlu0 %v7724_v2  ;;  %v298_v4 = vld [vmem:[%s10573_s4 + $0x8] sm:$0xff]  ;;  %v301_v7 = vld [vmem:[%s10573_s4 + $0x20] sm:$0xff]  ;;  %p7988_p3 = scmp.lt.s32.totalorder %s6342_s25, 1 }
   0xd   : > { %827 = vst [vmem:[#allocation2 + $0x14] sm:$0xf] %v7724_v2  ;;  %828 = vst [vmem:[#allocation2 + $0x18] sm:$0xff] %v7724_v2  ;;  %569 = vperm.xlu1 %7454, %v299_v0   ;;  %559 = vperm.xlu0 %7453, %v297_v1   ;;  %v302_v6 = vld [vmem:[%s10573_s4 + $0x28] sm:$0xff]  ;;  %v304_v8 = vld [vmem:[%s10573_s4 + $0x38] sm:$0xff]  ;;  %vm1477_vm1 = vcmask 1043459  }
   0xe   : > { %829 = vst [vmem:[#allocation2 + $0x20] sm:$0xf] %v7724_v2  ;;  %830 = vst [vmem:[#allocation2 + $0x204] sm:$0xee] %v7724_v2  ;;  %2972 = vmatprep.subr.bf16.mxu0 %v7724_v2  ;;  %7125 = vmatprep.subr.bf16.mxu1 %v10577_v5  ;;  %v303_v9 = vld [vmem:[%s10573_s4 + $0x30] sm:$0xff]  ;;  %v306_v10 = vld [vmem:[%s10573_s4 + $0x48] sm:$0xff] }
   0xf   : > { %831 = vst [vmem:[#allocation2 + $0x20c] sm:$0xe] %v7724_v2  ;;  %833 = vst [vmem:[#allocation2 + $0x218] sm:$0xf] %v7724_v2  ;;  %v7455_v11 = vld [vmem:[%s10572_s3 + $0xf8] sm:$0xff]   ;;  %v305_v12 = vld [vmem:[%s10573_s4 + $0x40] sm:$0xff]  ;;  %7141 = vmatprep.mubr.msk.bf16.mxu1 %vm7726_vm0, %v10577_v5 }
  0x10   : > { %834 = vst [vmem:[#allocation2 + $0x21c] sm:$0xff] %v7724_v2  ;;  %835 = vst [vmem:[#allocation2 + $0x224] sm:$0xf] %v7724_v2  ;;  %2973 = vmatpush1.bf16.msra.mxu0 %v7455_v11  ;;  %v7456_v13 = vld [vmem:[%s10572_s3 + $0xf0] sm:$0xff]   ;;  %v308_v14 = vld [vmem:[%s10573_s4 + $0x58] sm:$0xff]  ;;  %s11067_s25 = smov (!%p7988_p3, %s6342_s25), 1 }
  0x11   : > { %574 = vperm.xlu1 %7454, %v300_v3   ;;  %564 = vperm.xlu0 %7453, %v298_v4   ;;  %v307_v15 = vld [vmem:[%s10573_s4 + $0x50] sm:$0xff]  ;;  %v7457_v16 = vld [vmem:[%s10572_s3 + $0xe8] sm:$0xff]   ;;  %v7462_v17 = vld [vmem:[%s10572_s3 + $0x178] sm:$0xff]   ;;  %s7441_s8 = smul.u32 164, %s11067_s25  ;;  %vm1478_vm2 = vsmask.f32 7950  ;;  %s292_s20 = scalar_lea.vmem %s10575_s6, %s11067_s25 }
  0x12   : > { %2974 = vmatprep.subr.bf16.mxu0 %v7724_v2  ;;  %v310_v18 = vld [vmem:[%s10573_s4 + $0x68] sm:$0xff]  ;;  %v309_v19 = vld [vmem:[%s10573_s4 + $0x60] sm:$0xff]  ;;  %7126 = vmatpush3.bf16.msra.mxu1 %v7462_v17  ;;  %v7464_v21 = vld [vmem:[%s10572_s3 + $0x170] sm:$0xff]   ;;  %vm1529_vm3 = vcmask 1042432   ;;  %vm1530_vm4 = vcmask 1046532   ;;  %vm1523_vm11 = vcmask 1041408   ;;  %s295_s23 = scalar_lea.vmem %s10576_s7, %s11067_s25 }
  0x13   : > { %v7458_v20 = vld [vmem:[%s10572_s3 + $0xe0] sm:$0xff]   ;;  %7127 = vmatprep.subr.bf16.mxu1 %v10577_v5  ;;  %v312_v22 = vld [vmem:[%s10573_s4 + $0x78] sm:$0xff]  ;;  %v311_v23 = vld [vmem:[%s10573_s4 + $0x70] sm:$0xff]  ;;  %s8028_s11 = scalar_lea.vmem %s10569_s0, %s7441_s8  ;;  %vm1023_vm5 = vsmask.f32 3328  ;;  %s10456_s18 = scalar_lea.vmem %s10574_s5, %s7441_s8 }
  0x14   : > { %2975 = vmatpush1.bf16.msra.mxu0 %v7456_v13  ;;  %v7459_v24 = vld [vmem:[%s10572_s3 + $0xd8] sm:$0xff]   ;;  %v7466_v25 = vld [vmem:[%s10572_s3 + $0x168] sm:$0xff]   ;;  %v313_v27 = vld [vmem:[%s10573_s4 + $0x80] sm:$0xff]  ;;  %vm1024_vm6 = vsmask.f32 7440 }
  0x15   : > { %584 = vperm.xlu1 %7454, %v302_v6   ;;  %579 = vperm.xlu0 %7453, %v301_v7   ;;  %v314_v26 = vld [vmem:[%s10573_s4 + $0x88] sm:$0xff]  ;;  %v7468_v28 = vld [vmem:[%s10572_s3 + $0x160] sm:$0xff]   ;;  %v7460_v29 = vld [vmem:[%s10572_s3 + $0xd0] sm:$0xff]   ;;  %vm2200_vm10 = vsmask.f32 4352 }
  0x16   : > { %2976 = vmatprep.subr.bf16.mxu0 %v7724_v2  ;;  %7128 = vmatpush3.bf16.msra.mxu1 %v7464_v21  ;;  %v316_v30 = vld [vmem:[%s10573_s4 + $0x98] sm:$0xff]  ;;  %v315_v31 = vld [vmem:[%s10573_s4 + $0x90] sm:$0xff]  ;;  %v7461_v33 = vld [vmem:[%s10572_s3 + $0xc8] sm:$0xff]   ;;  %vm1524_vm12 = vsmask.f32 1280 }
  0x17   : > { %7129 = vmatprep.subr.bf16.mxu1 %v10577_v5  ;;  %v7470_v32 = vld [vmem:[%s10572_s3 + $0x158] sm:$0xff]   ;;  %v318_v34 = vld [vmem:[%s10573_s4 + $0xa8] sm:$0xff]  ;;  %v317_v35 = vld [vmem:[%s10573_s4 + $0xa0] sm:$0xff]  ;;  %vm3401_vm14 = vsmask.f32 5376 }
  0x18   : > { %2977 = vmatpush1.bf16.msra.mxu0 %v7457_v16  ;;  %v7472_v36 = vld [vmem:[%s10572_s3 + $0x150] sm:$0xff]   ;;  %v7463_v37 = vld [vmem:[%s10572_s3 + $0xc0] sm:$0xff]   ;;  %v320_v38 = vld [vmem:[%s10573_s4 + $0xb8] sm:$0xff]  ;;  %vm4702_vm15 = vsmask.f32 7424 }
  0x19   : > { %594 = vperm.xlu1 %7454, %v304_v8   ;;  %589 = vperm.xlu0 %7453, %v303_v9   ;;  %v319_v39 = vld [vmem:[%s10573_s4 + $0xb0] sm:$0xff]  ;;  %v7465_v40 = vld [vmem:[%s10572_s3 + $0x138] sm:$0xff]   ;;  %v7474_v41 = vld [vmem:[%s10572_s3 + $0x148] sm:$0xff]  }
  0x1a   : > { %2978 = vmatprep.subr.bf16.mxu0 %v7724_v2  ;;  %7130 = vmatpush3.bf16.msra.mxu1 %v7466_v25  ;;  %v322_v42 = vld [vmem:[%s10573_s4 + $0xc8] sm:$0xff]  ;;  %v321_v43 = vld [vmem:[%s10573_s4 + $0xc0] sm:$0xff]  ;;  %v7467_v45 = vld [vmem:[%s10572_s3 + $0x130] sm:$0xff]  }
  0x1b   : > { %7131 = vmatprep.subr.bf16.mxu1 %v10577_v5  ;;  %v7476_v44 = vld [vmem:[%s10572_s3 + $0x140] sm:$0xff]   ;;  %v324_v46 = vld [vmem:[%s10573_s4 + $0xd8] sm:$0xff]  ;;  %v323_v47 = vld [vmem:[%s10573_s4 + $0xd0] sm:$0xff] }
  0x1c   : > { %2979 = vmatpush1.bf16.msra.mxu0 %v7458_v20  ;;  %v7469_v48 = vld [vmem:[%s10572_s3 + $0x128] sm:$0xff]   ;;  %v325_v50 = vld [vmem:[%s10573_s4 + $0xe0] sm:$0xff]  ;;  %v328_v52 = vld [vmem:[%s10573_s4 + $0xf8] sm:$0xff] }
  0x1d   : > { %604 = vperm.xlu1 %7454, %v306_v10   ;;  %599 = vperm.xlu0 %7453, %v305_v12   ;;  %v326_v49 = vld [vmem:[%s10573_s4 + $0xe8] sm:$0xff]  ;;  %v7471_v51 = vld [vmem:[%s10572_s3 + $0x120] sm:$0xff]   ;;  %v327_v53 = vld [vmem:[%s10573_s4 + $0xf0] sm:$0xff] }
  0x1e   : > { %2980 = vmatprep.subr.bf16.mxu0 %v7724_v2  ;;  %7132 = vmatpush3.bf16.msra.mxu1 %v7468_v28  ;;  %v7473_v54 = vld [vmem:[%s10572_s3 + $0x118] sm:$0xff]   ;;  %v330_v55 = vld [vmem:[%s10573_s4 + $0x108] sm:$0xff]  ;;  %v329_v56 = vld [vmem:[%s10573_s4 + $0x100] sm:$0xff] }
  0x1f   : > { %7133 = vmatprep.subr.bf16.mxu1 %v10577_v5  ;;  %v7475_v57 = vld [vmem:[%s10572_s3 + $0x110] sm:$0xff]   ;;  %v332_v58 = vld [vmem:[%s10573_s4 + $0x118] sm:$0xff]  ;;  %v7477_v60 = vld [vmem:[%s10572_s3 + $0x108] sm:$0xff]  }
  0x20   : > { %2981 = vmatpush1.bf16.msra.mxu0 %v7459_v24  ;;  %v331_v59 = vld [vmem:[%s10573_s4 + $0x110] sm:$0xff]  ;;  %v334_v61 = vld [vmem:[%s10573_s4 + $0x128] sm:$0xff]  ;;  %v333_v62 = vld [vmem:[%s10573_s4 + $0x120] sm:$0xff] }
  0x21   : > { %614 = vperm.xlu1 %7454, %v308_v14   ;;  %609 = vperm.xlu0 %7453, %v307_v15   ;;  %v7482_v63 = vld [vmem:[%s10572_s3 + $0x100] sm:$0xff]   ;;  %v336_v0 = vld [vmem:[%s10573_s4 + $0x138] sm:$0xff]  ;;  %v335_v1 = vld [vmem:[%s10573_s4 + $0x130] sm:$0xff] }
  0x22   : > { %2982 = vmatprep.subr.bf16.mxu0 %v7724_v2  ;;  %7134 = vmatpush3.bf16.msra.mxu1 %v7470_v32  ;;  %v7000_v3 = vld [vmem:[%s8028_s11 + $0x8] sm:$0xff]   ;;  %v6821_v6 = vld [vmem:[%s8028_s11] sm:$0xff]   ;;  %v7001_v9 = vld [vmem:[%s8028_s11 + $0x10] sm:$0xff]  }
  0x23   : > { %7135 = vmatprep.subr.bf16.mxu1 %v10577_v5  ;;  %v6826_v4 = vunpack.c.l.bf16 %v7000_v3  ;;  %v8035_v7 = vld [vmem:[%s10570_s1] ss:$0 sm:$0xff]  ;;  %v6827_v8 = vunpack.c.h.bf16 %v7000_v3  ;;  %v7002_v10 = vld [vmem:[%s8028_s11 + $0x18] sm:$0xff]   ;;  %v6822_v11 = vunpack.c.l.bf16 %v6821_v6  ;;  %v6823_v12 = vunpack.c.h.bf16 %v6821_v6  ;;  %v7004_v15 = vld [vmem:[%s8028_s11 + $0x28] sm:$0xff]  }
  0x24   : > { %2983 = vmatpush1.bf16.msra.mxu0 %v7460_v29  ;;  %v7003_v13 = vld [vmem:[%s8028_s11 + $0x20] sm:$0xff]   ;;  %v6835_v20 = vunpack.c.h.bf16 %v7002_v10  ;;  %v7005_v21 = vld [vmem:[%s8028_s11 + $0x30] sm:$0xff]   ;;  %v6842_v28 = vunpack.c.l.bf16 %v7004_v15  ;;  %v7006_v29 = vld [vmem:[%s8028_s11 + $0x38] sm:$0xff]  }
  0x25   : > { %624 = vperm.xlu1 %7454, %v310_v18   ;;  %619 = vperm.xlu0 %7453, %v309_v19   ;;  %v429_v14 = vmul.f32 %v6826_v4, %v8035_v7  ;;  %v8045_v16 = vld [vmem:[%s10571_s2] ss:$0 sm:$0xff]  ;;  %v430_v17 = vmul.f32 %v6827_v8, %v8035_v7  ;;  %v6831_v18 = vunpack.c.h.bf16 %v7001_v9  ;;  %v6830_v19 = vunpack.c.l.bf16 %v7001_v9  ;;  %vm8237_vm7 = vmand %vm1477_vm1, %vm1478_vm2 }
  0x26   : > { %2984 = vmatprep.subr.bf16.mxu0 %v7724_v2  ;;  %7136 = vmatpush3.bf16.msra.mxu1 %v7472_v36  ;;  %v6838_v24 = vunpack.c.l.bf16 %v7003_v13  ;;  %v427_v25 = vmul.f32 %v6822_v11, %v8035_v7  ;;  %v6846_v32 = vunpack.c.l.bf16 %v7005_v21  ;;  %v434_v36 = vmul.f32 %v6835_v20, %v8035_v7  ;;  %v7011_v20 = vld [vmem:[%s8028_s11 + $0x60] sm:$0xff]   ;;  %vm8258_vm8 = vmor %vm1529_vm3, %vm1530_vm4 }
  0x27   : > { %7137 = vmatprep.subr.bf16.mxu1 %v10577_v5  ;;  %vm8270_vm9 = vmor %vm1023_vm5, %vm1024_vm6 }
  0x28   : > { %2985 = vmatpush1.bf16.msra.mxu0 %v7461_v33  ;;  %v8056_v33 = vadd.f32 %v8045_v16, %v430_v17  ;;  %vm9189_vm13 = vmand %vm1523_vm11, %vm1524_vm12 }
  0x29   : > { %634 = vperm.xlu1 %7454, %v312_v22   ;;  %629 = vperm.xlu0 %7453, %v311_v23   ;;  %v6834_v22 = vunpack.c.l.bf16 %v7002_v10  ;;  %v6839_v23 = vunpack.c.h.bf16 %v7003_v13  ;;  %v7009_v13 = vld [vmem:[%s8028_s11 + $0x50] sm:$0xff]  }
  0x2a   : > { %2986 = vmatprep.subr.bf16.mxu0 %v7724_v2  ;;  %7138 = vmatpush3.bf16.msra.mxu1 %v7474_v41  ;;  %v8065_v41 = vadd.f32 %v8045_v16, %v427_v25  ;;  %v7012_v25 = vld [vmem:[%s8028_s11 + $0x68] sm:$0xff]  }
  0x2b   : > { %7139 = vmatprep.subr.bf16.mxu1 %v10577_v5 }
  0x2c   : > { %2987 = vmatpush1.bf16.msra.mxu0 %v7463_v37  ;;  %v433_v37 = vmul.f32 %v6834_v22, %v8035_v7 }
  0x2d   : > { %644 = vperm.xlu1 %7454, %v314_v26   ;;  %639 = vperm.xlu0 %7453, %v313_v27   ;;  %v428_v26 = vmul.f32 %v6823_v12, %v8035_v7  ;;  %v6843_v27 = vunpack.c.h.bf16 %v7004_v15 }
  0x2e   : > { %2988 = vmatprep.subr.bf16.mxu0 %v7724_v2  ;;  %7140 = vmatpush3.bf16.msra.mxu1 %v7476_v44  ;;  %v437_v44 = vmul.f32 %v6842_v28, %v8035_v7  ;;  %v6862_v28 = vunpack.c.l.bf16 %v7009_v13 }
  0x2f   : > { %3903 = vmatprep.subr.bf16.mxu1 %v7724_v2 }
  0x30   : > { %2989 = vmatpush2.bf16.msra.mxu0 %v7465_v40  ;;  %v6851_v40 = vunpack.c.h.bf16 %v7006_v29 }
  0x31   : > { %654 = vperm.xlu1 %7454, %v316_v30   ;;  %649 = vperm.xlu0 %7453, %v315_v31   ;;  %v8053_v30 = vadd.f32 %v8045_v16, %v429_v14  ;;  %v6847_v31 = vunpack.c.h.bf16 %v7005_v21  ;;  %v7010_v14 = vld [vmem:[%s8028_s11 + $0x58] sm:$0xff]  }
  0x32   : > { %2990 = vmatprep.subr.bf16.mxu0 %v7724_v2 }
  0x34   : > { %2991 = vmatpush2.bf16.msra.mxu0 %v7467_v45  ;;  %v518_v45 = vmax.f32 %v8053_v30, 0.0 }
  0x35   : > { %664 = vperm.xlu1 %7454, %v318_v34   ;;  %659 = vperm.xlu0 %7453, %v317_v35   ;;  %v432_v34 = vmul.f32 %v6831_v18, %v8035_v7  ;;  %v431_v35 = vmul.f32 %v6830_v19, %v8035_v7 }
  0x36   : > { %2992 = vmatprep.subr.bf16.mxu0 %v7724_v2 }
  0x38   : > { %2993 = vmatpush2.bf16.msra.mxu0 %v7469_v48  ;;  %v6850_v48 = vunpack.c.l.bf16 %v7006_v29  ;;  %v6867_v29 = vunpack.c.h.bf16 %v7010_v14 }
  0x39   : > { %674 = vperm.xlu1 %7454, %v320_v38   ;;  %669 = vperm.xlu0 %7453, %v319_v39   ;;  %v436_v38 = vmul.f32 %v6839_v23, %v8035_v7  ;;  %v435_v39 = vmul.f32 %v6838_v24, %v8035_v7 }
  0x3a   : > { %2994 = vmatprep.subr.bf16.mxu0 %v7724_v2 }
  0x3c   : > { %2995 = vmatpush2.bf16.msra.mxu0 %v7471_v51  ;;  %v8080_v51 = vadd.f32 %v8045_v16, %v431_v35  ;;  %v6871_v35 = vunpack.c.h.bf16 %v7011_v20 }
  0x3d   : > { %684 = vperm.xlu1 %7454, %v322_v42   ;;  %679 = vperm.xlu0 %7453, %v321_v43   ;;  %v8068_v42 = vadd.f32 %v8045_v16, %v428_v26  ;;  %v438_v43 = vmul.f32 %v6843_v27, %v8035_v7  ;;  %v6863_v27 = vunpack.c.h.bf16 %v7009_v13 }
  0x3e   : > { %2996 = vmatprep.subr.bf16.mxu0 %v7724_v2  ;;  %v520_v4 = vmax.f32 %v8080_v51, 0.0 }
  0x40   : > { %2997 = vmatpush2.bf16.msra.mxu0 %v7473_v54  ;;  %v8087_v54 = vadd.f32 %v8045_v16, %v433_v37 }
  0x41   : > { %694 = vperm.xlu1 %7454, %v324_v46   ;;  %689 = vperm.xlu0 %7453, %v323_v47   ;;  %v440_v46 = vmul.f32 %v6847_v31, %v8035_v7  ;;  %v439_v47 = vmul.f32 %v6846_v32, %v8035_v7  ;;  %v7013_v31 = vld [vmem:[%s8028_s11 + $0x70] sm:$0xff]  }
  0x42   : > { %2998 = vmatprep.subr.bf16.mxu0 %v7724_v2  ;;  %v522_v9 = vmax.f32 %v8087_v54, 0.0 }
  0x44   : > { %2999 = vmatpush2.bf16.msra.mxu0 %v7475_v57  ;;  %v442_v57 = vmul.f32 %v6851_v40, %v8035_v7  ;;  %v6874_v40 = vunpack.c.l.bf16 %v7012_v25 }
  0x45   : > { %704 = vperm.xlu1 %7454, %v326_v49   ;;  %699 = vperm.xlu0 %7453, %v325_v50   ;;  %v519_v49 = vmax.f32 %v8056_v33, 0.0  ;;  %v8077_v50 = vadd.f32 %v8045_v16, %v432_v34  ;;  %v6866_v34 = vunpack.c.l.bf16 %v7010_v14 }
  0x46   : > { %3000 = vmatprep.subr.bf16.mxu0 %v7724_v2  ;;  %v8119_v12 = vadd.f32 %v8045_v16, %v442_v57  ;;  %v447_v57 = vmul.f32 %v6862_v28, %v8035_v7 }
  0x47   : > { %v521_v3 = vmax.f32 %v8077_v50, 0.0 }
  0x48   : > { %3001 = vmatpush2.bf16.msra.mxu0 %v7477_v60  ;;  %v8099_v60 = vadd.f32 %v8045_v16, %v438_v43 }
  0x49   : > { %714 = vperm.xlu1 %7454, %v328_v52   ;;  %709 = vperm.xlu0 %7453, %v327_v53   ;;  %v8083_v52 = vadd.f32 %v8045_v16, %v434_v36  ;;  %v7007_v53 = vld [vmem:[%s8028_s11 + $0x40] sm:$0xff]   ;;  %v6870_v36 = vunpack.c.l.bf16 %v7011_v20 }
  0x4a   : > { %3002 = vmatprep.subr.bf16.mxu0 %v7724_v2  ;;  %v337_v2 = vld [vmem:[%s10573_s4 + $0x140] sm:$0xf]  ;;  %v6854_v8 = vunpack.c.l.bf16 %v7007_v53 }
  0x4b   : > { %v523_v6 = vmax.f32 %v8083_v52, 0.0  ;;  %v451_v13 = vmul.f32 %v6870_v36, %v8035_v7 }
  0x4c   : > { %3003 = vmatpush2.bf16.msra.mxu0 %v7482_v63  ;;  %v8108_v63 = vadd.f32 %v8045_v16, %v439_v47  ;;  %v443_v26 = vmul.f32 %v6854_v8, %v8035_v7  ;;  %v6878_v47 = vunpack.c.l.bf16 %v7013_v31  ;;  %v452_v8 = vmul.f32 %v6871_v35, %v8035_v7 }
  0x4d   : > { %724 = vperm.xlu1 %7454, %v330_v55   ;;  %719 = vperm.xlu0 %7453, %v329_v56   ;;  %v8090_v55 = vadd.f32 %v8045_v16, %v436_v38  ;;  %v8093_v56 = vadd.f32 %v8045_v16, %v435_v39  ;;  %v6875_v39 = vunpack.c.h.bf16 %v7012_v25  ;;  %v8169_v35 = vadd.f32 %v8045_v16, %v447_v57 }
  0x4e   : > { %7225 = vmatprep.subr.bf16.mxu0 %v10577_v5 }
  0x4f   : > { %v525_v10 = vmax.f32 %v8090_v55, 0.0  ;;  %v454_v20 = vmul.f32 %v6875_v39, %v8035_v7  ;;  %v8181_v39 = vadd.f32 %v8045_v16, %v451_v13 }
  0x51   : > { %734 = vperm.xlu1 %7454, %v332_v58   ;;  %729 = vperm.xlu0 %7453, %v331_v59   ;;  %v516_v58 = vmax.f32 %v8065_v41, 0.0  ;;  %v517_v59 = vmax.f32 %v8068_v42, 0.0 }
  0x55   : > { %744 = vperm.xlu1 %7454, %v334_v61   ;;  %739 = vperm.xlu0 %7453, %v333_v62   ;;  %v8102_v61 = vadd.f32 %v8045_v16, %v437_v44  ;;  %v8105_v62 = vadd.f32 %v8045_v16, %v440_v46  ;;  %v6879_v46 = vunpack.c.h.bf16 %v7013_v31 }
  0x57   : > { %v456_v25 = vmul.f32 %v6879_v46, %v8035_v7  ;;  %v1480_v46 = vld [vmem:[#allocation2 + $0x1c] sm:$0x8]  ;;  %v10783_v54 = vmax.f32 %v8102_v61, 0.0 }
  0x59   : > { %754 = vperm.xlu1 %7454, %v336_v0   ;;  %749 = vperm.xlu0 %7453, %v335_v1   ;;  %v441_v0 = vmul.f32 %v6850_v48, %v8035_v7  ;;  %v6855_v1 = vunpack.c.h.bf16 %v7007_v53  ;;  %v8143_v48 = vadd.f32 %v8045_v16, %v443_v26  ;;  %v448_v53 = vmul.f32 %v6863_v27, %v8035_v7 }
  0x5a   : > { %v455_v26 = vmul.f32 %v6878_v47, %v8035_v7  ;;  %v8186_v47 = vadd.f32 %v8045_v16, %v454_v20 }
  0x5b   : > { %v8129_v23 = vadd.f32 %v8045_v16, %v441_v0  ;;  %v444_v24 = vmul.f32 %v6855_v1, %v8035_v7  ;;  %v450_v0 = vmul.f32 %v6867_v29, %v8035_v7  ;;  %v7014_v1 = vld [vmem:[%s8028_s11 + $0x78] sm:$0xff]  }
  0x5c   : > { %v6883_v14 = vunpack.c.h.bf16 %v7014_v1  ;;  %v6882_v28 = vunpack.c.l.bf16 %v7014_v1  ;;  %v8196_v1 = vadd.f32 %v8045_v16, %v456_v25 }
  0x5d   : > { %759 = vperm.xlu0 %7453, %v337_v2   ;;  %v7008_v2 = vld [vmem:[%s8028_s11 + $0x48] sm:$0xff]   ;;  %v8140_v44 = vadd.f32 %v8045_v16, %v444_v24  ;;  %v453_v24 = vmul.f32 %v6874_v40, %v8035_v7  ;;  %v8172_v36 = vadd.f32 %v8045_v16, %v450_v0 }
  0x5e   : > { %v6859_v18 = vunpack.c.h.bf16 %v7008_v2  ;;  %v6858_v19 = vunpack.c.l.bf16 %v7008_v2  ;;  %v449_v2 = vmul.f32 %v6866_v34, %v8035_v7  ;;  %v458_v27 = vmul.f32 %v6883_v14, %v8035_v7 }
  0x5f   : > { %v8166_v34 = vadd.f32 %v8045_v16, %v448_v53  ;;  %v8189_v53 = vadd.f32 %v8045_v16, %v453_v24  ;;  %v457_v13 = vmul.f32 %v6882_v28, %v8035_v7 }
  0x60   : > { %v446_v37 = vmul.f32 %v6859_v18, %v8035_v7  ;;  %v445_v38 = vmul.f32 %v6858_v19, %v8035_v7 }
  0x62   : > { %v8153_v18 = vadd.f32 %v8045_v16, %v446_v37  ;;  %v8156_v19 = vadd.f32 %v8045_v16, %v445_v38  ;;  %v8175_v37 = vadd.f32 %v8045_v16, %v449_v2  ;;  %v8178_v38 = vadd.f32 %v8045_v16, %v452_v8 }
  0x63   : > { %v8199_v2 = vadd.f32 %v8045_v16, %v455_v26  ;;  %v8202_v8 = vadd.f32 %v8045_v16, %v458_v27  ;;  %v8229_v27 = vadd.f32 %v8045_v16, %v457_v13 }
  0x88   : > { %v8191_v57 = vpop.permute.xlu1 %569  ;;  %v8193_v0 = vpop.permute.xlu0 %559 }
  0x89   : > { %10763 = vst [vmem:[#allocation3_spill] sm:$0xff] %v8191_v57  ;;  %10764 = vst [vmem:[#allocation4_spill] sm:$0xff] %v8193_v0  ;;  %v764_v14 = vmul.f32 %v8191_v57, %v518_v45  ;;  %v762_v20 = vmul.f32 %v8193_v0, %v516_v58 }
  0x8b   : > { %v8217_v28 = vpack.c.bf16 %v764_v14, %v764_v14  ;;  %v6738_v30 = vpack.c.bf16 %v762_v20, %v762_v20 }
  0x8c   : > { %v8221_v58 = vpop.permute.xlu1 %574  ;;  %v8223_v24 = vpop.permute.xlu0 %564 }
  0x8d   : > { %10765 = vst [vmem:[#allocation5_spill] sm:$0xff] %v8221_v58  ;;  %10766 = vst [vmem:[#allocation6_spill] sm:$0xff] %v8223_v24  ;;  %v1046_v14 = vshll.u32 %v8217_v28, 16  ;;  %v1050_v20 = vshrl.u32 %v8217_v28, 16  ;;  %v1537_v41 = vrot.slane %v8217_v28, 5  ;;  %v1027_v45 = vshll.u32 %v6738_v30, 16 }
  0x8e   : > { %984 = vst [vmem:[#allocation2 + $0x3c] sm:$0xf] %v8217_v28  ;;  %982 = vst [vmem:[#allocation2 + $0x24] sm:$0xf] %v6738_v30  ;;  %v1030_v26 = vshrl.u32 %v6738_v30, 16  ;;  %v1532_v16 = vrot.slane %v6738_v30, 5  ;;  %v765_v13 = vmul.f32 %v8221_v58, %v519_v49  ;;  %v763_v7 = vmul.f32 %v8223_v24, %v517_v59 }
  0x8f   : > { %v8247_v28 = vrot.slane %v1046_v14, 5  ;;  %v1052_v40 = vrot.slane %v1050_v20, 4  ;;  %v1539_v5 = vrot.slane %v1537_v41, 4  ;;  %v1029_v31 = vrot.slane %v1027_v45, 5 }
  0x90   : > { %v1032_v29 = vrot.slane %v1030_v26, 4  ;;  %v1533_v43 = vrot.slane %v1532_v16, 4  ;;  %1696 = vst [vmem:[#allocation2 + $0x20] sm:$0x8] %v1532_v16  ;;  %v6741_v32 = vpack.c.bf16 %v765_v13, %v765_v13  ;;  %v6739_v22 = vpack.c.bf16 %v763_v7, %v763_v7  ;;  %v8249_v21 = vpop.permute.xlu1 %584  ;;  %v8251_v30 = vpop.permute.xlu0 %579 }
  0x91   : > { %10769 = vst [vmem:[#allocation7_spill] sm:$0xff] %v8249_v21  ;;  %10770 = vst [vmem:[#allocation8_spill] sm:$0xff] %v8251_v30  ;;  %v1053_v33 = vor.u32 %v1052_v40, %v8247_v28  ;;  %v1481_v42 = vsel %vm8237_vm7, %v1029_v31, %v1480_v46  ;;  %v767_v59 = vmul.f32 %v8249_v21, %v521_v3 }
  0x92   : > { %v766_v26 = vmul.f32 %v8251_v30, %v520_v4  ;;  %v1033_v7 = vor.u32 %v1032_v29, %v1029_v31  ;;  %1482 = vst [vmem:[#allocation2 + $0x1c] sm:$0x8] %v1481_v42  ;;  %985 = vst [vmem:[#allocation2 + $0x48] sm:$0xf] %v6741_v32  ;;  %v1056_v40 = vshll.u32 %v6741_v32, 16  ;;  %v1060_v25 = vshrl.u32 %v6741_v32, 16 }
  0x93   : > { %v1540_v46 = vrot.slane %v6741_v32, 5  ;;  %983 = vst [vmem:[#allocation2 + $0x30] sm:$0xf] %v6739_v22  ;;  %v1054_v45 = vrot.slane %v1053_v33, 4  ;;  %v1036_v50 = vshll.u32 %v6739_v22, 16  ;;  %v1040_v3 = vshrl.u32 %v6739_v22, 16 }
  0x94   : > { %v1534_v20 = vrot.slane %v6739_v22, 5  ;;  %v1034_v51 = vrot.slane %v1033_v7, 4  ;;  %v1058_v16 = vrot.slane %v1056_v40, 5  ;;  %v1062_v4 = vrot.slane %v1060_v25, 4  ;;  %v8276_v31 = vpop.permute.xlu1 %594  ;;  %v8278_v32 = vpop.permute.xlu0 %589 }
  0x95   : > { %v1541_v29 = vsel %vm8258_vm8, %v1539_v5, %v1540_v46  ;;  %10775 = vst [vmem:[#allocation9_spill] sm:$0xff] %v8276_v31  ;;  %10776 = vst [vmem:[#allocation10_spill] sm:$0xff] %v8278_v32  ;;  %v1542_v13 = vrot.slane %v1540_v46, 4  ;;  %v1038_v33 = vrot.slane %v1036_v50, 5  ;;  %v1042_v42 = vrot.slane %v1040_v3, 4 }
  0x96   : > { %1699 = vst [vmem:[#allocation2 + $0x44] sm:$0xf] %v1541_v29  ;;  %v1535_v17 = vsel %vm8258_vm8, %v1533_v43, %v1534_v20  ;;  %v1059_v22 = vsel %vm8270_vm9, %v1054_v45, %v1058_v16  ;;  %v1063_v7 = vor.u32 %v1062_v4, %v1058_v16  ;;  %v1536_v40 = vrot.slane %v1534_v20, 4 }
  0x97   : > { %1697 = vst [vmem:[#allocation2 + $0x2c] sm:$0xf] %v1535_v17  ;;  %v6743_v25 = vpack.c.bf16 %v767_v59, %v767_v59  ;;  %1485 = vst [vmem:[#allocation2 + $0x40] sm:$0xf] %v1059_v22  ;;  %v1039_v5 = vsel %vm8270_vm9, %v1034_v51, %v1038_v33  ;;  %v1043_v15 = vor.u32 %v1042_v42, %v1038_v33 }
  0x98   : > { %v6742_v11 = vpack.c.bf16 %v766_v26, %v766_v26  ;;  %v769_v46 = vmul.f32 %v8276_v31, %v523_v6  ;;  %v1064_v50 = vrot.slane %v1063_v7, 4  ;;  %1483 = vst [vmem:[#allocation2 + $0x28] sm:$0xf] %v1039_v5  ;;  %v1538_v43 = vsel %vm8258_vm8, %v1536_v40, %v1537_v41  ;;  %v8291_v17 = vpop.permute.xlu1 %604  ;;  %v8293_v59 = vpop.permute.xlu0 %599 }
  0x99   : > { %987 = vst [vmem:[#allocation2 + $0x60] sm:$0xf] %v6743_v25  ;;  %v1076_v45 = vshll.u32 %v6743_v25, 16  ;;  %v1080_v3 = vshrl.u32 %v6743_v25, 16  ;;  %10777 = vst [vmem:[#allocation11_spill] sm:$0xff] %v8291_v17  ;;  %v1044_v20 = vrot.slane %v1043_v15, 4 }
  0x9a   : > { %10778 = vst [vmem:[#allocation12_spill] sm:$0xff] %v8293_v59  ;;  %1698 = vst [vmem:[#allocation2 + $0x38] sm:$0xf] %v1538_v43  ;;  %v1546_v51 = vrot.slane %v6743_v25, 5  ;;  %v1066_v26 = vshll.u32 %v6742_v11, 16  ;;  %v1070_v52 = vshrl.u32 %v6742_v11, 16  ;;  %v6745_v29 = vpack.c.bf16 %v769_v46, %v769_v46 }
  0x9b   : > { %986 = vst [vmem:[#allocation2 + $0x54] sm:$0xf] %v6742_v11  ;;  %v1078_v16 = vrot.slane %v1076_v45, 5  ;;  %v1082_v6 = vrot.slane %v1080_v3, 4  ;;  %v1543_v4 = vrot.slane %v6742_v11, 5  ;;  %v1049_v41 = vsel %vm8270_vm9, %v1044_v20, %v8247_v28 }
  0x9c   : > { %v1548_v33 = vrot.slane %v1546_v51, 4  ;;  %v1068_v42 = vrot.slane %v1066_v26, 5  ;;  %v1072_v22 = vrot.slane %v1070_v52, 4  ;;  %1484 = vst [vmem:[#allocation2 + $0x34] sm:$0xf] %v1049_v41  ;;  %v1096_v25 = vshll.u32 %v6745_v29, 16  ;;  %v8300_v5 = vpop.permute.xlu1 %614  ;;  %v8304_v45 = vpop.permute.xlu0 %609 }
  0x9d   : > { %v1083_v7 = vor.u32 %v1082_v6, %v1078_v16  ;;  %v1544_v15 = vsel %vm8258_vm8, %v1542_v13, %v1543_v4  ;;  %v1545_v40 = vrot.slane %v1543_v4, 4  ;;  %989 = vst [vmem:[#allocation2 + $0x78] sm:$0xf] %v6745_v29  ;;  %10779 = vst [vmem:[#allocation13_spill] sm:$0xff] %v8300_v5  ;;  %v1100_v43 = vshrl.u32 %v6745_v29, 16 }
  0x9e   : > { %v1069_v11 = vsel %vm8270_vm9, %v1064_v50, %v1068_v42  ;;  %v1073_v46 = vor.u32 %v1072_v22, %v1068_v42  ;;  %1700 = vst [vmem:[#allocation2 + $0x50] sm:$0xf] %v1544_v15  ;;  %v1552_v28 = vrot.slane %v6745_v29, 5  ;;  %10780 = vst [vmem:[#allocation14_spill] sm:$0xff] %v8304_v45  ;;  %v8308_v13 = vrot.slane %v1096_v25, 5 }
  0x9f   : > { %v1084_v3 = vrot.slane %v1083_v7, 4  ;;  %1486 = vst [vmem:[#allocation2 + $0x4c] sm:$0xf] %v1069_v11  ;;  %v1547_v20 = vsel %vm8258_vm8, %v1545_v40, %v1546_v51  ;;  %v768_v26 = vmul.f32 %v8278_v32, %v522_v9  ;;  %v1102_v50 = vrot.slane %v1100_v43, 4 }
  0xa0   : > { %v1074_v52 = vrot.slane %v1073_v46, 4  ;;  %1701 = vst [vmem:[#allocation2 + $0x5c] sm:$0xf] %v1547_v20  ;;  %v1554_v6 = vrot.slane %v1552_v28, 4  ;;  %v771_v4 = vmul.f32 %v8291_v17, %v525_v10  ;;  %v10781_v41 = vmax.f32 %v8093_v56, 0.0  ;;  %v8325_v7 = vpop.permute.xlu1 %624 }
  0xa1   : > { %v6744_v29 = vpack.c.bf16 %v768_v26, %v768_v26  ;;  %v10782_v51 = vmax.f32 %v8099_v60, 0.0  ;;  %v772_v9 = vmul.f32 %v8304_v45, %v10783_v54  ;;  %10784 = vst [vmem:[#allocation15_spill] sm:$0xff] %v8325_v7  ;;  %v1103_v10 = vor.u32 %v1102_v50, %v8308_v13 }
  0xa2   : > { %v770_v42 = vmul.f32 %v8293_v59, %v10781_v41  ;;  %v1079_v55 = vsel %vm8270_vm9, %v1074_v52, %v1078_v16  ;;  %v6747_v15 = vpack.c.bf16 %v771_v4, %v771_v4  ;;  %v10785_v56 = vmax.f32 %v8105_v62, 0.0 }
  0xa3   : > { %v773_v22 = vmul.f32 %v8300_v5, %v10782_v51  ;;  %1487 = vst [vmem:[#allocation2 + $0x58] sm:$0xf] %v1079_v55  ;;  %988 = vst [vmem:[#allocation2 + $0x6c] sm:$0xf] %v6744_v29  ;;  %v1086_v60 = vshll.u32 %v6744_v29, 16  ;;  %v1090_v25 = vshrl.u32 %v6744_v29, 16 }
  0xa4   : > { %v775_v40 = vmul.f32 %v8325_v7, %v10785_v56  ;;  %v1549_v11 = vrot.slane %v6744_v29, 5  ;;  %v6746_v61 = vpack.c.bf16 %v770_v42, %v770_v42  ;;  %v1104_v46 = vrot.slane %v1103_v10, 4  ;;  %991 = vst [vmem:[#allocation2 + $0x90] sm:$0xf] %v6747_v15 }
  0xa5   : > { %v1116_v43 = vshll.u32 %v6747_v15, 16  ;;  %v1120_v20 = vshrl.u32 %v6747_v15, 16  ;;  %v1558_v26 = vrot.slane %v6747_v15, 5  ;;  %v1088_v41 = vrot.slane %v1086_v60, 5 }
  0xa6   : > { %v1092_v16 = vrot.slane %v1090_v25, 4  ;;  %v1550_v52 = vsel %vm8258_vm8, %v1548_v33, %v1549_v11  ;;  %v1551_v50 = vrot.slane %v1549_v11, 4  ;;  %990 = vst [vmem:[#allocation2 + $0x84] sm:$0xf] %v6746_v61  ;;  %v1106_v54 = vshll.u32 %v6746_v61, 16 }
  0xa7   : > { %1702 = vst [vmem:[#allocation2 + $0x68] sm:$0xf] %v1550_v52  ;;  %v1118_v62 = vrot.slane %v1116_v43, 5  ;;  %v1122_v4 = vrot.slane %v1120_v20, 4  ;;  %v1560_v51 = vrot.slane %v1558_v26, 4  ;;  %v1089_v29 = vsel %vm8270_vm9, %v1084_v3, %v1088_v41  ;;  %v8341_v52 = vpop.permute.xlu0 %619 }
  0xa8   : > { %v1093_v42 = vor.u32 %v1092_v16, %v1088_v41  ;;  %v1553_v55 = vsel %vm8258_vm8, %v1551_v50, %v1552_v28  ;;  %v1110_v10 = vshrl.u32 %v6746_v61, 16  ;;  %1488 = vst [vmem:[#allocation2 + $0x64] sm:$0xf] %v1089_v29  ;;  %v1108_v56 = vrot.slane %v1106_v54, 5  ;;  %10786 = vst [vmem:[#allocation16_spill] sm:$0xff] %v8341_v52 }
  0xa9   : > { %1703 = vst [vmem:[#allocation2 + $0x74] sm:$0xf] %v1553_v55  ;;  %v1123_v15 = vor.u32 %v1122_v4, %v1118_v62  ;;  %v1555_v33 = vrot.slane %v6746_v61, 5  ;;  %v6749_v60 = vpack.c.bf16 %v773_v22, %v773_v22  ;;  %v6748_v43 = vpack.c.bf16 %v772_v9, %v772_v9 }
  0xaa   : > { %v1094_v25 = vrot.slane %v1093_v42, 4  ;;  %v1112_v11 = vrot.slane %v1110_v10, 4  ;;  %v8339_v20 = vpack.c.bf16 %v775_v40, %v775_v40  ;;  %v1109_v3 = vsel %vm8270_vm9, %v1104_v46, %v1108_v56 }
  0xab   : > { %v1124_v7 = vrot.slane %v1123_v15, 4  ;;  %v1556_v28 = vsel %vm8258_vm8, %v1554_v6, %v1555_v33  ;;  %v1557_v41 = vrot.slane %v1555_v33, 4  ;;  %993 = vst [vmem:[#allocation2 + $0xa8] sm:$0xf] %v6749_v60  ;;  %1490 = vst [vmem:[#allocation2 + $0x7c] sm:$0xf] %v1109_v3 }
  0xac   : > { %v1099_v22 = vsel %vm8270_vm9, %v1094_v25, %v8308_v13  ;;  %v1113_v61 = vor.u32 %v1112_v11, %v1108_v56  ;;  %1704 = vst [vmem:[#allocation2 + $0x80] sm:$0xf] %v1556_v28  ;;  %v1136_v9 = vshll.u32 %v6749_v60, 16  ;;  %v1140_v40 = vshrl.u32 %v6749_v60, 16  ;;  %992 = vst [vmem:[#allocation2 + $0x9c] sm:$0xf] %v6748_v43  ;;  %v8359_v25 = vpop.permute.xlu1 %634  ;;  %v8361_v11 = vpop.permute.xlu0 %629 }
  0xad   : > { %995 = vst [vmem:[#allocation2 + $0xc0] sm:$0xf] %v8339_v20  ;;  %1489 = vst [vmem:[#allocation2 + $0x70] sm:$0xf] %v1099_v22  ;;  %v1559_v46 = vsel %vm8258_vm8, %v1557_v41, %v1558_v26  ;;  %v1564_v16 = vrot.slane %v6749_v60, 5  ;;  %v1126_v6 = vshll.u32 %v6748_v43, 16 }
  0xae   : > { %v1130_v50 = vshrl.u32 %v6748_v43, 16  ;;  %v1114_v4 = vrot.slane %v1113_v61, 4  ;;  %1705 = vst [vmem:[#allocation2 + $0x8c] sm:$0xf] %v1559_v46  ;;  %v1138_v54 = vrot.slane %v1136_v9, 5  ;;  %v1142_v29 = vrot.slane %v1140_v40, 4 }
  0xaf   : > { %v1561_v13 = vrot.slane %v6748_v43, 5  ;;  %v1128_v42 = vrot.slane %v1126_v6, 5  ;;  %v1156_v10 = vshll.u32 %v8339_v20, 16  ;;  %10787 = vst [vmem:[#allocation17_spill] sm:$0xff] %v8359_v25  ;;  %10788 = vst [vmem:[#allocation18_spill] sm:$0xff] %v8361_v11  ;;  %v1160_v41 = vshrl.u32 %v8339_v20, 16 }
  0xb0   : > { %v1132_v55 = vrot.slane %v1130_v50, 4  ;;  %v1119_v56 = vsel %vm8270_vm9, %v1114_v4, %v1118_v62  ;;  %v1143_v33 = vor.u32 %v1142_v29, %v1138_v54  ;;  %v1745_v62 = vld [vmem:[#allocation2 + $0x2c] sm:$0xf]  ;;  %v1871_v22 = vld [vmem:[#allocation2 + $0x20] sm:$0x8]  ;;  %v1570_v40 = vrot.slane %v8339_v20, 5 }
  0xb1   : > { %v1562_v26 = vsel %vm8258_vm8, %v1560_v51, %v1561_v13  ;;  %v1563_v60 = vrot.slane %v1561_v13, 4  ;;  %1491 = vst [vmem:[#allocation2 + $0x88] sm:$0xf] %v1119_v56  ;;  %v1129_v43 = vsel %vm8270_vm9, %v1124_v7, %v1128_v42  ;;  %v8365_v28 = vrot.slane %v1156_v10, 5  ;;  %v8368_v61 = vld [vmem:[#allocation2 + $0x38] ss:$12 sps:$4 sm:$0xff]  }
  0xb2   : > { %v1133_v3 = vor.u32 %v1132_v55, %v1128_v42  ;;  %1706 = vst [vmem:[#allocation2 + $0x98] sm:$0xf] %v1562_v26  ;;  %v1566_v51 = vrot.slane %v1564_v16, 4  ;;  %1492 = vst [vmem:[#allocation2 + $0x94] sm:$0xf] %v1129_v43  ;;  %v10789_v46 = vmax.f32 %v8108_v63, 0.0  ;;  %v6442_v56 = vcombine.low %v1871_v22, %v1745_v62 }
  0xb3   : > { %v1565_v9 = vsel %vm8258_vm8, %v1563_v60, %v1564_v16  ;;  %v1162_v50 = vrot.slane %v1160_v41, 4  ;;  %v10790_v4 = vmax.f32 %v8119_v12, 0.0  ;;  %v10791_v13 = vmax.f32 %v8129_v23, 0.0 }
  0xb4   : > { %v774_v7 = vmul.f32 %v8341_v52, %v10789_v46  ;;  %v1134_v6 = vrot.slane %v1133_v3, 4  ;;  %1707 = vst [vmem:[#allocation2 + $0xa4] sm:$0xf] %v1565_v9  ;;  %v1144_v55 = vrot.slane %v1143_v33, 4  ;;  %v1572_v10 = vrot.slane %v1570_v40, 4 }
  0xb5   : > { %v777_v29 = vmul.f32 %v8359_v25, %v10790_v4  ;;  %v776_v42 = vmul.f32 %v8361_v11, %v10791_v13  ;;  %v1163_v20 = vor.u32 %v1162_v50, %v8365_v28  ;;  %v10581_v23 = vshrl.u32 %v8368_v61, 16 }
  0xb6   : > { %v6750_v16 = vpack.c.bf16 %v774_v7, %v774_v7  ;;  %v1139_v63 = vsel %vm8270_vm9, %v1134_v6, %v1138_v54  ;;  %v2236_v54 = vshrl.u32 %v6442_v56, 16 }
  0xb7   : > { %v8385_v26 = vpack.c.bf16 %v777_v29, %v777_v29  ;;  %v6752_v60 = vpack.c.bf16 %v776_v42, %v776_v42  ;;  %1493 = vst [vmem:[#allocation2 + $0xa0] sm:$0xf] %v1139_v63  ;;  %v1164_v41 = vrot.slane %v1163_v20, 4 }
  0xb8   : > { %994 = vst [vmem:[#allocation2 + $0xb4] sm:$0xf] %v6750_v16  ;;  %v1146_v12 = vshll.u32 %v6750_v16, 16  ;;  %v1150_v43 = vshrl.u32 %v6750_v16, 16  ;;  %v1567_v3 = vrot.slane %v6750_v16, 5 }
  0xb9   : > { %997 = vst [vmem:[#allocation2 + $0xd8] sm:$0xf] %v8385_v26  ;;  %v1176_v33 = vshll.u32 %v8385_v26, 16  ;;  %v1180_v62 = vshrl.u32 %v8385_v26, 16  ;;  %996 = vst [vmem:[#allocation2 + $0xcc] sm:$0xf] %v6752_v60 }
  0xba   : > { %v1148_v22 = vrot.slane %v1146_v12, 5  ;;  %v1152_v9 = vrot.slane %v1150_v43, 4  ;;  %v1568_v46 = vsel %vm8258_vm8, %v1566_v51, %v1567_v3  ;;  %v1569_v7 = vrot.slane %v1567_v3, 4  ;;  %v8399_v3 = vld [vmem:[%s8028_s11 + $0x80] sm:$0xff]  }
  0xbb   : > { %1708 = vst [vmem:[#allocation2 + $0xb0] sm:$0xf] %v1568_v46  ;;  %v1178_v6 = vrot.slane %v1176_v33, 5  ;;  %v1182_v50 = vrot.slane %v1180_v62, 4  ;;  %v1576_v4 = vrot.slane %v8385_v26, 5  ;;  %v1166_v29 = vshll.u32 %v6752_v60, 16 }
  0xbc   : > { %v1149_v13 = vsel %vm8270_vm9, %v1144_v55, %v1148_v22  ;;  %v1153_v42 = vor.u32 %v1152_v9, %v1148_v22  ;;  %v1571_v16 = vsel %vm8258_vm8, %v1569_v7, %v1570_v40  ;;  %v1170_v63 = vshrl.u32 %v6752_v60, 16  ;;  %v8403_v55 = vpop.permute.xlu1 %644  ;;  %v8405_v22 = vpop.permute.xlu0 %639  ;;  %v8407_v40 = vld [vmem:[#allocation2 + $0x24] sm:$0xff] }
  0xbd   : > { %1494 = vst [vmem:[#allocation2 + $0xac] sm:$0xf] %v1149_v13  ;;  %1709 = vst [vmem:[#allocation2 + $0xbc] sm:$0xf] %v1571_v16  ;;  %v1183_v51 = vor.u32 %v1182_v50, %v1178_v6  ;;  %v1168_v20 = vrot.slane %v1166_v29, 5  ;;  %v1573_v12 = vrot.slane %v6752_v60, 5 }
  0xbe   : > { %v2238_v43 = vrot.slane %v2236_v54, 3  ;;  %v1154_v33 = vrot.slane %v1153_v42, 4  ;;  %v1172_v26 = vrot.slane %v1170_v63, 4  ;;  %v2239_v62 = vshll.u32 %v6442_v56, 16  ;;  %10792 = vst [vmem:[#allocation19_spill] sm:$0xff] %v8403_v55  ;;  %10793 = vst [vmem:[#allocation20_spill] sm:$0xff] %v8405_v22 }
  0xbf   : > { %v2246_v46 = vrot.slane %v10581_v23, 3  ;;  %v8409_v9 = vrot.slane %v1183_v51, 4  ;;  %v1169_v60 = vsel %vm8270_vm9, %v1164_v41, %v1168_v20  ;;  %v1574_v54 = vsel %vm8258_vm8, %v1572_v10, %v1573_v12  ;;  %v8415_v50 = vld [vmem:[#allocation2 + $0x34] ss:$12 sps:$4 sm:$0xff]   ;;  %v1870_v16 = vld [vmem:[#allocation2 + $0x18] sm:$0x88] }
  0xc0   : > { %v1575_v7 = vrot.slane %v1573_v12, 4  ;;  %v1159_v56 = vsel %vm8270_vm9, %v1154_v33, %v8365_v28  ;;  %v1173_v29 = vor.u32 %v1172_v26, %v1168_v20  ;;  %1496 = vst [vmem:[#allocation2 + $0xc4] sm:$0xf] %v1169_v60  ;;  %1710 = vst [vmem:[#allocation2 + $0xc8] sm:$0xf] %v1574_v54  ;;  %v2241_v13 = vrot.slane %v2239_v62, 4 }
  0xc1   : > { %v10580_v42 = vshll.u32 %v8368_v61, 16  ;;  %1495 = vst [vmem:[#allocation2 + $0xb8] sm:$0xf] %v1159_v56  ;;  %v10794_v10 = vmax.f32 %v8140_v44, 0.0  ;;  %v10795_v51 = vmax.f32 %v8143_v48, 0.0  ;;  %v6441_v62 = vcombine.high %v1870_v16, %v8407_v40  ;;  %v7481_v44 = vld [vmem:[%s10572_s3 + $0x38] sm:$0xff]  }
  0xc2   : > { %v1577_v41 = vsel %vm8258_vm8, %v1575_v7, %v1576_v4  ;;  %v1174_v20 = vrot.slane %v1173_v29, 4  ;;  %v2242_v33 = vor.u32 %v2241_v13, %v2238_v43  ;;  %v8451_v7 = vpop.permute.xlu0 %649  ;;  %v10798_v48 = vmov 0.0  }
  0xc3   : > { %v779_v63 = vmul.f32 %v8403_v55, %v10794_v10  ;;  %v778_v12 = vmul.f32 %v8405_v22, %v10795_v51  ;;  %1711 = vst [vmem:[#allocation2 + $0xd4] sm:$0xf] %v1577_v41  ;;  %v2249_v26 = vrot.slane %v10580_v42, 4  ;;  %v2219_v43 = vshrl.u32 %v6441_v62, 16  ;;  %10797 = vst [vmem:[#allocation22_spill] sm:$0xff] %v8451_v7 }
  0xc4   : > { %v1179_v56 = vsel %vm8270_vm9, %v1174_v20, %v1178_v6  ;;  %v2222_v13 = vshll.u32 %v6441_v62, 16  ;;  %v7491_v6 = vld [vmem:[%s10572_s3 + $0x30] sm:$0xff]   ;;  %v10801_v55 = vmax.f32 %v8153_v18, 0.0  ;;  %v6440_v25 = vcombine.low %v1870_v16, %v8407_v40  ;;  %v7497_v18 = vld [vmem:[%s10572_s3 + $0x28] sm:$0xff]  }
  0xc5   : > { %v6755_v60 = vpack.c.bf16 %v779_v63, %v779_v63  ;;  %v6754_v54 = vpack.c.bf16 %v778_v12, %v778_v12  ;;  %v8440_v29 = vor.u32 %v2249_v26, %v2246_v46  ;;  %1497 = vst [vmem:[#allocation2 + $0xd0] sm:$0xf] %v1179_v56  ;;  %v1578_v63 = vrot.slane %v1576_v4, 4  ;;  %v8447_v56 = vpop.permute.xlu1 %654 }
  0xc6   : > { %v2221_v62 = vrot.slane %v2219_v43, 3  ;;  %10796 = vst [vmem:[#allocation21_spill] sm:$0xff] %v8447_v56  ;;  %v10800_v43 = vshll.u32 %v8415_v50, 16 }
  0xc7   : > { %999 = vst [vmem:[#allocation2 + $0xf0] sm:$0xf] %v6755_v60  ;;  %v1196_v41 = vshll.u32 %v6755_v60, 16  ;;  %v1200_v10 = vshrl.u32 %v6755_v60, 16  ;;  %v1582_v51 = vrot.slane %v6755_v60, 5  ;;  %v1186_v42 = vshll.u32 %v6754_v54, 16 }
  0xc8   : > { %998 = vst [vmem:[#allocation2 + $0xe4] sm:$0xf] %v6754_v54  ;;  %v2251_v12 = vsel %vm2200_vm10, %v2242_v33, %v8440_v29  ;;  %v1190_v23 = vshrl.u32 %v6754_v54, 16  ;;  %v1579_v15 = vrot.slane %v6754_v54, 5  ;;  %v2224_v33 = vrot.slane %v2222_v13, 4  ;;  %v8464_v13 = vld [vmem:[#allocation2] sm:$0xff] }
  0xc9   : > { %7142 = vmatmul.mubr.bf16.vlgmr.msra.gmra.mxu1 %v2251_v12  ;;  %v1198_v46 = vrot.slane %v1196_v41, 5  ;;  %v1202_v20 = vrot.slane %v1200_v10, 4  ;;  %v1188_v26 = vrot.slane %v1186_v42, 5  ;;  %v8453_v54 = vld [vmem:[#allocation2 + $0x30] ss:$12 sps:$4 sm:$0xff]   ;;  %v1584_v41 = vrot.slane %v1582_v51, 4 }
  0xca   : > { %3904 = vmatpush1.bf16.msra.mxu1 %v7481_v44  ;;  %v1192_v60 = vrot.slane %v1190_v23, 4  ;;  %v1580_v4 = vsel %vm8258_vm8, %v1578_v63, %v1579_v15  ;;  %v1581_v28 = vrot.slane %v1579_v15, 4  ;;  %7145 = vmatprep.mubr.msk.bf16.mxu1 %vm7726_vm0, %v10798_v48  ;;  %v10799_v23 = vshrl.u32 %v8415_v50, 16 }
  0xcb   : > { %v1189_v42 = vsel %vm8270_vm9, %v8409_v9, %v1188_v26  ;;  %1712 = vst [vmem:[#allocation2 + $0xe0] sm:$0xf] %v1580_v4  ;;  %v2232_v15 = vrot.slane %v10800_v43, 4  ;;  %3905 = vmatprep.subr.bf16.mxu1 %v8464_v13  ;;  %v1203_v10 = vor.u32 %v1202_v20, %v1198_v46  ;;  %v781_v9 = vmul.f32 %v8447_v56, %v10801_v55 }
  0xcc   : > { %v2229_v44 = vrot.slane %v10799_v23, 3  ;;  %v1193_v63 = vor.u32 %v1192_v60, %v1188_v26  ;;  %1498 = vst [vmem:[#allocation2 + $0xdc] sm:$0xf] %v1189_v42  ;;  %v1583_v12 = vsel %vm8258_vm8, %v1581_v28, %v1582_v51  ;;  %v2225_v4 = vor.u32 %v2224_v33, %v2221_v62  ;;  %v8488_v42 = vld [vmem:[#allocation2 + $0x50] ss:$12 sps:$4 sm:$0xff]  }
  0xcd   : > { %1713 = vst [vmem:[#allocation2 + $0xec] sm:$0xf] %v1583_v12  ;;  %v10802_v43 = vmax.f32 %v8156_v19, 0.0  ;;  %v6757_v26 = vpack.c.bf16 %v781_v9, %v781_v9  ;;  %v2202_v19 = vshrl.u32 %v6440_v25, 16  ;;  %v2205_v62 = vshll.u32 %v6440_v25, 16  ;;  %v8497_v9 = vpop.permute.xlu0 %659 }
  0xce   : > { %v8472_v23 = vor.u32 %v2232_v15, %v2229_v44  ;;  %v1194_v20 = vrot.slane %v1193_v63, 4  ;;  %3906 = vmatpush1.bf16.msra.mxu1 %v7491_v6  ;;  %v8490_v44 = vpop.permute.xlu1 %664  ;;  %v1204_v15 = vrot.slane %v1203_v10, 4  ;;  %10804 = vst [vmem:[#allocation24_spill] sm:$0xff] %v8497_v9 }
  0xcf   : > { %v780_v22 = vmul.f32 %v8451_v7, %v10802_v43  ;;  %3907 = vmatprep.subr.bf16.mxu1 %v8464_v13  ;;  %1001 = vst [vmem:[#allocation2 + $0x108] sm:$0xf] %v6757_v26  ;;  %v1216_v16 = vshll.u32 %v6757_v26, 16  ;;  %v1220_v33 = vshrl.u32 %v6757_v26, 16  ;;  %v1588_v6 = vrot.slane %v6757_v26, 5  ;;  %10803 = vst [vmem:[#allocation23_spill] sm:$0xff] %v8490_v44 }
  0xd0   : > { %v2234_v55 = vsel %vm2200_vm10, %v2225_v4, %v8472_v23  ;;  %v1199_v40 = vsel %vm8270_vm9, %v1194_v20, %v1198_v46  ;;  %v8495_v46 = vld [vmem:[#allocation2 + $0x4c] ss:$12 sps:$4 sm:$0xff]   ;;  %v2204_v20 = vrot.slane %v2202_v19, 3  ;;  %v2207_v26 = vrot.slane %v2205_v62, 4 }
  0xd1   : > { %v6756_v51 = vpack.c.bf16 %v780_v22, %v780_v22  ;;  %3004 = vmatprep.mubr.bf16.mxu0 %v2234_v55  ;;  %v7506_v22 = vld [vmem:[%s10572_s3 + $0x20] sm:$0xff]   ;;  %1499 = vst [vmem:[#allocation2 + $0xe8] sm:$0xf] %v1199_v40  ;;  %v1218_v4 = vrot.slane %v1216_v16, 5  ;;  %v1222_v43 = vrot.slane %v1220_v33, 4  ;;  %v8502_v56 = vrot.slane %v1588_v6, 4 }
  0xd2   : > { %3908 = vmatpush1.bf16.msra.mxu1 %v7497_v18  ;;  %v10806_v16 = vshll.u32 %v8453_v54, 16  ;;  %v10588_v33 = vshrl.u32 %v8495_v46, 16 }
  0xd3   : > { %1000 = vst [vmem:[#allocation2 + $0xfc] sm:$0xf] %v6756_v51  ;;  %v1206_v25 = vshll.u32 %v6756_v51, 16  ;;  %v1210_v63 = vshrl.u32 %v6756_v51, 16  ;;  %v1585_v12 = vrot.slane %v6756_v51, 5  ;;  %3909 = vmatprep.subr.bf16.mxu1 %v8464_v13  ;;  %v1223_v40 = vor.u32 %v1222_v43, %v1218_v4  ;;  %v8517_v43 = vpop.permute.xlu1 %674 }
  0xd4   : > { %v10805_v51 = vshrl.u32 %v8453_v54, 16  ;;  %v2215_v19 = vrot.slane %v10806_v16, 4  ;;  %10807 = vst [vmem:[#allocation25_spill] sm:$0xff] %v8517_v43 }
  0xd5   : > { %v1208_v55 = vrot.slane %v1206_v25, 5  ;;  %v1212_v28 = vrot.slane %v1210_v63, 4  ;;  %v1586_v60 = vsel %vm8258_vm8, %v1584_v41, %v1585_v12  ;;  %v1587_v10 = vrot.slane %v1585_v12, 4 }
  0xd6   : > { %1714 = vst [vmem:[#allocation2 + $0xf8] sm:$0xf] %v1586_v60  ;;  %v2212_v7 = vrot.slane %v10805_v51, 3  ;;  %v2208_v25 = vor.u32 %v2207_v26, %v2204_v20  ;;  %v10587_v60 = vshll.u32 %v8495_v46, 16  ;;  %v10589_v12 = vshrl.u32 %v8488_v42, 16  ;;  %3910 = vmatpush1.bf16.msra.mxu1 %v7506_v22 }
  0xd7   : > { %v1209_v18 = vsel %vm8270_vm9, %v1204_v15, %v1208_v55  ;;  %v1213_v62 = vor.u32 %v1212_v28, %v1208_v55  ;;  %v1589_v41 = vsel %vm8258_vm8, %v1587_v10, %v1588_v6  ;;  %v7500_v28 = vld [vmem:[%s10572_s3 + $0xb8] sm:$0xff]   ;;  %v10590_v20 = vshll.u32 %v8488_v42, 16  ;;  %v8531_v10 = vpop.permute.xlu0 %669  ;;  %3911 = vmatprep.subr.bf16.mxu1 %v8464_v13 }
  0xd8   : > { %1500 = vst [vmem:[#allocation2 + $0xf4] sm:$0xf] %v1209_v18  ;;  %1715 = vst [vmem:[#allocation2 + $0x104] sm:$0xf] %v1589_v41  ;;  %v8513_v63 = vor.u32 %v2215_v19, %v2212_v7  ;;  %v7511_v6 = vld [vmem:[%s10572_s3 + $0x18] sm:$0xff]   ;;  %v2264_v7 = vrot.slane %v10588_v33, 3 }
  0xd9   : > { %v1214_v15 = vrot.slane %v1213_v62, 4  ;;  %v10808_v26 = vmax.f32 %v8166_v34, 0.0  ;;  %10809 = vst [vmem:[#allocation26_spill] sm:$0xff] %v8531_v10  ;;  %v2267_v51 = vrot.slane %v10587_v60, 4  ;;  %v2273_v16 = vrot.slane %v10589_v12, 3 }
  0xda   : > { %v2217_v22 = vsel %vm2200_vm10, %v2208_v25, %v8513_v63  ;;  %v10810_v19 = vmax.f32 %v8169_v35, 0.0  ;;  %v2276_v62 = vrot.slane %v10590_v20, 4  ;;  %v10811_v25 = vmax.f32 %v8172_v36, 0.0  ;;  %v8550_v60 = vld [vmem:[#allocation2 + $0x48] ss:$12 sps:$4 sm:$0xff]   ;;  %3912 = vmatpush1.bf16.msra.mxu1 %v7511_v6 }
  0xdb   : > { %v783_v55 = vmul.f32 %v8490_v44, %v10808_v26  ;;  %v1219_v34 = vsel %vm8270_vm9, %v1214_v15, %v1218_v4  ;;  %3005 = vmatmul.mubr.bf16.vlgmr.msra.gmra.mxu0 %v2217_v22  ;;  %v1224_v33 = vrot.slane %v1223_v40, 4  ;;  %v8552_v12 = vor.u32 %v2267_v51, %v2264_v7  ;;  %v7512_v15 = vld [vmem:[%s10572_s3 + $0xb0] sm:$0xff]   ;;  %3913 = vmatprep.subr.bf16.mxu1 %v8464_v13 }
  0xdc   : > { %v782_v18 = vmul.f32 %v8497_v9, %v10810_v19  ;;  %v785_v26 = vmul.f32 %v8517_v43, %v10811_v25  ;;  %1501 = vst [vmem:[#allocation2 + $0x100] sm:$0xf] %v1219_v34  ;;  %v10812_v19 = vmax.f32 %v8175_v37, 0.0  ;;  %7226 = vmatpush3.bf16.msra.mxu0 %v7500_v28  ;;  %v8560_v36 = vor.u32 %v2276_v62, %v2273_v16  ;;  %v7518_v37 = vld [vmem:[%s10572_s3 + $0x10] sm:$0xff]   ;;  %v8635_v9 = vld [vmem:[#allocation2 + $0x60] ss:$12 sps:$4 sm:$0xff]  }
  0xdd   : > { %v6759_v41 = vpack.c.bf16 %v783_v55, %v783_v55  ;;  %7227 = vmatprep.subr.bf16.mxu0 %v10798_v48  ;;  %v2269_v28 = vsel %vm2200_vm10, %v8472_v23, %v8552_v12  ;;  %v10593_v62 = vshrl.u32 %v8550_v60, 16 }
  0xde   : > { %v6758_v35 = vpack.c.bf16 %v782_v18, %v782_v18  ;;  %v784_v4 = vmul.f32 %v8531_v10, %v10812_v19  ;;  %3012 = vmatprep.mubr.bf16.mxu0 %v2269_v28  ;;  %v2278_v16 = vsel %vm2200_vm10, %v8440_v29, %v8560_v36  ;;  %v8580_v29 = vpack.c.bf16 %v785_v26, %v785_v26  ;;  %v8592_v26 = vld [vmem:[#allocation2 + $0x64] ss:$12 sps:$4 sm:$0xff]   ;;  %v8615_v10 = vld [vmem:[%s10570_s1] ss:$0 sm:$0xff] }
  0xdf   : > { %1003 = vst [vmem:[#allocation2 + $0x120] sm:$0xf] %v6759_v41  ;;  %v1236_v55 = vshll.u32 %v6759_v41, 16  ;;  %v1240_v22 = vshrl.u32 %v6759_v41, 16  ;;  %v1594_v40 = vrot.slane %v6759_v41, 5  ;;  %7146 = vmatmul.mubr.bf16.gmra.mxu1 %v2278_v16  ;;  %v10600_v44 = vshrl.u32 %v8592_v26, 16 }
  0xe0   : > { %1002 = vst [vmem:[#allocation2 + $0x114] sm:$0xf] %v6758_v35  ;;  %v1226_v6 = vshll.u32 %v6758_v35, 16  ;;  %v1230_v7 = vshrl.u32 %v6758_v35, 16  ;;  %v1591_v51 = vrot.slane %v6758_v35, 5  ;;  %7228 = vmatpush3.bf16.msra.mxu0 %v7512_v15  ;;  %v7527_v35 = vld [vmem:[%s10572_s3 + $0xa8] sm:$0xff]   ;;  %7149 = vmatprep.mubr.msk.bf16.mxu1 %vm7726_vm0, %v10798_v48 }
  0xe1   : > { %v1238_v18 = vrot.slane %v1236_v55, 5  ;;  %v1242_v34 = vrot.slane %v1240_v22, 4  ;;  %v1596_v20 = vrot.slane %v1594_v40, 4  ;;  %v6760_v55 = vpack.c.bf16 %v784_v4, %v784_v4  ;;  %3914 = vmatpush1.bf16.msra.mxu1 %v7518_v37  ;;  %v8594_v4 = vld [vmem:[#allocation2 + $0x68] ss:$12 sps:$4 sm:$0xff]   ;;  %v8598_v37 = vpop.permute.xlu0 %679  ;;  %7229 = vmatprep.subr.bf16.mxu0 %v10798_v48 }
  0xe2   : > { %v1228_v41 = vrot.slane %v1226_v6, 5  ;;  %v1232_v25 = vrot.slane %v1230_v7, 4  ;;  %v1592_v23 = vsel %vm8258_vm8, %v8502_v56, %v1591_v51  ;;  %v1593_v19 = vrot.slane %v1591_v51, 4  ;;  %v7525_v56 = vld [vmem:[%s10572_s3 + $0x8] sm:$0xff]   ;;  %v8596_v51 = vpop.permute.xlu1 %684  ;;  %10814 = vst [vmem:[#allocation28_spill] sm:$0xff] %v8598_v37  ;;  %3915 = vmatprep.subr.bf16.mxu1 %v8464_v13 }
  0xe3   : > { %v1243_v28 = vor.u32 %v1242_v34, %v1238_v18  ;;  %1716 = vst [vmem:[#allocation2 + $0x110] sm:$0xf] %v1592_v23  ;;  %v10594_v7 = vshll.u32 %v8550_v60, 16  ;;  %10813 = vst [vmem:[#allocation27_spill] sm:$0xff] %v8596_v51  ;;  %v2255_v34 = vrot.slane %v10593_v62, 3  ;;  %v1250_v23 = vshrl.u32 %v6760_v55, 16 }
  0xe4   : > { %v1229_v15 = vsel %vm8270_vm9, %v1224_v33, %v1228_v41  ;;  %v1233_v22 = vor.u32 %v1232_v25, %v1228_v41  ;;  %v1595_v6 = vsel %vm8258_vm8, %v1593_v19, %v1594_v40  ;;  %1005 = vst [vmem:[#allocation2 + $0x138] sm:$0xf] %v8580_v29  ;;  %v1256_v33 = vshll.u32 %v8580_v29, 16  ;;  %1004 = vst [vmem:[#allocation2 + $0x12c] sm:$0xf] %v6760_v55 }
  0xe5   : > { %v1244_v16 = vrot.slane %v1243_v28, 4  ;;  %1502 = vst [vmem:[#allocation2 + $0x10c] sm:$0xf] %v1229_v15  ;;  %1717 = vst [vmem:[#allocation2 + $0x11c] sm:$0xf] %v1595_v6  ;;  %v1260_v40 = vshrl.u32 %v8580_v29, 16  ;;  %7230 = vmatpush3.bf16.msra.mxu0 %v7527_v35  ;;  %3916 = vmatpush1.bf16.msra.mxu1 %v7525_v56 }
  0xe6   : > { %v1234_v41 = vrot.slane %v1233_v22, 4  ;;  %v1246_v25 = vshll.u32 %v6760_v55, 16  ;;  %v1597_v19 = vrot.slane %v6760_v55, 5  ;;  %v7541_v28 = vld [vmem:[%s10572_s3 + $0xa0] sm:$0xff]   ;;  %v1258_v15 = vrot.slane %v1256_v33, 5  ;;  %7231 = vmatprep.subr.bf16.mxu0 %v10798_v48  ;;  %3917 = vmatprep.subr.bf16.mxu1 %v8464_v13 }
  0xe7   : > { %v1262_v6 = vrot.slane %v1260_v40, 4  ;;  %v2258_v43 = vrot.slane %v10594_v7, 4  ;;  %v10815_v22 = vunpack.c.h.bf16 %v8399_v3  ;;  %v7532_v35 = vld [vmem:[%s10572_s3] sm:$0xff]   ;;  %v1252_v40 = vrot.slane %v1250_v23, 4  ;;  %v8641_v23 = vpop.permute.xlu1 %694 }
  0xe8   : > { %v1239_v55 = vsel %vm8270_vm9, %v1234_v41, %v1238_v18  ;;  %v1248_v33 = vrot.slane %v1246_v25, 5  ;;  %v1598_v7 = vsel %vm8258_vm8, %v1596_v20, %v1597_v19  ;;  %v1600_v3 = vrot.slane %v8580_v29, 5  ;;  %10816 = vst [vmem:[#allocation29_spill] sm:$0xff] %v8641_v23 }
  0xe9   : > { %v8620_v62 = vmul.f32 %v8615_v10, %v10815_v22  ;;  %1503 = vst [vmem:[#allocation2 + $0x118] sm:$0xf] %v1239_v55  ;;  %v1599_v56 = vrot.slane %v1597_v19, 4  ;;  %1718 = vst [vmem:[#allocation2 + $0x128] sm:$0xf] %v1598_v7  ;;  %v8632_v22 = vor.u32 %v2258_v43, %v2255_v34  ;;  %v10598_v25 = vshll.u32 %v8592_v26, 16  ;;  %v8643_v55 = vpop.permute.xlu0 %689  ;;  %7232 = vmatpush3.bf16.msra.mxu0 %v7541_v28 }
  0xea   : > { %v1249_v18 = vsel %vm8270_vm9, %v1244_v16, %v1248_v33  ;;  %v1253_v41 = vor.u32 %v1252_v40, %v1248_v33  ;;  %v10597_v20 = vshrl.u32 %v8594_v4, 16  ;;  %10817 = vst [vmem:[#allocation30_spill] sm:$0xff] %v8643_v55  ;;  %v1263_v29 = vor.u32 %v1262_v6, %v1258_v15  ;;  %3918 = vmatpush1.bf16.msra.mxu1 %v7532_v35  ;;  %v7537_v34 = vld [vmem:[%s10572_s3 + $0x78] sm:$0xff]  }
  0xeb   : > { %1504 = vst [vmem:[#allocation2 + $0x124] sm:$0xf] %v1249_v18  ;;  %v1601_v43 = vsel %vm8258_vm8, %v1599_v56, %v1600_v3  ;;  %v2260_v7 = vsel %vm2200_vm10, %v8513_v63, %v8632_v22  ;;  %v2291_v16 = vrot.slane %v10600_v44, 3  ;;  %7233 = vmatprep.subr.bf16.mxu0 %v10798_v48  ;;  %v2294_v28 = vrot.slane %v10598_v25, 4  ;;  %3919 = vmatprep.subr.bf16.mxu1 %v8464_v13 }
  0xec   : > { %v1254_v19 = vrot.slane %v1253_v41, 4  ;;  %1719 = vst [vmem:[#allocation2 + $0x134] sm:$0xf] %v1601_v43  ;;  %3013 = vmatmul.mubr.bf16.gmra.mxu0 %v2260_v7  ;;  %v2300_v6 = vrot.slane %v10597_v20, 3  ;;  %v10599_v63 = vshll.u32 %v8594_v4, 16  ;;  %v10818_v35 = vmax.f32 %v8178_v38, 0.0 }
  0xed   : > { %v10819_v40 = vmax.f32 %v8181_v39, 0.0  ;;  %v10820_v18 = vmax.f32 %v8186_v47, 0.0  ;;  %v10821_v43 = vmax.f32 %v8189_v53, 0.0  ;;  %v8676_v25 = vor.u32 %v2294_v28, %v2291_v16 }
  0xee   : > { %v787_v33 = vmul.f32 %v8596_v51, %v10818_v35  ;;  %v1259_v20 = vsel %vm8270_vm9, %v1254_v19, %v1258_v15  ;;  %v2303_v38 = vrot.slane %v10599_v63, 4  ;;  %v10602_v39 = vshrl.u32 %v8635_v9, 16  ;;  %3920 = vmatpush2.bf16.msra.mxu1 %v7537_v34  ;;  %v8728_v51 = vld [vmem:[#allocation2 + $0x80] ss:$12 sps:$4 sm:$0xff]  }
  0xef   : > { %v786_v56 = vmul.f32 %v8598_v37, %v10819_v40  ;;  %v789_v41 = vmul.f32 %v8641_v23, %v10820_v18  ;;  %v788_v7 = vmul.f32 %v8643_v55, %v10821_v43  ;;  %1505 = vst [vmem:[#allocation2 + $0x130] sm:$0xf] %v1259_v20  ;;  %v1264_v53 = vrot.slane %v1263_v29, 4  ;;  %3921 = vmatprep.subr.bf16.mxu1 %v8464_v13  ;;  %v7546_v20 = vld [vmem:[%s10572_s3 + $0x70] sm:$0xff]   ;;  %v8705_v23 = vld [vmem:[#allocation2 + $0x7c] ss:$12 sps:$4 sm:$0xff]  }
  0xf0   : > { %v6763_v35 = vpack.c.bf16 %v787_v33, %v787_v33  ;;  %v1602_v43 = vrot.slane %v1600_v3, 4  ;;  %v2296_v15 = vsel %vm2200_vm10, %v8552_v12, %v8676_v25  ;;  %v8688_v16 = vor.u32 %v2303_v38, %v2300_v6 }
  0xf1   : > { %v6762_v40 = vpack.c.bf16 %v786_v56, %v786_v56  ;;  %v8681_v47 = vpack.c.bf16 %v789_v41, %v789_v41  ;;  %v8683_v18 = vpack.c.bf16 %v788_v7, %v788_v7  ;;  %3020 = vmatprep.mubr.bf16.mxu0 %v2296_v15  ;;  %v2282_v6 = vrot.slane %v10602_v39, 3 }
  0xf2   : > { %1007 = vst [vmem:[#allocation2 + $0x150] sm:$0xf] %v6763_v35  ;;  %v1276_v19 = vshll.u32 %v6763_v35, 16  ;;  %v1280_v28 = vshrl.u32 %v6763_v35, 16  ;;  %v1606_v33 = vrot.slane %v6763_v35, 5  ;;  %v2305_v12 = vsel %vm2200_vm10, %v8560_v36, %v8688_v16  ;;  %v8709_v36 = vpop.permute.xlu1 %704  ;;  %3922 = vmatpush2.bf16.msra.mxu1 %v7546_v20  ;;  %v7553_v20 = vld [vmem:[%s10572_s3 + $0x98] sm:$0xff]  }
  0xf3   : > { %1006 = vst [vmem:[#allocation2 + $0x144] sm:$0xf] %v6762_v40  ;;  %v1266_v29 = vshll.u32 %v6762_v40, 16  ;;  %1009 = vst [vmem:[#allocation2 + $0x168] sm:$0xf] %v8681_v47  ;;  %v1270_v3 = vshrl.u32 %v6762_v40, 16  ;;  %7150 = vmatmul.mubr.bf16.gmra.mxu1 %v2305_v12  ;;  %v8717_v12 = vpop.permute.xlu0 %699  ;;  %3923 = vmatprep.subr.bf16.mxu1 %v8464_v13 }
  0xf4   : > { %1008 = vst [vmem:[#allocation2 + $0x15c] sm:$0xf] %v8683_v18  ;;  %v1603_v34 = vrot.slane %v6762_v40, 5  ;;  %v1278_v56 = vrot.slane %v1276_v19, 5  ;;  %v1282_v41 = vrot.slane %v1280_v28, 4  ;;  %v1296_v38 = vshll.u32 %v8681_v47, 16  ;;  %7153 = vmatprep.mubr.msk.bf16.mxu1 %vm7726_vm0, %v10798_v48  ;;  %7234 = vmatpush3.bf16.msra.mxu0 %v7553_v20 }
  0xf5   : > { %v1268_v7 = vrot.slane %v1266_v29, 5  ;;  %v1272_v35 = vrot.slane %v1270_v3, 4  ;;  %10822 = vst [vmem:[#allocation31_spill] sm:$0xff] %v8709_v36  ;;  %v7552_v40 = vld [vmem:[%s10572_s3 + $0x68] sm:$0xff]   ;;  %v1608_v28 = vrot.slane %v1606_v33, 4  ;;  %v1300_v29 = vshrl.u32 %v8681_v47, 16  ;;  %7235 = vmatprep.subr.bf16.mxu0 %v10798_v48 }
  0xf6   : > { %v1604_v15 = vsel %vm8258_vm8, %v1602_v43, %v1603_v34  ;;  %v1605_v63 = vrot.slane %v1603_v34, 4  ;;  %v1283_v19 = vor.u32 %v1282_v41, %v1278_v56  ;;  %10823 = vst [vmem:[#allocation32_spill] sm:$0xff] %v8717_v12  ;;  %v1286_v41 = vshll.u32 %v8683_v18, 16  ;;  %3924 = vmatpush2.bf16.msra.mxu1 %v7552_v40 }
  0xf7   : > { %v1269_v43 = vsel %vm8270_vm9, %v1264_v53, %v1268_v7  ;;  %1720 = vst [vmem:[#allocation2 + $0x140] sm:$0xf] %v1604_v15  ;;  %v1273_v3 = vor.u32 %v1272_v35, %v1268_v7  ;;  %v1290_v53 = vshrl.u32 %v8683_v18, 16  ;;  %v1298_v39 = vrot.slane %v1296_v38, 5  ;;  %3925 = vmatprep.subr.bf16.mxu1 %v8464_v13 }
  0xf8   : > { %1506 = vst [vmem:[#allocation2 + $0x13c] sm:$0xf] %v1269_v43  ;;  %v1607_v34 = vsel %vm8258_vm8, %v1605_v63, %v1606_v33  ;;  %v1284_v15 = vrot.slane %v1283_v19, 4  ;;  %v1302_v44 = vrot.slane %v1300_v29, 4  ;;  %v1609_v55 = vrot.slane %v8683_v18, 5  ;;  %v7558_v19 = vld [vmem:[%s10572_s3 + $0x60] sm:$0xff]  }
  0xf9   : > { %1721 = vst [vmem:[#allocation2 + $0x14c] sm:$0xf] %v1607_v34  ;;  %v1274_v37 = vrot.slane %v1273_v3, 4  ;;  %v1288_v11 = vrot.slane %v1286_v41, 5  ;;  %v1292_v7 = vrot.slane %v1290_v53, 4  ;;  %v10824_v35 = vshll.u32 %v8635_v9, 16 }
  0xfa   : > { %v1612_v63 = vrot.slane %v8681_v47, 5  ;;  %v1610_v33 = vsel %vm8258_vm8, %v1608_v28, %v1609_v55  ;;  %v1611_v38 = vrot.slane %v1609_v55, 4  ;;  %v10610_v18 = vshrl.u32 %v8705_v23, 16  ;;  %v8747_v28 = vpop.permute.xlu1 %714  ;;  %3926 = vmatpush2.bf16.msra.mxu1 %v7558_v19 }
  0xfb   : > { %v2285_v43 = vrot.slane %v10824_v35, 4  ;;  %v1279_v29 = vsel %vm8270_vm9, %v1274_v37, %v1278_v56  ;;  %v1289_v40 = vsel %vm8270_vm9, %v1284_v15, %v1288_v11  ;;  %v1293_v20 = vor.u32 %v1292_v7, %v1288_v11  ;;  %1722 = vst [vmem:[#allocation2 + $0x158] sm:$0xf] %v1610_v33  ;;  %10825 = vst [vmem:[#allocation33_spill] sm:$0xff] %v8747_v28  ;;  %v8754_v56 = vpop.permute.xlu0 %709  ;;  %v9280_v21 = vld [vmem:[#allocation2 + $0x150] ss:$12 sps:$4 sm:$0xff]  }
  0xfc   : > { %1507 = vst [vmem:[#allocation2 + $0x148] sm:$0xf] %v1279_v29  ;;  %v1303_v55 = vor.u32 %v1302_v44, %v1298_v39  ;;  %1508 = vst [vmem:[#allocation2 + $0x154] sm:$0xf] %v1289_v40  ;;  %v1613_v3 = vsel %vm8258_vm8, %v1611_v38, %v1612_v63  ;;  %v2318_v34 = vrot.slane %v10610_v18, 3  ;;  %v10609_v37 = vshll.u32 %v8705_v23, 16  ;;  %3927 = vmatprep.subr.bf16.mxu1 %v8464_v13 }
  0xfd   : > { %v8745_v47 = vor.u32 %v2285_v43, %v2282_v6  ;;  %10826 = vst [vmem:[#allocation34_spill] sm:$0xff] %v8754_v56  ;;  %v1294_v41 = vrot.slane %v1293_v20, 4  ;;  %1723 = vst [vmem:[#allocation2 + $0x164] sm:$0xf] %v1613_v3  ;;  %v10608_v6 = vshrl.u32 %v8728_v51, 16  ;;  %v10607_v44 = vshll.u32 %v8728_v51, 16 }
  0xfe   : > { %v2321_v53 = vrot.slane %v10609_v37, 4  ;;  %v10827_v15 = vmax.f32 %v8196_v1, 0.0  ;;  %v10828_v35 = vmax.f32 %v8199_v2, 0.0  ;;  %v10829_v33 = vmax.f32 %v8202_v8, 0.0  ;;  %10860 = vst [vmem:[#allocation51_spill] sm:$0xff] %v9280_v21 }
  0xff   : > { %v2287_v11 = vsel %vm2200_vm10, %v8632_v22, %v8745_v47  ;;  %v1299_v38 = vsel %vm8270_vm9, %v1294_v41, %v1298_v39  ;;  %v2327_v19 = vrot.slane %v10608_v6, 3  ;;  %v2330_v1 = vrot.slane %v10607_v44, 4  ;;  %v8815_v6 = vld [vmem:[#allocation2 + $0x98] ss:$12 sps:$4 sm:$0xff]  }
 0x100   : > { %3021 = vmatmul.mubr.bf16.gmra.mxu0 %v2287_v11  ;;  %v791_v7 = vmul.f32 %v8709_v36, %v10827_v15  ;;  %v790_v43 = vmul.f32 %v8717_v12, %v10828_v35  ;;  %v793_v22 = vmul.f32 %v8747_v28, %v10829_v33  ;;  %v10830_v29 = vmax.f32 %v8229_v27, 0.0  ;;  %1509 = vst [vmem:[#allocation2 + $0x160] sm:$0xf] %v1299_v38  ;;  %v8786_v11 = vld [vmem:[#allocation2 + $0x78] ss:$12 sps:$4 sm:$0xff]  }
 0x101   : > { %v8782_v40 = vor.u32 %v2321_v53, %v2318_v34  ;;  %v1304_v39 = vrot.slane %v1303_v55, 4  ;;  %v1614_v41 = vrot.slane %v1612_v63, 4  ;;  %v8788_v15 = vor.u32 %v2330_v1, %v2327_v19 }
 0x102   : > { %v792_v2 = vmul.f32 %v8754_v56, %v10830_v29  ;;  %v6767_v8 = vpack.c.bf16 %v791_v7, %v791_v7  ;;  %v6766_v20 = vpack.c.bf16 %v790_v43, %v790_v43  ;;  %v8784_v3 = vpack.c.bf16 %v793_v22, %v793_v22 }
 0x103   : > { %v2323_v27 = vsel %vm2200_vm10, %v8676_v25, %v8782_v40  ;;  %v2332_v55 = vsel %vm2200_vm10, %v8688_v16, %v8788_v15  ;;  %v10611_v19 = vshrl.u32 %v8786_v11, 16 }
 0x104   : > { %v6768_v35 = vpack.c.bf16 %v792_v2, %v792_v2  ;;  %1011 = vst [vmem:[#allocation2 + $0x180] sm:$0xf] %v6767_v8  ;;  %v1316_v33 = vshll.u32 %v6767_v8, 16  ;;  %v1320_v38 = vshrl.u32 %v6767_v8, 16  ;;  %v1618_v34 = vrot.slane %v6767_v8, 5  ;;  %3028 = vmatprep.mubr.bf16.mxu0 %v2323_v27  ;;  %7154 = vmatmul.mubr.bf16.gmra.mxu1 %v2332_v55 }
 0x105   : > { %1010 = vst [vmem:[#allocation2 + $0x174] sm:$0xf] %v6766_v20  ;;  %1013 = vst [vmem:[#allocation2 + $0x198] sm:$0xf] %v8784_v3  ;;  %v1306_v63 = vshll.u32 %v6766_v20, 16  ;;  %v1310_v53 = vshrl.u32 %v6766_v20, 16  ;;  %7157 = vmatprep.mubr.msk.bf16.mxu1 %vm7726_vm0, %v10798_v48 }
 0x106   : > { %v1615_v7 = vrot.slane %v6766_v20, 5  ;;  %1012 = vst [vmem:[#allocation2 + $0x18c] sm:$0xf] %v6768_v35  ;;  %v1318_v43 = vrot.slane %v1316_v33, 5  ;;  %v1322_v22 = vrot.slane %v1320_v38, 4  ;;  %v1336_v25 = vshll.u32 %v8784_v3, 16 }
 0x107   : > { %v1308_v1 = vrot.slane %v1306_v63, 5  ;;  %v1312_v29 = vrot.slane %v1310_v53, 4  ;;  %v1620_v27 = vrot.slane %v1618_v34, 4  ;;  %v1340_v20 = vshrl.u32 %v8784_v3, 16  ;;  %v8805_v38 = vld [vmem:[#allocation2 + $0x94] ss:$12 sps:$4 sm:$0xff]  }
 0x108   : > { %v1616_v2 = vsel %vm8258_vm8, %v1614_v41, %v1615_v7  ;;  %v1617_v8 = vrot.slane %v1615_v7, 4  ;;  %v1323_v16 = vor.u32 %v1322_v22, %v1318_v43  ;;  %v1326_v53 = vshll.u32 %v6768_v35, 16 }
 0x109   : > { %1724 = vst [vmem:[#allocation2 + $0x170] sm:$0xf] %v1616_v2  ;;  %v1309_v55 = vsel %vm8270_vm9, %v1304_v39, %v1308_v1  ;;  %v1313_v63 = vor.u32 %v1312_v29, %v1308_v1  ;;  %v8811_v22 = vrot.slane %v1336_v25, 5  ;;  %v8813_v2 = vrot.slane %v1340_v20, 4 }
 0x10a   : > { %v1619_v41 = vsel %vm8258_vm8, %v1617_v8, %v1618_v34  ;;  %v1324_v7 = vrot.slane %v1323_v16, 4  ;;  %1510 = vst [vmem:[#allocation2 + $0x16c] sm:$0xf] %v1309_v55  ;;  %v1330_v44 = vshrl.u32 %v6768_v35, 16  ;;  %v1328_v18 = vrot.slane %v1326_v53, 5  ;;  %v7566_v34 = vld [vmem:[%s10572_s3 + $0x58] sm:$0xff]  }
 0x10b   : > { %1725 = vst [vmem:[#allocation2 + $0x17c] sm:$0xf] %v1619_v41  ;;  %v1314_v37 = vrot.slane %v1313_v63, 4  ;;  %v1621_v33 = vrot.slane %v6768_v35, 5  ;;  %v2309_v39 = vrot.slane %v10611_v19, 3  ;;  %v10616_v1 = vrot.slane %v8784_v3, 5  ;;  %3928 = vmatpush2.bf16.msra.mxu1 %v7566_v34  ;;  %v8856_v34 = vpop.permute.xlu1 %724 }
 0x10c   : > { %v1332_v29 = vrot.slane %v1330_v44, 4  ;;  %v10831_v25 = vshll.u32 %v8786_v11, 16  ;;  %v10612_v16 = vshrl.u32 %v8805_v38, 16  ;;  %v7568_v35 = vld [vmem:[%s10572_s3 + $0x90] sm:$0xff]   ;;  %v1329_v55 = vsel %vm8270_vm9, %v1324_v7, %v1328_v18  ;;  %3929 = vmatprep.subr.bf16.mxu1 %v8464_v13  ;;  %10832 = vst [vmem:[#allocation35_spill] sm:$0xff] %v8856_v34 }
 0x10d   : > { %v1319_v20 = vsel %vm8270_vm9, %v1314_v37, %v1318_v43  ;;  %v1622_v63 = vsel %vm8258_vm8, %v1620_v27, %v1621_v33  ;;  %v1623_v44 = vrot.slane %v1621_v33, 4  ;;  %v8835_v41 = vld [vmem:[#allocation2 + $0x90] ss:$12 sps:$4 sm:$0xff]   ;;  %v1343_v53 = vor.u32 %v8813_v2, %v8811_v22  ;;  %1512 = vst [vmem:[#allocation2 + $0x184] sm:$0xf] %v1329_v55  ;;  %v7016_v43 = vld [vmem:[%s8028_s11 + $0x88] sm:$0xff]   ;;  %7236 = vmatpush3.bf16.msra.mxu0 %v7568_v35 }
 0x10e   : > { %v2312_v8 = vrot.slane %v10831_v25, 4  ;;  %1511 = vst [vmem:[#allocation2 + $0x178] sm:$0xf] %v1319_v20  ;;  %v1333_v25 = vor.u32 %v1332_v29, %v1328_v18  ;;  %1726 = vst [vmem:[#allocation2 + $0x188] sm:$0xf] %v1622_v63  ;;  %v2345_v37 = vrot.slane %v10612_v16, 3  ;;  %7237 = vmatprep.subr.bf16.mxu0 %v10798_v48  ;;  %v8875_v16 = vpop.permute.xlu0 %719 }
 0x10f   : > { %v1625_v27 = vsel %vm8258_vm8, %v1623_v44, %v10616_v1  ;;  %v10613_v33 = vshll.u32 %v8805_v38, 16  ;;  %v10614_v18 = vshrl.u32 %v8815_v6, 16  ;;  %v10615_v7 = vshll.u32 %v8815_v6, 16  ;;  %v8861_v29 = vld [vmem:[%s10571_s2] ss:$0 sm:$0xff]  ;;  %10833 = vst [vmem:[#allocation36_spill] sm:$0xff] %v8875_v16 }
 0x110   : > { %v8839_v19 = vor.u32 %v2312_v8, %v2309_v39  ;;  %v1334_v2 = vrot.slane %v1333_v25, 4  ;;  %1727 = vst [vmem:[#allocation2 + $0x194] sm:$0xf] %v1625_v27  ;;  %v508_v8 = vadd.f32 %v8861_v29, %v8620_v62  ;;  %v7699_v35 = vld [vmem:[%s8028_s11 + $0x80] sm:$0xff]   ;;  %v6891_v44 = vunpack.c.h.bf16 %v7016_v43  ;;  %v8884_v1 = vld [vmem:[#allocation2 + $0xac] ss:$12 sps:$4 sm:$0xff]  }
 0x111   : > { %v6886_v20 = vunpack.c.l.bf16 %v7699_v35  ;;  %v2348_v55 = vrot.slane %v10613_v33, 4  ;;  %v2354_v63 = vrot.slane %v10614_v18, 3  ;;  %v9309_v57 = vld [vmem:[#allocation2 + $0x168] ss:$12 sps:$4 sm:$0xff]  }
 0x112   : > { %v2314_v39 = vsel %vm2200_vm10, %v8745_v47, %v8839_v19  ;;  %v2357_v47 = vrot.slane %v10615_v7, 4  ;;  %v1339_v25 = vsel %vm8270_vm9, %v1334_v2, %v8811_v22  ;;  %v549_v27 = vmax.f32 %v508_v8, 0.0  ;;  %10863 = vst [vmem:[#allocation54_spill] sm:$0xff] %v9309_v57 }
 0x113   : > { %3029 = vmatmul.mubr.bf16.gmra.mxu0 %v2314_v39  ;;  %v459_v62 = vmul.f32 %v8615_v10, %v6886_v20  ;;  %v6890_v39 = vunpack.c.l.bf16 %v7016_v43  ;;  %1513 = vst [vmem:[#allocation2 + $0x190] sm:$0xf] %v1339_v25  ;;  %v8878_v35 = vor.u32 %v2348_v55, %v2345_v37  ;;  %v462_v18 = vmul.f32 %v8615_v10, %v6891_v44  ;;  %v7573_v37 = vld [vmem:[%s10572_s3 + $0x50] sm:$0xff]  }
 0x114   : > { %v8880_v33 = vor.u32 %v2357_v47, %v2354_v63  ;;  %v10619_v7 = vshrl.u32 %v8835_v41, 16  ;;  %v795_v28 = vmul.f32 %v8856_v34, %v549_v27  ;;  %v10620_v8 = vshll.u32 %v8835_v41, 16  ;;  %v8902_v47 = vld [vmem:[#allocation2 + $0xb0] ss:$12 sps:$4 sm:$0xff]   ;;  %v8904_v27 = vpop.permute.xlu1 %734  ;;  %3930 = vmatpush2.bf16.msra.mxu1 %v7573_v37 }
 0x115   : > { %v507_v22 = vadd.f32 %v8861_v29, %v459_v62  ;;  %v461_v2 = vmul.f32 %v8615_v10, %v6890_v39  ;;  %v2350_v43 = vsel %vm2200_vm10, %v8782_v40, %v8878_v35  ;;  %v510_v55 = vadd.f32 %v8861_v29, %v462_v18  ;;  %10834 = vst [vmem:[#allocation37_spill] sm:$0xff] %v8904_v27 }
 0x116   : > { %v2359_v20 = vsel %vm2200_vm10, %v8788_v15, %v8880_v33  ;;  %v2336_v63 = vrot.slane %v10619_v7, 3  ;;  %3036 = vmatprep.mubr.bf16.mxu0 %v2350_v43  ;;  %v6771_v44 = vpack.c.bf16 %v795_v28, %v795_v28  ;;  %v2339_v40 = vrot.slane %v10620_v8, 4  ;;  %3931 = vmatprep.subr.bf16.mxu1 %v8464_v13 }
 0x117   : > { %7158 = vmatmul.mubr.bf16.gmra.mxu1 %v2359_v20  ;;  %v548_v25 = vmax.f32 %v507_v22, 0.0  ;;  %v509_v62 = vadd.f32 %v8861_v29, %v461_v2  ;;  %v1344_v39 = vrot.slane %v1343_v53, 4  ;;  %v10835_v15 = vrot.slane %v8784_v3, 5  ;;  %v8915_v2 = vpop.permute.xlu0 %729 }
 0x118   : > { %v551_v34 = vmax.f32 %v510_v55, 0.0  ;;  %7161 = vmatprep.mubr.msk.bf16.mxu1 %vm7726_vm0, %v10798_v48  ;;  %1015 = vst [vmem:[#allocation2 + $0x1b0] sm:$0xf] %v6771_v44  ;;  %v1356_v28 = vshll.u32 %v6771_v44, 16  ;;  %v1360_v22 = vshrl.u32 %v6771_v44, 16  ;;  %10836 = vst [vmem:[#allocation38_spill] sm:$0xff] %v8915_v2  ;;  %v8920_v55 = vor.u32 %v2339_v40, %v2336_v63 }
 0x119   : > { %v1626_v18 = vrot.slane %v10835_v15, 4  ;;  %v794_v43 = vmul.f32 %v8875_v16, %v548_v25  ;;  %v10626_v20 = vshll.u32 %v8884_v1, 16  ;;  %v550_v53 = vmax.f32 %v509_v62, 0.0 }
 0x11a   : > { %v797_v3 = vmul.f32 %v8904_v27, %v551_v34  ;;  %v8923_v8 = vrot.slane %v1356_v28, 5  ;;  %v1362_v37 = vrot.slane %v1360_v22, 4  ;;  %v1630_v7 = vrot.slane %v6771_v44, 5  ;;  %v7577_v44 = vld [vmem:[%s10572_s3 + $0x48] sm:$0xff]  }
 0x11b   : > { %v6770_v56 = vpack.c.bf16 %v794_v43, %v794_v43  ;;  %v796_v25 = vmul.f32 %v8915_v2, %v550_v53  ;;  %v2341_v13 = vsel %vm2200_vm10, %v8839_v19, %v8920_v55  ;;  %v10837_v34 = vshrl.u32 %v8884_v1, 16  ;;  %3932 = vmatpush2.bf16.msra.mxu1 %v7577_v44 }
 0x11c   : > { %v8925_v36 = vpack.c.bf16 %v797_v3, %v797_v3  ;;  %v1363_v63 = vor.u32 %v1362_v37, %v8923_v8  ;;  %3037 = vmatmul.mubr.bf16.gmra.mxu0 %v2341_v13  ;;  %v2375_v3 = vrot.slane %v10626_v20, 4  ;;  %v1632_v53 = vrot.slane %v1630_v7, 4  ;;  %v7018_v20 = vld [vmem:[%s8028_s11 + $0x98] sm:$0xff]  }
 0x11d   : > { %v2372_v62 = vrot.slane %v10837_v34, 3  ;;  %1014 = vst [vmem:[#allocation2 + $0x1a4] sm:$0xf] %v6770_v56  ;;  %v1346_v40 = vshll.u32 %v6770_v56, 16  ;;  %v1350_v28 = vshrl.u32 %v6770_v56, 16  ;;  %v1627_v15 = vrot.slane %v6770_v56, 5 }
 0x11e   : > { %1017 = vst [vmem:[#allocation2 + $0x1c8] sm:$0xf] %v8925_v36  ;;  %v1376_v22 = vshll.u32 %v8925_v36, 16  ;;  %v1380_v19 = vshrl.u32 %v8925_v36, 16  ;;  %v6772_v43 = vpack.c.bf16 %v796_v25, %v796_v25  ;;  %v1364_v13 = vrot.slane %v1363_v63, 4  ;;  %v8948_v25 = vld [vmem:[#allocation2] sm:$0xff] }
 0x11f   : > { %v1348_v37 = vrot.slane %v1346_v40, 5  ;;  %v1352_v34 = vrot.slane %v1350_v28, 4  ;;  %v1628_v56 = vsel %vm8258_vm8, %v1626_v18, %v1627_v15  ;;  %v1629_v27 = vrot.slane %v1627_v15, 4  ;;  %3933 = vmatprep.subr.bf16.mxu1 %v8948_v25 }
 0x120   : > { %1728 = vst [vmem:[#allocation2 + $0x1a0] sm:$0xf] %v1628_v56  ;;  %v8944_v2 = vrot.slane %v1376_v22, 5  ;;  %v8946_v16 = vrot.slane %v1380_v19, 4  ;;  %1016 = vst [vmem:[#allocation2 + $0x1bc] sm:$0xf] %v6772_v43  ;;  %v8956_v19 = vor.u32 %v2375_v3, %v2372_v62 }
 0x121   : > { %v1349_v40 = vsel %vm8270_vm9, %v1344_v39, %v1348_v37  ;;  %v1353_v28 = vor.u32 %v1352_v34, %v1348_v37  ;;  %v1366_v18 = vshll.u32 %v6772_v43, 16  ;;  %v1370_v44 = vshrl.u32 %v6772_v43, 16  ;;  %v7017_v56 = vld [vmem:[%s8028_s11 + $0x90] sm:$0xff]  }
 0x122   : > { %1514 = vst [vmem:[#allocation2 + $0x19c] sm:$0xf] %v1349_v40  ;;  %v1631_v15 = vsel %vm8258_vm8, %v1629_v27, %v1630_v7  ;;  %v10632_v63 = vrot.slane %v8925_v36, 5  ;;  %v1633_v22 = vrot.slane %v6772_v43, 5  ;;  %v8962_v34 = vld [vmem:[#allocation2 + $0xa8] ss:$12 sps:$4 sm:$0xff]   ;;  %v2377_v43 = vsel %vm2200_vm10, %v8878_v35, %v8956_v19 }
 0x123   : > { %v1354_v12 = vrot.slane %v1353_v28, 4  ;;  %1729 = vst [vmem:[#allocation2 + $0x1ac] sm:$0xf] %v1631_v15  ;;  %v1368_v39 = vrot.slane %v1366_v18, 5  ;;  %v1372_v37 = vrot.slane %v1370_v44, 4  ;;  %v7579_v7 = vld [vmem:[%s10572_s3 + $0x88] sm:$0xff]   ;;  %3044 = vmatprep.mubr.bf16.mxu0 %v2377_v43  ;;  %v8980_v15 = vpop.permute.xlu1 %744 }
 0x124   : > { %v1634_v27 = vsel %vm8258_vm8, %v1632_v53, %v1633_v22  ;;  %v1635_v62 = vrot.slane %v1633_v22, 4  ;;  %v10838_v3 = vshrl.u32 %v8902_v47, 16  ;;  %v10629_v53 = vshll.u32 %v8902_v47, 16  ;;  %10839 = vst [vmem:[#allocation39_spill] sm:$0xff] %v8980_v15  ;;  %7238 = vmatpush3.bf16.msra.mxu0 %v7579_v7 }
 0x125   : > { %v1359_v28 = vsel %vm8270_vm9, %v1354_v12, %v8923_v8  ;;  %v1369_v18 = vsel %vm8270_vm9, %v1364_v13, %v1368_v39  ;;  %v1373_v44 = vor.u32 %v1372_v37, %v1368_v39  ;;  %1730 = vst [vmem:[#allocation2 + $0x1b8] sm:$0xf] %v1634_v27  ;;  %v6895_v22 = vunpack.c.h.bf16 %v7017_v56  ;;  %v8986_v12 = vpop.permute.xlu0 %739  ;;  %v8988_v39 = vld [vmem:[#allocation2 + $0xc4] ss:$12 sps:$4 sm:$0xff]   ;;  %7239 = vmatprep.subr.bf16.mxu0 %v10798_v48 }
 0x126   : > { %v2381_v40 = vrot.slane %v10838_v3, 3  ;;  %1515 = vst [vmem:[#allocation2 + $0x1a8] sm:$0xf] %v1359_v28  ;;  %1516 = vst [vmem:[#allocation2 + $0x1b4] sm:$0xf] %v1369_v18  ;;  %v1637_v35 = vsel %vm8258_vm8, %v1635_v62, %v10632_v63  ;;  %v6894_v8 = vunpack.c.l.bf16 %v7017_v56  ;;  %v6899_v13 = vunpack.c.h.bf16 %v7018_v20 }
 0x127   : > { %10840 = vst [vmem:[#allocation40_spill] sm:$0xff] %v8986_v12  ;;  %v1374_v37 = vrot.slane %v1373_v44, 4  ;;  %1731 = vst [vmem:[#allocation2 + $0x1c4] sm:$0xf] %v1637_v35  ;;  %v2384_v7 = vrot.slane %v10629_v53, 4  ;;  %v6898_v27 = vunpack.c.l.bf16 %v7018_v20  ;;  %v10630_v43 = vshrl.u32 %v8962_v34, 16 }
 0x128   : > { %v464_v3 = vmul.f32 %v8615_v10, %v6895_v22  ;;  %v463_v62 = vmul.f32 %v8615_v10, %v6894_v8  ;;  %v466_v28 = vmul.f32 %v8615_v10, %v6899_v13  ;;  %v10631_v56 = vshll.u32 %v8962_v34, 16  ;;  %v9006_v53 = vld [vmem:[#allocation2 + $0xc8] ss:$12 sps:$4 sm:$0xff]  }
 0x129   : > { %v1379_v18 = vsel %vm8270_vm9, %v1374_v37, %v8944_v2  ;;  %v9001_v44 = vor.u32 %v2384_v7, %v2381_v40  ;;  %v465_v35 = vmul.f32 %v8615_v10, %v6898_v27  ;;  %v2363_v20 = vrot.slane %v10630_v43, 3  ;;  %v9016_v10 = vpop.permute.xlu1 %754 }
 0x12a   : > { %1517 = vst [vmem:[#allocation2 + $0x1c0] sm:$0xf] %v1379_v18  ;;  %v512_v22 = vadd.f32 %v8861_v29, %v464_v3  ;;  %v511_v8 = vadd.f32 %v8861_v29, %v463_v62  ;;  %v514_v13 = vadd.f32 %v8861_v29, %v466_v28  ;;  %v2366_v52 = vrot.slane %v10631_v56, 4  ;;  %10841 = vst [vmem:[#allocation41_spill] sm:$0xff] %v9016_v10  ;;  %v9021_v28 = vpop.permute.xlu0 %749 }
 0x12b   : > { %v2386_v40 = vsel %vm2200_vm10, %v8880_v33, %v9001_v44  ;;  %v513_v37 = vadd.f32 %v8861_v29, %v465_v35  ;;  %v10634_v7 = vshrl.u32 %v8988_v39, 16  ;;  %v10633_v27 = vshll.u32 %v8988_v39, 16  ;;  %10842 = vst [vmem:[#allocation42_spill] sm:$0xff] %v9021_v28  ;;  %v7584_v33 = vld [vmem:[%s10572_s3 + $0x40] sm:$0xff]  }
 0x12c   : > { %7162 = vmatmul.mubr.bf16.gmra.mxu1 %v2386_v40  ;;  %v553_v3 = vmax.f32 %v512_v22, 0.0  ;;  %v552_v62 = vmax.f32 %v511_v8, 0.0  ;;  %v555_v18 = vmax.f32 %v514_v13, 0.0  ;;  %v9023_v43 = vor.u32 %v2366_v52, %v2363_v20 }
 0x12d   : > { %v554_v56 = vmax.f32 %v513_v37, 0.0  ;;  %v2399_v35 = vrot.slane %v10634_v7, 3  ;;  %v2402_v63 = vrot.slane %v10633_v27, 4  ;;  %7165 = vmatprep.mubr.msk.bf16.mxu1 %vm7726_vm0, %v10798_v48  ;;  %3934 = vmatpush2.bf16.msra.mxu1 %v7584_v33  ;;  %v10638_v27 = vshll.u32 %v9006_v53, 16 }
 0x12e   : > { %v799_v8 = vmul.f32 %v8980_v15, %v553_v3  ;;  %v798_v52 = vmul.f32 %v8986_v12, %v552_v62  ;;  %v801_v20 = vmul.f32 %v9016_v10, %v555_v18  ;;  %v2368_v13 = vsel %vm2200_vm10, %v8920_v55, %v9023_v43  ;;  %5411 = vmatprep.subr.bf16.mxu1 %v8948_v25 }
 0x12f   : > { %v800_v40 = vmul.f32 %v9021_v28, %v554_v56  ;;  %3045 = vmatmul.mubr.bf16.gmra.mxu0 %v2368_v13  ;;  %v9042_v37 = vor.u32 %v2402_v63, %v2399_v35  ;;  %v10843_v3 = vrot.slane %v8925_v36, 5  ;;  %v10844_v55 = vor.u32 %v8946_v16, %v8944_v2 }
 0x130   : > { %v6775_v62 = vpack.c.bf16 %v799_v8, %v799_v8  ;;  %v6774_v22 = vpack.c.bf16 %v798_v52, %v798_v52  ;;  %v9048_v18 = vpack.c.bf16 %v801_v20, %v801_v20  ;;  %v10845_v56 = vshrl.u32 %v9006_v53, 16 }
 0x131   : > { %v1638_v7 = vrot.slane %v10843_v3, 4  ;;  %v1384_v33 = vrot.slane %v10844_v55, 4  ;;  %v6776_v10 = vpack.c.bf16 %v800_v40, %v800_v40  ;;  %v2404_v63 = vsel %vm2200_vm10, %v8956_v19, %v9042_v37 }
 0x132   : > { %v2408_v35 = vrot.slane %v10845_v56, 3  ;;  %1019 = vst [vmem:[#allocation2 + $0x1e0] sm:$0xf] %v6775_v62  ;;  %v1396_v25 = vshll.u32 %v6775_v62, 16  ;;  %v1400_v36 = vshrl.u32 %v6775_v62, 16  ;;  %v1386_v8 = vshll.u32 %v6774_v22, 16  ;;  %3052 = vmatprep.mubr.bf16.mxu0 %v2404_v63 }
 0x133   : > { %1018 = vst [vmem:[#allocation2 + $0x1d4] sm:$0xf] %v6774_v22  ;;  %1021 = vst [vmem:[#allocation2 + $0x1f8] sm:$0xf] %v9048_v18  ;;  %v2411_v16 = vrot.slane %v10638_v27, 4  ;;  %v1390_v2 = vshrl.u32 %v6774_v22, 16 }
 0x134   : > { %v1639_v52 = vrot.slane %v6774_v22, 5  ;;  %v1416_v20 = vshll.u32 %v9048_v18, 16  ;;  %v1420_v19 = vshrl.u32 %v9048_v18, 16  ;;  %1020 = vst [vmem:[#allocation2 + $0x1ec] sm:$0xf] %v6776_v10  ;;  %v1398_v13 = vrot.slane %v1396_v25, 5 }
 0x135   : > { %v1402_v40 = vrot.slane %v1400_v36, 4  ;;  %v1642_v3 = vrot.slane %v6775_v62, 5  ;;  %v1388_v55 = vrot.slane %v1386_v8, 5  ;;  %v1392_v56 = vrot.slane %v1390_v2, 4  ;;  %v7588_v62 = vld [vmem:[%s10572_s3 + $0x80] sm:$0xff]  }
 0x136   : > { %v1640_v28 = vsel %vm8258_vm8, %v1638_v7, %v1639_v52  ;;  %v1641_v63 = vrot.slane %v1639_v52, 4  ;;  %v9065_v15 = vrot.slane %v1416_v20, 5  ;;  %v9069_v12 = vrot.slane %v1420_v19, 4  ;;  %v378_v52 = vld [vmem:[%s8028_s11 + $0xa0] sm:$0x3]  ;;  %7240 = vmatpush3.bf16.msra.mxu0 %v7588_v62 }
 0x137   : > { %v1403_v27 = vor.u32 %v1402_v40, %v1398_v13  ;;  %v1389_v22 = vsel %vm8270_vm9, %v1384_v33, %v1388_v55  ;;  %1732 = vst [vmem:[#allocation2 + $0x1d0] sm:$0xf] %v1640_v28  ;;  %v1648_v25 = vrot.slane %v9048_v18, 5  ;;  %v1393_v36 = vor.u32 %v1392_v56, %v1388_v55  ;;  %v9078_v20 = vld [vmem:[#allocation2 + $0xc0] ss:$12 sps:$4 sm:$0xff]   ;;  %7325 = vmatprep.subr.bf16.mxu0 %v10798_v48 }
 0x138   : > { %1518 = vst [vmem:[#allocation2 + $0x1cc] sm:$0xf] %v1389_v22  ;;  %v1643_v7 = vsel %vm8258_vm8, %v1641_v63, %v1642_v3  ;;  %v1406_v8 = vshll.u32 %v6776_v10, 16  ;;  %v1410_v2 = vshrl.u32 %v6776_v10, 16  ;;  %v1644_v28 = vrot.slane %v1642_v3, 4 }
 0x139   : > { %v1404_v33 = vrot.slane %v1403_v27, 4  ;;  %1733 = vst [vmem:[#allocation2 + $0x1dc] sm:$0xf] %v1643_v7  ;;  %v1645_v19 = vrot.slane %v6776_v10, 5  ;;  %v9082_v40 = vld [vmem:[#allocation2 + $0xe0] ss:$12 sps:$4 sm:$0xff]   ;;  %v2412_v5 = vor.u32 %v2411_v16, %v2408_v35  ;;  %v419_v7 = vunpack.c.l.bf16 %v378_v52 }
 0x13a   : > { %v1394_v55 = vrot.slane %v1393_v36, 4  ;;  %v1408_v56 = vrot.slane %v1406_v8, 5  ;;  %v1412_v22 = vrot.slane %v1410_v2, 4  ;;  %v9084_v63 = vld [vmem:[#allocation2 + $0xdc] ss:$12 sps:$4 sm:$0xff]   ;;  %v9087_v45 = vrot.slane %v1648_v25, 4 }
 0x13b   : > { %v1646_v27 = vsel %vm8258_vm8, %v1644_v28, %v1645_v19  ;;  %v1647_v3 = vrot.slane %v1645_v19, 4  ;;  %v2413_v35 = vsel %vm2200_vm10, %v9001_v44, %v2412_v5  ;;  %v7701_v8 = vld [vmem:[%s10570_s1] ss:$0 sm:$0xff]  ;;  %v10642_v52 = vshll.u32 %v9078_v20, 16 }
 0x13c   : > { %v1399_v10 = vsel %vm8270_vm9, %v1394_v55, %v1398_v13  ;;  %v1409_v62 = vsel %vm8270_vm9, %v1404_v33, %v1408_v56  ;;  %v1413_v36 = vor.u32 %v1412_v22, %v1408_v56  ;;  %1734 = vst [vmem:[#allocation2 + $0x1e8] sm:$0xf] %v1646_v27  ;;  %7166 = vmatmul.mubr.bf16.gmra.mxu1 %v2413_v35  ;;  %v10645_v13 = vshrl.u32 %v9078_v20, 16  ;;  %v9104_v33 = vld [vmem:[#allocation2 + $0xd8] ss:$12 sps:$4 sm:$0xff]  }
 0x13d   : > { %1519 = vst [vmem:[#allocation2 + $0x1d8] sm:$0xf] %v1399_v10  ;;  %1520 = vst [vmem:[#allocation2 + $0x1e4] sm:$0xf] %v1409_v62  ;;  %v1649_v16 = vsel %vm8258_vm8, %v1647_v3, %v1648_v25  ;;  %v467_v2 = vmul.f32 %v7701_v8, %v419_v7  ;;  %v9106_v28 = vld [vmem:[#allocation2 + $0xf4] ss:$12 sps:$4 sm:$0xff]   ;;  %7169 = vmatprep.mubr.msk.bf16.mxu1 %vm7726_vm0, %v10798_v48  ;;  %v9122_v10 = vpop.permute.xlu0 %759 }
 0x13e   : > { %v1414_v44 = vrot.slane %v1413_v36, 4  ;;  %1735 = vst [vmem:[#allocation2 + $0x1f4] sm:$0xf] %v1649_v16  ;;  %v10643_v19 = vshrl.u32 %v9084_v63, 16  ;;  %v10644_v25 = vshll.u32 %v9084_v63, 16  ;;  %v10646_v55 = vshrl.u32 %v9082_v40, 16 }
 0x13f   : > { %v515_v56 = vadd.f32 %v8861_v29, %v467_v2  ;;  %v2390_v22 = vrot.slane %v10645_v13, 3  ;;  %v2393_v27 = vrot.slane %v10642_v52, 4  ;;  %v10647_v3 = vshll.u32 %v9082_v40, 16  ;;  %10846 = vst [vmem:[#allocation43_spill] sm:$0xff] %v9122_v10 }
 0x140   : > { %v1419_v7 = vsel %vm8270_vm9, %v1414_v44, %v9065_v15  ;;  %v2426_v62 = vrot.slane %v10643_v19, 3  ;;  %v2429_v29 = vrot.slane %v10644_v25, 4  ;;  %v2435_v36 = vrot.slane %v10646_v55, 3  ;;  %v9133_v44 = vld [vmem:[#allocation2 + $0xf8] ss:$12 sps:$4 sm:$0xff]  }
 0x141   : > { %1521 = vst [vmem:[#allocation2 + $0x1f0] sm:$0xf] %v1419_v7  ;;  %v556_v35 = vmax.f32 %v515_v56, 0.0  ;;  %v2394_v16 = vor.u32 %v2393_v27, %v2390_v22  ;;  %v2438_v8 = vrot.slane %v10647_v3, 4  ;;  %v10649_v2 = vshrl.u32 %v9104_v33, 16 }
 0x142   : > { %v2430_v52 = vor.u32 %v2429_v29, %v2426_v62  ;;  %v10648_v19 = vshll.u32 %v9104_v33, 16  ;;  %v10650_v25 = vshrl.u32 %v9106_v28, 16  ;;  %v10651_v13 = vshll.u32 %v9106_v28, 16  ;;  %v9138_v55 = vld [vmem:[#allocation2 + $0xf0] ss:$12 sps:$4 sm:$0xff]  }
 0x143   : > { %v802_v7 = vmul.f32 %v9122_v10, %v556_v35  ;;  %v2395_v56 = vsel %vm2200_vm10, %v9023_v43, %v2394_v16  ;;  %v2439_v22 = vor.u32 %v2438_v8, %v2435_v36  ;;  %v2417_v27 = vrot.slane %v10649_v2, 3 }
 0x144   : > { %3053 = vmatmul.mubr.bf16.gmra.mxu0 %v2395_v56  ;;  %v2431_v62 = vsel %vm2200_vm10, %v9042_v37, %v2430_v52  ;;  %v2420_v29 = vrot.slane %v10648_v19, 4  ;;  %v2453_v3 = vrot.slane %v10650_v25, 3  ;;  %v2456_v35 = vrot.slane %v10651_v13, 4  ;;  %v9156_v56 = vld [vmem:[#allocation2 + $0x110] ss:$12 sps:$4 sm:$0xff]  }
 0x145   : > { %v6778_v18 = vpack.c.bf16 %v802_v7, %v802_v7  ;;  %3060 = vmatprep.mubr.bf16.mxu0 %v2431_v62  ;;  %v2440_v43 = vsel %vm2200_vm10, %v2412_v5, %v2439_v22  ;;  %v10847_v37 = vor.u32 %v9069_v12, %v9065_v15  ;;  %v10670_v25 = vshrl.u32 %v9138_v55, 16  ;;  %v9163_v7 = vld [vmem:[#allocation2 + $0x10c] ss:$12 sps:$4 sm:$0xff]  }
 0x146   : > { %7170 = vmatmul.mubr.bf16.gmra.mxu1 %v2440_v43  ;;  %v2421_v2 = vor.u32 %v2420_v29, %v2417_v27  ;;  %v10848_v8 = vshrl.u32 %v9133_v44, 16  ;;  %v2457_v12 = vor.u32 %v2456_v35, %v2453_v3  ;;  %v10849_v27 = vshll.u32 %v9133_v44, 16 }
 0x147   : > { %v1424_v19 = vrot.slane %v10847_v37, 4  ;;  %1022 = vst [vmem:[#allocation2 + $0x204] sm:$0x3] %v6778_v18  ;;  %v1426_v5 = vshll.u32 %v6778_v18, 16  ;;  %v1430_v62 = vshrl.u32 %v6778_v18, 16  ;;  %v1651_v36 = vrot.slane %v6778_v18, 5  ;;  %7173 = vmatprep.mubr.msk.bf16.mxu1 %vm7726_vm0, %v10798_v48 }
 0x148   : > { %v2462_v10 = vrot.slane %v10848_v8, 3  ;;  %v2422_v15 = vsel %vm2200_vm10, %v2394_v16, %v2421_v2  ;;  %v2465_v29 = vrot.slane %v10849_v27, 4  ;;  %v2444_v43 = vrot.slane %v10670_v25, 3 }
 0x149   : > { %v1428_v37 = vrot.slane %v1426_v5, 5  ;;  %v1432_v13 = vrot.slane %v1430_v62, 4  ;;  %v1652_v18 = vsel %vm8258_vm8, %v9087_v45, %v1651_v36  ;;  %v1653_v17 = vrot.slane %v1651_v36, 4  ;;  %v9185_v45 = vld [vmem:[#allocation2 + $0x108] ss:$12 sps:$4 sm:$0xff]  }
 0x14a   : > { %1736 = vst [vmem:[#allocation2 + $0x200] sm:$0xf] %v1652_v18  ;;  %v2466_v59 = vor.u32 %v2465_v29, %v2462_v10  ;;  %v10850_v8 = vshll.u32 %v9138_v55, 16  ;;  %v10665_v3 = vshrl.u32 %v9163_v7, 16  ;;  %v10663_v16 = vshll.u32 %v9163_v7, 16 }
 0x14b   : > { %v1429_v35 = vsel %vm8270_vm9, %v1424_v19, %v1428_v37  ;;  %v1433_v27 = vor.u32 %v1432_v13, %v1428_v37  ;;  %1737 = vst [vmem:[#allocation2 + $0x20c] sm:$0x1] %v1653_v17  ;;  %v10657_v5 = vshrl.u32 %v9156_v56, 16  ;;  %v10656_v49 = vshll.u32 %v9156_v56, 16  ;;  %v1526_v36 = vld [vmem:[#allocation2 + $0x208] sm:$0x3] }
 0x14c   : > { %v2447_v31 = vrot.slane %v10850_v8, 4  ;;  %1522 = vst [vmem:[#allocation2 + $0x1fc] sm:$0xf] %v1429_v35  ;;  %3061 = vmatmul.mubr.bf16.gmra.mxu0 %v2422_v15  ;;  %v2458_v14 = vsel %vm2200_vm10, %v2430_v52, %v2457_v12  ;;  %v2480_v17 = vrot.slane %v10665_v3, 3  ;;  %v2483_v13 = vrot.slane %v10663_v16, 4 }
 0x14d   : > { %v9198_v19 = vld [vmem:[#allocation2 + $0x124] ss:$12 sps:$4 sm:$0xff]   ;;  %v1434_v62 = vrot.slane %v1433_v27, 4  ;;  %3068 = vmatprep.mubr.bf16.mxu0 %v2458_v14  ;;  %v2467_v29 = vsel %vm2200_vm10, %v2439_v22, %v2466_v59  ;;  %v2489_v37 = vrot.slane %v10657_v5, 3  ;;  %v2492_v15 = vrot.slane %v10656_v49, 4 }
 0x14e   : > { %v9205_v18 = vld [vmem:[#allocation2 + $0x128] ss:$12 sps:$4 sm:$0xff]   ;;  %7174 = vmatmul.mubr.bf16.gmra.mxu1 %v2467_v29  ;;  %v2448_v8 = vor.u32 %v2447_v31, %v2444_v43  ;;  %v10661_v35 = vshrl.u32 %v9185_v45, 16  ;;  %v10658_v22 = vshll.u32 %v9185_v45, 16  ;;  %v2484_v27 = vor.u32 %v2483_v13, %v2480_v17  ;;  %v9251_v3 = vld [vmem:[#allocation2 + $0x138] ss:$12 sps:$4 sm:$0xff]  }
 0x14f   : > { %10853 = vst [vmem:[#allocation44_spill] sm:$0xff] %v9205_v18  ;;  %v1527_v52 = vsel %vm9189_vm13, %v1434_v62, %v1526_v36  ;;  %7177 = vmatprep.mubr.msk.bf16.mxu1 %vm7726_vm0, %v10798_v48  ;;  %v10660_v14 = vshrl.u32 %v9198_v19, 16  ;;  %v10659_v49 = vshll.u32 %v9198_v19, 16  ;;  %v2493_v5 = vor.u32 %v2492_v15, %v2489_v37  ;;  %v9222_v62 = vld [vmem:[#allocation2 + $0x120] ss:$12 sps:$4 sm:$0xff]   ;;  %10857 = vst [vmem:[#allocation48_spill] sm:$0xff] %v9251_v3 }
 0x150   : > { %1528 = vst [vmem:[#allocation2 + $0x208] sm:$0x3] %v1527_v52  ;;  %v10662_v29 = vshrl.u32 %v9205_v18, 16  ;;  %v10664_v10 = vshll.u32 %v9205_v18, 16  ;;  %v2449_v31 = vsel %vm2200_vm10, %v2421_v2, %v2448_v8  ;;  %v2471_v43 = vrot.slane %v10661_v35, 3  ;;  %10854 = vst [vmem:[#allocation45_spill] sm:$0xff] %v9222_v62 }
 0x151   : > { %v2474_v36 = vrot.slane %v10658_v22, 4  ;;  %v2485_v17 = vsel %vm2200_vm10, %v2457_v12, %v2484_v27  ;;  %v2507_v13 = vrot.slane %v10660_v14, 3  ;;  %v2510_v37 = vrot.slane %v10659_v49, 4  ;;  %v9229_v15 = vld [vmem:[#allocation2 + $0x13c] ss:$12 sps:$4 sm:$0xff]  }
 0x152   : > { %10855 = vst [vmem:[#allocation46_spill] sm:$0xff] %v9229_v15  ;;  %v2494_v2 = vsel %vm2200_vm10, %v2466_v59, %v2493_v5  ;;  %v2516_v52 = vrot.slane %v10662_v29, 3  ;;  %v2519_v22 = vrot.slane %v10664_v10, 4  ;;  %v10666_v49 = vshrl.u32 %v9222_v62, 16 }
 0x153   : > { %v2475_v12 = vor.u32 %v2474_v36, %v2471_v43  ;;  %v10667_v14 = vshll.u32 %v9222_v62, 16  ;;  %v10669_v59 = vshrl.u32 %v9229_v15, 16  ;;  %v10668_v35 = vshll.u32 %v9229_v15, 16 }
 0x154   : > { %3069 = vmatmul.mubr.bf16.gmra.mxu0 %v2449_v31  ;;  %v9236_v31 = vld [vmem:[#allocation2 + $0x140] ss:$12 sps:$4 sm:$0xff]   ;;  %v2520_v29 = vor.u32 %v2519_v22, %v2516_v52  ;;  %v2498_v43 = vrot.slane %v10666_v49, 3 }
 0x155   : > { %3076 = vmatprep.mubr.bf16.mxu0 %v2485_v17  ;;  %10856 = vst [vmem:[#allocation47_spill] sm:$0xff] %v9236_v31  ;;  %v2511_v17 = vor.u32 %v2510_v37, %v2507_v13  ;;  %v10671_v16 = vshrl.u32 %v9236_v31, 16  ;;  %v10673_v10 = vshll.u32 %v9236_v31, 16  ;;  %v2501_v36 = vrot.slane %v10667_v14, 4  ;;  %v9258_v52 = vld [vmem:[#allocation2 + $0x154] ss:$12 sps:$4 sm:$0xff]  }
 0x156   : > { %7178 = vmatmul.mubr.bf16.gmra.mxu1 %v2494_v2  ;;  %v2476_v2 = vsel %vm2200_vm10, %v2448_v8, %v2475_v12  ;;  %v2534_v22 = vrot.slane %v10669_v59, 3  ;;  %v2537_v37 = vrot.slane %v10668_v35, 4  ;;  %10858 = vst [vmem:[#allocation49_spill] sm:$0xff] %v9258_v52  ;;  %v2521_v8 = vsel %vm2200_vm10, %v2493_v5, %v2520_v29 }
 0x157   : > { %7181 = vmatprep.mubr.msk.bf16.mxu1 %vm7726_vm0, %v10798_v48  ;;  %v2512_v13 = vsel %vm2200_vm10, %v2484_v27, %v2511_v17  ;;  %v2543_v49 = vrot.slane %v10671_v16, 3  ;;  %v2546_v14 = vrot.slane %v10673_v10, 4  ;;  %v2502_v27 = vor.u32 %v2501_v36, %v2498_v43 }
 0x158   : > { %v10675_v35 = vshrl.u32 %v9251_v3, 16  ;;  %v10676_v59 = vshll.u32 %v9251_v3, 16  ;;  %v10678_v5 = vshrl.u32 %v9258_v52, 16  ;;  %v10677_v25 = vshll.u32 %v9258_v52, 16 }
 0x159   : > { %v2547_v16 = vor.u32 %v2546_v14, %v2543_v49 }
 0x15a   : > { %v2525_v43 = vrot.slane %v10675_v35, 3  ;;  %v2528_v36 = vrot.slane %v10676_v59, 4  ;;  %v2561_v49 = vrot.slane %v10678_v5, 3  ;;  %v2564_v14 = vrot.slane %v10677_v25, 4 }
 0x15b   : > { %v10684_v25 = vshrl.u32 %v9280_v21, 16  ;;  %v10685_v5 = vshll.u32 %v9280_v21, 16 }
 0x15c   : > { %3077 = vmatmul.mubr.bf16.gmra.mxu0 %v2476_v2  ;;  %v9265_v2 = vld [vmem:[#allocation2 + $0x158] ss:$12 sps:$4 sm:$0xff]  }
 0x15d   : > { %3084 = vmatprep.mubr.bf16.mxu0 %v2512_v13  ;;  %10859 = vst [vmem:[#allocation50_spill] sm:$0xff] %v9265_v2  ;;  %v2538_v13 = vor.u32 %v2537_v37, %v2534_v22  ;;  %v10680_v32 = vshrl.u32 %v9265_v2, 16  ;;  %v10682_v10 = vshll.u32 %v9265_v2, 16  ;;  %v9287_v37 = vld [vmem:[#allocation2 + $0x16c] ss:$12 sps:$4 sm:$0xff]  }
 0x15e   : > { %7182 = vmatmul.mubr.bf16.gmra.mxu1 %v2521_v8  ;;  %v2503_v8 = vsel %vm2200_vm10, %v2475_v12, %v2502_v27  ;;  %10861 = vst [vmem:[#allocation52_spill] sm:$0xff] %v9287_v37  ;;  %v2548_v12 = vsel %vm2200_vm10, %v2520_v29, %v2547_v16  ;;  %v10687_v29 = vshrl.u32 %v9287_v37, 16  ;;  %v10686_v30 = vshll.u32 %v9287_v37, 16 }
 0x15f   : > { %7185 = vmatprep.mubr.msk.bf16.mxu1 %vm7726_vm0, %v10798_v48  ;;  %v2539_v22 = vsel %vm2200_vm10, %v2511_v17, %v2538_v13  ;;  %v2570_v35 = vrot.slane %v10680_v32, 3  ;;  %v2573_v59 = vrot.slane %v10682_v10, 4  ;;  %v2529_v17 = vor.u32 %v2528_v36, %v2525_v43 }
 0x160   : > { %v2552_v43 = vrot.slane %v10684_v25, 3  ;;  %v2555_v36 = vrot.slane %v10685_v5, 4 }
 0x161   : > { %v2574_v32 = vor.u32 %v2573_v59, %v2570_v35  ;;  %v2588_v35 = vrot.slane %v10687_v29, 3  ;;  %v2591_v59 = vrot.slane %v10686_v30, 4  ;;  %v10694_v30 = vshrl.u32 %v9309_v57, 16 }
 0x162   : > { %v10695_v29 = vshll.u32 %v9309_v57, 16  ;;  %v9367_v57 = vld [vmem:[#allocation2 + $0x198] ss:$12 sps:$4 sm:$0xff]  }
 0x163   : > { %10869 = vst [vmem:[#allocation60_spill] sm:$0xff] %v9367_v57 }
 0x164   : > { %3085 = vmatmul.mubr.bf16.gmra.mxu0 %v2503_v8  ;;  %v9294_v8 = vld [vmem:[#allocation2 + $0x170] ss:$12 sps:$4 sm:$0xff]  }
 0x165   : > { %3092 = vmatprep.mubr.bf16.mxu0 %v2539_v22  ;;  %10862 = vst [vmem:[#allocation53_spill] sm:$0xff] %v9294_v8  ;;  %v2565_v22 = vor.u32 %v2564_v14, %v2561_v49  ;;  %v10689_v58 = vshrl.u32 %v9294_v8, 16  ;;  %v10691_v10 = vshll.u32 %v9294_v8, 16  ;;  %v9316_v14 = vld [vmem:[#allocation2 + $0x184] ss:$12 sps:$4 sm:$0xff]  }
 0x166   : > { %7186 = vmatmul.mubr.bf16.gmra.mxu1 %v2548_v12  ;;  %v2530_v12 = vsel %vm2200_vm10, %v2502_v27, %v2529_v17  ;;  %10864 = vst [vmem:[#allocation55_spill] sm:$0xff] %v9316_v14  ;;  %v2575_v27 = vsel %vm2200_vm10, %v2547_v16, %v2574_v32  ;;  %v10697_v16 = vshrl.u32 %v9316_v14, 16  ;;  %v10696_v24 = vshll.u32 %v9316_v14, 16  ;;  %v9338_v8 = vld [vmem:[#allocation2 + $0x180] ss:$12 sps:$4 sm:$0xff]  }
 0x167   : > { %7189 = vmatprep.mubr.msk.bf16.mxu1 %vm7726_vm0, %v10798_v48  ;;  %v2566_v49 = vsel %vm2200_vm10, %v2538_v13, %v2565_v22  ;;  %v2597_v25 = vrot.slane %v10689_v58, 3  ;;  %v2600_v5 = vrot.slane %v10691_v10, 4  ;;  %v2556_v13 = vor.u32 %v2555_v36, %v2552_v43  ;;  %10866 = vst [vmem:[#allocation57_spill] sm:$0xff] %v9338_v8 }
 0x168   : > { %v2579_v43 = vrot.slane %v10694_v30, 3  ;;  %v2582_v36 = vrot.slane %v10695_v29, 4 }
 0x169   : > { %v2601_v58 = vor.u32 %v2600_v5, %v2597_v25  ;;  %v2615_v25 = vrot.slane %v10697_v16, 3  ;;  %v2618_v5 = vrot.slane %v10696_v24, 4  ;;  %v10706_v24 = vshrl.u32 %v9338_v8, 16 }
 0x16a   : > { %v10707_v16 = vshll.u32 %v9338_v8, 16  ;;  %v9396_v8 = vld [vmem:[#allocation2 + $0x1b0] ss:$12 sps:$4 sm:$0xff]  }
 0x16b   : > { %10872 = vst [vmem:[#allocation63_spill] sm:$0xff] %v9396_v8 }
 0x16c   : > { %3093 = vmatmul.mubr.bf16.gmra.mxu0 %v2530_v12  ;;  %v9323_v12 = vld [vmem:[#allocation2 + $0x188] ss:$12 sps:$4 sm:$0xff]  }
 0x16d   : > { %3100 = vmatprep.mubr.bf16.mxu0 %v2566_v49  ;;  %10865 = vst [vmem:[#allocation56_spill] sm:$0xff] %v9323_v12  ;;  %v2592_v49 = vor.u32 %v2591_v59, %v2588_v35  ;;  %v10700_v0 = vshrl.u32 %v9323_v12, 16  ;;  %v10703_v10 = vshll.u32 %v9323_v12, 16  ;;  %v9345_v59 = vld [vmem:[#allocation2 + $0x19c] ss:$12 sps:$4 sm:$0xff]  }
 0x16e   : > { %7190 = vmatmul.mubr.bf16.gmra.mxu1 %v2575_v27  ;;  %v2557_v27 = vsel %vm2200_vm10, %v2529_v17, %v2556_v13  ;;  %10867 = vst [vmem:[#allocation58_spill] sm:$0xff] %v9345_v59  ;;  %v2602_v17 = vsel %vm2200_vm10, %v2574_v32, %v2601_v58  ;;  %v10709_v32 = vshrl.u32 %v9345_v59, 16  ;;  %v10708_v14 = vshll.u32 %v9345_v59, 16 }
 0x16f   : > { %7193 = vmatprep.mubr.msk.bf16.mxu1 %vm7726_vm0, %v10798_v48  ;;  %v2593_v35 = vsel %vm2200_vm10, %v2565_v22, %v2592_v49  ;;  %v2624_v30 = vrot.slane %v10700_v0, 3  ;;  %v2627_v29 = vrot.slane %v10703_v10, 4  ;;  %v2583_v22 = vor.u32 %v2582_v36, %v2579_v43 }
 0x170   : > { %v2606_v43 = vrot.slane %v10706_v24, 3  ;;  %v2609_v36 = vrot.slane %v10707_v16, 4 }
 0x171   : > { %v2628_v0 = vor.u32 %v2627_v29, %v2624_v30  ;;  %v2642_v30 = vrot.slane %v10709_v32, 3  ;;  %v2645_v29 = vrot.slane %v10708_v14, 4  ;;  %v10718_v14 = vshrl.u32 %v9367_v57, 16 }
 0x172   : > { %v10719_v32 = vshll.u32 %v9367_v57, 16  ;;  %v1872_v57 = vld [vmem:[#allocation2 + $0x1ec] sm:$0xff] }
 0x174   : > { %3101 = vmatmul.mubr.bf16.gmra.mxu0 %v2557_v27  ;;  %v9352_v27 = vld [vmem:[#allocation2 + $0x1a0] ss:$12 sps:$4 sm:$0xff]  }
 0x175   : > { %3108 = vmatprep.mubr.bf16.mxu0 %v2593_v35  ;;  %10868 = vst [vmem:[#allocation59_spill] sm:$0xff] %v9352_v27  ;;  %v2619_v35 = vor.u32 %v2618_v5, %v2615_v25  ;;  %v10712_v12 = vshrl.u32 %v9352_v27, 16  ;;  %v10715_v10 = vshll.u32 %v9352_v27, 16  ;;  %v9374_v5 = vld [vmem:[#allocation2 + $0x1b4] ss:$12 sps:$4 sm:$0xff]  }
 0x176   : > { %7194 = vmatmul.mubr.bf16.gmra.mxu1 %v2602_v17  ;;  %v2584_v17 = vsel %vm2200_vm10, %v2556_v13, %v2583_v22  ;;  %10870 = vst [vmem:[#allocation61_spill] sm:$0xff] %v9374_v5  ;;  %v2629_v13 = vsel %vm2200_vm10, %v2601_v58, %v2628_v0  ;;  %v10721_v58 = vshrl.u32 %v9374_v5, 16  ;;  %v10720_v59 = vshll.u32 %v9374_v5, 16 }
 0x177   : > { %7197 = vmatprep.mubr.msk.bf16.mxu1 %vm7726_vm0, %v10798_v48  ;;  %v2620_v25 = vsel %vm2200_vm10, %v2592_v49, %v2619_v35  ;;  %v2651_v24 = vrot.slane %v10712_v12, 3  ;;  %v2654_v16 = vrot.slane %v10715_v10, 4  ;;  %v2610_v49 = vor.u32 %v2609_v36, %v2606_v43 }
 0x178   : > { %v2633_v43 = vrot.slane %v10718_v14, 3  ;;  %v2636_v36 = vrot.slane %v10719_v32, 4 }
 0x179   : > { %v2655_v12 = vor.u32 %v2654_v16, %v2651_v24  ;;  %v2669_v24 = vrot.slane %v10721_v58, 3  ;;  %v2672_v16 = vrot.slane %v10720_v59, 4  ;;  %v10732_v59 = vshrl.u32 %v9396_v8, 16 }
 0x17a   : > { %v10735_v58 = vshll.u32 %v9396_v8, 16 }
 0x17c   : > { %3109 = vmatmul.mubr.bf16.gmra.mxu0 %v2584_v17  ;;  %v9381_v17 = vld [vmem:[#allocation2 + $0x1b8] ss:$12 sps:$4 sm:$0xff]   ;;  %v2663_v2 = vrot.slane %v10735_v58, 4 }
 0x17d   : > { %3116 = vmatprep.mubr.bf16.mxu0 %v2620_v25  ;;  %10871 = vst [vmem:[#allocation62_spill] sm:$0xff] %v9381_v17  ;;  %v2646_v25 = vor.u32 %v2645_v29, %v2642_v30  ;;  %v10724_v27 = vshrl.u32 %v9381_v17, 16  ;;  %v10727_v10 = vshll.u32 %v9381_v17, 16  ;;  %v9403_v29 = vld [vmem:[#allocation2 + $0x1cc] ss:$12 sps:$4 sm:$0xff]  }
 0x17e   : > { %7198 = vmatmul.mubr.bf16.gmra.mxu1 %v2629_v13  ;;  %v2611_v13 = vsel %vm2200_vm10, %v2583_v22, %v2610_v49  ;;  %10873 = vst [vmem:[#allocation64_spill] sm:$0xff] %v9403_v29  ;;  %v2656_v22 = vsel %vm2200_vm10, %v2628_v0, %v2655_v12  ;;  %v10740_v0 = vshrl.u32 %v9403_v29, 16  ;;  %v10741_v5 = vshll.u32 %v9403_v29, 16 }
 0x17f   : > { %7201 = vmatprep.mubr.msk.bf16.mxu1 %vm7726_vm0, %v10798_v48  ;;  %v2647_v30 = vsel %vm2200_vm10, %v2619_v35, %v2646_v25  ;;  %v2678_v14 = vrot.slane %v10724_v27, 3  ;;  %v2681_v32 = vrot.slane %v10727_v10, 4  ;;  %v2637_v35 = vor.u32 %v2636_v36, %v2633_v43 }
 0x180   : > { %v2660_v36 = vrot.slane %v10732_v59, 3  ;;  %v2699_v10 = vrot.slane %v10741_v5, 4 }
 0x181   : > { %v2682_v27 = vor.u32 %v2681_v32, %v2678_v14  ;;  %v2638_v43 = vsel %vm2200_vm10, %v2610_v49, %v2637_v35  ;;  %v2696_v32 = vrot.slane %v10740_v0, 3  ;;  %v1819_v49 = vld [vmem:[#allocation2 + $0x1e8] sm:$0xf] }
 0x183   : > { %v2683_v59 = vsel %vm2200_vm10, %v2655_v12, %v2682_v27  ;;  %v2700_v29 = vor.u32 %v2699_v10, %v2696_v32  ;;  %v7580_v32 = vld [vmem:[#allocation2 + $0x1fc] ss:$12 sps:$4 sm:$0x3f]  }
 0x184   : > { %3117 = vmatmul.mubr.bf16.gmra.mxu0 %v2611_v13  ;;  %v9410_v13 = vld [vmem:[#allocation2 + $0x1d0] ss:$12 sps:$4 sm:$0xff]  }
 0x185   : > { %3124 = vmatprep.mubr.bf16.mxu0 %v2647_v30  ;;  %10874 = vst [vmem:[#allocation65_spill] sm:$0xff] %v9410_v13  ;;  %v2673_v30 = vor.u32 %v2672_v16, %v2669_v24  ;;  %v9425_v24 = vld [vmem:[#allocation2 + $0x1c8] ss:$12 sps:$4 sm:$0xff]   ;;  %v1818_v16 = vld [vmem:[#allocation2 + $0x1e0] sm:$0xff]  ;;  %v10876_v8 = vshrl.u32 %v9410_v13, 16  ;;  %v10877_v37 = vshll.u32 %v9410_v13, 16 }
 0x186   : > { %7202 = vmatmul.mubr.bf16.gmra.mxu1 %v2656_v22  ;;  %v1873_v22 = vld [vmem:[#allocation2 + $0x1f4] sm:$0xf]  ;;  %10875 = vst [vmem:[#allocation66_spill] sm:$0xff] %v9425_v24  ;;  %v6498_v17 = vcombine.high %v1818_v16, %v1872_v57  ;;  %v10752_v0 = vshrl.u32 %v9425_v24, 16  ;;  %v10753_v5 = vshll.u32 %v9425_v24, 16 }
 0x187   : > { %7205 = vmatprep.mubr.msk.bf16.mxu1 %vm7726_vm0, %v10798_v48  ;;  %v2674_v14 = vsel %vm2200_vm10, %v2646_v25, %v2673_v30  ;;  %v2705_v58 = vrot.slane %v10876_v8, 3  ;;  %v2708_v21 = vrot.slane %v10877_v37, 4  ;;  %v2664_v25 = vor.u32 %v2663_v2, %v2660_v36  ;;  %v1738_v24 = vld [vmem:[#allocation2] sm:$0xcc] }
 0x188   : > { %v2724_v31 = vshll.u32 %v6498_v17, 16  ;;  %v2687_v37 = vrot.slane %v10752_v0, 3  ;;  %v2690_v2 = vrot.slane %v10753_v5, 4 }
 0x189   : > { %v2709_v12 = vor.u32 %v2708_v21, %v2705_v58  ;;  %v3206_v8 = vpop.f32.mrf.mxu1  ;;  %v2665_v13 = vsel %vm2200_vm10, %v2637_v35, %v2664_v25  ;;  %v7582_v35 = vld [vmem:[#allocation2 + $0x200] ss:$12 sps:$4 sm:$0x3f]  }
 0x18a   : > { %v2726_v10 = vrot.slane %v2724_v31, 4  ;;  %v2691_v0 = vor.u32 %v2690_v2, %v2687_v37 }
 0x18b   : > { %v2710_v21 = vsel %vm2200_vm10, %v2682_v27, %v2709_v12 }
 0x18c   : > { %3125 = vmatmul.mubr.bf16.gmra.mxu0 %v2638_v43  ;;  %v6499_v43 = vcombine.low %v1819_v49, %v1873_v22  ;;  %v2701_v22 = vsel %vm2200_vm10, %v2673_v30, %v2700_v29  ;;  %v2748_v30 = vshrl.u32 %v7580_v32, 16 }
 0x18d   : > { %3132 = vmatprep.mubr.bf16.mxu0 %v2674_v14  ;;  %v2721_v14 = vshrl.u32 %v6498_v17, 16  ;;  %v7143_v17 = vpop.f32.mrf.mxu1 }
 0x18e   : > { %7206 = vmatmul.mubr.bf16.gmra.mxu1 %v2683_v59  ;;  %v2730_v52 = vshrl.u32 %v6499_v43, 16  ;;  %v2733_v3 = vshll.u32 %v6499_v43, 16  ;;  %v6497_v59 = vcombine.low %v1818_v16, %v1872_v57  ;;  %v2757_v17 = vshrl.u32 %v7582_v35, 16 }
 0x18f   : > { %7209 = vmatprep.mubr.msk.bf16.mxu1 %vm7726_vm0, %v10798_v48  ;;  %v2723_v36 = vrot.slane %v2721_v14, 3  ;;  %v3209_v43 = vpop.f32.mrf.mxu1  ;;  %v2751_v14 = vshll.u32 %v7580_v32, 16  ;;  %v2750_v2 = vrot.slane %v2748_v30, 3  ;;  %v1742_v32 = vld [vmem:[#allocation2 + $0x18] sm:$0xff] }
 0x190   : > { %v2732_v58 = vrot.slane %v2730_v52, 3  ;;  %v2735_v49 = vrot.slane %v2733_v3, 4  ;;  %v2712_v57 = vshrl.u32 %v6497_v59, 16  ;;  %v2692_v52 = vsel %vm2200_vm10, %v2664_v25, %v2691_v0  ;;  %v7703_v25 = vld [vmem:[#allocation2 + $0x24] sm:$0xff] }
 0x191   : > { %v2727_v16 = vor.u32 %v2726_v10, %v2723_v36  ;;  %v7144_v31 = vpop.f32.mrf.mxu1  ;;  %v2753_v18 = vrot.slane %v2751_v14, 4  ;;  %v2759_v36 = vrot.slane %v2757_v17, 3 }
 0x192   : > { %v2736_v5 = vor.u32 %v2735_v49, %v2732_v58  ;;  %v2714_v3 = vrot.slane %v2712_v57, 3  ;;  %v9453_v58 = vld [vmem:[#allocation2] sm:$0xff] }
 0x193   : > { %v2728_v37 = vsel %vm2200_vm10, %v2700_v29, %v2727_v16  ;;  %v6528_v49 = vcombine.high %v1738_v24, %v9453_v58  ;;  %v2754_v30 = vor.u32 %v2753_v18, %v2750_v2  ;;  %v6527_v18 = vcombine.low %v1738_v24, %v9453_v58 }
 0x194   : > { %3133 = vmatmul.mubr.bf16.gmra.mxu0 %v2665_v13  ;;  %v2715_v13 = vshll.u32 %v6497_v59, 16  ;;  %v2737_v59 = vsel %vm2200_vm10, %v2709_v12, %v2736_v5  ;;  %v6530_v2 = vcombine.low %v1742_v32, %v7703_v25 }
 0x195   : > { %3140 = vmatprep.mubr.bf16.mxu0 %v2701_v22  ;;  %v2760_v22 = vshll.u32 %v7582_v35, 16  ;;  %v6531_v35 = vcombine.high %v1742_v32, %v7703_v25  ;;  %v3420_v31 = vshrl.u32 %v6528_v49, 16  ;;  %v3423_v12 = vshll.u32 %v6528_v49, 16  ;;  %v1743_v32 = vld [vmem:[#allocation2 + $0x20] sm:$0xf] }
 0x196   : > { %7210 = vmatmul.mubr.bf16.gmra.mxu1 %v2710_v21  ;;  %v2717_v27 = vrot.slane %v2715_v13, 4  ;;  %v7583_v21 = vld [vmem:[#allocation2 + $0x1f8] ss:$12 sps:$4 sm:$0x3f]  }
 0x197   : > { %7213 = vmatprep.mubr.msk.bf16.mxu1 %vm7726_vm0, %v10798_v48  ;;  %v2762_v10 = vrot.slane %v2760_v22, 4  ;;  %v2739_v29 = vshrl.u32 %v7583_v21, 16  ;;  %v2742_v13 = vshll.u32 %v7583_v21, 16  ;;  %v3428_v17 = vshrl.u32 %v6531_v35, 16 }
 0x198   : > { %v2718_v57 = vor.u32 %v2717_v27, %v2714_v3  ;;  %v3431_v22 = vshll.u32 %v6531_v35, 16  ;;  %v2755_v3 = vsel %vm2200_vm10, %v2727_v16, %v2754_v30 }
 0x199   : > { %v2763_v14 = vor.u32 %v2762_v10, %v2759_v36  ;;  %v2744_v15 = vrot.slane %v2742_v13, 4  ;;  %v3422_v36 = vrot.slane %v3420_v31, 2  ;;  %v3425_v10 = vrot.slane %v3423_v12, 3  ;;  %v7704_v12 = vld [vmem:[#allocation2 + $0x2c] sm:$0xf] }
 0x19a   : > { %v3430_v49 = vrot.slane %v3428_v17, 2  ;;  %v3433_v35 = vrot.slane %v3431_v22, 3  ;;  %v6532_v17 = vcombine.low %v1743_v32, %v7704_v12 }
 0x19b   : > { %v2764_v21 = vsel %vm2200_vm10, %v2736_v5, %v2763_v14  ;;  %v3411_v5 = vshrl.u32 %v6530_v2, 16  ;;  %v3426_v25 = vor.u32 %v3425_v10, %v3422_v36  ;;  %v10878_v36 = vshrl.u32 %v8415_v50, 16 }
 0x19c   : > { %3141 = vmatmul.mubr.bf16.gmra.mxu0 %v2692_v52  ;;  %v3006_v52 = vpop.f32.mrf.mxu0  ;;  %v3434_v31 = vor.u32 %v3433_v35, %v3430_v49  ;;  %v10879_v49 = vshll.u32 %v8415_v50, 16  ;;  %v3448_v32 = vshll.u32 %v6532_v17, 16 }
 0x19d   : > { %3148 = vmatprep.mubr.bf16.mxu0 %v2728_v37  ;;  %v2719_v37 = vsel %vm2200_vm10, %v2691_v0, %v2718_v57  ;;  %v9459_v62 = vadd.f32 %v3206_v8, %v3006_v52  ;;  %v3403_v52 = vshrl.u32 %v6527_v18, 16  ;;  %v3457_v10 = vrot.slane %v10878_v36, 2 }
 0x19e   : > { %7214 = vmatmul.mubr.bf16.gmra.mxu1 %v2737_v59  ;;  %v2741_v59 = vrot.slane %v2739_v29, 3  ;;  %v3008_v27 = vpop.f32.mrf.mxu0  ;;  %v3458_v35 = vrot.slane %v10879_v49, 3  ;;  %v3450_v50 = vrot.slane %v3448_v32, 3 }
 0x19f   : > { %7217 = vmatprep.mubr.msk.bf16.mxu1 %vm7726_vm0, %v10798_v48  ;;  %v3214_v8 = vpop.f32.mrf.mxu1 }
 0x1a0   : > { %v3009_v0 = vpop.f32.mrf.mxu0  ;;  %v2745_v29 = vor.u32 %v2744_v15, %v2741_v59  ;;  %v7589_v15 = vld [vmem:[#allocation2 + $0x8] ss:$12 sps:$4 sm:$0xfc]  }
 0x1a1   : > { %v9466_v13 = vadd.f32 %v3209_v43, %v3009_v0  ;;  %v7147_v24 = vpop.f32.mrf.mxu1  ;;  %v3405_v43 = vrot.slane %v3403_v52, 2 }
 0x1a2   : > { %v3011_v16 = vpop.f32.mrf.mxu0  ;;  %v2746_v22 = vsel %vm2200_vm10, %v2718_v57, %v2745_v29  ;;  %v3437_v57 = vshrl.u32 %v7589_v15, 16  ;;  %v3445_v24 = vshrl.u32 %v6532_v17, 16  ;;  %v10880_v17 = vshrl.u32 %v8453_v54, 16 }
 0x1a3   : > { %v3217_v59 = vpop.f32.mrf.mxu1  ;;  %v3440_v16 = vshll.u32 %v7589_v15, 16 }
 0x1a4   : > { %3149 = vmatmul.mubr.bf16.gmra.mxu0 %v2719_v37  ;;  %v3406_v37 = vshll.u32 %v6527_v18, 16 }
 0x1a5   : > { %3156 = vmatprep.mubr.bf16.mxu0 %v2755_v3  ;;  %v3414_v3 = vshll.u32 %v6530_v2, 16  ;;  %v7148_v18 = vpop.f32.mrf.mxu1  ;;  %v3435_v2 = vsel %vm3401_vm14, %v3426_v25, %v3434_v31  ;;  %v3439_v25 = vrot.slane %v3437_v57, 2  ;;  %v3442_v12 = vrot.slane %v3440_v16, 3 }
 0x1a6   : > { %7218 = vmatmul.mubr.bf16.gmra.mxu1 %v2764_v21  ;;  %v3408_v27 = vrot.slane %v3406_v37, 3  ;;  %v3413_v21 = vrot.slane %v3411_v5, 2  ;;  %v3459_v5 = vor.u32 %v3458_v35, %v3457_v10 }
 0x1a7   : > { %7221 = vmatprep.mubr.msk.bf16.mxu1 %vm7726_vm0, %v10798_v48  ;;  %v3416_v0 = vrot.slane %v3414_v3, 3  ;;  %v3443_v35 = vor.u32 %v3442_v12, %v3439_v25  ;;  %v10885_v25 = vshll.u32 %v8368_v61, 16 }
 0x1a9   : > { %v3417_v52 = vor.u32 %v3416_v0, %v3413_v21  ;;  %v3460_v0 = vsel %vm3401_vm14, %v3434_v31, %v3459_v5  ;;  %v3462_v12 = vrot.slane %v10885_v25, 3 }
 0x1ac   : > { %3157 = vmatmul.mubr.bf16.gmra.mxu0 %v2746_v22  ;;  %v3014_v37 = vpop.f32.mrf.mxu0  ;;  %v3447_v22 = vrot.slane %v3445_v24, 2 }
 0x1ad   : > { %3164 = vmatprep.mubr.bf16.mxu0 %v2754_v30  ;;  %v3409_v30 = vor.u32 %v3408_v27, %v3405_v43  ;;  %v9474_v3 = vadd.f32 %v3214_v8, %v3014_v37  ;;  %v3453_v43 = vrot.slane %v10880_v17, 2  ;;  %v10881_v8 = vshll.u32 %v8453_v54, 16  ;;  %v7590_v54 = vld [vmem:[%s10572_s3 + $0x1b0] sm:$0xff]  }
 0x1ae   : > { %7222 = vmatmul.mubr.bf16.gmra.mxu1 %v2763_v14  ;;  %v7587_v14 = vld [vmem:[%s10572_s3 + $0x1b8] sm:$0xff]   ;;  %v3016_v18 = vpop.f32.mrf.mxu0  ;;  %v3451_v57 = vor.u32 %v3450_v50, %v3447_v22  ;;  %v10884_v37 = vshrl.u32 %v8368_v61, 16  ;;  %v7591_v22 = vld [vmem:[%s10572_s3 + $0x1a8] sm:$0xff]  }
 0x1af   : > { %3935 = vmatprep.mubr.bf16.mxu1 %v3435_v2  ;;  %v3418_v15 = vsel %vm3401_vm14, %v3409_v30, %v3417_v52  ;;  %v3454_v27 = vrot.slane %v10881_v8, 3  ;;  %v10882_v2 = vshrl.u32 %v8495_v46, 16  ;;  %v7595_v8 = vld [vmem:[%s10572_s3 + $0x230] sm:$0xff]  }
 0x1b0   : > { %v3017_v21 = vpop.f32.mrf.mxu0  ;;  %v3452_v30 = vsel %vm3401_vm14, %v3443_v35, %v3451_v57 }
 0x1b1   : > { %v3469_v36 = vrot.slane %v10882_v2, 2  ;;  %v9491_v49 = vadd.f32 %v3217_v59, %v3017_v21  ;;  %v3455_v24 = vor.u32 %v3454_v27, %v3453_v43  ;;  %v10887_v43 = vshll.u32 %v8550_v60, 16 }
 0x1b2   : > { %v3019_v16 = vpop.f32.mrf.mxu0  ;;  %v10888_v21 = vshrl.u32 %v8592_v26, 16 }
 0x1b3   : > { %v3222_v31 = vpop.f32.mrf.mxu1  ;;  %v3456_v18 = vsel %vm3401_vm14, %v3417_v52, %v3455_v24  ;;  %v3466_v61 = vrot.slane %v10887_v43, 3  ;;  %v10890_v16 = vshrl.u32 %v8488_v42, 16  ;;  %v10895_v43 = vshll.u32 %v8705_v23, 16 }
 0x1b4   : > { %3165 = vmatmul.mubr.bf16.gmra.mxu0 %v2745_v29  ;;  %v10883_v29 = vshll.u32 %v8495_v46, 16  ;;  %v7592_v46 = vld [vmem:[%s10572_s3 + $0x238] sm:$0xff]   ;;  %v3481_v52 = vrot.slane %v10888_v21, 2  ;;  %v7596_v21 = vld [vmem:[%s10572_s3 + $0x190] sm:$0xff]  }
 0x1b5   : > { %7241 = vmatprep.mubr.msk.bf16.mxu0 %vm7726_vm0, %v10798_v48  ;;  %v7151_v59 = vpop.f32.mrf.mxu1 }
 0x1b6   : > { %3936 = vmatmul.mubr.bf16.vlgmr.msra.gmra.mxu1 %v3418_v15  ;;  %v3470_v10 = vrot.slane %v10883_v29, 3  ;;  %v10886_v15 = vshrl.u32 %v8550_v60, 16  ;;  %v7593_v29 = vld [vmem:[%s10572_s3 + $0x1a0] sm:$0xff]   ;;  %v10891_v59 = vshll.u32 %v8488_v42, 16 }
 0x1b7   : > { %5412 = vmatpush1.bf16.msra.mxu1 %v7587_v14  ;;  %3943 = vmatprep.mubr.bf16.mxu1 %v3460_v0  ;;  %v3461_v14 = vrot.slane %v10884_v37, 2  ;;  %v3225_v50 = vpop.f32.mrf.mxu1  ;;  %v10889_v0 = vshll.u32 %v8592_v26, 16  ;;  %v7594_v37 = vld [vmem:[%s10572_s3 + $0x198] sm:$0xff]  }
 0x1b8   : > { %5413 = vmatprep.subr.bf16.mxu1 %v9453_v58  ;;  %v3471_v32 = vor.u32 %v3470_v10, %v3469_v36  ;;  %v3465_v17 = vrot.slane %v10886_v15, 2 }
 0x1b9   : > { %v3482_v2 = vrot.slane %v10889_v0, 3  ;;  %v7152_v36 = vpop.f32.mrf.mxu1  ;;  %v3463_v60 = vor.u32 %v3462_v12, %v3461_v14 }
 0x1ba   : > { %v3472_v27 = vsel %vm3401_vm14, %v3459_v5, %v3471_v32  ;;  %v3467_v10 = vor.u32 %v3466_v61, %v3465_v17  ;;  %v7598_v5 = vld [vmem:[%s10572_s3 + $0x228] sm:$0xff]   ;;  %v10894_v17 = vshrl.u32 %v8705_v23, 16  ;;  %v3494_v61 = vrot.slane %v10895_v43, 3  ;;  %v7604_v23 = vld [vmem:[%s10572_s3 + $0x218] sm:$0xff]  }
 0x1bb   : > { %5414 = vmatpush1.bf16.msra.mxu1 %v7590_v54  ;;  %v3483_v26 = vor.u32 %v3482_v2, %v3481_v52  ;;  %v3464_v54 = vsel %vm3401_vm14, %v3451_v57, %v3463_v60  ;;  %v10892_v57 = vshrl.u32 %v8635_v9, 16 }
 0x1bc   : > { %7242 = vmatmul.mubr.bf16.vlgmr.msra.gmra.mxu0 %v3452_v30  ;;  %5415 = vmatprep.subr.bf16.mxu1 %v9453_v58  ;;  %v3474_v30 = vrot.slane %v10891_v59, 3  ;;  %v3468_v12 = vsel %vm3401_vm14, %v3455_v24, %v3467_v10  ;;  %v3493_v24 = vrot.slane %v10894_v17, 2 }
 0x1bd   : > { %7245 = vmatprep.mubr.msk.bf16.mxu0 %vm7726_vm0, %v10798_v48  ;;  %7326 = vmatpush3.bf16.msra.mxu0 %v7592_v46  ;;  %v3473_v46 = vrot.slane %v10890_v16, 2  ;;  %v3477_v42 = vrot.slane %v10892_v57, 2  ;;  %v3484_v15 = vsel %vm3401_vm14, %v3471_v32, %v3483_v26  ;;  %v7597_v16 = vld [vmem:[%s10572_s3 + $0x188] sm:$0xff]   ;;  %v10900_v57 = vshrl.u32 %v8805_v38, 16 }
 0x1be   : > { %3944 = vmatmul.mubr.bf16.gmra.mxu1 %v3456_v18  ;;  %7327 = vmatprep.subr.bf16.mxu0 %v10798_v48  ;;  %v3495_v2 = vor.u32 %v3494_v61, %v3493_v24  ;;  %v10902_v24 = vshrl.u32 %v8728_v51, 16  ;;  %v10903_v61 = vshll.u32 %v8728_v51, 16 }
 0x1bf   : > { %3951 = vmatprep.mubr.bf16.mxu1 %v3472_v27  ;;  %5416 = vmatpush1.bf16.msra.mxu1 %v7591_v22  ;;  %v10893_v22 = vshll.u32 %v8635_v9, 16  ;;  %v3475_v9 = vor.u32 %v3474_v30, %v3473_v46 }
 0x1c0   : > { %5417 = vmatprep.subr.bf16.mxu1 %v9453_v58  ;;  %v3022_v35 = vpop.f32.mrf.mxu0  ;;  %v3497_v43 = vrot.slane %v10902_v24, 2 }
 0x1c1   : > { %7328 = vmatpush3.bf16.msra.mxu0 %v7595_v8  ;;  %v9541_v14 = vadd.f32 %v3222_v31, %v3022_v35  ;;  %v3478_v18 = vrot.slane %v10893_v22, 3  ;;  %v7601_v31 = vld [vmem:[%s10572_s3 + $0x220] sm:$0xff]   ;;  %v10897_v35 = vshll.u32 %v8594_v4, 16 }
 0x1c2   : > { %7329 = vmatprep.subr.bf16.mxu0 %v10798_v48  ;;  %v3024_v25 = vpop.f32.mrf.mxu0 }
 0x1c3   : > { %5418 = vmatpush1.bf16.msra.mxu1 %v7593_v29  ;;  %v3479_v0 = vor.u32 %v3478_v18, %v3477_v42  ;;  %v10896_v29 = vshrl.u32 %v8594_v4, 16  ;;  %v10899_v4 = vshll.u32 %v8786_v11, 16  ;;  %v7607_v25 = vld [vmem:[%s10572_s3 + $0x210] sm:$0xff]   ;;  %v10901_v42 = vshll.u32 %v8805_v38, 16 }
 0x1c4   : > { %7246 = vmatmul.mubr.bf16.gmra.mxu0 %v3464_v54  ;;  %5419 = vmatprep.subr.bf16.mxu1 %v9453_v58  ;;  %v3025_v8 = vpop.f32.mrf.mxu0  ;;  %v3230_v52 = vpop.f32.mrf.mxu1  ;;  %v3486_v54 = vrot.slane %v10897_v35, 3 }
 0x1c5   : > { %7249 = vmatprep.mubr.msk.bf16.mxu0 %vm7726_vm0, %v10798_v48  ;;  %7330 = vmatpush3.bf16.msra.mxu0 %v7598_v5  ;;  %v9560_v27 = vadd.f32 %v3225_v50, %v3025_v8  ;;  %v3476_v50 = vsel %vm3401_vm14, %v3463_v60, %v3475_v9  ;;  %v3485_v5 = vrot.slane %v10896_v29, 2  ;;  %v3480_v59 = vsel %vm3401_vm14, %v3467_v10, %v3479_v0 }
 0x1c6   : > { %3952 = vmatmul.mubr.bf16.gmra.mxu1 %v3468_v12  ;;  %7331 = vmatprep.subr.bf16.mxu0 %v10798_v48  ;;  %v3027_v32 = vpop.f32.mrf.mxu0  ;;  %v7155_v36 = vpop.f32.mrf.mxu1  ;;  %v10898_v60 = vshrl.u32 %v8786_v11, 16  ;;  %v3496_v12 = vsel %vm3401_vm14, %v3483_v26, %v3495_v2  ;;  %v3505_v10 = vrot.slane %v10900_v57, 2  ;;  %v3506_v22 = vrot.slane %v10901_v42, 3  ;;  %v7611_v26 = vld [vmem:[%s10572_s3 + $0x208] sm:$0xff]  }
 0x1c7   : > { %3959 = vmatprep.mubr.bf16.mxu1 %v3484_v15  ;;  %5420 = vmatpush1.bf16.msra.mxu1 %v7594_v37  ;;  %v3490_v37 = vrot.slane %v10899_v4, 3  ;;  %v3487_v11 = vor.u32 %v3486_v54, %v3485_v5  ;;  %v3498_v8 = vrot.slane %v10903_v61, 3  ;;  %v7600_v32 = vld [vmem:[%s10572_s3 + $0x1f8] sm:$0xff]   ;;  %v10908_v57 = vshrl.u32 %v8815_v6, 16 }
 0x1c8   : > { %5421 = vmatprep.subr.bf16.mxu1 %v9453_v58  ;;  %v3233_v46 = vpop.f32.mrf.mxu1  ;;  %v3489_v30 = vrot.slane %v10898_v60, 2  ;;  %v3507_v38 = vor.u32 %v3506_v22, %v3505_v10  ;;  %v10909_v42 = vshll.u32 %v8815_v6, 16  ;;  %v10911_v6 = vshll.u32 %v8962_v34, 16 }
 0x1c9   : > { %7332 = vmatpush3.bf16.msra.mxu0 %v7601_v31  ;;  %v7599_v31 = vld [vmem:[%s10572_s3 + $0x180] sm:$0xff]   ;;  %v3488_v17 = vsel %vm3401_vm14, %v3475_v9, %v3487_v11  ;;  %v10904_v9 = vshrl.u32 %v8835_v41, 16  ;;  %v3509_v10 = vrot.slane %v10908_v57, 2  ;;  %v10918_v57 = vshrl.u32 %v9084_v63, 16 }
 0x1ca   : > { %7333 = vmatprep.subr.bf16.mxu0 %v10798_v48  ;;  %v7156_v18 = vpop.f32.mrf.mxu1  ;;  %v3491_v15 = vor.u32 %v3490_v37, %v3489_v30  ;;  %v3508_v35 = vsel %vm3401_vm14, %v3495_v2, %v3507_v38  ;;  %v3510_v22 = vrot.slane %v10909_v42, 3  ;;  %v10919_v42 = vshll.u32 %v9084_v63, 16 }
 0x1cb   : > { %5422 = vmatpush1.bf16.msra.mxu1 %v7596_v21  ;;  %v3501_v51 = vrot.slane %v10904_v9, 2 }
 0x1cc   : > { %7250 = vmatmul.mubr.bf16.gmra.mxu0 %v3476_v50  ;;  %5423 = vmatprep.subr.bf16.mxu1 %v9453_v58  ;;  %v3492_v36 = vsel %vm3401_vm14, %v3479_v0, %v3491_v15  ;;  %v10905_v50 = vshll.u32 %v8835_v41, 16  ;;  %v7602_v41 = vld [vmem:[%s10572_s3 + $0x1f0] sm:$0xff]  }
 0x1cd   : > { %7253 = vmatprep.mubr.msk.bf16.mxu0 %vm7726_vm0, %v10798_v48  ;;  %7334 = vmatpush3.bf16.msra.mxu0 %v7604_v23 }
 0x1ce   : > { %3960 = vmatmul.mubr.bf16.gmra.mxu1 %v3480_v59  ;;  %7335 = vmatprep.subr.bf16.mxu0 %v10798_v48  ;;  %v3502_v29 = vrot.slane %v10905_v50, 3  ;;  %v3499_v59 = vor.u32 %v3498_v8, %v3497_v43  ;;  %v10912_v43 = vshrl.u32 %v8988_v39, 16  ;;  %v10913_v8 = vshll.u32 %v8988_v39, 16  ;;  %v7623_v39 = vld [vmem:[%s10572_s3 + $0x200] sm:$0xff]  }
 0x1cf   : > { %3967 = vmatprep.mubr.bf16.mxu1 %v3496_v12  ;;  %5424 = vmatpush1.bf16.msra.mxu1 %v7597_v16  ;;  %v10907_v16 = vshll.u32 %v8884_v1, 16 }
 0x1d0   : > { %5425 = vmatprep.subr.bf16.mxu1 %v9453_v58  ;;  %v3503_v2 = vor.u32 %v3502_v29, %v3501_v51  ;;  %v3500_v12 = vsel %vm3401_vm14, %v3487_v11, %v3499_v59  ;;  %v10910_v11 = vshrl.u32 %v8962_v34, 16  ;;  %v3529_v61 = vrot.slane %v10912_v43, 2  ;;  %v7605_v34 = vld [vmem:[%s10572_s3 + $0x1e0] sm:$0xff]  }
 0x1d1   : > { %7336 = vmatpush3.bf16.msra.mxu0 %v7607_v25  ;;  %v3518_v0 = vrot.slane %v10907_v16, 3  ;;  %v10922_v43 = vshrl.u32 %v9104_v33, 16 }
 0x1d2   : > { %7337 = vmatprep.subr.bf16.mxu0 %v10798_v48 }
 0x1d3   : > { %v3030_v21 = vpop.f32.mrf.mxu0  ;;  %5426 = vmatpush1.bf16.msra.mxu1 %v7599_v31  ;;  %v3504_v31 = vsel %vm3401_vm14, %v3491_v15, %v3503_v2 }
 0x1d4   : > { %7254 = vmatmul.mubr.bf16.gmra.mxu0 %v3488_v17  ;;  %v9611_v23 = vadd.f32 %v3230_v52, %v3030_v21  ;;  %5427 = vmatprep.subr.bf16.mxu1 %v9453_v58  ;;  %v10906_v52 = vshrl.u32 %v8884_v1, 16  ;;  %v3514_v17 = vrot.slane %v10911_v6, 3  ;;  %v3530_v21 = vrot.slane %v10913_v8, 3  ;;  %v7610_v6 = vld [vmem:[%s10572_s3 + $0x1c8] sm:$0xff]  }
 0x1d5   : > { %7257 = vmatprep.mubr.msk.bf16.mxu0 %vm7726_vm0, %v10798_v48  ;;  %v3032_v5 = vpop.f32.mrf.mxu0  ;;  %7338 = vmatpush3.bf16.msra.mxu0 %v7611_v26  ;;  %v3513_v26 = vrot.slane %v10910_v11, 2 }
 0x1d6   : > { %3968 = vmatmul.mubr.bf16.gmra.mxu1 %v3492_v36  ;;  %v3517_v54 = vrot.slane %v10906_v52, 2  ;;  %7339 = vmatprep.subr.bf16.mxu0 %v10798_v48  ;;  %v3511_v36 = vor.u32 %v3510_v22, %v3509_v10  ;;  %v3531_v50 = vor.u32 %v3530_v21, %v3529_v61  ;;  %v3541_v10 = vrot.slane %v10918_v57, 2 }
 0x1d7   : > { %3975 = vmatprep.mubr.bf16.mxu1 %v3508_v35  ;;  %v3033_v60 = vpop.f32.mrf.mxu0  ;;  %5428 = vmatpush2.bf16.msra.mxu1 %v7600_v32  ;;  %v3238_v30 = vpop.f32.mrf.mxu1  ;;  %v10914_v35 = vshrl.u32 %v8902_v47, 16  ;;  %v3542_v22 = vrot.slane %v10919_v42, 3  ;;  %v3537_v61 = vrot.slane %v10922_v43, 2  ;;  %v10935_v43 = vshll.u32 %v9185_v45, 16 }
 0x1d8   : > { %v9630_v4 = vadd.f32 %v3233_v46, %v3033_v60  ;;  %5429 = vmatprep.subr.bf16.mxu1 %v9453_v58  ;;  %v3519_v25 = vor.u32 %v3518_v0, %v3517_v54  ;;  %v7603_v46 = vld [vmem:[%s10572_s3 + $0x1e8] sm:$0xff]   ;;  %v3512_v5 = vsel %vm3401_vm14, %v3499_v59, %v3511_v36  ;;  %v10915_v54 = vshll.u32 %v8902_v47, 16  ;;  %v7606_v60 = vld [vmem:[%s10572_s3 + $0x1d8] sm:$0xff]  }
 0x1d9   : > { %v3035_v37 = vpop.f32.mrf.mxu0  ;;  %v7159_v1 = vpop.f32.mrf.mxu1  ;;  %v3521_v52 = vrot.slane %v10914_v35, 2  ;;  %7340 = vmatpush3.bf16.msra.mxu0 %v7623_v39  ;;  %v10916_v47 = vshrl.u32 %v9078_v20, 16  ;;  %v7614_v39 = vld [vmem:[%s10572_s3 + $0x1c0] sm:$0xff]  }
 0x1da   : > { %v3520_v24 = vsel %vm3401_vm14, %v3507_v38, %v3519_v25  ;;  %v3515_v38 = vor.u32 %v3514_v17, %v3513_v26  ;;  %v3522_v16 = vrot.slane %v10915_v54, 3  ;;  %v10917_v37 = vshll.u32 %v9078_v20, 16 }
 0x1db   : > { %5430 = vmatpush2.bf16.msra.mxu1 %v7602_v41  ;;  %v3241_v18 = vpop.f32.mrf.mxu1  ;;  %v10921_v26 = vshll.u32 %v9006_v53, 16  ;;  %v10926_v54 = vshrl.u32 %v9082_v40, 16 }
 0x1dc   : > { %7258 = vmatmul.mubr.bf16.gmra.mxu0 %v3500_v12  ;;  %5431 = vmatprep.subr.bf16.mxu1 %v9453_v58  ;;  %v3038_v32 = vpop.f32.mrf.mxu0  ;;  %v3516_v59 = vsel %vm3401_vm14, %v3503_v2, %v3515_v38  ;;  %v3526_v1 = vrot.slane %v10917_v37, 3  ;;  %v3532_v12 = vsel %vm3401_vm14, %v3519_v25, %v3531_v50  ;;  %v3523_v2 = vor.u32 %v3522_v16, %v3521_v52 }
 0x1dd   : > { %7261 = vmatprep.mubr.msk.bf16.mxu0 %vm7726_vm0, %v10798_v48  ;;  %v7160_v15 = vpop.f32.mrf.mxu1  ;;  %v9654_v9 = vadd.f32 %v3238_v30, %v3038_v32  ;;  %v3525_v30 = vrot.slane %v10916_v47, 2  ;;  %v10920_v25 = vshrl.u32 %v9006_v53, 16  ;;  %v3534_v63 = vrot.slane %v10921_v26, 3 }
 0x1de   : > { %3976 = vmatmul.mubr.bf16.gmra.mxu1 %v3504_v31  ;;  %v3040_v51 = vpop.f32.mrf.mxu0  ;;  %v3524_v31 = vsel %vm3401_vm14, %v3511_v36, %v3523_v2  ;;  %v10923_v53 = vshll.u32 %v9104_v33, 16  ;;  %v10924_v32 = vshrl.u32 %v9106_v28, 16  ;;  %v10925_v36 = vshll.u32 %v9106_v28, 16 }
 0x1df   : > { %3983 = vmatprep.mubr.bf16.mxu1 %v3520_v24  ;;  %5432 = vmatpush2.bf16.msra.mxu1 %v7603_v46  ;;  %v7608_v46 = vld [vmem:[%s10572_s3 + $0x1d0] sm:$0xff]   ;;  %v3527_v20 = vor.u32 %v3526_v1, %v3525_v30  ;;  %v3533_v11 = vrot.slane %v10920_v25, 2  ;;  %v3545_v16 = vrot.slane %v10926_v54, 2  ;;  %v10928_v30 = vshrl.u32 %v9138_v55, 16  ;;  %v10940_v54 = vld [vmem:[#allocation45_spill] sm:$0xff] }
 0x1e0   : > { %5433 = vmatprep.subr.bf16.mxu1 %v9453_v58  ;;  %v3041_v29 = vpop.f32.mrf.mxu0  ;;  %v3538_v8 = vrot.slane %v10923_v53, 3  ;;  %v3553_v15 = vrot.slane %v10924_v32, 2  ;;  %v10929_v1 = vshll.u32 %v9138_v55, 16  ;;  %v10932_v55 = vshrl.u32 %v9133_v44, 16 }
 0x1e1   : > { %v9668_v0 = vadd.f32 %v3241_v18, %v3041_v29  ;;  %v3543_v18 = vor.u32 %v3542_v22, %v3541_v10  ;;  %v3528_v17 = vsel %vm3401_vm14, %v3515_v38, %v3527_v20  ;;  %v3535_v51 = vor.u32 %v3534_v63, %v3533_v11 }
 0x1e2   : > { %v3043_v41 = vpop.f32.mrf.mxu0  ;;  %v3539_v33 = vor.u32 %v3538_v8, %v3537_v61  ;;  %v3549_v37 = vrot.slane %v10928_v30, 2  ;;  %v10930_v10 = vshrl.u32 %v9163_v7, 16  ;;  %v10931_v22 = vshll.u32 %v9163_v7, 16  ;;  %v10943_v30 = vld [vmem:[#allocation46_spill] sm:$0xff] }
 0x1e3   : > { %5434 = vmatpush2.bf16.msra.mxu1 %v7605_v34  ;;  %v3544_v21 = vsel %vm3401_vm14, %v3531_v50, %v3543_v18  ;;  %v3554_v34 = vrot.slane %v10925_v36, 3  ;;  %v3536_v28 = vsel %vm3401_vm14, %v3523_v2, %v3535_v51  ;;  %v3557_v26 = vrot.slane %v10932_v55, 2 }
 0x1e4   : > { %7262 = vmatmul.mubr.bf16.gmra.mxu0 %v3512_v5  ;;  %5435 = vmatprep.subr.bf16.mxu1 %v9453_v58  ;;  %v3565_v42 = vrot.slane %v10930_v10, 2  ;;  %v3566_v2 = vrot.slane %v10931_v22, 3  ;;  %v10933_v63 = vshll.u32 %v9133_v44, 16  ;;  %v10934_v7 = vshrl.u32 %v9185_v45, 16 }
 0x1e5   : > { %7265 = vmatprep.mubr.msk.bf16.mxu0 %vm7726_vm0, %v10798_v48  ;;  %v3555_v35 = vor.u32 %v3554_v34, %v3553_v15  ;;  %v3562_v61 = vrot.slane %v10935_v43, 3  ;;  %v10936_v8 = vshrl.u32 %v9198_v19, 16  ;;  %v10938_v45 = vshrl.u32 %v9156_v56, 16 }
 0x1e6   : > { %3984 = vmatmul.mubr.bf16.gmra.mxu1 %v3516_v59  ;;  %v3567_v25 = vor.u32 %v3566_v2, %v3565_v42 }
 0x1e7   : > { %3991 = vmatprep.mubr.bf16.mxu1 %v3532_v12  ;;  %5436 = vmatpush2.bf16.msra.mxu1 %v7606_v60  ;;  %v10927_v60 = vshll.u32 %v9082_v40, 16  ;;  %v3550_v12 = vrot.slane %v10929_v1, 3  ;;  %v3556_v40 = vsel %vm3401_vm14, %v3543_v18, %v3555_v35  ;;  %v3577_v44 = vrot.slane %v10936_v8, 2 }
 0x1e8   : > { %5437 = vmatprep.subr.bf16.mxu1 %v9453_v58  ;;  %v3568_v53 = vsel %vm3401_vm14, %v3555_v35, %v3567_v25 }
 0x1e9   : > { %v3546_v41 = vrot.slane %v10927_v60, 3 }
 0x1eb   : > { %5438 = vmatpush2.bf16.msra.mxu1 %v7608_v46 }
 0x1ec   : > { %7266 = vmatmul.mubr.bf16.gmra.mxu0 %v3524_v31  ;;  %5439 = vmatprep.subr.bf16.mxu1 %v9453_v58  ;;  %v3246_v24 = vpop.f32.mrf.mxu1  ;;  %v3551_v31 = vor.u32 %v3550_v12, %v3549_v37  ;;  %v10944_v37 = vshrl.u32 %v10943_v30, 16  ;;  %v10945_v12 = vshll.u32 %v10943_v30, 16 }
 0x1ed   : > { %7269 = vmatprep.mubr.msk.bf16.mxu0 %vm7726_vm0, %v10798_v48 }
 0x1ee   : > { %3992 = vmatmul.mubr.bf16.gmra.mxu1 %v3528_v17  ;;  %v7163_v38 = vpop.f32.mrf.mxu1  ;;  %v3552_v17 = vsel %vm3401_vm14, %v3539_v33, %v3551_v31  ;;  %v3589_v1 = vrot.slane %v10944_v37, 2 }
 0x1ef   : > { %3999 = vmatprep.mubr.bf16.mxu1 %v3544_v21  ;;  %5440 = vmatpush2.bf16.msra.mxu1 %v7610_v6  ;;  %v3046_v29 = vpop.f32.mrf.mxu0  ;;  %v3558_v6 = vrot.slane %v10933_v63, 3  ;;  %v10937_v21 = vshll.u32 %v9198_v19, 16 }
 0x1f0   : > { %5441 = vmatprep.subr.bf16.mxu1 %v9453_v58  ;;  %v3249_v5 = vpop.f32.mrf.mxu1  ;;  %v9715_v50 = vadd.f32 %v3246_v24, %v3046_v29  ;;  %v3540_v58 = vsel %vm3401_vm14, %v3527_v20, %v3539_v33  ;;  %v3547_v20 = vor.u32 %v3546_v41, %v3545_v16  ;;  %v3561_v24 = vrot.slane %v10934_v7, 2 }
 0x1f1   : > { %v3048_v52 = vpop.f32.mrf.mxu0  ;;  %v3578_v32 = vrot.slane %v10937_v21, 3  ;;  %v3559_v36 = vor.u32 %v3558_v6, %v3557_v26  ;;  %v3569_v33 = vrot.slane %v10938_v45, 2  ;;  %v10941_v16 = vshrl.u32 %v10940_v54, 16  ;;  %v10946_v26 = vld [vmem:[#allocation44_spill] sm:$0xff] }
 0x1f2   : > { %v7164_v59 = vpop.f32.mrf.mxu1  ;;  %v3548_v11 = vsel %vm3401_vm14, %v3535_v51, %v3547_v20  ;;  %v3563_v51 = vor.u32 %v3562_v61, %v3561_v24  ;;  %v10942_v41 = vshll.u32 %v10940_v54, 16  ;;  %v10948_v6 = vshll.u32 %v10946_v26, 16  ;;  %v10949_v61 = vld [vmem:[#allocation48_spill] sm:$0xff] }
 0x1f3   : > { %5442 = vmatpush2.bf16.msra.mxu1 %v7614_v39  ;;  %v3049_v47 = vpop.f32.mrf.mxu0  ;;  %v3579_v38 = vor.u32 %v3578_v32, %v3577_v44  ;;  %v3560_v39 = vsel %vm3401_vm14, %v3547_v20, %v3559_v36  ;;  %v3573_v60 = vrot.slane %v10941_v16, 2  ;;  %v10951_v44 = vshll.u32 %v10949_v61, 16 }
 0x1f4   : > { %7270 = vmatmul.mubr.bf16.gmra.mxu0 %v3536_v28  ;;  %7425 = vmatprep.subr.bf16.mxu1 %v10798_v48  ;;  %v9730_v57 = vadd.f32 %v3249_v5, %v3049_v47  ;;  %v10939_v5 = vshll.u32 %v9156_v56, 16  ;;  %v3564_v19 = vsel %vm3401_vm14, %v3551_v31, %v3563_v51  ;;  %v3574_v59 = vrot.slane %v10942_v41, 3 }
 0x1f5   : > { %7273 = vmatprep.mubr.msk.bf16.mxu0 %vm7726_vm0, %v10798_v48  ;;  %v3051_v46 = vpop.f32.mrf.mxu0  ;;  %v3580_v56 = vsel %vm3401_vm14, %v3567_v25, %v3579_v38  ;;  %v10947_v25 = vshrl.u32 %v10946_v26, 16  ;;  %v3586_v21 = vrot.slane %v10951_v44, 3 }
 0x1f6   : > { %4000 = vmatmul.mubr.bf16.gmra.mxu1 %v3540_v58  ;;  %v3570_v35 = vrot.slane %v10939_v5, 3  ;;  %v3575_v46 = vor.u32 %v3574_v59, %v3573_v60  ;;  %v10955_v59 = vld [vmem:[#allocation47_spill] sm:$0xff] }
 0x1f7   : > { %4007 = vmatprep.mubr.bf16.mxu1 %v3556_v40  ;;  %v3590_v40 = vrot.slane %v10945_v12, 3  ;;  %v3581_v63 = vrot.slane %v10947_v25, 2  ;;  %v10961_v25 = vld [vmem:[#allocation52_spill] sm:$0xff] }
 0x1f8   : > { %v3571_v10 = vor.u32 %v3570_v35, %v3569_v33  ;;  %v3576_v43 = vsel %vm3401_vm14, %v3563_v51, %v3575_v46 }
 0x1fa   : > { %v3572_v55 = vsel %vm3401_vm14, %v3559_v36, %v3571_v10 }
 0x1fc   : > { %7274 = vmatmul.mubr.bf16.gmra.mxu0 %v3548_v11  ;;  %v3254_v18 = vpop.f32.mrf.mxu1  ;;  %v3591_v11 = vor.u32 %v3590_v40, %v3589_v1  ;;  %v10958_v40 = vld [vmem:[#allocation51_spill] sm:$0xff] }
 0x1fd   : > { %7277 = vmatprep.mubr.msk.bf16.mxu0 %vm7726_vm0, %v10798_v48 }
 0x1fe   : > { %4008 = vmatmul.mubr.bf16.gmra.mxu1 %v3552_v17  ;;  %v7167_v15 = vpop.f32.mrf.mxu1  ;;  %v3592_v36 = vsel %vm3401_vm14, %v3579_v38, %v3591_v11  ;;  %v10956_v38 = vshrl.u32 %v10955_v59, 16 }
 0x1ff   : > { %4015 = vmatprep.mubr.bf16.mxu1 %v3568_v53  ;;  %v10950_v53 = vshrl.u32 %v10949_v61, 16 }
 0x200   : > { %v3257_v34 = vpop.f32.mrf.mxu1 }
 0x201   : > { %v3585_v8 = vrot.slane %v10950_v53, 2 }
 0x202   : > { %v7168_v29 = vpop.f32.mrf.mxu1 }
 0x204   : > { %v3054_v52 = vpop.f32.mrf.mxu0  ;;  %7278 = vmatmul.mubr.bf16.gmra.mxu0 %v3560_v39 }
 0x205   : > { %v9759_v28 = vadd.f32 %v3254_v18, %v3054_v52  ;;  %7281 = vmatprep.mubr.msk.bf16.mxu0 %vm7726_vm0, %v10798_v48  ;;  %v3582_v18 = vrot.slane %v10948_v6, 3 }
 0x206   : > { %v3056_v47 = vpop.f32.mrf.mxu0  ;;  %v3262_v58 = vpop.f32.mrf.mxu1  ;;  %4016 = vmatmul.mubr.bf16.gmra.mxu1 %v3564_v19  ;;  %v3587_v19 = vor.u32 %v3586_v21, %v3585_v8 }
 0x207   : > { %4023 = vmatprep.mubr.bf16.mxu1 %v3580_v56  ;;  %v3583_v33 = vor.u32 %v3582_v18, %v3581_v63  ;;  %v3593_v47 = vrot.slane %v10956_v38, 2  ;;  %v10962_v63 = vshrl.u32 %v10961_v25, 16  ;;  %v10963_v18 = vshll.u32 %v10961_v25, 16  ;;  %v10973_v25 = vld [vmem:[#allocation53_spill] sm:$0xff] }
 0x208   : > { %v3057_v42 = vpop.f32.mrf.mxu0  ;;  %v7171_v22 = vpop.f32.mrf.mxu1  ;;  %v3588_v12 = vsel %vm3401_vm14, %v3575_v46, %v3587_v19 }
 0x209   : > { %v9773_v2 = vadd.f32 %v3257_v34, %v3057_v42  ;;  %v10952_v34 = vld [vmem:[#allocation49_spill] sm:$0xff]  ;;  %v3584_v41 = vsel %vm3401_vm14, %v3571_v10, %v3583_v33  ;;  %v10959_v42 = vshrl.u32 %v10958_v40, 16  ;;  %v10960_v10 = vshll.u32 %v10958_v40, 16 }
 0x20a   : > { %v3059_v20 = vpop.f32.mrf.mxu0  ;;  %v3265_v31 = vpop.f32.mrf.mxu1  ;;  %v10953_v39 = vshrl.u32 %v10952_v34, 16  ;;  %v10954_v45 = vshll.u32 %v10952_v34, 16  ;;  %v3613_v6 = vrot.slane %v10962_v63, 2  ;;  %v3614_v46 = vrot.slane %v10963_v18, 3 }
 0x20b   : > { %v3597_v22 = vrot.slane %v10959_v42, 2  ;;  %v3598_v20 = vrot.slane %v10960_v10, 3 }
 0x20c   : > { %v3062_v17 = vpop.f32.mrf.mxu0  ;;  %7282 = vmatmul.mubr.bf16.gmra.mxu0 %v3572_v55  ;;  %v7172_v7 = vpop.f32.mrf.mxu1  ;;  %v3601_v29 = vrot.slane %v10953_v39, 2  ;;  %v3602_v51 = vrot.slane %v10954_v45, 3  ;;  %v3615_v21 = vor.u32 %v3614_v46, %v3613_v6  ;;  %v10975_v6 = vshll.u32 %v10973_v25, 16 }
 0x20d   : > { %v9780_v24 = vadd.f32 %v3262_v58, %v3062_v17  ;;  %7285 = vmatprep.mubr.msk.bf16.mxu0 %vm7726_vm0, %v10798_v48  ;;  %v10957_v58 = vshll.u32 %v10955_v59, 16  ;;  %v3599_v53 = vor.u32 %v3598_v20, %v3597_v22 }
 0x20e   : > { %v3064_v32 = vpop.f32.mrf.mxu0  ;;  %v3270_v15 = vpop.f32.mrf.mxu1  ;;  %4024 = vmatmul.mubr.bf16.gmra.mxu1 %v3576_v43  ;;  %v3603_v60 = vor.u32 %v3602_v51, %v3601_v29  ;;  %v3618_v18 = vrot.slane %v10975_v6, 3 }
 0x20f   : > { %4031 = vmatprep.mubr.bf16.mxu1 %v3592_v36  ;;  %v3594_v56 = vrot.slane %v10957_v58, 3  ;;  %v10970_v58 = vld [vmem:[#allocation55_spill] sm:$0xff] }
 0x210   : > { %v3065_v5 = vpop.f32.mrf.mxu0  ;;  %v7175_v35 = vpop.f32.mrf.mxu1  ;;  %v3604_v26 = vsel %vm3401_vm14, %v3591_v11, %v3603_v60 }
 0x211   : > { %v9794_v52 = vadd.f32 %v3265_v31, %v3065_v5  ;;  %v3595_v17 = vor.u32 %v3594_v56, %v3593_v47  ;;  %v3600_v5 = vsel %vm3401_vm14, %v3587_v19, %v3599_v53  ;;  %v10967_v35 = vld [vmem:[#allocation54_spill] sm:$0xff]  ;;  %v3616_v47 = vsel %vm3401_vm14, %v3603_v60, %v3615_v21 }
 0x212   : > { %v3067_v54 = vpop.f32.mrf.mxu0  ;;  %v3273_v16 = vpop.f32.mrf.mxu1  ;;  %v10971_v56 = vshrl.u32 %v10970_v58, 16  ;;  %v10974_v60 = vshrl.u32 %v10973_v25, 16  ;;  %v10985_v25 = vld [vmem:[#allocation60_spill] sm:$0xff] }
 0x213   : > { %v3596_v32 = vsel %vm3401_vm14, %v3583_v33, %v3595_v17  ;;  %v10968_v54 = vshrl.u32 %v10967_v35, 16  ;;  %v10969_v33 = vshll.u32 %v10967_v35, 16 }
 0x214   : > { %v3070_v30 = vpop.f32.mrf.mxu0  ;;  %7286 = vmatmul.mubr.bf16.gmra.mxu0 %v3584_v41  ;;  %v7176_v37 = vpop.f32.mrf.mxu1  ;;  %v3617_v63 = vrot.slane %v10974_v60, 2  ;;  %v10986_v60 = vshrl.u32 %v10985_v25, 16 }
 0x215   : > { %v9801_v1 = vadd.f32 %v3270_v15, %v3070_v30  ;;  %7289 = vmatprep.mubr.msk.bf16.mxu0 %vm7726_vm0, %v10798_v48  ;;  %v10964_v15 = vld [vmem:[#allocation50_spill] sm:$0xff]  ;;  %v3610_v41 = vrot.slane %v10969_v33, 3  ;;  %v3625_v30 = vrot.slane %v10971_v56, 2  ;;  %v10972_v37 = vshll.u32 %v10970_v58, 16 }
 0x216   : > { %v3072_v31 = vpop.f32.mrf.mxu0  ;;  %v3278_v55 = vpop.f32.mrf.mxu1  ;;  %4032 = vmatmul.mubr.bf16.gmra.mxu1 %v3588_v12  ;;  %v10965_v11 = vshrl.u32 %v10964_v15, 16  ;;  %v10966_v34 = vshll.u32 %v10964_v15, 16 }
 0x217   : > { %4039 = vmatprep.mubr.bf16.mxu1 %v3604_v26  ;;  %v3626_v19 = vrot.slane %v10972_v37, 3 }
 0x218   : > { %v3073_v7 = vpop.f32.mrf.mxu0  ;;  %v7179_v43 = vpop.f32.mrf.mxu1  ;;  %v3605_v36 = vrot.slane %v10965_v11, 2  ;;  %v3606_v39 = vrot.slane %v10966_v34, 3 }
 0x219   : > { %v9815_v61 = vadd.f32 %v3273_v16, %v3073_v7  ;;  %v3609_v16 = vrot.slane %v10968_v54, 2  ;;  %v3619_v54 = vor.u32 %v3618_v18, %v3617_v63  ;;  %v3633_v63 = vrot.slane %v10986_v60, 2 }
 0x21a   : > { %v3075_v8 = vpop.f32.mrf.mxu0  ;;  %v3281_v44 = vpop.f32.mrf.mxu1  ;;  %v3607_v12 = vor.u32 %v3606_v39, %v3605_v36 }
 0x21b   : > { %v3611_v10 = vor.u32 %v3610_v41, %v3609_v16 }
 0x21c   : > { %v3078_v29 = vpop.f32.mrf.mxu0  ;;  %7290 = vmatmul.mubr.bf16.gmra.mxu0 %v3596_v32  ;;  %v7180_v45 = vpop.f32.mrf.mxu1  ;;  %v3608_v26 = vsel %vm3401_vm14, %v3595_v17, %v3607_v12  ;;  %v3620_v56 = vsel %vm3401_vm14, %v3607_v12, %v3619_v54  ;;  %v10987_v12 = vshll.u32 %v10985_v25, 16 }
 0x21d   : > { %v9822_v51 = vadd.f32 %v3278_v55, %v3078_v29  ;;  %7293 = vmatprep.mubr.msk.bf16.mxu0 %vm7726_vm0, %v10798_v48  ;;  %v3627_v55 = vor.u32 %v3626_v19, %v3625_v30  ;;  %v3612_v8 = vsel %vm3401_vm14, %v3599_v53, %v3611_v10  ;;  %v10979_v29 = vld [vmem:[#allocation58_spill] sm:$0xff]  ;;  %v10982_v30 = vld [vmem:[#allocation56_spill] sm:$0xff] }
 0x21e   : > { %v3080_v59 = vpop.f32.mrf.mxu0  ;;  %v3286_v38 = vpop.f32.mrf.mxu1  ;;  %4040 = vmatmul.mubr.bf16.gmra.mxu1 %v3600_v5  ;;  %v10980_v45 = vshrl.u32 %v10979_v29, 16  ;;  %v10981_v35 = vshll.u32 %v10979_v29, 16  ;;  %v10984_v19 = vshll.u32 %v10982_v30, 16  ;;  %v3634_v6 = vrot.slane %v10987_v12, 3 }
 0x21f   : > { %4047 = vmatprep.mubr.bf16.mxu1 %v3616_v47  ;;  %v3628_v39 = vsel %vm3401_vm14, %v3615_v21, %v3627_v55  ;;  %v10983_v21 = vshrl.u32 %v10982_v30, 16 }
 0x220   : > { %v3081_v40 = vpop.f32.mrf.mxu0  ;;  %v7183_v42 = vpop.f32.mrf.mxu1  ;;  %v3637_v5 = vrot.slane %v10980_v45, 2  ;;  %v3638_v53 = vrot.slane %v10981_v35, 3 }
 0x221   : > { %v9836_v22 = vadd.f32 %v3281_v44, %v3081_v40  ;;  %v10976_v44 = vld [vmem:[#allocation57_spill] sm:$0xff]  ;;  %v3629_v37 = vrot.slane %v10983_v21, 2  ;;  %v3630_v40 = vrot.slane %v10984_v19, 3  ;;  %v10994_v19 = vld [vmem:[#allocation63_spill] sm:$0xff] }
 0x222   : > { %v3083_v20 = vpop.f32.mrf.mxu0  ;;  %v3289_v31 = vpop.f32.mrf.mxu1  ;;  %v10977_v32 = vshrl.u32 %v10976_v44, 16  ;;  %v10978_v17 = vshll.u32 %v10976_v44, 16  ;;  %v3639_v58 = vor.u32 %v3638_v53, %v3637_v5  ;;  %v10991_v53 = vld [vmem:[#allocation59_spill] sm:$0xff] }
 0x224   : > { %v3086_v46 = vpop.f32.mrf.mxu0  ;;  %7294 = vmatmul.mubr.bf16.gmra.mxu0 %v3608_v26  ;;  %v7184_v7 = vpop.f32.mrf.mxu1  ;;  %v3621_v15 = vrot.slane %v10977_v32, 2  ;;  %v3622_v11 = vrot.slane %v10978_v17, 3  ;;  %v3631_v17 = vor.u32 %v3630_v40, %v3629_v37  ;;  %v10995_v40 = vshrl.u32 %v10994_v19, 16 }
 0x225   : > { %v9843_v43 = vadd.f32 %v3286_v38, %v3086_v46  ;;  %7297 = vmatprep.mubr.msk.bf16.mxu0 %vm7726_vm0, %v10798_v48  ;;  %v3640_v7 = vsel %vm3401_vm14, %v3627_v55, %v3639_v58  ;;  %v10992_v55 = vshrl.u32 %v10991_v53, 16 }
 0x226   : > { %v3088_v36 = vpop.f32.mrf.mxu0  ;;  %v3294_v34 = vpop.f32.mrf.mxu1  ;;  %4048 = vmatmul.mubr.bf16.gmra.mxu1 %v3612_v8  ;;  %v3623_v59 = vor.u32 %v3622_v11, %v3621_v15  ;;  %v10988_v8 = vld [vmem:[#allocation61_spill] sm:$0xff]  ;;  %v3632_v35 = vsel %vm3401_vm14, %v3619_v54, %v3631_v17  ;;  %v3645_v54 = vrot.slane %v10995_v40, 2 }
 0x227   : > { %4055 = vmatprep.mubr.bf16.mxu1 %v3628_v39  ;;  %v10989_v44 = vshrl.u32 %v10988_v8, 16  ;;  %v10990_v15 = vshll.u32 %v10988_v8, 16  ;;  %v3635_v39 = vor.u32 %v3634_v6, %v3633_v63  ;;  %v10997_v63 = vld [vmem:[#allocation64_spill] sm:$0xff] }
 0x228   : > { %v3089_v16 = vpop.f32.mrf.mxu0  ;;  %v7187_v33 = vpop.f32.mrf.mxu1  ;;  %v10998_v12 = vshrl.u32 %v10997_v63, 16 }
 0x229   : > { %v9857_v41 = vadd.f32 %v3289_v31, %v3089_v16  ;;  %v3624_v31 = vsel %vm3401_vm14, %v3611_v10, %v3623_v59  ;;  %v3649_v32 = vrot.slane %v10989_v44, 2  ;;  %v3650_v10 = vrot.slane %v10990_v15, 3 }
 0x22a   : > { %v3091_v38 = vpop.f32.mrf.mxu0  ;;  %v3297_v47 = vpop.f32.mrf.mxu1  ;;  %v3641_v16 = vrot.slane %v10992_v55, 2  ;;  %v10993_v33 = vshll.u32 %v10991_v53, 16  ;;  %v3661_v6 = vrot.slane %v10998_v12, 2  ;;  %v11000_v55 = vld [vmem:[#allocation62_spill] sm:$0xff] }
 0x22b   : > { %v3651_v5 = vor.u32 %v3650_v10, %v3649_v32 }
 0x22c   : > { %v3094_v42 = vpop.f32.mrf.mxu0  ;;  %7298 = vmatmul.mubr.bf16.gmra.mxu0 %v3620_v56  ;;  %v7188_v20 = vpop.f32.mrf.mxu1  ;;  %v3642_v38 = vrot.slane %v10993_v33, 3  ;;  %v1820_v56 = vld [vmem:[#allocation2 + $0x1ec] sm:$0x11]  ;;  %v11001_v33 = vshrl.u32 %v11000_v55, 16 }
 0x22d   : > { %v9864_v26 = vadd.f32 %v3294_v34, %v3094_v42  ;;  %7301 = vmatprep.mubr.msk.bf16.mxu0 %vm7726_vm0, %v10798_v48  ;;  %v10996_v42 = vshll.u32 %v10994_v19, 16  ;;  %v3652_v60 = vsel %vm3401_vm14, %v3639_v58, %v3651_v5 }
 0x22e   : > { %v3096_v18 = vpop.f32.mrf.mxu0  ;;  %v3302_v46 = vpop.f32.mrf.mxu1  ;;  %4056 = vmatmul.mubr.bf16.gmra.mxu1 %v3624_v31  ;;  %v3643_v8 = vor.u32 %v3642_v38, %v3641_v16  ;;  %v11003_v38 = vld [vmem:[#allocation66_spill] sm:$0xff] }
 0x22f   : > { %4063 = vmatprep.mubr.bf16.mxu1 %v3640_v7  ;;  %v3646_v20 = vrot.slane %v10996_v42, 3  ;;  %v10999_v18 = vshll.u32 %v10997_v63, 16 }
 0x230   : > { %v3097_v11 = vpop.f32.mrf.mxu0  ;;  %v7191_v36 = vpop.f32.mrf.mxu1  ;;  %v3644_v53 = vsel %vm3401_vm14, %v3631_v17, %v3643_v8  ;;  %v11005_v17 = vshll.u32 %v11003_v38, 16 }
 0x231   : > { %v9878_v34 = vadd.f32 %v3297_v47, %v3097_v11  ;;  %v3636_v47 = vsel %vm3401_vm14, %v3623_v59, %v3635_v39  ;;  %v3662_v59 = vrot.slane %v10999_v18, 3  ;;  %v3647_v10 = vor.u32 %v3646_v20, %v3645_v54 }
 0x232   : > { %v3099_v29 = vpop.f32.mrf.mxu0  ;;  %v3305_v45 = vpop.f32.mrf.mxu1  ;;  %v3658_v20 = vrot.slane %v11005_v17, 3 }
 0x233   : > { %v3663_v29 = vor.u32 %v3662_v59, %v3661_v6  ;;  %v3648_v42 = vsel %vm3401_vm14, %v3635_v39, %v3647_v10 }
 0x234   : > { %v3102_v30 = vpop.f32.mrf.mxu0  ;;  %7302 = vmatmul.mubr.bf16.gmra.mxu0 %v3632_v35  ;;  %v7192_v21 = vpop.f32.mrf.mxu1 }
 0x235   : > { %v9885_v37 = vadd.f32 %v3302_v46, %v3102_v30  ;;  %7305 = vmatprep.mubr.msk.bf16.mxu0 %vm7726_vm0, %v10798_v48  ;;  %v7705_v46 = vld [vmem:[#allocation2 + $0x1e0] sm:$0xff]  ;;  %v3653_v30 = vrot.slane %v11001_v33, 2  ;;  %v11002_v21 = vshll.u32 %v11000_v55, 16  ;;  %v3664_v12 = vsel %vm3401_vm14, %v3651_v5, %v3663_v29 }
 0x236   : > { %v3104_v31 = vpop.f32.mrf.mxu0  ;;  %v3310_v25 = vpop.f32.mrf.mxu1  ;;  %4064 = vmatmul.mubr.bf16.gmra.mxu1 %v3636_v47  ;;  %v6534_v7 = vcombine.high %v7705_v46, %v1820_v56 }
 0x237   : > { %4071 = vmatprep.mubr.bf16.mxu1 %v3652_v60  ;;  %v3654_v47 = vrot.slane %v11002_v21, 3  ;;  %v6533_v31 = vcombine.low %v7705_v46, %v1820_v56  ;;  %v11006_v21 = vld [vmem:[#allocation65_spill] sm:$0xff] }
 0x238   : > { %v3105_v44 = vpop.f32.mrf.mxu0  ;;  %v7195_v32 = vpop.f32.mrf.mxu1  ;;  %v3679_v35 = vshrl.u32 %v6534_v7, 16  ;;  %v3682_v58 = vshll.u32 %v6534_v7, 16 }
 0x239   : > { %v9899_v15 = vadd.f32 %v3305_v45, %v3105_v44  ;;  %v11004_v45 = vshrl.u32 %v11003_v38, 16  ;;  %v3655_v59 = vor.u32 %v3654_v47, %v3653_v30  ;;  %v1821_v44 = vld [vmem:[#allocation2 + $0x1f4] sm:$0x1]  ;;  %v7706_v30 = vld [vmem:[#allocation2 + $0x1e8] sm:$0xf] }
 0x23a   : > { %v3107_v11 = vpop.f32.mrf.mxu0  ;;  %v3313_v36 = vpop.f32.mrf.mxu1  ;;  %v3681_v6 = vrot.slane %v3679_v35, 2  ;;  %v3684_v18 = vrot.slane %v3682_v58, 3  ;;  %v11008_v35 = vshll.u32 %v11006_v21, 16  ;;  %v6535_v47 = vcombine.low %v7706_v30, %v1821_v44 }
 0x23b   : > { %v3657_v40 = vrot.slane %v11004_v45, 2  ;;  %v3670_v11 = vshrl.u32 %v6533_v31, 16  ;;  %v3656_v46 = vsel %vm3401_vm14, %v3643_v8, %v3655_v59 }
 0x23c   : > { %v3110_v19 = vpop.f32.mrf.mxu0  ;;  %7306 = vmatmul.mubr.bf16.gmra.mxu0 %v3644_v53  ;;  %v7196_v16 = vpop.f32.mrf.mxu1  ;;  %v3673_v53 = vshll.u32 %v6533_v31, 16  ;;  %v3685_v56 = vor.u32 %v3684_v18, %v3681_v6  ;;  %v3666_v58 = vrot.slane %v11008_v35, 3 }
 0x23d   : > { %v9908_v54 = vadd.f32 %v3310_v25, %v3110_v19  ;;  %7309 = vmatprep.mubr.msk.bf16.mxu0 %vm7726_vm0, %v10798_v48  ;;  %v3659_v32 = vor.u32 %v3658_v20, %v3657_v40  ;;  %v11007_v19 = vshrl.u32 %v11006_v21, 16  ;;  %v3672_v40 = vrot.slane %v3670_v11, 2 }
 0x23e   : > { %v3112_v60 = vpop.f32.mrf.mxu0  ;;  %v3318_v63 = vpop.f32.mrf.mxu1  ;;  %4072 = vmatmul.mubr.bf16.gmra.mxu1 %v3648_v42  ;;  %v3675_v8 = vrot.slane %v3673_v53, 3  ;;  %v3686_v20 = vsel %vm3401_vm14, %v3663_v29, %v3685_v56 }
 0x23f   : > { %4079 = vmatprep.mubr.bf16.mxu1 %v3664_v12  ;;  %v3665_v5 = vrot.slane %v11007_v19, 2  ;;  %v3660_v45 = vsel %vm3401_vm14, %v3647_v10, %v3659_v32  ;;  %v3688_v60 = vshrl.u32 %v6535_v47, 16  ;;  %v3691_v12 = vshll.u32 %v6535_v47, 16  ;;  %v7615_v47 = vld [vmem:[#allocation2 + $0x3c] ss:$12 sps:$4 sm:$0xff]  }
 0x240   : > { %v3113_v25 = vpop.f32.mrf.mxu0  ;;  %v7199_v7 = vpop.f32.mrf.mxu1  ;;  %v3676_v10 = vor.u32 %v3675_v8, %v3672_v40  ;;  %v9942_v8 = vld [vmem:[#allocation2 + $0x54] ss:$12 sps:$4 sm:$0xff]  }
 0x241   : > { %v9916_v39 = vadd.f32 %v3313_v36, %v3113_v25  ;;  %v3667_v31 = vor.u32 %v3666_v58, %v3665_v5  ;;  %v3690_v53 = vrot.slane %v3688_v60, 2  ;;  %v9944_v60 = vld [vmem:[#allocation2 + $0x70] ss:$12 sps:$4 sm:$0xff]  }
 0x242   : > { %v3115_v55 = vpop.f32.mrf.mxu0  ;;  %v3321_v33 = vpop.f32.mrf.mxu1  ;;  %v3677_v35 = vsel %vm3401_vm14, %v3659_v32, %v3676_v10 }
 0x243   : > { %v9931_v55 = vld [vmem:[#allocation2 + $0x58] ss:$12 sps:$4 sm:$0xff]   ;;  %v3668_v11 = vsel %vm3401_vm14, %v3655_v59, %v3667_v31 }
 0x244   : > { %v3118_v16 = vpop.f32.mrf.mxu0  ;;  %7310 = vmatmul.mubr.bf16.gmra.mxu0 %v3656_v46  ;;  %v7200_v36 = vpop.f32.mrf.mxu1  ;;  %v3693_v46 = vrot.slane %v3691_v12, 3  ;;  %v4723_v30 = vshll.u32 %v9931_v55, 16 }
 0x245   : > { %v9923_v38 = vadd.f32 %v3318_v63, %v3118_v16  ;;  %7313 = vmatprep.mubr.msk.bf16.mxu0 %vm7726_vm0, %v10798_v48  ;;  %v7617_v63 = vld [vmem:[#allocation2 + $0x40] ss:$12 sps:$4 sm:$0xff]  }
 0x246   : > { %v3120_v42 = vpop.f32.mrf.mxu0  ;;  %v3326_v17 = vpop.f32.mrf.mxu1  ;;  %4080 = vmatmul.mubr.bf16.gmra.mxu1 %v3660_v45  ;;  %v4718_v19 = vshll.u32 %v7617_v63, 16  ;;  %v3694_v59 = vor.u32 %v3693_v46, %v3690_v53  ;;  %v7624_v53 = vld [vmem:[#allocation2 + $0x44] ss:$12 sps:$4 sm:$0xff]  }
 0x247   : > { %4087 = vmatprep.mubr.bf16.mxu1 %v3686_v20  ;;  %v4725_v20 = vrot.slane %v4723_v30, 1  ;;  %v4704_v30 = vshrl.u32 %v7615_v47, 16 }
 0x248   : > { %v3121_v6 = vpop.f32.mrf.mxu0  ;;  %v7203_v18 = vpop.f32.mrf.mxu1  ;;  %v4720_v45 = vrot.slane %v4718_v19, 1  ;;  %v3695_v12 = vsel %vm3401_vm14, %v3667_v31, %v3694_v59  ;;  %v4751_v31 = vshll.u32 %v9944_v60, 16  ;;  %v9954_v19 = vld [vmem:[#allocation2 + $0x5c] ss:$12 sps:$4 sm:$0xff]  }
 0x249   : > { %v9929_v25 = vadd.f32 %v3321_v33, %v3121_v6  ;;  %v4706_v6 = vshll.u32 %v7615_v47, 16 }
 0x24a   : > { %v3123_v7 = vpop.f32.mrf.mxu0  ;;  %v3329_v44 = vpop.f32.mrf.mxu1 }
 0x24c   : > { %v3126_v21 = vpop.f32.mrf.mxu0  ;;  %7314 = vmatmul.mubr.bf16.gmra.mxu0 %v3668_v11  ;;  %v7204_v29 = vpop.f32.mrf.mxu1 }
 0x24d   : > { %v9934_v5 = vadd.f32 %v3326_v17, %v3126_v21  ;;  %7317 = vmatprep.mubr.msk.bf16.mxu0 %vm7726_vm0, %v10798_v48  ;;  %v4716_v17 = vshrl.u32 %v7617_v63, 16  ;;  %v4708_v29 = vrot.slane %v4706_v6, 1 }
 0x24e   : > { %v3128_v33 = vpop.f32.mrf.mxu0  ;;  %v3334_v58 = vpop.f32.mrf.mxu1  ;;  %4088 = vmatmul.mubr.bf16.gmra.mxu1 %v3677_v35 }
 0x24f   : > { %4095 = vmatprep.mubr.bf16.mxu1 %v3685_v56  ;;  %v4721_v7 = vor.u32 %v4720_v45, %v4716_v17  ;;  %v9958_v45 = vld [vmem:[#allocation2 + $0x6c] ss:$12 sps:$4 sm:$0xff]   ;;  %v4709_v6 = vor.u32 %v4708_v29, %v4704_v30  ;;  %v9975_v30 = vld [vmem:[#allocation2 + $0x74] ss:$12 sps:$4 sm:$0xff]  }
 0x250   : > { %v3129_v16 = vpop.f32.mrf.mxu0  ;;  %v7207_v36 = vpop.f32.mrf.mxu1 }
 0x251   : > { %v9940_v40 = vadd.f32 %v3329_v44, %v3129_v16  ;;  %v4711_v44 = vshll.u32 %v9942_v8, 16  ;;  %v4726_v21 = vsel %vm4702_vm15, %v4721_v7, %v4725_v20  ;;  %v4730_v36 = vshll.u32 %v7624_v53, 16 }
 0x252   : > { %v3131_v42 = vpop.f32.mrf.mxu0  ;;  %v3337_v32 = vpop.f32.mrf.mxu1 }
 0x253   : > { %v4713_v16 = vrot.slane %v4711_v44, 1  ;;  %v4732_v44 = vrot.slane %v4730_v36, 1 }
 0x254   : > { %v3134_v18 = vpop.f32.mrf.mxu0  ;;  %7318 = vmatmul.mubr.bf16.gmra.mxu0 %v3695_v12  ;;  %v7208_v56 = vpop.f32.mrf.mxu1  ;;  %v4753_v12 = vrot.slane %v4751_v31, 1 }
 0x255   : > { %v9947_v11 = vadd.f32 %v3334_v58, %v3134_v18  ;;  %7321 = vmatprep.mubr.msk.bf16.mxu0 %vm7726_vm0, %v10798_v48  ;;  %v9961_v18 = vld [vmem:[#allocation2 + $0x88] ss:$12 sps:$4 sm:$0xff]   ;;  %v4735_v56 = vshll.u32 %v9954_v19, 16  ;;  %v4714_v47 = vsel %vm4702_vm15, %v4709_v6, %v4713_v16 }
 0x256   : > { %v3136_v63 = vpop.f32.mrf.mxu0  ;;  %v3342_v46 = vpop.f32.mrf.mxu1  ;;  %4096 = vmatmul.mubr.bf16.gmra.mxu1 %v3676_v10  ;;  %v4747_v10 = vshrl.u32 %v9931_v55, 16  ;;  %v4743_v55 = vshll.u32 %v9958_v45, 16 }
 0x257   : > { %5443 = vmatprep.mubr.bf16.mxu1 %v4726_v21 }
 0x258   : > { %v3137_v35 = vpop.f32.mrf.mxu0  ;;  %v7211_v33 = vpop.f32.mrf.mxu1 }
 0x259   : > { %v9956_v58 = vadd.f32 %v3337_v32, %v3137_v35  ;;  %v4749_v32 = vor.u32 %v4747_v10, %v4725_v20  ;;  %v4775_v33 = vshll.u32 %v9961_v18, 16  ;;  %v4728_v20 = vshrl.u32 %v7624_v53, 16 }
 0x25a   : > { %v3139_v42 = vpop.f32.mrf.mxu0  ;;  %v3345_v17 = vpop.f32.mrf.mxu1 }
 0x25b   : > { %v4754_v29 = vsel %vm4702_vm15, %v4749_v32, %v4753_v12  ;;  %v4733_v6 = vor.u32 %v4732_v44, %v4728_v20  ;;  %v9981_v32 = vld [vmem:[#allocation2 + $0x84] ss:$12 sps:$4 sm:$0xff]   ;;  %v4777_v53 = vrot.slane %v4775_v33, 1 }
 0x25c   : > { %v3142_v7 = vpop.f32.mrf.mxu0  ;;  %7322 = vmatmul.mubr.bf16.gmra.mxu0 %v3694_v59  ;;  %v7212_v63 = vpop.f32.mrf.mxu1  ;;  %v7707_v59 = vld [vmem:[%s10572_s3 + $0x238] sm:$0xff]  }
 0x25d   : > { %v9964_v21 = vadd.f32 %v3342_v46, %v3142_v7  ;;  %7341 = vmatprep.mubr.msk.bf16.mxu0 %vm7726_vm0, %v10798_v48  ;;  %v4737_v46 = vrot.slane %v4735_v56, 1  ;;  %v4739_v7 = vshrl.u32 %v9942_v8, 16  ;;  %v4745_v63 = vrot.slane %v4743_v55, 1  ;;  %v9984_v56 = vld [vmem:[#allocation2 + $0xa0] ss:$12 sps:$4 sm:$0xff]  }
 0x25e   : > { %v3144_v31 = vpop.f32.mrf.mxu0  ;;  %v3350_v35 = vpop.f32.mrf.mxu1  ;;  %5444 = vmatmul.mubr.bf16.vlgmr.msra.gmra.mxu1 %v4714_v47 }
 0x25f   : > { %11009 = vst [vmem:[#allocation45_spill] sm:$0xff] %v9964_v21  ;;  %7433 = vmatpush3.bf16.msra.mxu1 %v7707_v59  ;;  %5451 = vmatprep.mubr.bf16.mxu1 %v4754_v29  ;;  %v4771_v29 = vshrl.u32 %v9944_v60, 16  ;;  %v4738_v59 = vsel %vm4702_vm15, %v4733_v6, %v4737_v46  ;;  %v4759_v21 = vshll.u32 %v9975_v30, 16 }
 0x260   : > { %v3145_v36 = vpop.f32.mrf.mxu0  ;;  %v7215_v42 = vpop.f32.mrf.mxu1  ;;  %7426 = vmatprep.subr.bf16.mxu1 %v10798_v48 }
 0x261   : > { %v9978_v10 = vadd.f32 %v3345_v17, %v3145_v36  ;;  %v4741_v42 = vor.u32 %v4739_v7, %v4713_v16  ;;  %v7708_v17 = vld [vmem:[%s10572_s3 + $0x230] sm:$0xff]   ;;  %v4773_v55 = vor.u32 %v4771_v29, %v4753_v12  ;;  %v4767_v16 = vshll.u32 %v9981_v32, 16  ;;  %v7709_v29 = vld [vmem:[%s10572_s3 + $0x228] sm:$0xff]  }
 0x262   : > { %v3147_v47 = vpop.f32.mrf.mxu0  ;;  %v3353_v31 = vpop.f32.mrf.mxu1  ;;  %v4799_v7 = vshll.u32 %v9984_v56, 16  ;;  %v4755_v12 = vshrl.u32 %v9954_v19, 16 }
 0x263   : > { %11010 = vst [vmem:[#allocation46_spill] sm:$0xff] %v9978_v10  ;;  %7434 = vmatpush3.bf16.msra.mxu1 %v7708_v17  ;;  %v4746_v33 = vsel %vm4702_vm15, %v4741_v42, %v4745_v63  ;;  %v4778_v6 = vsel %vm4702_vm15, %v4773_v55, %v4777_v53  ;;  %v4761_v47 = vrot.slane %v4759_v21, 1  ;;  %v4769_v55 = vrot.slane %v4767_v16, 1 }
 0x264   : > { %v3150_v8 = vpop.f32.mrf.mxu0  ;;  %7342 = vmatmul.mubr.bf16.vlgmr.msra.gmra.mxu0 %v4738_v59  ;;  %v7216_v44 = vpop.f32.mrf.mxu1  ;;  %7427 = vmatprep.subr.bf16.mxu1 %v10798_v48 }
 0x265   : > { %v9992_v60 = vadd.f32 %v3350_v35, %v3150_v8  ;;  %7345 = vmatprep.mubr.msk.bf16.mxu0 %vm7726_vm0, %v10798_v48  ;;  %v10001_v35 = vld [vmem:[#allocation2 + $0x8c] ss:$12 sps:$4 sm:$0xff]   ;;  %v4757_v8 = vor.u32 %v4755_v12, %v4737_v46  ;;  %v4763_v44 = vshrl.u32 %v9958_v45, 16  ;;  %v7710_v46 = vld [vmem:[%s10572_s3 + $0x220] sm:$0xff]  }
 0x266   : > { %v3152_v20 = vpop.f32.mrf.mxu0  ;;  %v3358_v36 = vpop.f32.mrf.mxu1  ;;  %5452 = vmatmul.mubr.bf16.gmra.mxu1 %v4746_v33  ;;  %v10010_v33 = vld [vmem:[#allocation2 + $0x9c] ss:$12 sps:$4 sm:$0xff]   ;;  %v4783_v10 = vshll.u32 %v10001_v35, 16 }
 0x267   : > { %11011 = vst [vmem:[#allocation44_spill] sm:$0xff] %v9992_v60  ;;  %5459 = vmatprep.mubr.bf16.mxu1 %v4778_v6  ;;  %7435 = vmatpush3.bf16.msra.mxu1 %v7709_v29  ;;  %v4795_v20 = vshrl.u32 %v9961_v18, 16  ;;  %v4801_v6 = vrot.slane %v4799_v7, 1  ;;  %v10013_v60 = vld [vmem:[#allocation2 + $0xb8] ss:$12 sps:$4 sm:$0xff]   ;;  %v4762_v29 = vsel %vm4702_vm15, %v4757_v8, %v4761_v47 }
 0x268   : > { %v3153_v59 = vpop.f32.mrf.mxu0  ;;  %v7219_v42 = vpop.f32.mrf.mxu1  ;;  %7428 = vmatprep.subr.bf16.mxu1 %v10798_v48 }
 0x269   : > { %v10007_v17 = vadd.f32 %v3353_v31, %v3153_v59  ;;  %v4765_v42 = vor.u32 %v4763_v44, %v4745_v63  ;;  %v4797_v16 = vor.u32 %v4795_v20, %v4777_v53  ;;  %v4791_v63 = vshll.u32 %v10010_v33, 16  ;;  %v7711_v20 = vld [vmem:[%s10572_s3 + $0x218] sm:$0xff]  }
 0x26a   : > { %v3155_v19 = vpop.f32.mrf.mxu0  ;;  %v3361_v21 = vpop.f32.mrf.mxu1  ;;  %v4823_v44 = vshll.u32 %v10013_v60, 16  ;;  %v4779_v53 = vshrl.u32 %v9975_v30, 16 }
 0x26b   : > { %11012 = vst [vmem:[#allocation48_spill] sm:$0xff] %v10007_v17  ;;  %7436 = vmatpush3.bf16.msra.mxu1 %v7710_v46  ;;  %v4770_v7 = vsel %vm4702_vm15, %v4765_v42, %v4769_v55  ;;  %v4802_v8 = vsel %vm4702_vm15, %v4797_v16, %v4801_v6  ;;  %v4785_v19 = vrot.slane %v4783_v10, 1  ;;  %v4793_v16 = vrot.slane %v4791_v63, 1 }
 0x26c   : > { %v3158_v45 = vpop.f32.mrf.mxu0  ;;  %7346 = vmatmul.mubr.bf16.gmra.mxu0 %v4762_v29  ;;  %v7220_v31 = vpop.f32.mrf.mxu1  ;;  %7429 = vmatprep.subr.bf16.mxu1 %v10798_v48 }
 0x26d   : > { %v10021_v18 = vadd.f32 %v3358_v36, %v3158_v45  ;;  %7349 = vmatprep.mubr.msk.bf16.mxu0 %vm7726_vm0, %v10798_v48  ;;  %v10030_v36 = vld [vmem:[#allocation2 + $0xa4] ss:$12 sps:$4 sm:$0xff]   ;;  %v4781_v45 = vor.u32 %v4779_v53, %v4761_v47  ;;  %v4787_v31 = vshrl.u32 %v9981_v32, 16 }
 0x26e   : > { %v3160_v12 = vpop.f32.mrf.mxu0  ;;  %v3366_v59 = vpop.f32.mrf.mxu1  ;;  %5460 = vmatmul.mubr.bf16.gmra.mxu1 %v4770_v7  ;;  %v10039_v7 = vld [vmem:[#allocation2 + $0xb4] ss:$12 sps:$4 sm:$0xff]   ;;  %v4807_v17 = vshll.u32 %v10030_v36, 16 }
 0x26f   : > { %11013 = vst [vmem:[#allocation49_spill] sm:$0xff] %v10021_v18  ;;  %5467 = vmatprep.mubr.bf16.mxu1 %v4802_v8  ;;  %7437 = vmatpush3.bf16.msra.mxu1 %v7711_v20  ;;  %v4819_v12 = vshrl.u32 %v9984_v56, 16  ;;  %v4825_v8 = vrot.slane %v4823_v44, 1  ;;  %v10042_v18 = vld [vmem:[#allocation2 + $0xd0] ss:$12 sps:$4 sm:$0xff]   ;;  %v4786_v20 = vsel %vm4702_vm15, %v4781_v45, %v4785_v19 }
 0x270   : > { %v3161_v29 = vpop.f32.mrf.mxu0  ;;  %v7223_v42 = vpop.f32.mrf.mxu1  ;;  %7430 = vmatprep.subr.bf16.mxu1 %v10798_v48  ;;  %v7712_v47 = vld [vmem:[%s10572_s3 + $0x210] sm:$0xff]  }
 0x271   : > { %v10036_v46 = vadd.f32 %v3361_v21, %v3161_v29  ;;  %v4789_v42 = vor.u32 %v4787_v31, %v4769_v55  ;;  %v4821_v63 = vor.u32 %v4819_v12, %v4801_v6  ;;  %v4815_v55 = vshll.u32 %v10039_v7, 16  ;;  %v7713_v12 = vld [vmem:[%s10572_s3 + $0x208] sm:$0xff]  }
 0x272   : > { %v3163_v30 = vpop.f32.mrf.mxu0  ;;  %v3369_v10 = vpop.f32.mrf.mxu1  ;;  %v4847_v31 = vshll.u32 %v10042_v18, 16 }
 0x273   : > { %7438 = vmatpush3.bf16.msra.mxu1 %v7712_v47  ;;  %v4794_v44 = vsel %vm4702_vm15, %v4789_v42, %v4793_v16  ;;  %v4826_v45 = vsel %vm4702_vm15, %v4821_v63, %v4825_v8  ;;  %v4809_v30 = vrot.slane %v4807_v17, 1  ;;  %v10060_v10 = vld [vmem:[#allocation2 + $0xbc] ss:$12 sps:$4 sm:$0xff]   ;;  %v4843_v17 = vshrl.u32 %v10013_v60, 16 }
 0x274   : > { %v3166_v32 = vpop.f32.mrf.mxu0  ;;  %7350 = vmatmul.mubr.bf16.gmra.mxu0 %v4786_v20  ;;  %v7224_v21 = vpop.f32.mrf.mxu1  ;;  %7431 = vmatprep.subr.bf16.mxu1 %v10798_v48 }
 0x275   : > { %v10050_v56 = vadd.f32 %v3366_v59, %v3166_v32  ;;  %7353 = vmatprep.mubr.msk.bf16.mxu0 %vm7726_vm0, %v10798_v48  ;;  %v4803_v59 = vshrl.u32 %v10001_v35, 16  ;;  %v4811_v32 = vshrl.u32 %v10010_v33, 16  ;;  %v4817_v21 = vrot.slane %v4815_v55, 1  ;;  %v7714_v33 = vld [vmem:[%s10572_s3 + $0x200] sm:$0xff]  }
 0x276   : > { %v3168_v53 = vpop.f32.mrf.mxu0  ;;  %v3937_v29 = vpop.f32.mrf.mxu1  ;;  %5468 = vmatmul.mubr.bf16.gmra.mxu1 %v4794_v44  ;;  %v4849_v44 = vrot.slane %v4847_v31, 1 }
 0x277   : > { %v3938_v6 = vadd.f32 %v3937_v29, %v9459_v62  ;;  %5475 = vmatprep.mubr.bf16.mxu1 %v4826_v45  ;;  %7439 = vmatpush3.bf16.msra.mxu1 %v7713_v12  ;;  %v4805_v47 = vor.u32 %v4803_v59, %v4785_v19  ;;  %v10067_v62 = vld [vmem:[#allocation2 + $0xcc] ss:$12 sps:$4 sm:$0xff]   ;;  %v10070_v53 = vld [vmem:[#allocation2 + $0xe8] ss:$12 sps:$4 sm:$0xff]   ;;  %v4813_v12 = vor.u32 %v4811_v32, %v4793_v16 }
 0x278   : > { %v3169_v20 = vpop.f32.mrf.mxu0  ;;  %v3939_v42 = vpop.f32.mrf.mxu1  ;;  %7432 = vmatprep.subr.bf16.mxu1 %v10798_v48  ;;  %v4845_v59 = vor.u32 %v4843_v17, %v4825_v8  ;;  %v4871_v32 = vshll.u32 %v10070_v53, 16  ;;  %v4827_v8 = vshrl.u32 %v10030_v36, 16 }
 0x279   : > { %v4810_v45 = vsel %vm4702_vm15, %v4805_v47, %v4809_v30  ;;  %v4831_v20 = vshll.u32 %v10060_v10, 16  ;;  %v4818_v31 = vsel %vm4702_vm15, %v4813_v12, %v4817_v21 }
 0x27a   : > { %v3170_v63 = vpop.f32.mrf.mxu0  ;;  %v3940_v35 = vpop.f32.mrf.mxu1  ;;  %v4850_v47 = vsel %vm4702_vm15, %v4845_v59, %v4849_v44 }
 0x27b   : > { %v3941_v29 = vadd.f32 %v3940_v35, %v9466_v13  ;;  %7440 = vmatpush3.bf16.msra.mxu1 %v7714_v33  ;;  %v4839_v13 = vshll.u32 %v10067_v62, 16  ;;  %v10088_v35 = vld [vmem:[#allocation2 + $0xd4] ss:$12 sps:$4 sm:$0xff]   ;;  %v4829_v33 = vor.u32 %v4827_v8, %v4809_v30 }
 0x27c   : > { %v4137_v19 = vpop.f32.mrf.mxu0  ;;  %7354 = vmatmul.mubr.bf16.gmra.mxu0 %v4810_v45  ;;  %v3942_v55 = vpop.f32.mrf.mxu1 }
 0x27d   : > { %v10078_v60 = vadd.f32 %v4137_v19, %v3938_v6  ;;  %7357 = vmatprep.mubr.msk.bf16.mxu0 %vm7726_vm0, %v10798_v48  ;;  %v4833_v6 = vrot.slane %v4831_v20, 1  ;;  %v4835_v19 = vshrl.u32 %v10039_v7, 16  ;;  %v4841_v55 = vrot.slane %v4839_v13, 1 }
 0x27e   : > { %v7243_v16 = vpop.f32.mrf.mxu0  ;;  %v3945_v42 = vpop.f32.mrf.mxu1  ;;  %5476 = vmatmul.mubr.bf16.gmra.mxu1 %v4818_v31  ;;  %v10093_v31 = vld [vmem:[#allocation2 + $0xe4] ss:$12 sps:$4 sm:$0xff]  }
 0x27f   : > { %v3946_v63 = vadd.f32 %v3945_v42, %v9474_v3  ;;  %5483 = vmatprep.mubr.bf16.mxu1 %v4850_v47  ;;  %v4867_v3 = vshrl.u32 %v10042_v18, 16  ;;  %v4873_v42 = vrot.slane %v4871_v32, 1  ;;  %v10096_v47 = vld [vmem:[#allocation2 + $0x100] ss:$12 sps:$4 sm:$0xff]   ;;  %v4834_v20 = vsel %vm4702_vm15, %v4829_v33, %v4833_v6 }
 0x280   : > { %v4140_v17 = vpop.f32.mrf.mxu0  ;;  %v3947_v45 = vpop.f32.mrf.mxu1  ;;  %v4863_v18 = vshll.u32 %v10093_v31, 16  ;;  %v4895_v33 = vshll.u32 %v10096_v47, 16 }
 0x281   : > { %v10090_v12 = vadd.f32 %v4140_v17, %v3941_v29  ;;  %v4837_v45 = vor.u32 %v4835_v19, %v4817_v21  ;;  %v4855_v29 = vshll.u32 %v10088_v35, 16  ;;  %v4869_v13 = vor.u32 %v4867_v3, %v4849_v44 }
 0x282   : > { %v7244_v59 = vpop.f32.mrf.mxu0  ;;  %v3948_v16 = vpop.f32.mrf.mxu1  ;;  %v4851_v44 = vshrl.u32 %v10060_v10, 16 }
 0x283   : > { %v3949_v36 = vadd.f32 %v3948_v16, %v9491_v49  ;;  %v4842_v17 = vsel %vm4702_vm15, %v4837_v45, %v4841_v55  ;;  %v4874_v21 = vsel %vm4702_vm15, %v4869_v13, %v4873_v42  ;;  %v10111_v59 = vld [vmem:[#allocation2 + $0xec] ss:$12 sps:$4 sm:$0xff]  }
 0x284   : > { %v4145_v30 = vpop.f32.mrf.mxu0  ;;  %7358 = vmatmul.mubr.bf16.gmra.mxu0 %v4834_v20  ;;  %v3950_v7 = vpop.f32.mrf.mxu1  ;;  %v4853_v45 = vor.u32 %v4851_v44, %v4833_v6 }
 0x285   : > { %v10101_v8 = vadd.f32 %v4145_v30, %v3946_v63  ;;  %7361 = vmatprep.mubr.msk.bf16.mxu0 %vm7726_vm0, %v10798_v48  ;;  %v4857_v63 = vrot.slane %v4855_v29, 1  ;;  %v4859_v30 = vshrl.u32 %v10067_v62, 16  ;;  %v4865_v7 = vrot.slane %v4863_v18, 1 }
 0x286   : > { %v7247_v32 = vpop.f32.mrf.mxu0  ;;  %v3953_v49 = vpop.f32.mrf.mxu1  ;;  %5484 = vmatmul.mubr.bf16.gmra.mxu1 %v4842_v17  ;;  %v10116_v17 = vld [vmem:[#allocation2 + $0xfc] ss:$12 sps:$4 sm:$0xff]  }
 0x287   : > { %v3954_v19 = vadd.f32 %v3953_v49, %v9541_v14  ;;  %5491 = vmatprep.mubr.bf16.mxu1 %v4874_v21  ;;  %v4891_v14 = vshrl.u32 %v10070_v53, 16  ;;  %v4897_v49 = vrot.slane %v4895_v33, 1  ;;  %v10119_v21 = vld [vmem:[#allocation2 + $0x118] ss:$12 sps:$4 sm:$0xff]   ;;  %v4858_v29 = vsel %vm4702_vm15, %v4853_v45, %v4857_v63 }
 0x288   : > { %v4148_v16 = vpop.f32.mrf.mxu0  ;;  %v3955_v3 = vpop.f32.mrf.mxu1  ;;  %v4887_v53 = vshll.u32 %v10116_v17, 16  ;;  %v4919_v45 = vshll.u32 %v10119_v21, 16 }
 0x289   : > { %v10113_v20 = vadd.f32 %v4148_v16, %v3949_v36  ;;  %v4861_v3 = vor.u32 %v4859_v30, %v4841_v55  ;;  %v4879_v36 = vshll.u32 %v10111_v59, 16  ;;  %v4893_v18 = vor.u32 %v4891_v14, %v4873_v42 }
 0x28a   : > { %v7248_v13 = vpop.f32.mrf.mxu0  ;;  %v3956_v32 = vpop.f32.mrf.mxu1  ;;  %v4875_v42 = vshrl.u32 %v10088_v35, 16 }
 0x28b   : > { %v3957_v10 = vadd.f32 %v3956_v32, %v9560_v27  ;;  %v4866_v16 = vsel %vm4702_vm15, %v4861_v3, %v4865_v7  ;;  %v4898_v55 = vsel %vm4702_vm15, %v4893_v18, %v4897_v49  ;;  %v10134_v13 = vld [vmem:[#allocation2 + $0x104] ss:$12 sps:$4 sm:$0xff]  }
 0x28c   : > { %v4153_v6 = vpop.f32.mrf.mxu0  ;;  %7362 = vmatmul.mubr.bf16.gmra.mxu0 %v4858_v29  ;;  %v3958_v62 = vpop.f32.mrf.mxu1  ;;  %v4877_v3 = vor.u32 %v4875_v42, %v4857_v63 }
 0x28d   : > { %v10124_v44 = vadd.f32 %v4153_v6, %v3954_v19  ;;  %7365 = vmatprep.mubr.msk.bf16.mxu0 %vm7726_vm0, %v10798_v48  ;;  %v4881_v19 = vrot.slane %v4879_v36, 1  ;;  %v4883_v6 = vshrl.u32 %v10093_v31, 16  ;;  %v4889_v62 = vrot.slane %v4887_v53, 1 }
 0x28e   : > { %v7251_v33 = vpop.f32.mrf.mxu0  ;;  %v3961_v27 = vpop.f32.mrf.mxu1  ;;  %5492 = vmatmul.mubr.bf16.gmra.mxu1 %v4866_v16  ;;  %v10139_v16 = vld [vmem:[#allocation2 + $0x114] ss:$12 sps:$4 sm:$0xff]  }
 0x28f   : > { %v3962_v30 = vadd.f32 %v3961_v27, %v9611_v23  ;;  %5499 = vmatprep.mubr.bf16.mxu1 %v4898_v55  ;;  %v4915_v23 = vshrl.u32 %v10096_v47, 16  ;;  %v4921_v27 = vrot.slane %v4919_v45, 1  ;;  %v10142_v55 = vld [vmem:[#allocation2 + $0x130] ss:$12 sps:$4 sm:$0xff]   ;;  %v4882_v36 = vsel %vm4702_vm15, %v4877_v3, %v4881_v19 }
 0x290   : > { %v4156_v32 = vpop.f32.mrf.mxu0  ;;  %v3963_v14 = vpop.f32.mrf.mxu1  ;;  %v4911_v47 = vshll.u32 %v10139_v16, 16  ;;  %v4943_v3 = vshll.u32 %v10142_v55, 16 }
 0x291   : > { %v10136_v29 = vadd.f32 %v4156_v32, %v3957_v10  ;;  %v4885_v14 = vor.u32 %v4883_v6, %v4865_v7  ;;  %v4903_v10 = vshll.u32 %v10134_v13, 16  ;;  %v4917_v53 = vor.u32 %v4915_v23, %v4897_v49 }
 0x292   : > { %v7252_v18 = vpop.f32.mrf.mxu0  ;;  %v3964_v33 = vpop.f32.mrf.mxu1  ;;  %v4899_v49 = vshrl.u32 %v10111_v59, 16 }
 0x293   : > { %v3965_v35 = vadd.f32 %v3964_v33, %v9630_v4  ;;  %v4890_v32 = vsel %vm4702_vm15, %v4885_v14, %v4889_v62  ;;  %v4922_v7 = vsel %vm4702_vm15, %v4917_v53, %v4921_v27  ;;  %v10157_v18 = vld [vmem:[#allocation2 + $0x11c] ss:$12 sps:$4 sm:$0xff]  }
 0x294   : > { %v4161_v63 = vpop.f32.mrf.mxu0  ;;  %7366 = vmatmul.mubr.bf16.gmra.mxu0 %v4882_v36  ;;  %v3966_v31 = vpop.f32.mrf.mxu1  ;;  %v4901_v14 = vor.u32 %v4899_v49, %v4881_v19 }
 0x295   : > { %v10147_v42 = vadd.f32 %v4161_v63, %v3962_v30  ;;  %7369 = vmatprep.mubr.msk.bf16.mxu0 %vm7726_vm0, %v10798_v48  ;;  %v4905_v30 = vrot.slane %v4903_v10, 1  ;;  %v4907_v63 = vshrl.u32 %v10116_v17, 16  ;;  %v4913_v31 = vrot.slane %v4911_v47, 1 }
 0x296   : > { %v7255_v45 = vpop.f32.mrf.mxu0  ;;  %v3969_v4 = vpop.f32.mrf.mxu1  ;;  %5500 = vmatmul.mubr.bf16.gmra.mxu1 %v4890_v32  ;;  %v10162_v32 = vld [vmem:[#allocation2 + $0x12c] ss:$12 sps:$4 sm:$0xff]  }
 0x297   : > { %v3970_v6 = vadd.f32 %v3969_v4, %v9654_v9  ;;  %5507 = vmatprep.mubr.bf16.mxu1 %v4922_v7  ;;  %v4939_v9 = vshrl.u32 %v10119_v21, 16  ;;  %v4945_v4 = vrot.slane %v4943_v3, 1  ;;  %v10165_v7 = vld [vmem:[#allocation2 + $0x148] ss:$12 sps:$4 sm:$0xff]   ;;  %v4906_v10 = vsel %vm4702_vm15, %v4901_v14, %v4905_v30 }
 0x298   : > { %v4164_v33 = vpop.f32.mrf.mxu0  ;;  %v3971_v23 = vpop.f32.mrf.mxu1  ;;  %v4935_v21 = vshll.u32 %v10162_v32, 16  ;;  %v4967_v14 = vshll.u32 %v10165_v7, 16 }
 0x299   : > { %v10159_v36 = vadd.f32 %v4164_v33, %v3965_v35  ;;  %v4909_v23 = vor.u32 %v4907_v63, %v4889_v62  ;;  %v4927_v35 = vshll.u32 %v10157_v18, 16  ;;  %v4941_v47 = vor.u32 %v4939_v9, %v4921_v27 }
 0x29a   : > { %v7256_v53 = vpop.f32.mrf.mxu0  ;;  %v3972_v45 = vpop.f32.mrf.mxu1  ;;  %v4923_v27 = vshrl.u32 %v10134_v13, 16 }
 0x29b   : > { %v3973_v59 = vadd.f32 %v3972_v45, %v9668_v0  ;;  %v4914_v33 = vsel %vm4702_vm15, %v4909_v23, %v4913_v31  ;;  %v4946_v62 = vsel %vm4702_vm15, %v4941_v47, %v4945_v4  ;;  %v10180_v53 = vld [vmem:[#allocation2 + $0x134] ss:$12 sps:$4 sm:$0xff]  }
 0x29c   : > { %v4169_v19 = vpop.f32.mrf.mxu0  ;;  %7370 = vmatmul.mubr.bf16.gmra.mxu0 %v4906_v10  ;;  %v3974_v17 = vpop.f32.mrf.mxu1  ;;  %v4925_v23 = vor.u32 %v4923_v27, %v4905_v30 }
 0x29d   : > { %v10170_v49 = vadd.f32 %v4169_v19, %v3970_v6  ;;  %7373 = vmatprep.mubr.msk.bf16.mxu0 %vm7726_vm0, %v10798_v48  ;;  %v4929_v6 = vrot.slane %v4927_v35, 1  ;;  %v4931_v19 = vshrl.u32 %v10139_v16, 16  ;;  %v4937_v17 = vrot.slane %v4935_v21, 1 }
 0x29e   : > { %v7259_v3 = vpop.f32.mrf.mxu0  ;;  %v3977_v0 = vpop.f32.mrf.mxu1  ;;  %5508 = vmatmul.mubr.bf16.gmra.mxu1 %v4914_v33  ;;  %v10185_v33 = vld [vmem:[#allocation2 + $0x144] ss:$12 sps:$4 sm:$0xff]  }
 0x29f   : > { %v3978_v63 = vadd.f32 %v3977_v0, %v9715_v50  ;;  %5515 = vmatprep.mubr.bf16.mxu1 %v4946_v62  ;;  %v4963_v50 = vshrl.u32 %v10142_v55, 16  ;;  %v4969_v0 = vrot.slane %v4967_v14, 1  ;;  %v10188_v62 = vld [vmem:[#allocation2 + $0x160] ss:$12 sps:$4 sm:$0xff]   ;;  %v4930_v35 = vsel %vm4702_vm15, %v4925_v23, %v4929_v6 }
 0x2a0   : > { %v4172_v45 = vpop.f32.mrf.mxu0  ;;  %v3979_v9 = vpop.f32.mrf.mxu1  ;;  %v4959_v55 = vshll.u32 %v10185_v33, 16  ;;  %v4991_v23 = vshll.u32 %v10188_v62, 16 }
 0x2a1   : > { %v10182_v10 = vadd.f32 %v4172_v45, %v3973_v59  ;;  %v4933_v9 = vor.u32 %v4931_v19, %v4913_v31  ;;  %v4951_v59 = vshll.u32 %v10180_v53, 16  ;;  %v4965_v21 = vor.u32 %v4963_v50, %v4945_v4 }
 0x2a2   : > { %v7260_v47 = vpop.f32.mrf.mxu0  ;;  %v3980_v3 = vpop.f32.mrf.mxu1  ;;  %v4947_v4 = vshrl.u32 %v10157_v18, 16 }
 0x2a3   : > { %v3981_v13 = vadd.f32 %v3980_v3, %v9730_v57  ;;  %v4938_v45 = vsel %vm4702_vm15, %v4933_v9, %v4937_v17  ;;  %v4970_v31 = vsel %vm4702_vm15, %v4965_v21, %v4969_v0  ;;  %v10203_v47 = vld [vmem:[#allocation2 + $0x14c] ss:$12 sps:$4 sm:$0xff]  }
 0x2a4   : > { %v4177_v30 = vpop.f32.mrf.mxu0  ;;  %7374 = vmatmul.mubr.bf16.gmra.mxu0 %v4930_v35  ;;  %v3982_v16 = vpop.f32.mrf.mxu1  ;;  %v4949_v9 = vor.u32 %v4947_v4, %v4929_v6 }
 0x2a5   : > { %v10193_v27 = vadd.f32 %v4177_v30, %v3978_v63  ;;  %7377 = vmatprep.mubr.msk.bf16.mxu0 %vm7726_vm0, %v10798_v48  ;;  %v4953_v63 = vrot.slane %v4951_v59, 1  ;;  %v4955_v30 = vshrl.u32 %v10162_v32, 16  ;;  %v4961_v16 = vrot.slane %v4959_v55, 1 }
 0x2a6   : > { %v7263_v14 = vpop.f32.mrf.mxu0  ;;  %v3985_v57 = vpop.f32.mrf.mxu1  ;;  %5516 = vmatmul.mubr.bf16.gmra.mxu1 %v4938_v45  ;;  %v10208_v45 = vld [vmem:[#allocation2 + $0x15c] ss:$12 sps:$4 sm:$0xff]  }
 0x2a7   : > { %v3986_v19 = vadd.f32 %v3985_v57, %v9759_v28  ;;  %5523 = vmatprep.mubr.bf16.mxu1 %v4970_v31  ;;  %v4987_v28 = vshrl.u32 %v10165_v7, 16  ;;  %v4993_v57 = vrot.slane %v4991_v23, 1  ;;  %v10211_v31 = vld [vmem:[#allocation2 + $0x178] ss:$12 sps:$4 sm:$0xff]   ;;  %v4954_v59 = vsel %vm4702_vm15, %v4949_v9, %v4953_v63 }
 0x2a8   : > { %v4180_v3 = vpop.f32.mrf.mxu0  ;;  %v3987_v50 = vpop.f32.mrf.mxu1  ;;  %v4983_v7 = vshll.u32 %v10208_v45, 16  ;;  %v5015_v9 = vshll.u32 %v10211_v31, 16 }
 0x2a9   : > { %v10205_v35 = vadd.f32 %v4180_v3, %v3981_v13  ;;  %v4957_v50 = vor.u32 %v4955_v30, %v4937_v17  ;;  %v4975_v13 = vshll.u32 %v10203_v47, 16  ;;  %v4989_v55 = vor.u32 %v4987_v28, %v4969_v0 }
 0x2aa   : > { %v7264_v21 = vpop.f32.mrf.mxu0  ;;  %v3988_v14 = vpop.f32.mrf.mxu1  ;;  %v4971_v0 = vshrl.u32 %v10180_v53, 16 }
 0x2ab   : > { %v3989_v18 = vadd.f32 %v3988_v14, %v9773_v2  ;;  %v4962_v3 = vsel %vm4702_vm15, %v4957_v50, %v4961_v16  ;;  %v4994_v17 = vsel %vm4702_vm15, %v4989_v55, %v4993_v57  ;;  %v10226_v21 = vld [vmem:[#allocation2 + $0x164] ss:$12 sps:$4 sm:$0xff]  }
 0x2ac   : > { %v4185_v6 = vpop.f32.mrf.mxu0  ;;  %7378 = vmatmul.mubr.bf16.gmra.mxu0 %v4954_v59  ;;  %v3990_v32 = vpop.f32.mrf.mxu1  ;;  %v4973_v50 = vor.u32 %v4971_v0, %v4953_v63 }
 0x2ad   : > { %v10216_v4 = vadd.f32 %v4185_v6, %v3986_v19  ;;  %7381 = vmatprep.mubr.msk.bf16.mxu0 %vm7726_vm0, %v10798_v48  ;;  %v4977_v19 = vrot.slane %v4975_v13, 1  ;;  %v4979_v6 = vshrl.u32 %v10185_v33, 16  ;;  %v4985_v32 = vrot.slane %v4983_v7, 1 }
 0x2ae   : > { %v7267_v23 = vpop.f32.mrf.mxu0  ;;  %v3993_v2 = vpop.f32.mrf.mxu1  ;;  %5524 = vmatmul.mubr.bf16.gmra.mxu1 %v4962_v3  ;;  %v10231_v3 = vld [vmem:[#allocation2 + $0x174] ss:$12 sps:$4 sm:$0xff]  }
 0x2af   : > { %v3994_v30 = vadd.f32 %v3993_v2, %v9780_v24  ;;  %5531 = vmatprep.mubr.bf16.mxu1 %v4994_v17  ;;  %v5011_v24 = vshrl.u32 %v10188_v62, 16  ;;  %v5017_v2 = vrot.slane %v5015_v9, 1  ;;  %v10234_v17 = vld [vmem:[#allocation2 + $0x190] ss:$12 sps:$4 sm:$0xff]   ;;  %v4978_v13 = vsel %vm4702_vm15, %v4973_v50, %v4977_v19 }
 0x2b0   : > { %v4188_v14 = vpop.f32.mrf.mxu0  ;;  %v3995_v28 = vpop.f32.mrf.mxu1  ;;  %v5007_v62 = vshll.u32 %v10231_v3, 16  ;;  %v5039_v50 = vshll.u32 %v10234_v17, 16 }
 0x2b1   : > { %v10228_v59 = vadd.f32 %v4188_v14, %v3989_v18  ;;  %v4981_v28 = vor.u32 %v4979_v6, %v4961_v16  ;;  %v4999_v18 = vshll.u32 %v10226_v21, 16  ;;  %v5013_v7 = vor.u32 %v5011_v24, %v4993_v57 }
 0x2b2   : > { %v7268_v55 = vpop.f32.mrf.mxu0  ;;  %v3996_v23 = vpop.f32.mrf.mxu1  ;;  %v4995_v57 = vshrl.u32 %v10203_v47, 16 }
 0x2b3   : > { %v3997_v53 = vadd.f32 %v3996_v23, %v9794_v52  ;;  %v4986_v14 = vsel %vm4702_vm15, %v4981_v28, %v4985_v32  ;;  %v5018_v16 = vsel %vm4702_vm15, %v5013_v7, %v5017_v2  ;;  %v10249_v55 = vld [vmem:[#allocation2 + $0x17c] ss:$12 sps:$4 sm:$0xff]  }
 0x2b4   : > { %v4193_v63 = vpop.f32.mrf.mxu0  ;;  %7382 = vmatmul.mubr.bf16.gmra.mxu0 %v4978_v13  ;;  %v3998_v33 = vpop.f32.mrf.mxu1  ;;  %v4997_v28 = vor.u32 %v4995_v57, %v4977_v19 }
 0x2b5   : > { %v10239_v0 = vadd.f32 %v4193_v63, %v3994_v30  ;;  %7385 = vmatprep.mubr.msk.bf16.mxu0 %vm7726_vm0, %v10798_v48  ;;  %v5001_v30 = vrot.slane %v4999_v18, 1  ;;  %v5003_v63 = vshrl.u32 %v10208_v45, 16  ;;  %v5009_v33 = vrot.slane %v5007_v62, 1 }
 0x2b6   : > { %v7271_v9 = vpop.f32.mrf.mxu0  ;;  %v4001_v52 = vpop.f32.mrf.mxu1  ;;  %5532 = vmatmul.mubr.bf16.gmra.mxu1 %v4986_v14  ;;  %v10254_v14 = vld [vmem:[#allocation2 + $0x18c] ss:$12 sps:$4 sm:$0xff]  }
 0x2b7   : > { %v4002_v6 = vadd.f32 %v4001_v52, %v9801_v1  ;;  %5539 = vmatprep.mubr.bf16.mxu1 %v5018_v16  ;;  %v5035_v1 = vshrl.u32 %v10211_v31, 16  ;;  %v5041_v52 = vrot.slane %v5039_v50, 1  ;;  %v10257_v16 = vld [vmem:[#allocation2 + $0x1a8] ss:$12 sps:$4 sm:$0xff]   ;;  %v5002_v18 = vsel %vm4702_vm15, %v4997_v28, %v5001_v30 }
 0x2b8   : > { %v4196_v23 = vpop.f32.mrf.mxu0  ;;  %v4003_v24 = vpop.f32.mrf.mxu1  ;;  %v5031_v31 = vshll.u32 %v10254_v14, 16  ;;  %v5063_v28 = vshll.u32 %v10257_v16, 16 }
 0x2b9   : > { %v10251_v13 = vadd.f32 %v4196_v23, %v3997_v53  ;;  %v5005_v24 = vor.u32 %v5003_v63, %v4985_v32  ;;  %v5023_v53 = vshll.u32 %v10249_v55, 16  ;;  %v5037_v62 = vor.u32 %v5035_v1, %v5017_v2 }
 0x2ba   : > { %v7272_v7 = vpop.f32.mrf.mxu0  ;;  %v4004_v9 = vpop.f32.mrf.mxu1  ;;  %v5019_v2 = vshrl.u32 %v10226_v21, 16 }
 0x2bb   : > { %v4005_v47 = vadd.f32 %v4004_v9, %v9815_v61  ;;  %v5010_v23 = vsel %vm4702_vm15, %v5005_v24, %v5009_v33  ;;  %v5042_v32 = vsel %vm4702_vm15, %v5037_v62, %v5041_v52  ;;  %v10272_v7 = vld [vmem:[#allocation2 + $0x194] ss:$12 sps:$4 sm:$0xff]  }
 0x2bc   : > { %v4201_v19 = vpop.f32.mrf.mxu0  ;;  %7386 = vmatmul.mubr.bf16.gmra.mxu0 %v5002_v18  ;;  %v4006_v45 = vpop.f32.mrf.mxu1  ;;  %v5021_v24 = vor.u32 %v5019_v2, %v5001_v30 }
 0x2bd   : > { %v10262_v57 = vadd.f32 %v4201_v19, %v4002_v6  ;;  %7389 = vmatprep.mubr.msk.bf16.mxu0 %vm7726_vm0, %v10798_v48  ;;  %v5025_v6 = vrot.slane %v5023_v53, 1  ;;  %v5027_v19 = vshrl.u32 %v10231_v3, 16  ;;  %v5033_v45 = vrot.slane %v5031_v31, 1 }
 0x2be   : > { %v7275_v50 = vpop.f32.mrf.mxu0  ;;  %v4009_v61 = vpop.f32.mrf.mxu1  ;;  %5540 = vmatmul.mubr.bf16.gmra.mxu1 %v5010_v23  ;;  %v10277_v23 = vld [vmem:[#allocation2 + $0x1a4] ss:$12 sps:$4 sm:$0xff]  }
 0x2bf   : > { %v4010_v63 = vadd.f32 %v4009_v61, %v9822_v51  ;;  %5547 = vmatprep.mubr.bf16.mxu1 %v5042_v32  ;;  %v5059_v51 = vshrl.u32 %v10234_v17, 16  ;;  %v5065_v61 = vrot.slane %v5063_v28, 1  ;;  %v10280_v32 = vld [vmem:[#allocation2 + $0x1c0] ss:$12 sps:$4 sm:$0xff]   ;;  %v5026_v53 = vsel %vm4702_vm15, %v5021_v24, %v5025_v6 }
 0x2c0   : > { %v4204_v9 = vpop.f32.mrf.mxu0  ;;  %v4011_v1 = vpop.f32.mrf.mxu1  ;;  %v5055_v17 = vshll.u32 %v10277_v23, 16  ;;  %v5087_v24 = vshll.u32 %v10280_v32, 16 }
 0x2c1   : > { %v10274_v18 = vadd.f32 %v4204_v9, %v4005_v47  ;;  %v5029_v1 = vor.u32 %v5027_v19, %v5009_v33  ;;  %v5047_v47 = vshll.u32 %v10272_v7, 16  ;;  %v5061_v31 = vor.u32 %v5059_v51, %v5041_v52 }
 0x2c2   : > { %v7276_v62 = vpop.f32.mrf.mxu0  ;;  %v4012_v50 = vpop.f32.mrf.mxu1  ;;  %v5043_v52 = vshrl.u32 %v10249_v55, 16 }
 0x2c3   : > { %v4013_v21 = vadd.f32 %v4012_v50, %v9836_v22  ;;  %v5034_v9 = vsel %vm4702_vm15, %v5029_v1, %v5033_v45  ;;  %v5066_v33 = vsel %vm4702_vm15, %v5061_v31, %v5065_v61  ;;  %v10295_v62 = vld [vmem:[#allocation2 + $0x1ac] ss:$12 sps:$4 sm:$0xff]  }
 0x2c4   : > { %v4209_v30 = vpop.f32.mrf.mxu0  ;;  %7390 = vmatmul.mubr.bf16.gmra.mxu0 %v5026_v53  ;;  %v4014_v3 = vpop.f32.mrf.mxu1  ;;  %v5045_v1 = vor.u32 %v5043_v52, %v5025_v6 }
 0x2c5   : > { %v10285_v2 = vadd.f32 %v4209_v30, %v4010_v63  ;;  %7393 = vmatprep.mubr.msk.bf16.mxu0 %vm7726_vm0, %v10798_v48  ;;  %v5049_v63 = vrot.slane %v5047_v47, 1  ;;  %v5051_v30 = vshrl.u32 %v10254_v14, 16  ;;  %v5057_v3 = vrot.slane %v5055_v17, 1 }
 0x2c6   : > { %v7279_v28 = vpop.f32.mrf.mxu0  ;;  %v4017_v22 = vpop.f32.mrf.mxu1  ;;  %5548 = vmatmul.mubr.bf16.gmra.mxu1 %v5034_v9  ;;  %v10300_v9 = vld [vmem:[#allocation2 + $0x1bc] ss:$12 sps:$4 sm:$0xff]  }
 0x2c7   : > { %v4018_v19 = vadd.f32 %v4017_v22, %v9843_v43  ;;  %5555 = vmatprep.mubr.bf16.mxu1 %v5066_v33  ;;  %v5083_v43 = vshrl.u32 %v10257_v16, 16  ;;  %v5089_v22 = vrot.slane %v5087_v24, 1  ;;  %v10303_v33 = vld [vmem:[#allocation2 + $0x1d8] ss:$12 sps:$4 sm:$0xff]   ;;  %v5050_v47 = vsel %vm4702_vm15, %v5045_v1, %v5049_v63 }
 0x2c8   : > { %v4212_v50 = vpop.f32.mrf.mxu0  ;;  %v4019_v51 = vpop.f32.mrf.mxu1  ;;  %v5079_v16 = vshll.u32 %v10300_v9, 16  ;;  %v5111_v1 = vshll.u32 %v10303_v33, 16 }
 0x2c9   : > { %v10297_v53 = vadd.f32 %v4212_v50, %v4013_v21  ;;  %v5053_v51 = vor.u32 %v5051_v30, %v5033_v45  ;;  %v5071_v21 = vshll.u32 %v10295_v62, 16  ;;  %v5085_v17 = vor.u32 %v5083_v43, %v5065_v61 }
 0x2ca   : > { %v7280_v31 = vpop.f32.mrf.mxu0  ;;  %v4020_v28 = vpop.f32.mrf.mxu1  ;;  %v5067_v61 = vshrl.u32 %v10272_v7, 16 }
 0x2cb   : > { %v4021_v55 = vadd.f32 %v4020_v28, %v9857_v41  ;;  %v5058_v50 = vsel %vm4702_vm15, %v5053_v51, %v5057_v3  ;;  %v5090_v45 = vsel %vm4702_vm15, %v5085_v17, %v5089_v22  ;;  %v10318_v31 = vld [vmem:[#allocation2 + $0x1c4] ss:$12 sps:$4 sm:$0xff]  }
 0x2cc   : > { %v4217_v6 = vpop.f32.mrf.mxu0  ;;  %7394 = vmatmul.mubr.bf16.gmra.mxu0 %v5050_v47  ;;  %v4022_v14 = vpop.f32.mrf.mxu1  ;;  %v5069_v51 = vor.u32 %v5067_v61, %v5049_v63 }
 0x2cd   : > { %v10308_v52 = vadd.f32 %v4217_v6, %v4018_v19  ;;  %7397 = vmatprep.mubr.msk.bf16.mxu0 %vm7726_vm0, %v10798_v48  ;;  %v5073_v19 = vrot.slane %v5071_v21, 1  ;;  %v5075_v6 = vshrl.u32 %v10277_v23, 16  ;;  %v5081_v14 = vrot.slane %v5079_v16, 1 }
 0x2ce   : > { %v7283_v24 = vpop.f32.mrf.mxu0  ;;  %v4025_v41 = vpop.f32.mrf.mxu1  ;;  %5556 = vmatmul.mubr.bf16.gmra.mxu1 %v5058_v50  ;;  %v10323_v50 = vld [vmem:[#allocation2 + $0x1d4] ss:$12 sps:$4 sm:$0xff]  }
 0x2cf   : > { %v4026_v30 = vadd.f32 %v4025_v41, %v9864_v26  ;;  %5563 = vmatprep.mubr.bf16.mxu1 %v5090_v45  ;;  %v5107_v26 = vshrl.u32 %v10280_v32, 16  ;;  %v5113_v41 = vrot.slane %v5111_v1, 1  ;;  %v10326_v45 = vld [vmem:[#allocation2 + $0x1f0] ss:$12 sps:$4 sm:$0xff]   ;;  %v5074_v21 = vsel %vm4702_vm15, %v5069_v51, %v5073_v19 }
 0x2d0   : > { %v4220_v28 = vpop.f32.mrf.mxu0  ;;  %v4027_v43 = vpop.f32.mrf.mxu1  ;;  %v5103_v32 = vshll.u32 %v10323_v50, 16  ;;  %v5135_v51 = vshll.u32 %v10326_v45, 16 }
 0x2d1   : > { %v10320_v47 = vadd.f32 %v4220_v28, %v4021_v55  ;;  %v5077_v43 = vor.u32 %v5075_v6, %v5057_v3  ;;  %v5095_v55 = vshll.u32 %v10318_v31, 16  ;;  %v5109_v16 = vor.u32 %v5107_v26, %v5089_v22 }
 0x2d2   : > { %v7284_v17 = vpop.f32.mrf.mxu0  ;;  %v4028_v24 = vpop.f32.mrf.mxu1  ;;  %v5091_v22 = vshrl.u32 %v10295_v62, 16  ;;  %v7715_v62 = vld [vmem:[#allocation2] sm:$0xff] }
 0x2d3   : > { %v4029_v7 = vadd.f32 %v4028_v24, %v9878_v34  ;;  %v5082_v28 = vsel %vm4702_vm15, %v5077_v43, %v5081_v14  ;;  %v5114_v3 = vsel %vm4702_vm15, %v5109_v16, %v5113_v41  ;;  %v10341_v17 = vld [vmem:[#allocation2 + $0x1dc] ss:$12 sps:$4 sm:$0xff]   ;;  %v10346_v16 = vld [vmem:[#allocation2 + $0x1ec] ss:$12 sps:$4 sm:$0xff]  }
 0x2d4   : > { %v4225_v63 = vpop.f32.mrf.mxu0  ;;  %7398 = vmatmul.mubr.bf16.gmra.mxu0 %v5074_v21  ;;  %v4030_v23 = vpop.f32.mrf.mxu1  ;;  %v4379_v24 = vld [vmem:[#allocation2 + $0x204] sm:$0xff] }
 0x2d5   : > { %v10331_v61 = vadd.f32 %v4225_v63, %v4026_v30  ;;  %7401 = vmatprep.mubr.msk.bf16.mxu0 %vm7726_vm0, %v10798_v48  ;;  %v5097_v30 = vrot.slane %v5095_v55, 1  ;;  %v5093_v63 = vor.u32 %v5091_v22, %v5073_v19  ;;  %v5099_v23 = vshrl.u32 %v10300_v9, 16 }
 0x2d6   : > { %v7287_v1 = vpop.f32.mrf.mxu0  ;;  %v4033_v34 = vpop.f32.mrf.mxu1  ;;  %5564 = vmatmul.mubr.bf16.gmra.mxu1 %v5082_v28  ;;  %v5105_v28 = vrot.slane %v5103_v32, 1  ;;  %v10349_v55 = vcombine.high %v4379_v24, %v7715_v62  ;;  %v5119_v19 = vshll.u32 %v10341_v17, 16 }
 0x2d7   : > { %11014 = vst [vmem:[#allocation47_spill] sm:$0xff] %v10331_v61  ;;  %v4034_v6 = vadd.f32 %v4033_v34, %v9885_v37  ;;  %5571 = vmatprep.mubr.bf16.mxu1 %v5114_v3  ;;  %v5131_v37 = vshrl.u32 %v10303_v33, 16  ;;  %v5137_v34 = vrot.slane %v5135_v51, 1  ;;  %v5127_v33 = vshll.u32 %v10346_v16, 16 }
 0x2d8   : > { %v4228_v26 = vpop.f32.mrf.mxu0  ;;  %v4035_v21 = vpop.f32.mrf.mxu1 }
 0x2d9   : > { %v10343_v43 = vadd.f32 %v4228_v26, %v4029_v7  ;;  %v5098_v21 = vsel %vm4702_vm15, %v5093_v63, %v5097_v30  ;;  %v5101_v7 = vor.u32 %v5099_v23, %v5081_v14  ;;  %v5133_v32 = vor.u32 %v5131_v37, %v5113_v41  ;;  %v10364_v23 = vld [vmem:[#allocation2 + $0x1f4] ss:$12 sps:$4 sm:$0xff]  }
 0x2da   : > { %v7288_v1 = vpop.f32.mrf.mxu0  ;;  %v4036_v61 = vpop.f32.mrf.mxu1  ;;  %v5115_v41 = vshrl.u32 %v10318_v31, 16  ;;  %v4383_v37 = vld [vmem:[#allocation2 + $0x21c] sm:$0x77] }
 0x2db   : > { %11015 = vst [vmem:[#allocation51_spill] sm:$0xff] %v10343_v43  ;;  %v4037_v3 = vadd.f32 %v4036_v61, %v9899_v15  ;;  %v5106_v1 = vsel %vm4702_vm15, %v5101_v7, %v5105_v28  ;;  %v5138_v14 = vsel %vm4702_vm15, %v5133_v32, %v5137_v34  ;;  %v5159_v61 = vshll.u32 %v10349_v55, 16 }
 0x2dc   : > { %v4233_v22 = vpop.f32.mrf.mxu0  ;;  %7402 = vmatmul.mubr.bf16.gmra.mxu0 %v5098_v21  ;;  %v4038_v9 = vpop.f32.mrf.mxu1  ;;  %v10369_v32 = vcombine.low %v4379_v24, %v7715_v62  ;;  %v10372_v31 = vcombine.high %v4383_v37, %v4383_v37 }
 0x2dd   : > { %v10354_v26 = vadd.f32 %v4233_v22, %v4034_v6  ;;  %7405 = vmatprep.mubr.msk.bf16.mxu0 %vm7726_vm0, %v10798_v48  ;;  %v5121_v6 = vrot.slane %v5119_v19, 1  ;;  %v5123_v22 = vshrl.u32 %v10323_v50, 16  ;;  %v5143_v50 = vshll.u32 %v10364_v23, 16 }
 0x2de   : > { %v7291_v51 = vpop.f32.mrf.mxu0  ;;  %v4041_v15 = vpop.f32.mrf.mxu1  ;;  %5572 = vmatmul.mubr.bf16.gmra.mxu1 %v5106_v1  ;;  %v5117_v1 = vor.u32 %v5115_v41, %v5097_v30  ;;  %v10387_v41 = vld [vmem:[#allocation2 + $0x20c] ss:$12 sps:$4 sm:$0xff]  }
 0x2df   : > { %11016 = vst [vmem:[#allocation52_spill] sm:$0xff] %v10354_v26  ;;  %v4042_v63 = vadd.f32 %v4041_v15, %v9908_v54  ;;  %5579 = vmatprep.mubr.bf16.mxu1 %v5138_v14  ;;  %v5129_v51 = vrot.slane %v5127_v33, 1  ;;  %v5155_v54 = vshrl.u32 %v10326_v45, 16  ;;  %v5161_v15 = vrot.slane %v5159_v61, 1 }
 0x2e0   : > { %v4236_v21 = vpop.f32.mrf.mxu0  ;;  %v4043_v7 = vpop.f32.mrf.mxu1  ;;  %v5122_v14 = vsel %vm4702_vm15, %v5117_v1, %v5121_v6  ;;  %v5151_v45 = vshll.u32 %v10369_v32, 16  ;;  %v5183_v61 = vshll.u32 %v10372_v31, 16 }
 0x2e1   : > { %v10367_v9 = vadd.f32 %v4236_v21, %v4037_v3  ;;  %v5125_v7 = vor.u32 %v5123_v22, %v5105_v28  ;;  %v5157_v33 = vor.u32 %v5155_v54, %v5137_v34  ;;  %v5139_v28 = vshrl.u32 %v10341_v17, 16 }
 0x2e2   : > { %v7292_v26 = vpop.f32.mrf.mxu0  ;;  %v4044_v43 = vpop.f32.mrf.mxu1  ;;  %v5179_v54 = vshrl.u32 %v10349_v55, 16 }
 0x2e3   : > { %v4045_v19 = vadd.f32 %v4044_v43, %v9916_v39  ;;  %v5130_v62 = vsel %vm4702_vm15, %v5125_v7, %v5129_v51  ;;  %v5162_v43 = vsel %vm4702_vm15, %v5157_v33, %v5161_v15  ;;  %v5141_v1 = vor.u32 %v5139_v28, %v5121_v6 }
 0x2e4   : > { %v4241_v3 = vpop.f32.mrf.mxu0  ;;  %7406 = vmatmul.mubr.bf16.gmra.mxu0 %v5122_v14  ;;  %v4046_v30 = vpop.f32.mrf.mxu1  ;;  %v5147_v7 = vshrl.u32 %v10346_v16, 16 }
 0x2e5   : > { %v10377_v24 = vadd.f32 %v4241_v3, %v4042_v63  ;;  %7409 = vmatprep.mubr.msk.bf16.mxu0 %vm7726_vm0, %v10798_v48  ;;  %v5145_v63 = vrot.slane %v5143_v50, 1  ;;  %v5153_v3 = vrot.slane %v5151_v45, 1  ;;  %v6668_v30 = vcombine.low %v4383_v37, %v4383_v37 }
 0x2e6   : > { %v7295_v26 = vpop.f32.mrf.mxu0  ;;  %v4049_v39 = vpop.f32.mrf.mxu1  ;;  %5580 = vmatmul.mubr.bf16.gmra.mxu1 %v5130_v62  ;;  %v5181_v62 = vor.u32 %v5179_v54, %v5161_v15 }
 0x2e7   : > { %v4050_v34 = vadd.f32 %v4049_v39, %v9923_v38  ;;  %5587 = vmatprep.mubr.bf16.mxu1 %v5162_v43  ;;  %v5185_v26 = vrot.slane %v5183_v61, 1  ;;  %v5146_v50 = vsel %vm4702_vm15, %v5141_v1, %v5145_v63  ;;  %v5149_v39 = vor.u32 %v5147_v7, %v5129_v51 }
 0x2e8   : > { %v4244_v21 = vpop.f32.mrf.mxu0  ;;  %v4051_v22 = vpop.f32.mrf.mxu1  ;;  %v5167_v43 = vshll.u32 %v10387_v41, 16  ;;  %v5175_v37 = vshll.u32 %v6668_v30, 16 }
 0x2e9   : > { %v10390_v14 = vadd.f32 %v4244_v21, %v4045_v19  ;;  %v5163_v19 = vshrl.u32 %v10364_v23, 16  ;;  %v5154_v16 = vsel %vm4702_vm15, %v5149_v39, %v5153_v3  ;;  %v5186_v51 = vsel %vm4702_vm15, %v5181_v62, %v5185_v26 }
 0x2ea   : > { %v7296_v17 = vpop.f32.mrf.mxu0  ;;  %v4052_v33 = vpop.f32.mrf.mxu1  ;;  %v5169_v21 = vrot.slane %v5167_v43, 1  ;;  %v5171_v23 = vshrl.u32 %v10369_v32, 16 }
 0x2eb   : > { %v4053_v38 = vadd.f32 %v4052_v33, %v9929_v25  ;;  %v5165_v45 = vor.u32 %v5163_v19, %v5145_v63  ;;  %v5177_v17 = vrot.slane %v5175_v37, 1  ;;  %v7695_v37 = vld [vmem:[#allocation2 + $0x224] ss:$0 sps:$4 sm:$0x77]  }
 0x2ec   : > { %v4249_v6 = vpop.f32.mrf.mxu0  ;;  %7410 = vmatmul.mubr.bf16.gmra.mxu0 %v5146_v50  ;;  %v4054_v55 = vpop.f32.mrf.mxu1  ;;  %v5173_v7 = vor.u32 %v5171_v23, %v5153_v3 }
 0x2ed   : > { %v10397_v28 = vadd.f32 %v4249_v6, %v4050_v34  ;;  %7413 = vmatprep.mubr.msk.bf16.mxu0 %vm7726_vm0, %v10798_v48  ;;  %v5198_v34 = vshrl.u32 %v10372_v31, 16  ;;  %v5170_v63 = vsel %vm4702_vm15, %v5165_v45, %v5169_v21 }
 0x2ee   : > { %v7299_v15 = vpop.f32.mrf.mxu0  ;;  %v4057_v25 = vpop.f32.mrf.mxu1  ;;  %5588 = vmatmul.mubr.bf16.gmra.mxu1 %v5154_v16  ;;  %v5178_v32 = vsel %vm4702_vm15, %v5173_v7, %v5177_v17 }
 0x2ef   : > { %v4058_v61 = vadd.f32 %v4057_v25, %v9934_v5  ;;  %5595 = vmatprep.mubr.bf16.mxu1 %v5186_v51  ;;  %v5200_v62 = vor.u32 %v5198_v34, %v5185_v26  ;;  %v5191_v34 = vshll.u32 %v7695_v37, 16 }
 0x2f0   : > { %v4252_v22 = vpop.f32.mrf.mxu0  ;;  %v4059_v1 = vpop.f32.mrf.mxu1 }
 0x2f1   : > { %v10406_v54 = vadd.f32 %v4252_v22, %v4053_v38  ;;  %v5195_v38 = vshrl.u32 %v6668_v30, 16  ;;  %v11017_v1 = vld [vmem:[#allocation45_spill] sm:$0xff] }
 0x2f2   : > { %v7300_v33 = vpop.f32.mrf.mxu0  ;;  %v4060_v50 = vpop.f32.mrf.mxu1 }
 0x2f3   : > { %v4061_v39 = vadd.f32 %v4060_v50, %v9940_v40  ;;  %v5197_v25 = vor.u32 %v5195_v38, %v5177_v17 }
 0x2f4   : > { %v4257_v5 = vpop.f32.mrf.mxu0  ;;  %7414 = vmatmul.mubr.bf16.gmra.mxu0 %v5170_v63  ;;  %v4062_v43 = vpop.f32.mrf.mxu1 }
 0x2f5   : > { %v10410_v6 = vadd.f32 %v4257_v5, %v4058_v61  ;;  %v11018_v5 = vld [vmem:[#allocation46_spill] sm:$0xff] }
 0x2f6   : > { %v7303_v31 = vpop.f32.mrf.mxu0  ;;  %v4065_v55 = vpop.f32.mrf.mxu1  ;;  %5596 = vmatmul.mubr.bf16.gmra.mxu1 %v5178_v32 }
 0x2f7   : > { %v4066_v3 = vadd.f32 %v4065_v55, %v9947_v11  ;;  %5603 = vmatprep.mubr.bf16.mxu1 %v5200_v62  ;;  %v5187_v11 = vshrl.u32 %v10387_v41, 16 }
 0x2f8   : > { %v4260_v19 = vpop.f32.mrf.mxu0  ;;  %v4067_v16 = vpop.f32.mrf.mxu1 }
 0x2f9   : > { %v10414_v40 = vadd.f32 %v4260_v19, %v4061_v39  ;;  %v5189_v17 = vor.u32 %v5187_v11, %v5169_v21  ;;  %v5201_v19 = vshrl.u32 %v7695_v37, 16  ;;  %v11019_v16 = vld [vmem:[#allocation44_spill] sm:$0xff] }
 0x2fa   : > { %v7304_v26 = vpop.f32.mrf.mxu0  ;;  %v4068_v15 = vpop.f32.mrf.mxu1 }
 0x2fb   : > { %v4069_v51 = vadd.f32 %v4068_v15, %v9956_v58  ;;  %v5193_v58 = vrot.slane %v5191_v34, 1  ;;  %v11020_v34 = vld [vmem:[#allocation48_spill] sm:$0xff] }
 0x2fc   : > { %v4265_v45 = vpop.f32.mrf.mxu0  ;;  %v4070_v61 = vpop.f32.mrf.mxu1 }
 0x2fd   : > { %v10417_v23 = vadd.f32 %v4265_v45, %v4066_v3  ;;  %v5194_v41 = vsel %vm4702_vm15, %v5189_v17, %v5193_v58  ;;  %v5203_v61 = vor.u32 %v5201_v19, %v5193_v58 }
 0x2fe   : > { %v7307_v22 = vpop.f32.mrf.mxu0  ;;  %v4073_v30 = vpop.f32.mrf.mxu1  ;;  %5604 = vmatmul.mubr.bf16.gmra.mxu1 %v5197_v25 }
 0x2ff   : > { %v4074_v7 = vadd.f32 %v4073_v30, %v11017_v1  ;;  %7417 = vmatprep.mubr.msk.bf16.mxu1 %vm7726_vm0, %v10798_v48 }
 0x300   : > { %v4268_v33 = vpop.f32.mrf.mxu0  ;;  %v4075_v50 = vpop.f32.mrf.mxu1 }
 0x301   : > { %v10423_v39 = vadd.f32 %v4268_v33, %v4069_v51  ;;  %v11021_v33 = vld [vmem:[#allocation49_spill] sm:$0xff] }
 0x302   : > { %v7308_v63 = vpop.f32.mrf.mxu0  ;;  %v4076_v62 = vpop.f32.mrf.mxu1 }
 0x303   : > { %v4077_v43 = vadd.f32 %v4076_v62, %v11018_v5 }
 0x304   : > { %v4273_v32 = vpop.f32.mrf.mxu0  ;;  %v4078_v31 = vpop.f32.mrf.mxu1 }
 0x305   : > { %v10426_v55 = vadd.f32 %v4273_v32, %v4074_v7 }
 0x306   : > { %v7311_v38 = vpop.f32.mrf.mxu0  ;;  %v4081_v3 = vpop.f32.mrf.mxu1  ;;  %7418 = vmatmul.mubr.bf16.vlgmr.msra.gmra.mxu1 %v5194_v41 }
 0x307   : > { %v4082_v26 = vadd.f32 %v4081_v3, %v11019_v16  ;;  %7421 = vmatprep.mubr.msk.bf16.mxu1 %vm7726_vm0, %v10798_v48  ;;  %vm6138_vm0 = vcmask 1043456  }
 0x308   : > { %v4276_v21 = vpop.f32.mrf.mxu0  ;;  %v4083_v15 = vpop.f32.mrf.mxu1 }
 0x309   : > { %v10432_v25 = vadd.f32 %v4276_v21, %v4077_v43 }
 0x30a   : > { %v7312_v51 = vpop.f32.mrf.mxu0  ;;  %v4084_v45 = vpop.f32.mrf.mxu1 }
 0x30b   : > { %v4085_v22 = vadd.f32 %v4084_v45, %v11020_v34 }
 0x30c   : > { %v4281_v30 = vpop.f32.mrf.mxu0  ;;  %v4086_v11 = vpop.f32.mrf.mxu1 }
 0x30d   : > { %v10435_v1 = vadd.f32 %v4281_v30, %v4082_v26 }
 0x30e   : > { %v7315_v7 = vpop.f32.mrf.mxu0  ;;  %v4089_v37 = vpop.f32.mrf.mxu1  ;;  %7422 = vmatmul.mubr.bf16.gmra.mxu1 %v5203_v61 }
 0x30f   : > { %v4090_v50 = vadd.f32 %v4089_v37, %v11021_v33 }
 0x310   : > { %v4284_v17 = vpop.f32.mrf.mxu0  ;;  %v4091_v48 = vpop.f32.mrf.mxu1 }
 0x311   : > { %v10438_v63 = vadd.f32 %v4284_v17, %v4085_v22 }
 0x312   : > { %v7316_v62 = vpop.f32.mrf.mxu0  ;;  %v4092_v5 = vpop.f32.mrf.mxu1 }
 0x313   : > { %v4093_v43 = vadd.f32 %v4092_v5, %v10036_v46 }
 0x314   : > { %v4289_v58 = vpop.f32.mrf.mxu0  ;;  %v4094_v32 = vpop.f32.mrf.mxu1 }
 0x315   : > { %v10441_v31 = vadd.f32 %v4289_v58, %v4090_v50 }
 0x316   : > { %v7319_v41 = vpop.f32.mrf.mxu0  ;;  %v4097_v38 = vpop.f32.mrf.mxu1 }
 0x317   : > { %v4098_v3 = vadd.f32 %v4097_v38, %v10050_v56  ;;  %v11022_v41 = vld [vmem:[#allocation4_spill] sm:$0xff] }
 0x318   : > { %v4292_v19 = vpop.f32.mrf.mxu0  ;;  %v4099_v16 = vpop.f32.mrf.mxu1 }
 0x319   : > { %v10444_v26 = vadd.f32 %v4292_v19, %v4093_v43 }
 0x31a   : > { %v7320_v21 = vpop.f32.mrf.mxu0  ;;  %v4100_v15 = vpop.f32.mrf.mxu1 }
 0x31c   : > { %v4297_v51 = vpop.f32.mrf.mxu0  ;;  %v4101_v45 = vpop.f32.mrf.mxu1 }
 0x31d   : > { %v10446_v61 = vadd.f32 %v4297_v51, %v4098_v3 }
 0x31e   : > { %v7323_v34 = vpop.f32.mrf.mxu0  ;;  %v5445_v46 = vpop.f32.mrf.mxu1 }
 0x320   : > { %v4300_v22 = vpop.f32.mrf.mxu0  ;;  %v5447_v30 = vpop.f32.mrf.mxu1 }
 0x322   : > { %v7324_v11 = vpop.f32.mrf.mxu0  ;;  %v5448_v7 = vpop.f32.mrf.mxu1 }
 0x324   : > { %v5645_v37 = vpop.f32.mrf.mxu0  ;;  %v5450_v33 = vpop.f32.mrf.mxu1 }
 0x325   : > { %v5646_v56 = vadd.f32 %v5645_v37, %v5445_v46  ;;  %v11024_v33 = vld [vmem:[#allocation3_spill] sm:$0xff] }
 0x326   : > { %v7343_v50 = vpop.f32.mrf.mxu0  ;;  %v5453_v17 = vpop.f32.mrf.mxu1 }
 0x327   : > { %v5811_v48 = vadd.f32 %v5646_v56, %v10078_v60  ;;  %v11023_v60 = vld [vmem:[#allocation6_spill] sm:$0xff] }
 0x328   : > { %v5648_v62 = vpop.f32.mrf.mxu0  ;;  %v5455_v5 = vpop.f32.mrf.mxu1 }
 0x329   : > { %v5649_v43 = vadd.f32 %v5648_v62, %v5448_v7  ;;  %v6058_v38 = vmul.f32 %v5811_v48, %v11022_v41 }
 0x32a   : > { %v7344_v58 = vpop.f32.mrf.mxu0  ;;  %v5456_v32 = vpop.f32.mrf.mxu1 }
 0x32b   : > { %v5812_v3 = vadd.f32 %v5649_v43, %v10090_v12  ;;  %v6148_v46 = vmul.f32 %v6058_v38, %v6058_v38 }
 0x32c   : > { %v5653_v19 = vpop.f32.mrf.mxu0  ;;  %v5458_v16 = vpop.f32.mrf.mxu1 }
 0x32d   : > { %v6903_v21 = vpack.c.bf16 %v5812_v3, %v5811_v48  ;;  %v6059_v15 = vmul.f32 %v5812_v3, %v11023_v60  ;;  %v5654_v51 = vadd.f32 %v5653_v19, %v5453_v17  ;;  %v11025_v19 = vld [vmem:[#allocation5_spill] sm:$0xff] }
 0x32e   : > { %v7347_v45 = vpop.f32.mrf.mxu0  ;;  %v5461_v34 = vpop.f32.mrf.mxu1 }
 0x32f   : > { %6904 = vst [vmem:[%s10456_s18] sm:$0xff] %v6903_v21   ;;  %v6099_v22 = vadd.f32 %v6059_v15, %v6058_v38  ;;  %v6149_v30 = vmul.f32 %v6059_v15, %v6059_v15  ;;  %v5813_v12 = vadd.f32 %v5654_v51, %v10101_v8 }
 0x330   : > { %v5656_v11 = vpop.f32.mrf.mxu0  ;;  %v5463_v7 = vpop.f32.mrf.mxu1 }
 0x331   : > { %v6189_v37 = vadd.f32 %v6149_v30, %v6148_v46  ;;  %v6060_v56 = vmul.f32 %v5813_v12, %v11024_v33  ;;  %v5657_v50 = vadd.f32 %v5656_v11, %v5456_v32  ;;  %v11026_v30 = vld [vmem:[#allocation8_spill] sm:$0xff] }
 0x332   : > { %v7348_v62 = vpop.f32.mrf.mxu0  ;;  %v5464_v48 = vpop.f32.mrf.mxu1 }
 0x333   : > { %v6100_v5 = vadd.f32 %v6099_v22, %v6060_v56  ;;  %v6150_v43 = vmul.f32 %v6060_v56, %v6060_v56  ;;  %v5814_v17 = vadd.f32 %v5657_v50, %v10113_v20 }
 0x334   : > { %v5661_v58 = vpop.f32.mrf.mxu0  ;;  %v5466_v41 = vpop.f32.mrf.mxu1 }
 0x335   : > { %v6190_v3 = vadd.f32 %v6189_v37, %v6150_v43  ;;  %v6908_v38 = vpack.c.bf16 %v5814_v17, %v5813_v12  ;;  %v6061_v16 = vmul.f32 %v5814_v17, %v11025_v19  ;;  %v5662_v8 = vadd.f32 %v5661_v58, %v5461_v34  ;;  %v11027_v43 = vld [vmem:[#allocation7_spill] sm:$0xff] }
 0x336   : > { %v7351_v21 = vpop.f32.mrf.mxu0  ;;  %v5469_v60 = vpop.f32.mrf.mxu1 }
 0x337   : > { %7019 = vst [vmem:[%s10456_s18 + $0x8] sm:$0xff] %v6908_v38   ;;  %v6101_v15 = vadd.f32 %v6100_v5, %v6061_v16  ;;  %v6151_v51 = vmul.f32 %v6061_v16, %v6061_v16  ;;  %v5815_v32 = vadd.f32 %v5662_v8, %v10124_v44  ;;  %v11028_v21 = vld [vmem:[#allocation10_spill] sm:$0xff] }
 0x338   : > { %v5664_v45 = vpop.f32.mrf.mxu0  ;;  %v5471_v46 = vpop.f32.mrf.mxu1 }
 0x339   : > { %v6191_v22 = vadd.f32 %v6190_v3, %v6151_v51  ;;  %v6062_v20 = vmul.f32 %v5815_v32, %v11026_v30  ;;  %v5665_v11 = vadd.f32 %v5664_v45, %v5464_v48 }
 0x33a   : > { %v7352_v7 = vpop.f32.mrf.mxu0  ;;  %v5472_v37 = vpop.f32.mrf.mxu1 }
 0x33b   : > { %v6102_v12 = vadd.f32 %v6101_v15, %v6062_v20  ;;  %v6152_v33 = vmul.f32 %v6062_v20, %v6062_v20  ;;  %v5816_v34 = vadd.f32 %v5665_v11, %v10136_v29  ;;  %v11029_v7 = vld [vmem:[#allocation9_spill] sm:$0xff] }
 0x33c   : > { %v5669_v56 = vpop.f32.mrf.mxu0  ;;  %v5474_v50 = vpop.f32.mrf.mxu1 }
 0x33d   : > { %v6192_v62 = vadd.f32 %v6191_v22, %v6152_v33  ;;  %v6913_v5 = vpack.c.bf16 %v5816_v34, %v5815_v32  ;;  %v6063_v17 = vmul.f32 %v5816_v34, %v11027_v43  ;;  %v5670_v44 = vadd.f32 %v5669_v56, %v5469_v60 }
 0x33e   : > { %v7355_v58 = vpop.f32.mrf.mxu0  ;;  %v5477_v41 = vpop.f32.mrf.mxu1 }
 0x33f   : > { %7020 = vst [vmem:[%s10456_s18 + $0x10] sm:$0xff] %v6913_v5   ;;  %v6103_v3 = vadd.f32 %v6102_v12, %v6063_v17  ;;  %v6153_v38 = vmul.f32 %v6063_v17, %v6063_v17  ;;  %v5817_v48 = vadd.f32 %v5670_v44, %v10147_v42  ;;  %v11030_v17 = vld [vmem:[#allocation12_spill] sm:$0xff] }
 0x340   : > { %v5672_v19 = vpop.f32.mrf.mxu0  ;;  %v5479_v16 = vpop.f32.mrf.mxu1 }
 0x341   : > { %v6193_v8 = vadd.f32 %v6192_v62, %v6153_v38  ;;  %v6064_v29 = vmul.f32 %v5817_v48, %v11028_v21  ;;  %v5673_v15 = vadd.f32 %v5672_v19, %v5472_v37 }
 0x342   : > { %v7356_v51 = vpop.f32.mrf.mxu0  ;;  %v5480_v45 = vpop.f32.mrf.mxu1 }
 0x343   : > { %v6104_v32 = vadd.f32 %v6103_v3, %v6064_v29  ;;  %v6154_v46 = vmul.f32 %v6064_v29, %v6064_v29  ;;  %v5818_v60 = vadd.f32 %v5673_v15, %v10159_v36  ;;  %v11031_v29 = vld [vmem:[#allocation11_spill] sm:$0xff] }
 0x344   : > { %v5677_v22 = vpop.f32.mrf.mxu0  ;;  %v5482_v30 = vpop.f32.mrf.mxu1 }
 0x345   : > { %v6194_v20 = vadd.f32 %v6193_v8, %v6154_v46  ;;  %v6918_v11 = vpack.c.bf16 %v5818_v60, %v5817_v48  ;;  %v6065_v12 = vmul.f32 %v5818_v60, %v11029_v7  ;;  %v5678_v42 = vadd.f32 %v5677_v22, %v5477_v41 }
 0x346   : > { %v7359_v33 = vpop.f32.mrf.mxu0  ;;  %v5485_v34 = vpop.f32.mrf.mxu1 }
 0x347   : > { %7021 = vst [vmem:[%s10456_s18 + $0x18] sm:$0xff] %v6918_v11   ;;  %v6105_v56 = vadd.f32 %v6104_v32, %v6065_v12  ;;  %v6155_v50 = vmul.f32 %v6065_v12, %v6065_v12  ;;  %v5819_v37 = vadd.f32 %v5678_v42, %v10170_v49  ;;  %v11032_v11 = vld [vmem:[#allocation14_spill] sm:$0xff] }
 0x348   : > { %v5680_v62 = vpop.f32.mrf.mxu0  ;;  %v5487_v5 = vpop.f32.mrf.mxu1 }
 0x349   : > { %v6195_v43 = vadd.f32 %v6194_v20, %v6155_v50  ;;  %v6066_v36 = vmul.f32 %v5819_v37, %v11030_v17  ;;  %v5681_v44 = vadd.f32 %v5680_v62, %v5480_v45 }
 0x34a   : > { %v7360_v58 = vpop.f32.mrf.mxu0  ;;  %v5488_v3 = vpop.f32.mrf.mxu1 }
 0x34b   : > { %v6106_v38 = vadd.f32 %v6105_v56, %v6066_v36  ;;  %v6156_v48 = vmul.f32 %v6066_v36, %v6066_v36  ;;  %v5820_v41 = vadd.f32 %v5681_v44, %v10182_v10 }
 0x34c   : > { %v5685_v19 = vpop.f32.mrf.mxu0  ;;  %v5490_v16 = vpop.f32.mrf.mxu1 }
 0x34d   : > { %v6196_v8 = vadd.f32 %v6195_v43, %v6156_v48  ;;  %v6923_v21 = vpack.c.bf16 %v5820_v41, %v5819_v37  ;;  %v6067_v15 = vmul.f32 %v5820_v41, %v11031_v29  ;;  %v5686_v49 = vadd.f32 %v5685_v19, %v5485_v34  ;;  %v11033_v43 = vld [vmem:[#allocation13_spill] sm:$0xff]  ;;  %v11034_v16 = vld [vmem:[#allocation16_spill] sm:$0xff] }
 0x34e   : > { %v7363_v51 = vpop.f32.mrf.mxu0  ;;  %v5493_v32 = vpop.f32.mrf.mxu1 }
 0x34f   : > { %7022 = vst [vmem:[%s10456_s18 + $0x20] sm:$0xff] %v6923_v21   ;;  %v6107_v46 = vadd.f32 %v6106_v38, %v6067_v15  ;;  %v6157_v60 = vmul.f32 %v6067_v15, %v6067_v15  ;;  %v5821_v45 = vadd.f32 %v5686_v49, %v10193_v27 }
 0x350   : > { %v5688_v22 = vpop.f32.mrf.mxu0  ;;  %v5495_v30 = vpop.f32.mrf.mxu1 }
 0x351   : > { %v6197_v20 = vadd.f32 %v6196_v8, %v6157_v60  ;;  %v6068_v10 = vmul.f32 %v5821_v45, %v11032_v11  ;;  %v5689_v7 = vadd.f32 %v5688_v22, %v5488_v3  ;;  %v11035_v22 = vld [vmem:[#allocation15_spill] sm:$0xff] }
 0x352   : > { %v7364_v12 = vpop.f32.mrf.mxu0  ;;  %v5496_v42 = vpop.f32.mrf.mxu1 }
 0x353   : > { %v6108_v33 = vadd.f32 %v6107_v46, %v6068_v10  ;;  %v6158_v56 = vmul.f32 %v6068_v10, %v6068_v10  ;;  %v5822_v34 = vadd.f32 %v5689_v7, %v10205_v35 }
 0x354   : > { %v5693_v50 = vpop.f32.mrf.mxu0  ;;  %v5498_v37 = vpop.f32.mrf.mxu1 }
 0x355   : > { %v6198_v62 = vadd.f32 %v6197_v20, %v6158_v56  ;;  %v6928_v5 = vpack.c.bf16 %v5822_v34, %v5821_v45  ;;  %v6069_v17 = vmul.f32 %v5822_v34, %v11033_v43  ;;  %v5694_v27 = vadd.f32 %v5693_v50, %v5493_v32  ;;  %v11036_v34 = vld [vmem:[#allocation18_spill] sm:$0xff] }
 0x356   : > { %v7367_v36 = vpop.f32.mrf.mxu0  ;;  %v5501_v44 = vpop.f32.mrf.mxu1 }
 0x357   : > { %7023 = vst [vmem:[%s10456_s18 + $0x28] sm:$0xff] %v6928_v5   ;;  %v6109_v58 = vadd.f32 %v6108_v33, %v6069_v17  ;;  %v6159_v38 = vmul.f32 %v6069_v17, %v6069_v17  ;;  %v5823_v3 = vadd.f32 %v5694_v27, %v10216_v4 }
 0x358   : > { %v5696_v48 = vpop.f32.mrf.mxu0  ;;  %v5503_v41 = vpop.f32.mrf.mxu1 }
 0x359   : > { %v6199_v19 = vadd.f32 %v6198_v62, %v6159_v38  ;;  %v6070_v35 = vmul.f32 %v5823_v3, %v11034_v16  ;;  %v5697_v8 = vadd.f32 %v5696_v48, %v5496_v42  ;;  %v11037_v38 = vld [vmem:[#allocation17_spill] sm:$0xff] }
 0x35a   : > { %v7368_v21 = vpop.f32.mrf.mxu0  ;;  %v5504_v29 = vpop.f32.mrf.mxu1 }
 0x35b   : > { %v6110_v15 = vadd.f32 %v6109_v58, %v6070_v35  ;;  %v6160_v49 = vmul.f32 %v6070_v35, %v6070_v35  ;;  %v5824_v51 = vadd.f32 %v5697_v8, %v10228_v59 }
 0x35c   : > { %v5701_v32 = vpop.f32.mrf.mxu0  ;;  %v5506_v46 = vpop.f32.mrf.mxu1 }
 0x35d   : > { %v6200_v60 = vadd.f32 %v6199_v19, %v6160_v49  ;;  %v6933_v45 = vpack.c.bf16 %v5824_v51, %v5823_v3  ;;  %v6071_v30 = vmul.f32 %v5824_v51, %v11035_v22  ;;  %v5702_v4 = vadd.f32 %v5701_v32, %v5501_v44 }
 0x35e   : > { %v7371_v20 = vpop.f32.mrf.mxu0  ;;  %v5509_v11 = vpop.f32.mrf.mxu1 }
 0x35f   : > { %7024 = vst [vmem:[%s10456_s18 + $0x30] sm:$0xff] %v6933_v45   ;;  %v6111_v10 = vadd.f32 %v6110_v15, %v6071_v30  ;;  %v6161_v7 = vmul.f32 %v6071_v30, %v6071_v30  ;;  %v5825_v12 = vadd.f32 %v5702_v4, %v10239_v0  ;;  %v11038_v15 = vld [vmem:[#allocation20_spill] sm:$0xff] }
 0x360   : > { %v5704_v42 = vpop.f32.mrf.mxu0  ;;  %v5511_v33 = vpop.f32.mrf.mxu1 }
 0x361   : > { %v6201_v56 = vadd.f32 %v6200_v60, %v6161_v7  ;;  %v6072_v59 = vmul.f32 %v5825_v12, %v11036_v34  ;;  %v5705_v50 = vadd.f32 %v5704_v42, %v5504_v29 }
 0x362   : > { %v7372_v37 = vpop.f32.mrf.mxu0  ;;  %v5512_v62 = vpop.f32.mrf.mxu1 }
 0x363   : > { %v6112_v5 = vadd.f32 %v6111_v10, %v6072_v59  ;;  %v6162_v43 = vmul.f32 %v6072_v59, %v6072_v59  ;;  %v5826_v17 = vadd.f32 %v5705_v50, %v10251_v13  ;;  %v11040_v37 = vld [vmem:[#allocation22_spill] sm:$0xff] }
 0x364   : > { %v5709_v27 = vpop.f32.mrf.mxu0  ;;  %v5514_v36 = vpop.f32.mrf.mxu1 }
 0x365   : > { %v6202_v44 = vadd.f32 %v6201_v56, %v6162_v43  ;;  %v6938_v58 = vpack.c.bf16 %v5826_v17, %v5825_v12  ;;  %v6073_v3 = vmul.f32 %v5826_v17, %v11037_v38  ;;  %v5710_v0 = vadd.f32 %v5709_v27, %v5509_v11  ;;  %v11039_v11 = vld [vmem:[#allocation19_spill] sm:$0xff] }
 0x366   : > { %v7375_v48 = vpop.f32.mrf.mxu0  ;;  %v5517_v41 = vpop.f32.mrf.mxu1 }
 0x367   : > { %7025 = vst [vmem:[%s10456_s18 + $0x38] sm:$0xff] %v6938_v58   ;;  %v6113_v19 = vadd.f32 %v6112_v5, %v6073_v3  ;;  %v6163_v16 = vmul.f32 %v6073_v3, %v6073_v3  ;;  %v5827_v35 = vadd.f32 %v5710_v0, %v10262_v57  ;;  %v11041_v0 = vld [vmem:[#allocation21_spill] sm:$0xff] }
 0x368   : > { %v5712_v8 = vpop.f32.mrf.mxu0  ;;  %v5519_v21 = vpop.f32.mrf.mxu1 }
 0x369   : > { %v6203_v29 = vadd.f32 %v6202_v44, %v6163_v16  ;;  %v6074_v13 = vmul.f32 %v5827_v35, %v11038_v15  ;;  %v5713_v49 = vadd.f32 %v5712_v8, %v5512_v62 }
 0x36a   : > { %v7376_v51 = vpop.f32.mrf.mxu0  ;;  %v5520_v32 = vpop.f32.mrf.mxu1 }
 0x36b   : > { %v6114_v46 = vadd.f32 %v6113_v19, %v6074_v13  ;;  %v6164_v60 = vmul.f32 %v6074_v13, %v6074_v13  ;;  %v5828_v45 = vadd.f32 %v5713_v49, %v10274_v18  ;;  %v11042_v13 = vld [vmem:[#allocation24_spill] sm:$0xff] }
 0x36c   : > { %v5717_v22 = vpop.f32.mrf.mxu0  ;;  %v5522_v30 = vpop.f32.mrf.mxu1 }
 0x36d   : > { %v6204_v4 = vadd.f32 %v6203_v29, %v6164_v60  ;;  %v6943_v20 = vpack.c.bf16 %v5828_v45, %v5827_v35  ;;  %v6075_v10 = vmul.f32 %v5828_v45, %v11039_v11  ;;  %v5718_v57 = vadd.f32 %v5717_v22, %v5517_v41  ;;  %v11043_v11 = vld [vmem:[#allocation23_spill] sm:$0xff] }
 0x36e   : > { %v7379_v7 = vpop.f32.mrf.mxu0  ;;  %v5525_v12 = vpop.f32.mrf.mxu1 }
 0x36f   : > { %7026 = vst [vmem:[%s10456_s18 + $0x40] sm:$0xff] %v6943_v20   ;;  %v6115_v42 = vadd.f32 %v6114_v46, %v6075_v10  ;;  %v6165_v33 = vmul.f32 %v6075_v10, %v6075_v10  ;;  %v5829_v56 = vadd.f32 %v5718_v57, %v10285_v2 }
 0x370   : > { %v5720_v34 = vpop.f32.mrf.mxu0  ;;  %v5527_v59 = vpop.f32.mrf.mxu1 }
 0x371   : > { %v6205_v50 = vadd.f32 %v6204_v4, %v6165_v33  ;;  %v6076_v18 = vmul.f32 %v5829_v56, %v11040_v37  ;;  %v5721_v62 = vadd.f32 %v5720_v34, %v5520_v32  ;;  %v11044_v33 = vld [vmem:[#allocation47_spill] sm:$0xff]  ;;  %v11045_v37 = vld [vmem:[#allocation26_spill] sm:$0xff] }
 0x372   : > { %v7380_v5 = vpop.f32.mrf.mxu0  ;;  %v5528_v43 = vpop.f32.mrf.mxu1 }
 0x373   : > { %v6116_v17 = vadd.f32 %v6115_v42, %v6076_v18  ;;  %v6166_v27 = vmul.f32 %v6076_v18, %v6076_v18  ;;  %v5830_v36 = vadd.f32 %v5721_v62, %v10297_v53 }
 0x374   : > { %v5725_v44 = vpop.f32.mrf.mxu0  ;;  %v5530_v58 = vpop.f32.mrf.mxu1 }
 0x375   : > { %v6206_v38 = vadd.f32 %v6205_v50, %v6166_v27  ;;  %v6948_v3 = vpack.c.bf16 %v5830_v36, %v5829_v56  ;;  %v6077_v48 = vmul.f32 %v5830_v36, %v11041_v0  ;;  %v5726_v2 = vadd.f32 %v5725_v44, %v5525_v12  ;;  %v11046_v27 = vld [vmem:[#allocation51_spill] sm:$0xff]  ;;  %v11047_v0 = vld [vmem:[#allocation25_spill] sm:$0xff] }
 0x376   : > { %v7383_v41 = vpop.f32.mrf.mxu0  ;;  %v5533_v19 = vpop.f32.mrf.mxu1 }
 0x377   : > { %7027 = vst [vmem:[%s10456_s18 + $0x48] sm:$0xff] %v6948_v3   ;;  %v6117_v16 = vadd.f32 %v6116_v17, %v6077_v48  ;;  %v6167_v35 = vmul.f32 %v6077_v48, %v6077_v48  ;;  %v5831_v8 = vadd.f32 %v5726_v2, %v10308_v52 }
 0x378   : > { %v5728_v21 = vpop.f32.mrf.mxu0  ;;  %v5535_v29 = vpop.f32.mrf.mxu1 }
 0x379   : > { %v6207_v15 = vadd.f32 %v6206_v38, %v6167_v35  ;;  %v6078_v53 = vmul.f32 %v5831_v8, %v11042_v13  ;;  %v5729_v49 = vadd.f32 %v5728_v21, %v5528_v43 }
 0x37a   : > { %v7384_v51 = vpop.f32.mrf.mxu0  ;;  %v5536_v32 = vpop.f32.mrf.mxu1 }
 0x37b   : > { %v6118_v46 = vadd.f32 %v6117_v16, %v6078_v53  ;;  %v6168_v60 = vmul.f32 %v6078_v53, %v6078_v53  ;;  %v5832_v45 = vadd.f32 %v5729_v49, %v10320_v47  ;;  %v11049_v53 = vld [vmem:[#allocation28_spill] sm:$0xff] }
 0x37c   : > { %v5733_v22 = vpop.f32.mrf.mxu0  ;;  %v5538_v30 = vpop.f32.mrf.mxu1 }
 0x37d   : > { %v6208_v4 = vadd.f32 %v6207_v15, %v6168_v60  ;;  %v6953_v20 = vpack.c.bf16 %v5832_v45, %v5831_v8  ;;  %v6079_v10 = vmul.f32 %v5832_v45, %v11043_v11  ;;  %v5734_v52 = vadd.f32 %v5733_v22, %v5533_v19  ;;  %v11048_v8 = vld [vmem:[#allocation52_spill] sm:$0xff] }
 0x37e   : > { %v7387_v57 = vpop.f32.mrf.mxu0  ;;  %v5541_v7 = vpop.f32.mrf.mxu1 }
 0x37f   : > { %7028 = vst [vmem:[%s10456_s18 + $0x50] sm:$0xff] %v6953_v20   ;;  %v6119_v12 = vadd.f32 %v6118_v46, %v6079_v10  ;;  %v6169_v42 = vmul.f32 %v6079_v10, %v6079_v10  ;;  %v5833_v56 = vadd.f32 %v5734_v52, %v11044_v33  ;;  %v11050_v10 = vld [vmem:[#allocation27_spill] sm:$0xff] }
 0x380   : > { %v5736_v34 = vpop.f32.mrf.mxu0  ;;  %v5543_v59 = vpop.f32.mrf.mxu1 }
 0x381   : > { %v6209_v50 = vadd.f32 %v6208_v4, %v6169_v42  ;;  %v6080_v47 = vmul.f32 %v5833_v56, %v11045_v37  ;;  %v5737_v18 = vadd.f32 %v5736_v34, %v5536_v32  ;;  %v11051_v37 = vld [vmem:[#allocation30_spill] sm:$0xff] }
 0x382   : > { %v7388_v62 = vpop.f32.mrf.mxu0  ;;  %v5544_v5 = vpop.f32.mrf.mxu1 }
 0x383   : > { %v6120_v43 = vadd.f32 %v6119_v12, %v6080_v47  ;;  %v6170_v17 = vmul.f32 %v6080_v47, %v6080_v47  ;;  %v5834_v36 = vadd.f32 %v5737_v18, %v11046_v27 }
 0x384   : > { %v5741_v44 = vpop.f32.mrf.mxu0  ;;  %v5546_v58 = vpop.f32.mrf.mxu1 }
 0x385   : > { %v6210_v38 = vadd.f32 %v6209_v50, %v6170_v17  ;;  %v6958_v3 = vpack.c.bf16 %v5834_v36, %v5833_v56  ;;  %v6081_v48 = vmul.f32 %v5834_v36, %v11047_v0  ;;  %v5742_v2 = vadd.f32 %v5741_v44, %v5541_v7 }
 0x386   : > { %v7391_v41 = vpop.f32.mrf.mxu0  ;;  %v5549_v19 = vpop.f32.mrf.mxu1 }
 0x387   : > { %7029 = vst [vmem:[%s10456_s18 + $0x58] sm:$0xff] %v6958_v3   ;;  %v6121_v16 = vadd.f32 %v6120_v43, %v6081_v48  ;;  %v6171_v35 = vmul.f32 %v6081_v48, %v6081_v48  ;;  %v5835_v21 = vadd.f32 %v5742_v2, %v11048_v8 }
 0x388   : > { %v5744_v29 = vpop.f32.mrf.mxu0  ;;  %v5551_v15 = vpop.f32.mrf.mxu1 }
 0x389   : > { %v6211_v13 = vadd.f32 %v6210_v38, %v6171_v35  ;;  %v6082_v49 = vmul.f32 %v5835_v21, %v11049_v53  ;;  %v5745_v51 = vadd.f32 %v5744_v29, %v5544_v5  ;;  %v11052_v38 = vld [vmem:[#allocation29_spill] sm:$0xff] }
 0x38a   : > { %v7392_v32 = vpop.f32.mrf.mxu0  ;;  %v5552_v46 = vpop.f32.mrf.mxu1 }
 0x38b   : > { %v6122_v60 = vadd.f32 %v6121_v16, %v6082_v49  ;;  %v6172_v45 = vmul.f32 %v6082_v49, %v6082_v49  ;;  %v5836_v22 = vadd.f32 %v5745_v51, %v10367_v9 }
 0x38c   : > { %v5749_v30 = vpop.f32.mrf.mxu0  ;;  %v5554_v4 = vpop.f32.mrf.mxu1 }
 0x38d   : > { %v6212_v20 = vadd.f32 %v6211_v13, %v6172_v45  ;;  %v6963_v11 = vpack.c.bf16 %v5836_v22, %v5835_v21  ;;  %v6083_v52 = vmul.f32 %v5836_v22, %v11050_v10  ;;  %v5750_v57 = vadd.f32 %v5749_v30, %v5549_v19  ;;  %v11053_v21 = vld [vmem:[#allocation32_spill] sm:$0xff]  ;;  %v11054_v22 = vld [vmem:[#allocation31_spill] sm:$0xff] }
 0x38e   : > { %v7395_v7 = vpop.f32.mrf.mxu0  ;;  %v5557_v12 = vpop.f32.mrf.mxu1 }
 0x38f   : > { %7030 = vst [vmem:[%s10456_s18 + $0x60] sm:$0xff] %v6963_v11   ;;  %v6123_v42 = vadd.f32 %v6122_v60, %v6083_v52  ;;  %v6173_v33 = vmul.f32 %v6083_v52, %v6083_v52  ;;  %v5837_v56 = vadd.f32 %v5750_v57, %v10377_v24 }
 0x390   : > { %v5752_v34 = vpop.f32.mrf.mxu0  ;;  %v5559_v59 = vpop.f32.mrf.mxu1 }
 0x391   : > { %v6213_v50 = vadd.f32 %v6212_v20, %v6173_v33  ;;  %v6084_v9 = vmul.f32 %v5837_v56, %v11051_v37  ;;  %v5753_v47 = vadd.f32 %v5752_v34, %v5552_v46 }
 0x392   : > { %v7396_v18 = vpop.f32.mrf.mxu0  ;;  %v5560_v62 = vpop.f32.mrf.mxu1 }
 0x393   : > { %v6124_v5 = vadd.f32 %v6123_v42, %v6084_v9  ;;  %v6174_v43 = vmul.f32 %v6084_v9, %v6084_v9  ;;  %v5838_v17 = vadd.f32 %v5753_v47, %v10390_v14  ;;  %v11055_v42 = vld [vmem:[#allocation34_spill] sm:$0xff] }
 0x394   : > { %v5757_v27 = vpop.f32.mrf.mxu0  ;;  %v5562_v36 = vpop.f32.mrf.mxu1 }
 0x395   : > { %v6214_v44 = vadd.f32 %v6213_v50, %v6174_v43  ;;  %v6968_v58 = vpack.c.bf16 %v5838_v17, %v5837_v56  ;;  %v6085_v3 = vmul.f32 %v5838_v17, %v11052_v38  ;;  %v5758_v24 = vadd.f32 %v5757_v27, %v5557_v12 }
 0x396   : > { %v7399_v0 = vpop.f32.mrf.mxu0  ;;  %v5565_v48 = vpop.f32.mrf.mxu1 }
 0x397   : > { %7031 = vst [vmem:[%s10456_s18 + $0x68] sm:$0xff] %v6968_v58   ;;  %v6125_v2 = vadd.f32 %v6124_v5, %v6085_v3  ;;  %v6175_v41 = vmul.f32 %v6085_v3, %v6085_v3  ;;  %v5839_v19 = vadd.f32 %v5758_v24, %v10397_v28  ;;  %v11056_v5 = vld [vmem:[#allocation33_spill] sm:$0xff]  ;;  %v11057_v0 = vld [vmem:[#allocation36_spill] sm:$0xff] }
 0x398   : > { %v5760_v16 = vpop.f32.mrf.mxu0  ;;  %v5567_v35 = vpop.f32.mrf.mxu1 }
 0x399   : > { %v6215_v8 = vadd.f32 %v6214_v44, %v6175_v41  ;;  %v6086_v14 = vmul.f32 %v5839_v19, %v11053_v21  ;;  %v5761_v29 = vadd.f32 %v5760_v16, %v5560_v62 }
 0x39a   : > { %v7400_v15 = vpop.f32.mrf.mxu0  ;;  %v5568_v13 = vpop.f32.mrf.mxu1 }
 0x39b   : > { %v6126_v53 = vadd.f32 %v6125_v2, %v6086_v14  ;;  %v6176_v49 = vmul.f32 %v6086_v14, %v6086_v14  ;;  %v5840_v51 = vadd.f32 %v5761_v29, %v10406_v54  ;;  %v11058_v15 = vld [vmem:[#allocation35_spill] sm:$0xff] }
 0x39c   : > { %v5765_v32 = vpop.f32.mrf.mxu0  ;;  %v5570_v46 = vpop.f32.mrf.mxu1 }
 0x39d   : > { %v6216_v60 = vadd.f32 %v6215_v8, %v6176_v49  ;;  %v6973_v45 = vpack.c.bf16 %v5840_v51, %v5839_v19  ;;  %v6087_v30 = vmul.f32 %v5840_v51, %v11054_v22  ;;  %v5766_v28 = vadd.f32 %v5765_v32, %v5565_v48 }
 0x39e   : > { %v7403_v4 = vpop.f32.mrf.mxu0  ;;  %v5573_v20 = vpop.f32.mrf.mxu1 }
 0x39f   : > { %7032 = vst [vmem:[%s10456_s18 + $0x70] sm:$0xff] %v6973_v45   ;;  %v6127_v11 = vadd.f32 %v6126_v53, %v6087_v30  ;;  %v6177_v10 = vmul.f32 %v6087_v30, %v6087_v30  ;;  %v5841_v52 = vadd.f32 %v5766_v28, %v10410_v6  ;;  %v11059_v30 = vld [vmem:[#allocation38_spill] sm:$0xff] }
 0x3a0   : > { %v5768_v57 = vpop.f32.mrf.mxu0  ;;  %v5575_v7 = vpop.f32.mrf.mxu1 }
 0x3a1   : > { %v6217_v12 = vadd.f32 %v6216_v60, %v6177_v10  ;;  %v6088_v54 = vmul.f32 %v5841_v52, %v11055_v42  ;;  %v5769_v33 = vadd.f32 %v5768_v57, %v5568_v13 }
 0x3a2   : > { %v7404_v56 = vpop.f32.mrf.mxu0  ;;  %v5576_v34 = vpop.f32.mrf.mxu1 }
 0x3a3   : > { %v6128_v59 = vadd.f32 %v6127_v11, %v6088_v54  ;;  %v6178_v50 = vmul.f32 %v6088_v54, %v6088_v54  ;;  %v5842_v37 = vadd.f32 %v5769_v33, %v10414_v40  ;;  %v11060_v54 = vld [vmem:[#allocation37_spill] sm:$0xff] }
 0x3a4   : > { %v5773_v9 = vpop.f32.mrf.mxu0  ;;  %v5578_v47 = vpop.f32.mrf.mxu1 }
 0x3a5   : > { %v6218_v18 = vadd.f32 %v6217_v12, %v6178_v50  ;;  %v6978_v62 = vpack.c.bf16 %v5842_v37, %v5841_v52  ;;  %v6089_v43 = vmul.f32 %v5842_v37, %v11056_v5  ;;  %v5774_v6 = vadd.f32 %v5773_v9, %v5573_v20 }
 0x3a6   : > { %v7407_v17 = vpop.f32.mrf.mxu0  ;;  %v5581_v27 = vpop.f32.mrf.mxu1 }
 0x3a7   : > { %7033 = vst [vmem:[%s10456_s18 + $0x78] sm:$0xff] %v6978_v62   ;;  %v6129_v36 = vadd.f32 %v6128_v59, %v6089_v43  ;;  %v6179_v44 = vmul.f32 %v6089_v43, %v6089_v43  ;;  %v5843_v58 = vadd.f32 %v5774_v6, %v10417_v23  ;;  %v11061_v62 = vld [vmem:[#allocation40_spill] sm:$0xff] }
 0x3a8   : > { %v5776_v38 = vpop.f32.mrf.mxu0  ;;  %v5583_v3 = vpop.f32.mrf.mxu1 }
 0x3a9   : > { %v6219_v24 = vadd.f32 %v6218_v18, %v6179_v44  ;;  %v6090_v40 = vmul.f32 %v5843_v58, %v11057_v0  ;;  %v5777_v48 = vadd.f32 %v5776_v38, %v5576_v34  ;;  %v11062_v3 = vld [vmem:[#allocation39_spill] sm:$0xff] }
 0x3aa   : > { %v7408_v2 = vpop.f32.mrf.mxu0  ;;  %v5584_v41 = vpop.f32.mrf.mxu1 }
 0x3ab   : > { %v6130_v19 = vadd.f32 %v6129_v36, %v6090_v40  ;;  %v6180_v16 = vmul.f32 %v6090_v40, %v6090_v40  ;;  %v5844_v35 = vadd.f32 %v5777_v48, %v10423_v39 }
 0x3ac   : > { %v5781_v8 = vpop.f32.mrf.mxu0  ;;  %v5586_v21 = vpop.f32.mrf.mxu1 }
 0x3ad   : > { %v6220_v14 = vadd.f32 %v6219_v24, %v6180_v16  ;;  %v6983_v29 = vpack.c.bf16 %v5844_v35, %v5843_v58  ;;  %v6091_v13 = vmul.f32 %v5844_v35, %v11058_v15  ;;  %v5782_v23 = vadd.f32 %v5781_v8, %v5581_v27 }
 0x3ae   : > { %v7411_v53 = vpop.f32.mrf.mxu0  ;;  %v5589_v49 = vpop.f32.mrf.mxu1 }
 0x3af   : > { %7034 = vst [vmem:[%s10456_s18 + $0x80] sm:$0xff] %v6983_v29   ;;  %v6131_v51 = vadd.f32 %v6130_v19, %v6091_v13  ;;  %v6181_v32 = vmul.f32 %v6091_v13, %v6091_v13  ;;  %v5845_v46 = vadd.f32 %v5782_v23, %v10426_v55 }
 0x3b0   : > { %v5784_v60 = vpop.f32.mrf.mxu0  ;;  %v5591_v45 = vpop.f32.mrf.mxu1 }
 0x3b1   : > { %v6221_v22 = vadd.f32 %v6220_v14, %v6181_v32  ;;  %v6092_v39 = vmul.f32 %v5845_v46, %v11059_v30  ;;  %v5785_v28 = vadd.f32 %v5784_v60, %v5584_v41  ;;  %v11063_v14 = vld [vmem:[#allocation42_spill] sm:$0xff]  ;;  %v11064_v60 = vld [vmem:[#allocation41_spill] sm:$0xff] }
 0x3b2   : > { %v7412_v4 = vpop.f32.mrf.mxu0  ;;  %v5592_v20 = vpop.f32.mrf.mxu1 }
 0x3b3   : > { %v6132_v11 = vadd.f32 %v6131_v51, %v6092_v39  ;;  %v6182_v10 = vmul.f32 %v6092_v39, %v6092_v39  ;;  %v5846_v52 = vadd.f32 %v5785_v28, %v10432_v25 }
 0x3b4   : > { %v5789_v57 = vpop.f32.mrf.mxu0  ;;  %v5594_v7 = vpop.f32.mrf.mxu1 }
 0x3b5   : > { %v6222_v12 = vadd.f32 %v6221_v22, %v6182_v10  ;;  %v6988_v42 = vpack.c.bf16 %v5846_v52, %v5845_v46  ;;  %v6093_v33 = vmul.f32 %v5846_v52, %v11060_v54  ;;  %v5790_v55 = vadd.f32 %v5789_v57, %v5589_v49  ;;  %v11065_v10 = vld [vmem:[#allocation43_spill] sm:$0xff] }
 0x3b6   : > { %v7415_v56 = vpop.f32.mrf.mxu0  ;;  %v5597_v34 = vpop.f32.mrf.mxu1 }
 0x3b7   : > { %7035 = vst [vmem:[%s10456_s18 + $0x88] sm:$0xff] %v6988_v42   ;;  %v6133_v59 = vadd.f32 %v6132_v11, %v6093_v33  ;;  %v6183_v50 = vmul.f32 %v6093_v33, %v6093_v33  ;;  %v5847_v37 = vadd.f32 %v5790_v55, %v10435_v1 }
 0x3b8   : > { %v5792_v9 = vpop.f32.mrf.mxu0  ;;  %v5599_v47 = vpop.f32.mrf.mxu1 }
 0x3b9   : > { %v6223_v18 = vadd.f32 %v6222_v12, %v6183_v50  ;;  %v6094_v25 = vmul.f32 %v5847_v37, %v11061_v62  ;;  %v5793_v5 = vadd.f32 %v5792_v9, %v5592_v20 }
 0x3ba   : > { %v7416_v43 = vpop.f32.mrf.mxu0  ;;  %v5600_v6 = vpop.f32.mrf.mxu1 }
 0x3bb   : > { %v6134_v17 = vadd.f32 %v6133_v59, %v6094_v25  ;;  %v6184_v27 = vmul.f32 %v6094_v25, %v6094_v25  ;;  %v5848_v36 = vadd.f32 %v5793_v5, %v10438_v63 }
 0x3bc   : > { %v5602_v44 = vpop.f32.mrf.mxu1 }
 0x3bd   : > { %v6224_v58 = vadd.f32 %v6223_v18, %v6184_v27  ;;  %v6993_v38 = vpack.c.bf16 %v5848_v36, %v5847_v37  ;;  %v6095_v24 = vmul.f32 %v5848_v36, %v11062_v3 }
 0x3be   : > { %v5605_v0 = vpop.f32.mrf.mxu1 }
 0x3bf   : > { %7036 = vst [vmem:[%s10456_s18 + $0x90] sm:$0xff] %v6993_v38   ;;  %v6135_v1 = vadd.f32 %v6134_v17, %v6095_v24  ;;  %v6185_v40 = vmul.f32 %v6095_v24, %v6095_v24 }
 0x3c0   : > { %v5607_v48 = vpop.f32.mrf.mxu1 }
 0x3c1   : > { %v6225_v2 = vadd.f32 %v6224_v58, %v6185_v40 }
 0x3c2   : > { %v5608_v41 = vpop.f32.mrf.mxu1 }
 0x3c4   : > { %v5609_v19 = vpop.f32.mrf.mxu1 }
 0x3c6   : > { %v5797_v16 = vpop.f32.mrf.mxu1 }
 0x3c7   : > { %v5798_v35 = vadd.f32 %v5797_v16, %v5597_v34 }
 0x3c8   : > { %v7419_v8 = vpop.f32.mrf.mxu1 }
 0x3c9   : > { %v5849_v21 = vadd.f32 %v5798_v35, %v10441_v31 }
 0x3ca   : > { %v5800_v63 = vpop.f32.mrf.mxu1 }
 0x3cb   : > { %v6096_v29 = vmul.f32 %v5849_v21, %v11063_v14  ;;  %v5801_v15 = vadd.f32 %v5800_v63, %v5600_v6 }
 0x3cc   : > { %v7420_v13 = vpop.f32.mrf.mxu1 }
 0x3cd   : > { %v6136_v23 = vadd.f32 %v6135_v1, %v6096_v29  ;;  %v6186_v53 = vmul.f32 %v6096_v29, %v6096_v29  ;;  %v5850_v49 = vadd.f32 %v5801_v15, %v10444_v26 }
 0x3ce   : > { %v5805_v51 = vpop.f32.mrf.mxu1 }
 0x3cf   : > { %v6226_v32 = vadd.f32 %v6225_v2, %v6186_v53  ;;  %v6998_v46 = vpack.c.bf16 %v5850_v49, %v5849_v21  ;;  %v6097_v45 = vmul.f32 %v5850_v49, %v11064_v60  ;;  %v5806_v22 = vadd.f32 %v5805_v51, %v5605_v0 }
 0x3d0   : > { %v7423_v30 = vpop.f32.mrf.mxu1 }
 0x3d1   : > { %7037 = vst [vmem:[%s10456_s18 + $0x98] sm:$0xff] %v6998_v46   ;;  %v6137_v39 = vadd.f32 %v6136_v23, %v6097_v45  ;;  %v6187_v31 = vmul.f32 %v6097_v45, %v6097_v45  ;;  %v5851_v28 = vadd.f32 %v5806_v22, %v10446_v61 }
 0x3d2   : > { %v5808_v4 = vpop.f32.mrf.mxu1 }
 0x3d3   : > { %v6227_v20 = vadd.f32 %v6226_v32, %v6187_v31  ;;  %v6819_v11 = vpack.c.bf16 %v5851_v28, %v5851_v28  ;;  %v6098_v52 = vmul.f32 %v5851_v28, %v11065_v10 }
 0x3d4   : > { %v7424_v26 = vpop.f32.mrf.mxu1 }
 0x3d5   : > { %6057 = vst [vmem:[%s10456_s18 + $0xa0] sm:$0x3] %v6819_v11  ;;  %v6139_v57 = vsel %vm6138_vm0, %v6098_v52, 0.0  ;;  %v6188_v7 = vmul.f32 %v6098_v52, %v6098_v52 }
 0x3d6   : > { %v6140_v12 = vadd.f32 %v6139_v57, %v6137_v39 }
 0x3d7   : > { %v6228_v42 = vsel %vm6138_vm0, %v6188_v7, 0.0 }
 0x3d8   : > { %v6141_v54 = vrot.slane %v6140_v12, 4  ;;  %v6229_v33 = vadd.f32 %v6228_v42, %v6227_v20 }
 0x3da   : > { %v6142_v55 = vadd.f32 %v6141_v54, %v6140_v12  ;;  %v6230_v56 = vrot.slane %v6229_v33, 4 }
 0x3dc   : > { %v6143_v34 = vrot.slane %v6142_v55, 2  ;;  %v6231_v61 = vadd.f32 %v6230_v56, %v6229_v33 }
 0x3de   : > { %v6144_v59 = vadd.f32 %v6143_v34, %v6142_v55  ;;  %v6232_v50 = vrot.slane %v6231_v61, 2 }
 0x3e0   : > { %v6145_v37 = vrot.slane %v6144_v59, 1  ;;  %v6233_v9 = vadd.f32 %v6232_v50, %v6231_v61 }
 0x3e2   : > { %v6146_v47 = vadd.f32 %v6145_v37, %v6144_v59  ;;  %v6234_v18 = vrot.slane %v6233_v9, 1 }
 0x3e4   : > { %6147 = vst [vmem:[%s292_s20] sm:$0x1] %v6146_v47  ;;  %v6235_v62 = vadd.f32 %v6234_v18, %v6233_v9 }
 0x3e6   : > { %6236 = vst [vmem:[%s295_s23] sm:$0x1] %v6235_v62 }
 0x3e7 PF: > { %s18_s24 = sadd.s32 1, %s7722_s24  }
 0x3e8   : > { %p15_p4 = scmp.ge.s32.totalorder %s18_s24, 4  }
 0x3ea   :  { %17 = sbr.rel (!%p15_p4) target bundleno = 1 (0x1), region = 96 }

// kernel: double_conv.2
= control target key start
LH: loop header
LB: loop body
LE: loop exit
PB: predicated region body
PF: predicated region fallthrough
CT: control target
= control target key end

     0   :  { %s7726_s24 = smov 0   ;;  %s10452_s0 = inlined_call_operand.vmem [shape: bf16[2,324,128], index: 0, kind: input, shape index: {}]   ;;  %s10453_s1 = inlined_call_operand.vmem [shape: f32[1,128], index: 1, kind: input, shape index: {}]   ;;  %s10454_s2 = inlined_call_operand.vmem [shape: f32[1,128], index: 2, kind: input, shape index: {}]   ;;  %s10455_s3 = inlined_call_operand.vmem [shape: bf16[3,384,128], index: 3, kind: input, shape index: {}]   ;;  %s10456_s4 = inlined_call_operand.vmem [shape: f32[324,1], index: 4, kind: input, shape index: {}]   ;;  %s10457_s5 = inlined_call_operand.vmem [shape: bf16[2,324,128], index: 5, kind: output, shape index: {0}]   ;;  %s10458_s6 = inlined_call_operand.vmem [shape: f32[2,1,128], index: 6, kind: output, shape index: {1}]   ;;  %s10459_s7 = inlined_call_operand.vmem [shape: f32[2,1,128], index: 7, kind: output, shape index: {2}]  }
   0x1 LB: > { %s6301_s25 = sadd.s32 4294967295, %s7681_s24   ;;  %p6305_p0 = scmp.ge.s32.totalorder %s7681_s24, 1  ;;  %s7681_s24 = sphi %s7726_s24, %s18_s24  }
   0x2   : > { %p242_p1 = scmp.lt.s32.totalorder %s7681_s24, 3 }
   0x4   : > { %p243_p2 = pnand %p6305_p0, %p242_p1 }
   0x6   : > { %246 = sbr.rel (%p243_p2) target bundleno = 993 (0x3e1), region = 40 }
   0xb   : > { %v299_v0 = vld [vmem:[%s10456_s4 + $0x10] sm:$0xff]  ;;  %v297_v1 = vld [vmem:[%s10456_s4] sm:$0xff]  ;;  %v7683_v2 = vmov 0   ;;  %v300_v3 = vld [vmem:[%s10456_s4 + $0x18] sm:$0xff]  ;;  %v10460_v5 = vmov 0.0   ;;  %vm7685_vm0 = vmmov 0  }
   0xc   : > { %7413 = vset.pattern.permute.xlu1 %v7683_v2  ;;  %783 = vst [vmem:[#allocation2] sm:$0xff] %v7683_v2  ;;  %784 = vst [vmem:[#allocation2 + $0x8] sm:$0xf] %v7683_v2  ;;  %7412 = vset.pattern.permute.xlu0 %v7683_v2  ;;  %v298_v4 = vld [vmem:[%s10456_s4 + $0x8] sm:$0xff]  ;;  %v301_v7 = vld [vmem:[%s10456_s4 + $0x20] sm:$0xff]  ;;  %p280_p3 = scmp.lt.s32.totalorder %s6301_s25, 1 }
   0xd   : > { %786 = vst [vmem:[#allocation2 + $0x14] sm:$0xf] %v7683_v2  ;;  %787 = vst [vmem:[#allocation2 + $0x18] sm:$0xff] %v7683_v2  ;;  %528 = vperm.xlu1 %7413, %v299_v0   ;;  %518 = vperm.xlu0 %7412, %v297_v1   ;;  %v302_v6 = vld [vmem:[%s10456_s4 + $0x28] sm:$0xff]  ;;  %v304_v8 = vld [vmem:[%s10456_s4 + $0x38] sm:$0xff]  ;;  %vm1436_vm1 = vcmask 1043459  }
   0xe   : > { %788 = vst [vmem:[#allocation2 + $0x20] sm:$0xf] %v7683_v2  ;;  %789 = vst [vmem:[#allocation2 + $0x204] sm:$0xee] %v7683_v2  ;;  %2931 = vmatprep.subr.bf16.mxu0 %v7683_v2  ;;  %7084 = vmatprep.subr.bf16.mxu1 %v10460_v5  ;;  %v303_v9 = vld [vmem:[%s10456_s4 + $0x30] sm:$0xff]  ;;  %v306_v10 = vld [vmem:[%s10456_s4 + $0x48] sm:$0xff] }
   0xf   : > { %790 = vst [vmem:[#allocation2 + $0x20c] sm:$0xe] %v7683_v2  ;;  %792 = vst [vmem:[#allocation2 + $0x218] sm:$0xf] %v7683_v2  ;;  %v7414_v11 = vld [vmem:[%s10455_s3 + $0xf8] sm:$0xff]   ;;  %v305_v12 = vld [vmem:[%s10456_s4 + $0x40] sm:$0xff]  ;;  %7100 = vmatprep.mubr.msk.bf16.mxu1 %vm7685_vm0, %v10460_v5 }
  0x10   : > { %793 = vst [vmem:[#allocation2 + $0x21c] sm:$0xff] %v7683_v2  ;;  %794 = vst [vmem:[#allocation2 + $0x224] sm:$0xf] %v7683_v2  ;;  %2932 = vmatpush1.bf16.msra.mxu0 %v7414_v11  ;;  %v7415_v13 = vld [vmem:[%s10455_s3 + $0xf0] sm:$0xff]   ;;  %v308_v14 = vld [vmem:[%s10456_s4 + $0x58] sm:$0xff]  ;;  %s10926_s25 = smov (!%p280_p3, %s6301_s25), 1 }
  0x11   : > { %533 = vperm.xlu1 %7413, %v300_v3   ;;  %523 = vperm.xlu0 %7412, %v298_v4   ;;  %v307_v15 = vld [vmem:[%s10456_s4 + $0x50] sm:$0xff]  ;;  %v7416_v16 = vld [vmem:[%s10455_s3 + $0xe8] sm:$0xff]   ;;  %v7421_v17 = vld [vmem:[%s10455_s3 + $0x178] sm:$0xff]   ;;  %s7400_s30 = smul.u32 164, %s10926_s25  ;;  %vm1437_vm2 = vsmask.f32 7950  ;;  %s292_s19 = scalar_lea.vmem %s10458_s6, %s10926_s25 }
  0x12   : > { %2933 = vmatprep.subr.bf16.mxu0 %v7683_v2  ;;  %v310_v18 = vld [vmem:[%s10456_s4 + $0x68] sm:$0xff]  ;;  %v309_v19 = vld [vmem:[%s10456_s4 + $0x60] sm:$0xff]  ;;  %7085 = vmatpush3.bf16.msra.mxu1 %v7421_v17  ;;  %v7423_v21 = vld [vmem:[%s10455_s3 + $0x170] sm:$0xff]   ;;  %vm1488_vm3 = vcmask 1042432   ;;  %vm1489_vm4 = vcmask 1046532   ;;  %vm1482_vm11 = vcmask 1041408   ;;  %s295_s22 = scalar_lea.vmem %s10459_s7, %s10926_s25 }
  0x13   : > { %v7417_v20 = vld [vmem:[%s10455_s3 + $0xe0] sm:$0xff]   ;;  %7086 = vmatprep.subr.bf16.mxu1 %v10460_v5  ;;  %v312_v22 = vld [vmem:[%s10456_s4 + $0x78] sm:$0xff]  ;;  %v311_v23 = vld [vmem:[%s10456_s4 + $0x70] sm:$0xff]  ;;  %s7981_s10 = scalar_lea.vmem %s10452_s0, %s7400_s30  ;;  %vm982_vm5 = vsmask.f32 3328  ;;  %s10339_s17 = scalar_lea.vmem %s10457_s5, %s7400_s30 }
  0x14   : > { %2934 = vmatpush1.bf16.msra.mxu0 %v7415_v13  ;;  %v7418_v24 = vld [vmem:[%s10455_s3 + $0xd8] sm:$0xff]   ;;  %v7425_v25 = vld [vmem:[%s10455_s3 + $0x168] sm:$0xff]   ;;  %v313_v27 = vld [vmem:[%s10456_s4 + $0x80] sm:$0xff]  ;;  %vm983_vm6 = vsmask.f32 7440 }
  0x15   : > { %543 = vperm.xlu1 %7413, %v302_v6   ;;  %538 = vperm.xlu0 %7412, %v301_v7   ;;  %v314_v26 = vld [vmem:[%s10456_s4 + $0x88] sm:$0xff]  ;;  %v7427_v28 = vld [vmem:[%s10455_s3 + $0x160] sm:$0xff]   ;;  %v7419_v29 = vld [vmem:[%s10455_s3 + $0xd0] sm:$0xff]   ;;  %vm2159_vm10 = vsmask.f32 4352 }
  0x16   : > { %2935 = vmatprep.subr.bf16.mxu0 %v7683_v2  ;;  %7087 = vmatpush3.bf16.msra.mxu1 %v7423_v21  ;;  %v316_v30 = vld [vmem:[%s10456_s4 + $0x98] sm:$0xff]  ;;  %v315_v31 = vld [vmem:[%s10456_s4 + $0x90] sm:$0xff]  ;;  %v7420_v33 = vld [vmem:[%s10455_s3 + $0xc8] sm:$0xff]   ;;  %vm1483_vm12 = vsmask.f32 1280 }
  0x17   : > { %7088 = vmatprep.subr.bf16.mxu1 %v10460_v5  ;;  %v7429_v32 = vld [vmem:[%s10455_s3 + $0x158] sm:$0xff]   ;;  %v318_v34 = vld [vmem:[%s10456_s4 + $0xa8] sm:$0xff]  ;;  %v317_v35 = vld [vmem:[%s10456_s4 + $0xa0] sm:$0xff]  ;;  %vm3360_vm14 = vsmask.f32 5376 }
  0x18   : > { %2936 = vmatpush1.bf16.msra.mxu0 %v7416_v16  ;;  %v7431_v36 = vld [vmem:[%s10455_s3 + $0x150] sm:$0xff]   ;;  %v7422_v37 = vld [vmem:[%s10455_s3 + $0xc0] sm:$0xff]   ;;  %v320_v38 = vld [vmem:[%s10456_s4 + $0xb8] sm:$0xff]  ;;  %vm4661_vm15 = vsmask.f32 7424 }
  0x19   : > { %553 = vperm.xlu1 %7413, %v304_v8   ;;  %548 = vperm.xlu0 %7412, %v303_v9   ;;  %v319_v39 = vld [vmem:[%s10456_s4 + $0xb0] sm:$0xff]  ;;  %v7424_v40 = vld [vmem:[%s10455_s3 + $0x138] sm:$0xff]   ;;  %v7433_v41 = vld [vmem:[%s10455_s3 + $0x148] sm:$0xff]  }
  0x1a   : > { %2937 = vmatprep.subr.bf16.mxu0 %v7683_v2  ;;  %7089 = vmatpush3.bf16.msra.mxu1 %v7425_v25  ;;  %v322_v42 = vld [vmem:[%s10456_s4 + $0xc8] sm:$0xff]  ;;  %v321_v43 = vld [vmem:[%s10456_s4 + $0xc0] sm:$0xff]  ;;  %v7426_v44 = vld [vmem:[%s10455_s3 + $0x130] sm:$0xff]  }
  0x1b   : > { %7090 = vmatprep.subr.bf16.mxu1 %v10460_v5  ;;  %v7435_v45 = vld [vmem:[%s10455_s3 + $0x140] sm:$0xff]   ;;  %v324_v46 = vld [vmem:[%s10456_s4 + $0xd8] sm:$0xff]  ;;  %v323_v47 = vld [vmem:[%s10456_s4 + $0xd0] sm:$0xff] }
  0x1c   : > { %2938 = vmatpush1.bf16.msra.mxu0 %v7417_v20  ;;  %v7428_v48 = vld [vmem:[%s10455_s3 + $0x128] sm:$0xff]   ;;  %v325_v50 = vld [vmem:[%s10456_s4 + $0xe0] sm:$0xff]  ;;  %v328_v52 = vld [vmem:[%s10456_s4 + $0xf8] sm:$0xff] }
  0x1d   : > { %563 = vperm.xlu1 %7413, %v306_v10   ;;  %558 = vperm.xlu0 %7412, %v305_v12   ;;  %v326_v49 = vld [vmem:[%s10456_s4 + $0xe8] sm:$0xff]  ;;  %v7430_v51 = vld [vmem:[%s10455_s3 + $0x120] sm:$0xff]   ;;  %v327_v53 = vld [vmem:[%s10456_s4 + $0xf0] sm:$0xff] }
  0x1e   : > { %2939 = vmatprep.subr.bf16.mxu0 %v7683_v2  ;;  %7091 = vmatpush3.bf16.msra.mxu1 %v7427_v28  ;;  %v7432_v54 = vld [vmem:[%s10455_s3 + $0x118] sm:$0xff]   ;;  %v330_v55 = vld [vmem:[%s10456_s4 + $0x108] sm:$0xff]  ;;  %v329_v56 = vld [vmem:[%s10456_s4 + $0x100] sm:$0xff] }
  0x1f   : > { %7092 = vmatprep.subr.bf16.mxu1 %v10460_v5  ;;  %v7434_v57 = vld [vmem:[%s10455_s3 + $0x110] sm:$0xff]   ;;  %v332_v58 = vld [vmem:[%s10456_s4 + $0x118] sm:$0xff]  ;;  %v7436_v60 = vld [vmem:[%s10455_s3 + $0x108] sm:$0xff]  }
  0x20   : > { %2940 = vmatpush1.bf16.msra.mxu0 %v7418_v24  ;;  %v331_v59 = vld [vmem:[%s10456_s4 + $0x110] sm:$0xff]  ;;  %v334_v61 = vld [vmem:[%s10456_s4 + $0x128] sm:$0xff]  ;;  %v333_v62 = vld [vmem:[%s10456_s4 + $0x120] sm:$0xff] }
  0x21   : > { %573 = vperm.xlu1 %7413, %v308_v14   ;;  %568 = vperm.xlu0 %7412, %v307_v15   ;;  %v7441_v63 = vld [vmem:[%s10455_s3 + $0x100] sm:$0xff]   ;;  %v336_v0 = vld [vmem:[%s10456_s4 + $0x138] sm:$0xff]  ;;  %v335_v1 = vld [vmem:[%s10456_s4 + $0x130] sm:$0xff] }
  0x22   : > { %2941 = vmatprep.subr.bf16.mxu0 %v7683_v2  ;;  %7093 = vmatpush3.bf16.msra.mxu1 %v7429_v32  ;;  %v337_v3 = vld [vmem:[%s10456_s4 + $0x140] sm:$0xf]  ;;  %v6960_v9 = vld [vmem:[%s7981_s10 + $0x10] sm:$0xff]   ;;  %v6961_v12 = vld [vmem:[%s7981_s10 + $0x18] sm:$0xff]  }
  0x23   : > { %7094 = vmatprep.subr.bf16.mxu1 %v10460_v5  ;;  %v6780_v4 = vld [vmem:[%s7981_s10] sm:$0xff]   ;;  %v6963_v14 = vld [vmem:[%s7981_s10 + $0x28] sm:$0xff]   ;;  %v6790_v17 = vunpack.c.h.bf16 %v6960_v9  ;;  %v6965_v20 = vld [vmem:[%s7981_s10 + $0x38] sm:$0xff]  }
  0x24   : > { %2942 = vmatpush1.bf16.msra.mxu0 %v7419_v29  ;;  %v7988_v8 = vld [vmem:[%s10453_s1] ss:$0 sm:$0xff]  ;;  %v6781_v10 = vunpack.c.l.bf16 %v6780_v4  ;;  %v6782_v11 = vunpack.c.h.bf16 %v6780_v4  ;;  %v6802_v28 = vunpack.c.h.bf16 %v6963_v14  ;;  %v6801_v29 = vunpack.c.l.bf16 %v6963_v14  ;;  %v6972_v14 = vld [vmem:[%s7981_s10 + $0x70] sm:$0xff]   ;;  %vm8157_vm7 = vmand %vm1436_vm1, %vm1437_vm2 }
  0x25   : > { %583 = vperm.xlu1 %7413, %v310_v18   ;;  %578 = vperm.xlu0 %7412, %v309_v19   ;;  %v6962_v13 = vld [vmem:[%s7981_s10 + $0x20] sm:$0xff]   ;;  %v6789_v18 = vunpack.c.l.bf16 %v6960_v9  ;;  %v6964_v19 = vld [vmem:[%s7981_s10 + $0x30] sm:$0xff]   ;;  %v6810_v32 = vunpack.c.h.bf16 %v6965_v20  ;;  %v6971_v9 = vld [vmem:[%s7981_s10 + $0x68] sm:$0xff]  }
  0x26   : > { %2943 = vmatprep.subr.bf16.mxu0 %v7683_v2  ;;  %7095 = vmatpush3.bf16.msra.mxu1 %v7431_v36  ;;  %v8001_v21 = vld [vmem:[%s10454_s2] ss:$0 sm:$0xff]  ;;  %v6798_v24 = vunpack.c.h.bf16 %v6962_v13  ;;  %v6797_v25 = vunpack.c.l.bf16 %v6962_v13  ;;  %v432_v36 = vmul.f32 %v6790_v17, %v7988_v8  ;;  %vm8176_vm8 = vmor %vm1488_vm3, %vm1489_vm4 }
  0x27   : > { %7096 = vmatprep.subr.bf16.mxu1 %v10460_v5  ;;  %vm8186_vm9 = vmor %vm982_vm5, %vm983_vm6 }
  0x28   : > { %2944 = vmatpush1.bf16.msra.mxu0 %v7420_v33  ;;  %v6809_v33 = vunpack.c.l.bf16 %v6965_v20  ;;  %vm9066_vm13 = vmand %vm1482_vm11, %vm1483_vm12 }
  0x29   : > { %593 = vperm.xlu1 %7413, %v312_v22   ;;  %588 = vperm.xlu0 %7412, %v311_v23   ;;  %v6794_v22 = vunpack.c.h.bf16 %v6961_v12  ;;  %v6793_v23 = vunpack.c.l.bf16 %v6961_v12 }
  0x2a   : > { %2945 = vmatprep.subr.bf16.mxu0 %v7683_v2  ;;  %7097 = vmatpush3.bf16.msra.mxu1 %v7433_v41  ;;  %v435_v41 = vmul.f32 %v6797_v25, %v7988_v8  ;;  %v6838_v25 = vunpack.c.h.bf16 %v6972_v14 }
  0x2b   : > { %7098 = vmatprep.subr.bf16.mxu1 %v10460_v5 }
  0x2c   : > { %2946 = vmatpush1.bf16.msra.mxu0 %v7422_v37  ;;  %v431_v37 = vmul.f32 %v6789_v18, %v7988_v8 }
  0x2d   : > { %603 = vperm.xlu1 %7413, %v314_v26   ;;  %598 = vperm.xlu0 %7412, %v313_v27   ;;  %v427_v26 = vmul.f32 %v6781_v10, %v7988_v8  ;;  %v428_v27 = vmul.f32 %v6782_v11, %v7988_v8 }
  0x2e   : > { %2947 = vmatprep.subr.bf16.mxu0 %v7683_v2  ;;  %7099 = vmatpush3.bf16.msra.mxu1 %v7435_v45  ;;  %v438_v45 = vmul.f32 %v6802_v28, %v7988_v8 }
  0x2f   : > { %3862 = vmatprep.subr.bf16.mxu1 %v7683_v2 }
  0x30   : > { %2948 = vmatpush2.bf16.msra.mxu0 %v7424_v40  ;;  %v436_v40 = vmul.f32 %v6798_v24, %v7988_v8  ;;  %v6833_v24 = vunpack.c.l.bf16 %v6971_v9 }
  0x31   : > { %613 = vperm.xlu1 %7413, %v316_v30   ;;  %608 = vperm.xlu0 %7412, %v315_v31   ;;  %v6806_v30 = vunpack.c.h.bf16 %v6964_v19  ;;  %v6805_v31 = vunpack.c.l.bf16 %v6964_v19 }
  0x32   : > { %2949 = vmatprep.subr.bf16.mxu0 %v7683_v2 }
  0x34   : > { %2950 = vmatpush2.bf16.msra.mxu0 %v7426_v44  ;;  %v8022_v44 = vadd.f32 %v8001_v21, %v428_v27 }
  0x35   : > { %623 = vperm.xlu1 %7413, %v318_v34   ;;  %618 = vperm.xlu0 %7412, %v317_v35  }
  0x36   : > { %2951 = vmatprep.subr.bf16.mxu0 %v7683_v2 }
  0x38   : > { %2952 = vmatpush2.bf16.msra.mxu0 %v7428_v48  ;;  %v439_v48 = vmul.f32 %v6805_v31, %v7988_v8 }
  0x39   : > { %633 = vperm.xlu1 %7413, %v320_v38   ;;  %628 = vperm.xlu0 %7412, %v319_v39   ;;  %v434_v38 = vmul.f32 %v6794_v22, %v7988_v8  ;;  %v433_v39 = vmul.f32 %v6793_v23, %v7988_v8  ;;  %v6834_v23 = vunpack.c.h.bf16 %v6971_v9 }
  0x3a   : > { %2953 = vmatprep.subr.bf16.mxu0 %v7683_v2  ;;  %v8062_v4 = vadd.f32 %v8001_v21, %v439_v48 }
  0x3c   : > { %2954 = vmatpush2.bf16.msra.mxu0 %v7430_v51  ;;  %v6967_v51 = vld [vmem:[%s7981_s10 + $0x48] sm:$0xff]  }
  0x3d   : > { %643 = vperm.xlu1 %7413, %v322_v42   ;;  %638 = vperm.xlu0 %7412, %v321_v43   ;;  %v6966_v42 = vld [vmem:[%s7981_s10 + $0x40] sm:$0xff]   ;;  %v8019_v43 = vadd.f32 %v8001_v21, %v427_v26  ;;  %v6837_v26 = vunpack.c.l.bf16 %v6972_v14 }
  0x3e   : > { %2955 = vmatprep.subr.bf16.mxu0 %v7683_v2 }
  0x3f   : > { %v455_v48 = vmul.f32 %v6837_v26, %v7988_v8 }
  0x40   : > { %2956 = vmatpush2.bf16.msra.mxu0 %v7432_v54  ;;  %v6814_v54 = vunpack.c.h.bf16 %v6966_v42 }
  0x41   : > { %653 = vperm.xlu1 %7413, %v324_v46   ;;  %648 = vperm.xlu0 %7412, %v323_v47   ;;  %v437_v46 = vmul.f32 %v6801_v29, %v7988_v8  ;;  %v440_v47 = vmul.f32 %v6806_v30, %v7988_v8 }
  0x42   : > { %2957 = vmatprep.subr.bf16.mxu0 %v7683_v2  ;;  %v444_v10 = vmul.f32 %v6814_v54, %v7988_v8 }
  0x44   : > { %2958 = vmatpush2.bf16.msra.mxu0 %v7434_v57  ;;  %v8041_v57 = vadd.f32 %v8001_v21, %v433_v39  ;;  %v8078_v29 = vadd.f32 %v8001_v21, %v444_v10 }
  0x45   : > { %663 = vperm.xlu1 %7413, %v326_v49   ;;  %658 = vperm.xlu0 %7412, %v325_v50   ;;  %v442_v49 = vmul.f32 %v6810_v32, %v7988_v8  ;;  %v441_v50 = vmul.f32 %v6809_v33, %v7988_v8 }
  0x46   : > { %2959 = vmatprep.subr.bf16.mxu0 %v7683_v2 }
  0x48   : > { %2960 = vmatpush2.bf16.msra.mxu0 %v7436_v60  ;;  %v6968_v60 = vld [vmem:[%s7981_s10 + $0x50] sm:$0xff]  }
  0x49   : > { %673 = vperm.xlu1 %7413, %v328_v52   ;;  %668 = vperm.xlu0 %7412, %v327_v53   ;;  %v8032_v52 = vadd.f32 %v8001_v21, %v432_v36  ;;  %v8035_v53 = vadd.f32 %v8001_v21, %v431_v37  ;;  %v6822_v12 = vunpack.c.h.bf16 %v6968_v60  ;;  %v6821_v13 = vunpack.c.l.bf16 %v6968_v60 }
  0x4a   : > { %2961 = vmatprep.subr.bf16.mxu0 %v7683_v2  ;;  %v6959_v2 = vld [vmem:[%s7981_s10 + $0x8] sm:$0xff]  }
  0x4b   : > { %v6785_v6 = vunpack.c.l.bf16 %v6959_v2  ;;  %v6786_v7 = vunpack.c.h.bf16 %v6959_v2  ;;  %v8059_v2 = vadd.f32 %v8001_v21, %v440_v47  ;;  %v448_v31 = vmul.f32 %v6822_v12, %v7988_v8 }
  0x4c   : > { %2962 = vmatpush2.bf16.msra.mxu0 %v7441_v63  ;;  %v6818_v63 = vunpack.c.h.bf16 %v6967_v51  ;;  %v447_v32 = vmul.f32 %v6821_v13, %v7988_v8  ;;  %v456_v47 = vmul.f32 %v6838_v25, %v7988_v8  ;;  %v8143_v13 = vadd.f32 %v8001_v21, %v455_v48 }
  0x4d   : > { %683 = vperm.xlu1 %7413, %v330_v55   ;;  %678 = vperm.xlu0 %7412, %v329_v56   ;;  %v429_v15 = vmul.f32 %v6785_v6, %v7988_v8  ;;  %v430_v16 = vmul.f32 %v6786_v7, %v7988_v8  ;;  %v6813_v55 = vunpack.c.l.bf16 %v6966_v42  ;;  %v8038_v56 = vadd.f32 %v8001_v21, %v434_v38 }
  0x4e   : > { %7184 = vmatprep.subr.bf16.mxu0 %v10460_v5  ;;  %v8065_v6 = vadd.f32 %v8001_v21, %v442_v49  ;;  %v8068_v7 = vadd.f32 %v8001_v21, %v441_v50  ;;  %v446_v20 = vmul.f32 %v6818_v63, %v7988_v8  ;;  %v453_v42 = vmul.f32 %v6833_v24, %v7988_v8 }
  0x4f   : > { %v8006_v34 = vadd.f32 %v8001_v21, %v429_v15  ;;  %v8009_v35 = vadd.f32 %v8001_v21, %v430_v16  ;;  %v443_v11 = vmul.f32 %v6813_v55, %v7988_v8  ;;  %v6973_v15 = vld [vmem:[%s7981_s10 + $0x78] sm:$0xff]   ;;  %v8110_v55 = vadd.f32 %v8001_v21, %v448_v31 }
  0x50   : > { %v6842_v27 = vunpack.c.h.bf16 %v6973_v15  ;;  %v6841_v28 = vunpack.c.l.bf16 %v6973_v15  ;;  %v8090_v39 = vadd.f32 %v8001_v21, %v446_v20  ;;  %v8113_v60 = vadd.f32 %v8001_v21, %v447_v32 }
  0x51   : > { %693 = vperm.xlu1 %7413, %v332_v58   ;;  %688 = vperm.xlu0 %7412, %v331_v59   ;;  %v8044_v58 = vadd.f32 %v8001_v21, %v436_v40  ;;  %v8047_v59 = vadd.f32 %v8001_v21, %v435_v41  ;;  %v8081_v30 = vadd.f32 %v8001_v21, %v443_v11 }
  0x52   : > { %v454_v41 = vmul.f32 %v6834_v23, %v7988_v8  ;;  %v458_v49 = vmul.f32 %v6842_v27, %v7988_v8  ;;  %v457_v50 = vmul.f32 %v6841_v28, %v7988_v8  ;;  %v8133_v9 = vadd.f32 %v8001_v21, %v453_v42 }
  0x53   : > { %v8140_v12 = vadd.f32 %v8001_v21, %v456_v47 }
  0x54   : > { %v8146_v14 = vadd.f32 %v8001_v21, %v458_v49  ;;  %v8149_v15 = vadd.f32 %v8001_v21, %v457_v50 }
  0x55   : > { %703 = vperm.xlu1 %7413, %v334_v61   ;;  %698 = vperm.xlu0 %7412, %v333_v62   ;;  %v8051_v61 = vadd.f32 %v8001_v21, %v438_v45  ;;  %v8054_v62 = vadd.f32 %v8001_v21, %v437_v46 }
  0x59   : > { %713 = vperm.xlu1 %7413, %v336_v0   ;;  %708 = vperm.xlu0 %7412, %v335_v1   ;;  %v6817_v0 = vunpack.c.l.bf16 %v6967_v51  ;;  %v6969_v1 = vld [vmem:[%s7981_s10 + $0x58] sm:$0xff]  }
  0x5a   : > { %v6826_v16 = vunpack.c.h.bf16 %v6969_v1  ;;  %v6825_v17 = vunpack.c.l.bf16 %v6969_v1 }
  0x5b   : > { %v445_v22 = vmul.f32 %v6817_v0, %v7988_v8 }
  0x5c   : > { %v450_v33 = vmul.f32 %v6826_v16, %v7988_v8  ;;  %v449_v36 = vmul.f32 %v6825_v17, %v7988_v8 }
  0x5d   : > { %718 = vperm.xlu0 %7412, %v337_v3   ;;  %v6970_v3 = vld [vmem:[%s7981_s10 + $0x60] sm:$0xff]   ;;  %v8093_v40 = vadd.f32 %v8001_v21, %v445_v22  ;;  %v1439_v22 = vld [vmem:[#allocation2 + $0x1c] sm:$0x8] }
  0x5e   : > { %v6830_v18 = vunpack.c.h.bf16 %v6970_v3  ;;  %v6829_v19 = vunpack.c.l.bf16 %v6970_v3  ;;  %v8116_v63 = vadd.f32 %v8001_v21, %v450_v33  ;;  %v8119_v0 = vadd.f32 %v8001_v21, %v449_v36 }
  0x5f   : > { %v8130_v3 = vadd.f32 %v8001_v21, %v454_v41 }
  0x60   : > { %v452_v37 = vmul.f32 %v6830_v18, %v7988_v8  ;;  %v451_v38 = vmul.f32 %v6829_v19, %v7988_v8 }
  0x62   : > { %v8122_v8 = vadd.f32 %v8001_v21, %v452_v37 }
  0x88   : > { %v8097_v45 = vpop.permute.xlu1 %528  ;;  %v8099_v46 = vpop.permute.xlu0 %518 }
  0x89   : > { %10629 = vst [vmem:[#allocation3_spill] sm:$0xff] %v8097_v45  ;;  %10630 = vst [vmem:[#allocation4_spill] sm:$0xff] %v8099_v46  ;;  %v723_v51 = vmul.f32 %v8097_v45, %v8006_v34  ;;  %v721_v54 = vmul.f32 %v8099_v46, %v8019_v43  ;;  %v8125_v34 = vadd.f32 %v8001_v21, %v451_v38 }
  0x8b   : > { %v8127_v1 = vpack.c.bf16 %v723_v51, %v723_v51  ;;  %v6697_v43 = vpack.c.bf16 %v721_v54, %v721_v54 }
  0x8c   : > { %v8135_v10 = vpop.permute.xlu1 %533  ;;  %v8137_v11 = vpop.permute.xlu0 %523 }
  0x8d   : > { %10631 = vst [vmem:[#allocation5_spill] sm:$0xff] %v8135_v10  ;;  %10632 = vst [vmem:[#allocation6_spill] sm:$0xff] %v8137_v11  ;;  %v1005_v16 = vshll.u32 %v8127_v1, 16  ;;  %v1009_v17 = vshrl.u32 %v8127_v1, 16  ;;  %v1496_v18 = vrot.slane %v8127_v1, 5  ;;  %v986_v19 = vshll.u32 %v6697_v43, 16 }
  0x8e   : > { %943 = vst [vmem:[#allocation2 + $0x3c] sm:$0xf] %v8127_v1  ;;  %941 = vst [vmem:[#allocation2 + $0x24] sm:$0xf] %v6697_v43  ;;  %v989_v23 = vshrl.u32 %v6697_v43, 16  ;;  %v1491_v21 = vrot.slane %v6697_v43, 5  ;;  %v724_v24 = vmul.f32 %v8135_v10, %v8009_v35  ;;  %v722_v25 = vmul.f32 %v8137_v11, %v8022_v44 }
  0x8f   : > { %v8165_v26 = vrot.slane %v1005_v16, 5  ;;  %v1011_v27 = vrot.slane %v1009_v17, 4  ;;  %v1498_v28 = vrot.slane %v1496_v18, 4  ;;  %v988_v31 = vrot.slane %v986_v19, 5 }
  0x90   : > { %v991_v32 = vrot.slane %v989_v23, 4  ;;  %v1492_v33 = vrot.slane %v1491_v21, 4  ;;  %1655 = vst [vmem:[#allocation2 + $0x20] sm:$0x8] %v1491_v21  ;;  %v6700_v36 = vpack.c.bf16 %v724_v24, %v724_v24  ;;  %v6698_v37 = vpack.c.bf16 %v722_v25, %v722_v25  ;;  %v8167_v38 = vpop.permute.xlu1 %543  ;;  %v8169_v41 = vpop.permute.xlu0 %538 }
  0x91   : > { %10635 = vst [vmem:[#allocation7_spill] sm:$0xff] %v8167_v38  ;;  %10636 = vst [vmem:[#allocation8_spill] sm:$0xff] %v8169_v41  ;;  %v1012_v42 = vor.u32 %v1011_v27, %v8165_v26  ;;  %v1440_v35 = vsel %vm8157_vm7, %v988_v31, %v1439_v22  ;;  %v726_v47 = vmul.f32 %v8167_v38, %v8032_v52 }
  0x92   : > { %v725_v48 = vmul.f32 %v8169_v41, %v8035_v53  ;;  %v992_v49 = vor.u32 %v991_v32, %v988_v31  ;;  %1441 = vst [vmem:[#allocation2 + $0x1c] sm:$0x8] %v1440_v35  ;;  %944 = vst [vmem:[#allocation2 + $0x48] sm:$0xf] %v6700_v36  ;;  %v1015_v50 = vshll.u32 %v6700_v36, 16  ;;  %v1019_v51 = vshrl.u32 %v6700_v36, 16 }
  0x93   : > { %v1499_v54 = vrot.slane %v6700_v36, 5  ;;  %942 = vst [vmem:[#allocation2 + $0x30] sm:$0xf] %v6698_v37  ;;  %v1013_v1 = vrot.slane %v1012_v42, 4  ;;  %v995_v16 = vshll.u32 %v6698_v37, 16  ;;  %v999_v17 = vshrl.u32 %v6698_v37, 16 }
  0x94   : > { %v1493_v52 = vrot.slane %v6698_v37, 5  ;;  %v993_v19 = vrot.slane %v992_v49, 4  ;;  %v1017_v20 = vrot.slane %v1015_v50, 5  ;;  %v1021_v53 = vrot.slane %v1019_v51, 4  ;;  %v8192_v23 = vpop.permute.xlu1 %553  ;;  %v8194_v21 = vpop.permute.xlu0 %548 }
  0x95   : > { %v1500_v22 = vsel %vm8176_vm8, %v1498_v28, %v1499_v54  ;;  %10641 = vst [vmem:[#allocation9_spill] sm:$0xff] %v8192_v23  ;;  %10642 = vst [vmem:[#allocation10_spill] sm:$0xff] %v8194_v21  ;;  %v1501_v24 = vrot.slane %v1499_v54, 4  ;;  %v997_v25 = vrot.slane %v995_v16, 5  ;;  %v1001_v27 = vrot.slane %v999_v17, 4 }
  0x96   : > { %1658 = vst [vmem:[#allocation2 + $0x44] sm:$0xf] %v1500_v22  ;;  %v1494_v31 = vsel %vm8176_vm8, %v1492_v33, %v1493_v52  ;;  %v1018_v32 = vsel %vm8186_vm9, %v1013_v1, %v1017_v20  ;;  %v1022_v36 = vor.u32 %v1021_v53, %v1017_v20  ;;  %v1495_v37 = vrot.slane %v1493_v52, 4 }
  0x97   : > { %1656 = vst [vmem:[#allocation2 + $0x2c] sm:$0xf] %v1494_v31  ;;  %v6702_v42 = vpack.c.bf16 %v726_v47, %v726_v47  ;;  %1444 = vst [vmem:[#allocation2 + $0x40] sm:$0xf] %v1018_v32  ;;  %v998_v28 = vsel %vm8186_vm9, %v993_v19, %v997_v25  ;;  %v1002_v35 = vor.u32 %v1001_v27, %v997_v25 }
  0x98   : > { %v6701_v49 = vpack.c.bf16 %v725_v48, %v725_v48  ;;  %v728_v50 = vmul.f32 %v8192_v23, %v8038_v56  ;;  %v1023_v51 = vrot.slane %v1022_v36, 4  ;;  %1442 = vst [vmem:[#allocation2 + $0x28] sm:$0xf] %v998_v28  ;;  %v1497_v33 = vsel %vm8176_vm8, %v1495_v37, %v1496_v18  ;;  %v8206_v16 = vpop.permute.xlu1 %563  ;;  %v8208_v47 = vpop.permute.xlu0 %558 }
  0x99   : > { %946 = vst [vmem:[#allocation2 + $0x60] sm:$0xf] %v6702_v42  ;;  %v1035_v54 = vshll.u32 %v6702_v42, 16  ;;  %v1039_v1 = vshrl.u32 %v6702_v42, 16  ;;  %10643 = vst [vmem:[#allocation11_spill] sm:$0xff] %v8206_v16  ;;  %v1003_v17 = vrot.slane %v1002_v35, 4 }
  0x9a   : > { %10644 = vst [vmem:[#allocation12_spill] sm:$0xff] %v8208_v47  ;;  %1657 = vst [vmem:[#allocation2 + $0x38] sm:$0xf] %v1497_v33  ;;  %v1505_v52 = vrot.slane %v6702_v42, 5  ;;  %v1025_v48 = vshll.u32 %v6701_v49, 16  ;;  %v1029_v19 = vshrl.u32 %v6701_v49, 16  ;;  %v6704_v22 = vpack.c.bf16 %v728_v50, %v728_v50 }
  0x9b   : > { %945 = vst [vmem:[#allocation2 + $0x54] sm:$0xf] %v6701_v49  ;;  %v1037_v20 = vrot.slane %v1035_v54, 5  ;;  %v1041_v56 = vrot.slane %v1039_v1, 4  ;;  %v1502_v53 = vrot.slane %v6701_v49, 5  ;;  %v1008_v18 = vsel %vm8186_vm9, %v1003_v17, %v8165_v26 }
  0x9c   : > { %v1507_v25 = vrot.slane %v1505_v52, 4  ;;  %v1027_v27 = vrot.slane %v1025_v48, 5  ;;  %v1031_v31 = vrot.slane %v1029_v19, 4  ;;  %1443 = vst [vmem:[#allocation2 + $0x34] sm:$0xf] %v1008_v18  ;;  %v1055_v42 = vshll.u32 %v6704_v22, 16  ;;  %v8215_v28 = vpop.permute.xlu1 %573  ;;  %v8219_v33 = vpop.permute.xlu0 %568 }
  0x9d   : > { %v1042_v32 = vor.u32 %v1041_v56, %v1037_v20  ;;  %v1503_v36 = vsel %vm8176_vm8, %v1501_v24, %v1502_v53  ;;  %v1504_v37 = vrot.slane %v1502_v53, 4  ;;  %948 = vst [vmem:[#allocation2 + $0x78] sm:$0xf] %v6704_v22  ;;  %10645 = vst [vmem:[#allocation13_spill] sm:$0xff] %v8215_v28  ;;  %v1059_v50 = vshrl.u32 %v6704_v22, 16 }
  0x9e   : > { %v1028_v35 = vsel %vm8186_vm9, %v1023_v51, %v1027_v27  ;;  %v1032_v49 = vor.u32 %v1031_v31, %v1027_v27  ;;  %1659 = vst [vmem:[#allocation2 + $0x50] sm:$0xf] %v1503_v36  ;;  %v1511_v26 = vrot.slane %v6704_v22, 5  ;;  %10646 = vst [vmem:[#allocation14_spill] sm:$0xff] %v8219_v33  ;;  %v8223_v24 = vrot.slane %v1055_v42, 5 }
  0x9f   : > { %v1043_v54 = vrot.slane %v1042_v32, 4  ;;  %1445 = vst [vmem:[#allocation2 + $0x4c] sm:$0xf] %v1028_v35  ;;  %v1506_v1 = vsel %vm8176_vm8, %v1504_v37, %v1505_v52  ;;  %v727_v17 = vmul.f32 %v8194_v21, %v8041_v57  ;;  %v1061_v19 = vrot.slane %v1059_v50, 4 }
  0xa0   : > { %v1033_v48 = vrot.slane %v1032_v49, 4  ;;  %1660 = vst [vmem:[#allocation2 + $0x5c] sm:$0xf] %v1506_v1  ;;  %v1513_v51 = vrot.slane %v1511_v26, 4  ;;  %v730_v56 = vmul.f32 %v8206_v16, %v8044_v58  ;;  %v729_v22 = vmul.f32 %v8208_v47, %v8047_v59  ;;  %v8235_v27 = vpop.permute.xlu1 %583  ;;  %v8250_v5 = vpop.permute.xlu0 %578 }
  0xa1   : > { %v6703_v53 = vpack.c.bf16 %v727_v17, %v727_v17  ;;  %v732_v18 = vmul.f32 %v8215_v28, %v8051_v61  ;;  %v731_v52 = vmul.f32 %v8219_v33, %v8054_v62  ;;  %10647 = vst [vmem:[#allocation15_spill] sm:$0xff] %v8235_v27  ;;  %v1062_v31 = vor.u32 %v1061_v19, %v8223_v24 }
  0xa2   : > { %v1038_v57 = vsel %vm8186_vm9, %v1033_v48, %v1037_v20  ;;  %v6706_v32 = vpack.c.bf16 %v730_v56, %v730_v56  ;;  %v734_v58 = vmul.f32 %v8235_v27, %v8059_v2  ;;  %v6705_v61 = vpack.c.bf16 %v729_v22, %v729_v22  ;;  %10648 = vst [vmem:[#allocation16_spill] sm:$0xff] %v8250_v5 }
  0xa3   : > { %1446 = vst [vmem:[#allocation2 + $0x58] sm:$0xf] %v1038_v57  ;;  %947 = vst [vmem:[#allocation2 + $0x6c] sm:$0xf] %v6703_v53  ;;  %v1045_v59 = vshll.u32 %v6703_v53, 16  ;;  %v1049_v36 = vshrl.u32 %v6703_v53, 16 }
  0xa4   : > { %v1508_v37 = vrot.slane %v6703_v53, 5  ;;  %v1063_v42 = vrot.slane %v1062_v31, 4  ;;  %950 = vst [vmem:[#allocation2 + $0x90] sm:$0xf] %v6706_v32  ;;  %v1075_v62 = vshll.u32 %v6706_v32, 16  ;;  %v1079_v35 = vshrl.u32 %v6706_v32, 16 }
  0xa5   : > { %v1517_v49 = vrot.slane %v6706_v32, 5  ;;  %v1047_v50 = vrot.slane %v1045_v59, 5  ;;  %v1051_v1 = vrot.slane %v1049_v36, 4  ;;  %949 = vst [vmem:[#allocation2 + $0x84] sm:$0xf] %v6705_v61  ;;  %v1065_v56 = vshll.u32 %v6705_v61, 16 }
  0xa6   : > { %v1509_v20 = vsel %vm8176_vm8, %v1507_v25, %v1508_v37  ;;  %v1510_v17 = vrot.slane %v1508_v37, 4  ;;  %v1077_v2 = vrot.slane %v1075_v62, 5  ;;  %v1081_v48 = vrot.slane %v1079_v35, 4 }
  0xa7   : > { %1661 = vst [vmem:[#allocation2 + $0x68] sm:$0xf] %v1509_v20  ;;  %v1519_v19 = vrot.slane %v1517_v49, 4  ;;  %v1048_v53 = vsel %vm8186_vm9, %v1043_v54, %v1047_v50  ;;  %v1052_v22 = vor.u32 %v1051_v1, %v1047_v50  ;;  %v1069_v31 = vshrl.u32 %v6705_v61, 16 }
  0xa8   : > { %v1512_v57 = vsel %vm8176_vm8, %v1510_v17, %v1511_v26  ;;  %1447 = vst [vmem:[#allocation2 + $0x64] sm:$0xf] %v1048_v53  ;;  %v1082_v32 = vor.u32 %v1081_v48, %v1077_v2  ;;  %v1067_v59 = vrot.slane %v1065_v56, 5  ;;  %v1514_v25 = vrot.slane %v6705_v61, 5  ;;  %v8261_v17 = vld [vmem:[%s7981_s10 + $0x80] sm:$0xff]  }
  0xa9   : > { %1662 = vst [vmem:[#allocation2 + $0x74] sm:$0xf] %v1512_v57  ;;  %v6708_v36 = vpack.c.bf16 %v732_v18, %v732_v18  ;;  %v1053_v37 = vrot.slane %v1052_v22, 4  ;;  %v1071_v20 = vrot.slane %v1069_v31, 4  ;;  %v6707_v62 = vpack.c.bf16 %v731_v52, %v731_v52 }
  0xaa   : > { %v8248_v35 = vpack.c.bf16 %v734_v58, %v734_v58  ;;  %v1083_v54 = vrot.slane %v1082_v32, 4  ;;  %v1068_v50 = vsel %vm8186_vm9, %v1063_v42, %v1067_v59  ;;  %v1515_v26 = vsel %vm8176_vm8, %v1513_v51, %v1514_v25 }
  0xab   : > { %v1516_v1 = vrot.slane %v1514_v25, 4  ;;  %952 = vst [vmem:[#allocation2 + $0xa8] sm:$0xf] %v6708_v36  ;;  %v1058_v18 = vsel %vm8186_vm9, %v1053_v37, %v8223_v24  ;;  %v1072_v61 = vor.u32 %v1071_v20, %v1067_v59  ;;  %1449 = vst [vmem:[#allocation2 + $0x7c] sm:$0xf] %v1068_v50  ;;  %v1095_v52 = vshll.u32 %v6708_v36, 16  ;;  %v8271_v50 = vpop.permute.xlu1 %593 }
  0xac   : > { %1663 = vst [vmem:[#allocation2 + $0x80] sm:$0xf] %v1515_v26  ;;  %v1099_v58 = vshrl.u32 %v6708_v36, 16  ;;  %951 = vst [vmem:[#allocation2 + $0x9c] sm:$0xf] %v6707_v62  ;;  %v1523_v42 = vrot.slane %v6708_v36, 5  ;;  %v8273_v26 = vpop.permute.xlu0 %588 }
  0xad   : > { %954 = vst [vmem:[#allocation2 + $0xc0] sm:$0xf] %v8248_v35  ;;  %1448 = vst [vmem:[#allocation2 + $0x70] sm:$0xf] %v1058_v18  ;;  %v1518_v51 = vsel %vm8176_vm8, %v1516_v1, %v1517_v49  ;;  %v1085_v48 = vshll.u32 %v6707_v62, 16  ;;  %v1089_v56 = vshrl.u32 %v6707_v62, 16 }
  0xae   : > { %v1073_v53 = vrot.slane %v1072_v61, 4  ;;  %1664 = vst [vmem:[#allocation2 + $0x8c] sm:$0xf] %v1518_v51  ;;  %v1097_v24 = vrot.slane %v1095_v52, 5  ;;  %v1101_v22 = vrot.slane %v1099_v58, 4  ;;  %v1520_v57 = vrot.slane %v6707_v62, 5 }
  0xaf   : > { %v1087_v31 = vrot.slane %v1085_v48, 5  ;;  %v1091_v32 = vrot.slane %v1089_v56, 4  ;;  %v1115_v59 = vshll.u32 %v8248_v35, 16  ;;  %10649 = vst [vmem:[#allocation17_spill] sm:$0xff] %v8271_v50  ;;  %10650 = vst [vmem:[#allocation18_spill] sm:$0xff] %v8273_v26  ;;  %v1119_v61 = vshrl.u32 %v8248_v35, 16 }
  0xb0   : > { %v1078_v37 = vsel %vm8186_vm9, %v1073_v53, %v1077_v2  ;;  %v1102_v20 = vor.u32 %v1101_v22, %v1097_v24  ;;  %v1521_v49 = vsel %vm8176_vm8, %v1519_v19, %v1520_v57  ;;  %v1522_v36 = vrot.slane %v1520_v57, 4  ;;  %v1704_v2 = vld [vmem:[#allocation2 + $0x2c] sm:$0xf]  ;;  %v1830_v52 = vld [vmem:[#allocation2 + $0x20] sm:$0x8] }
  0xb1   : > { %1450 = vst [vmem:[#allocation2 + $0x88] sm:$0xf] %v1078_v37  ;;  %v1088_v62 = vsel %vm8186_vm9, %v1083_v54, %v1087_v31  ;;  %v1092_v1 = vor.u32 %v1091_v32, %v1087_v31  ;;  %1665 = vst [vmem:[#allocation2 + $0x98] sm:$0xf] %v1521_v49  ;;  %v8277_v18 = vrot.slane %v1115_v59, 5  ;;  %v1525_v19 = vrot.slane %v1523_v42, 4 }
  0xb2   : > { %v8280_v58 = vld [vmem:[#allocation2 + $0x38] ss:$12 sps:$4 sm:$0xff]   ;;  %1451 = vst [vmem:[#allocation2 + $0x94] sm:$0xf] %v1088_v62  ;;  %v1524_v51 = vsel %vm8176_vm8, %v1522_v36, %v1523_v42  ;;  %v1529_v48 = vrot.slane %v8248_v35, 5  ;;  %v733_v54 = vmul.f32 %v8250_v5, %v8062_v4  ;;  %v1121_v53 = vrot.slane %v1119_v61, 4 }
  0xb3   : > { %v1093_v56 = vrot.slane %v1092_v1, 4  ;;  %1666 = vst [vmem:[#allocation2 + $0xa4] sm:$0xf] %v1524_v51  ;;  %v736_v22 = vmul.f32 %v8271_v50, %v8065_v6  ;;  %v735_v57 = vmul.f32 %v8273_v26, %v8068_v7  ;;  %v1103_v31 = vrot.slane %v1102_v20, 4  ;;  %v8301_v6 = vpop.permute.xlu1 %603  ;;  %v8303_v50 = vpop.permute.xlu0 %598 }
  0xb4   : > { %v1531_v32 = vrot.slane %v1529_v48, 4  ;;  %v6709_v59 = vpack.c.bf16 %v733_v54, %v733_v54  ;;  %v6401_v37 = vcombine.low %v1830_v52, %v1704_v2  ;;  %v1122_v35 = vor.u32 %v1121_v53, %v8277_v18  ;;  %10651 = vst [vmem:[#allocation19_spill] sm:$0xff] %v8301_v6  ;;  %10652 = vst [vmem:[#allocation20_spill] sm:$0xff] %v8303_v50 }
  0xb5   : > { %v1098_v42 = vsel %vm8186_vm9, %v1093_v56, %v1097_v24  ;;  %v6712_v49 = vpack.c.bf16 %v736_v22, %v736_v22  ;;  %v6711_v4 = vpack.c.bf16 %v735_v57, %v735_v57 }
  0xb6   : > { %1452 = vst [vmem:[#allocation2 + $0xa0] sm:$0xf] %v1098_v42  ;;  %953 = vst [vmem:[#allocation2 + $0xb4] sm:$0xf] %v6709_v59  ;;  %v1105_v36 = vshll.u32 %v6709_v59, 16  ;;  %v1109_v62 = vshrl.u32 %v6709_v59, 16 }
  0xb7   : > { %v1526_v1 = vrot.slane %v6709_v59, 5  ;;  %956 = vst [vmem:[#allocation2 + $0xd8] sm:$0xf] %v6712_v49  ;;  %v1135_v7 = vshll.u32 %v6712_v49, 16  ;;  %v1139_v20 = vshrl.u32 %v6712_v49, 16  ;;  %v1535_v61 = vrot.slane %v6712_v49, 5 }
  0xb8   : > { %955 = vst [vmem:[#allocation2 + $0xcc] sm:$0xf] %v6711_v4  ;;  %v2195_v2 = vshrl.u32 %v6401_v37, 16  ;;  %v1107_v52 = vrot.slane %v1105_v36, 5  ;;  %v1111_v51 = vrot.slane %v1109_v62, 4  ;;  %v1123_v56 = vrot.slane %v1122_v35, 4 }
  0xb9   : > { %v1527_v24 = vsel %vm8176_vm8, %v1525_v19, %v1526_v1  ;;  %v1528_v54 = vrot.slane %v1526_v1, 4  ;;  %v1137_v53 = vrot.slane %v1135_v7, 5  ;;  %v1141_v22 = vrot.slane %v1139_v20, 4 }
  0xba   : > { %1667 = vst [vmem:[#allocation2 + $0xb0] sm:$0xf] %v1527_v24  ;;  %v1125_v57 = vshll.u32 %v6711_v4, 16  ;;  %v1108_v59 = vsel %vm8186_vm9, %v1103_v31, %v1107_v52  ;;  %v1112_v42 = vor.u32 %v1111_v51, %v1107_v52  ;;  %v1129_v25 = vshrl.u32 %v6711_v4, 16  ;;  %v8305_v31 = vld [vmem:[#allocation2 + $0x24] sm:$0xff] }
  0xbb   : > { %v1530_v49 = vsel %vm8176_vm8, %v1528_v54, %v1529_v48  ;;  %1453 = vst [vmem:[#allocation2 + $0xac] sm:$0xf] %v1108_v59  ;;  %v1142_v36 = vor.u32 %v1141_v22, %v1137_v53  ;;  %v1537_v62 = vrot.slane %v1535_v61, 4  ;;  %v1532_v1 = vrot.slane %v6711_v4, 5  ;;  %v8313_v22 = vld [vmem:[#allocation2 + $0x34] ss:$12 sps:$4 sm:$0xff]  }
  0xbc   : > { %1668 = vst [vmem:[#allocation2 + $0xbc] sm:$0xf] %v1530_v49  ;;  %v1127_v19 = vrot.slane %v1125_v57, 5  ;;  %v1113_v35 = vrot.slane %v1112_v42, 4  ;;  %v1131_v24 = vrot.slane %v1129_v25, 4  ;;  %v2197_v7 = vrot.slane %v2195_v2, 3 }
  0xbd   : > { %v2198_v20 = vshll.u32 %v6401_v37, 16  ;;  %v1533_v52 = vsel %vm8176_vm8, %v1531_v32, %v1532_v1  ;;  %v1534_v51 = vrot.slane %v1532_v1, 4  ;;  %v10653_v54 = vshrl.u32 %v8280_v58, 16  ;;  %v1829_v49 = vld [vmem:[#allocation2 + $0x18] sm:$0x88] }
  0xbe   : > { %v1128_v48 = vsel %vm8186_vm9, %v1123_v56, %v1127_v19  ;;  %v1118_v25 = vsel %vm8186_vm9, %v1113_v35, %v8277_v18  ;;  %v1132_v37 = vor.u32 %v1131_v24, %v1127_v19  ;;  %1669 = vst [vmem:[#allocation2 + $0xc8] sm:$0xf] %v1533_v52  ;;  %v10463_v57 = vshll.u32 %v8280_v58, 16 }
  0xbf   : > { %v2205_v4 = vrot.slane %v10653_v54, 3  ;;  %1455 = vst [vmem:[#allocation2 + $0xc4] sm:$0xf] %v1128_v48  ;;  %v2200_v2 = vrot.slane %v2198_v20, 4  ;;  %1454 = vst [vmem:[#allocation2 + $0xb8] sm:$0xf] %v1118_v25  ;;  %v1536_v32 = vsel %vm8176_vm8, %v1534_v51, %v1535_v61  ;;  %v738_v59 = vmul.f32 %v8301_v6, %v8078_v29 }
  0xc0   : > { %v1143_v56 = vrot.slane %v1142_v36, 4  ;;  %v737_v42 = vmul.f32 %v8303_v50, %v8081_v30  ;;  %v1133_v1 = vrot.slane %v1132_v37, 4  ;;  %1670 = vst [vmem:[#allocation2 + $0xd4] sm:$0xf] %v1536_v32  ;;  %v2208_v19 = vrot.slane %v10463_v57, 4  ;;  %v7440_v36 = vld [vmem:[%s10455_s3 + $0x38] sm:$0xff]  }
  0xc1   : > { %v2201_v18 = vor.u32 %v2200_v2, %v2197_v7  ;;  %v6400_v35 = vcombine.high %v1829_v49, %v8305_v31  ;;  %v6714_v61 = vpack.c.bf16 %v738_v59, %v738_v59  ;;  %v8350_v20 = vld [vmem:[#allocation2 + $0x30] ss:$12 sps:$4 sm:$0xff]   ;;  %v10656_v29 = vmov 0.0  }
  0xc2   : > { %v6713_v24 = vpack.c.bf16 %v737_v42, %v737_v42  ;;  %v1138_v30 = vsel %vm8186_vm9, %v1133_v1, %v1137_v53  ;;  %v8335_v48 = vor.u32 %v2208_v19, %v2205_v4  ;;  %v7450_v53 = vld [vmem:[%s10455_s3 + $0x30] sm:$0xff]  }
  0xc3   : > { %v2178_v7 = vshrl.u32 %v6400_v35, 16  ;;  %v2181_v52 = vshll.u32 %v6400_v35, 16  ;;  %1456 = vst [vmem:[#allocation2 + $0xd0] sm:$0xf] %v1138_v30  ;;  %958 = vst [vmem:[#allocation2 + $0xf0] sm:$0xf] %v6714_v61  ;;  %v8344_v30 = vpop.permute.xlu1 %613 }
  0xc4   : > { %v1155_v51 = vshll.u32 %v6714_v61, 16  ;;  %v1159_v54 = vshrl.u32 %v6714_v61, 16  ;;  %v1541_v25 = vrot.slane %v6714_v61, 5  ;;  %957 = vst [vmem:[#allocation2 + $0xe4] sm:$0xf] %v6713_v24  ;;  %v1145_v37 = vshll.u32 %v6713_v24, 16 }
  0xc5   : > { %v2210_v2 = vsel %vm2159_vm10, %v2201_v18, %v8335_v48  ;;  %v1149_v32 = vshrl.u32 %v6713_v24, 16  ;;  %v1538_v59 = vrot.slane %v6713_v24, 5  ;;  %v2180_v42 = vrot.slane %v2178_v7, 3  ;;  %10654 = vst [vmem:[#allocation21_spill] sm:$0xff] %v8344_v30  ;;  %v8348_v7 = vpop.permute.xlu0 %608 }
  0xc6   : > { %7101 = vmatmul.mubr.bf16.vlgmr.msra.gmra.mxu1 %v2210_v2  ;;  %v1157_v4 = vrot.slane %v1155_v51, 5  ;;  %v1161_v1 = vrot.slane %v1159_v54, 4  ;;  %v8342_v19 = vrot.slane %v1541_v25, 4  ;;  %v1147_v35 = vrot.slane %v1145_v37, 5  ;;  %10655 = vst [vmem:[#allocation22_spill] sm:$0xff] %v8348_v7 }
  0xc7   : > { %3863 = vmatpush1.bf16.msra.mxu1 %v7440_v36  ;;  %v1151_v61 = vrot.slane %v1149_v32, 4  ;;  %v1539_v18 = vsel %vm8176_vm8, %v1537_v62, %v1538_v59  ;;  %v1540_v57 = vrot.slane %v1538_v59, 4  ;;  %v2183_v24 = vrot.slane %v2181_v52, 4  ;;  %7104 = vmatprep.mubr.msk.bf16.mxu1 %vm7685_vm0, %v10656_v29  ;;  %v8360_v32 = vld [vmem:[#allocation2] sm:$0xff] }
  0xc8   : > { %v1162_v51 = vor.u32 %v1161_v1, %v1157_v4  ;;  %v1148_v54 = vsel %vm8186_vm9, %v1143_v56, %v1147_v35  ;;  %1671 = vst [vmem:[#allocation2 + $0xe0] sm:$0xf] %v1539_v18  ;;  %v10657_v36 = vshrl.u32 %v8313_v22, 16  ;;  %v10658_v2 = vshll.u32 %v8313_v22, 16  ;;  %3864 = vmatprep.subr.bf16.mxu1 %v8360_v32 }
  0xc9   : > { %v1152_v52 = vor.u32 %v1151_v61, %v1147_v35  ;;  %1457 = vst [vmem:[#allocation2 + $0xdc] sm:$0xf] %v1148_v54  ;;  %v1542_v59 = vsel %vm8176_vm8, %v1540_v57, %v1541_v25  ;;  %v2184_v1 = vor.u32 %v2183_v24, %v2180_v42  ;;  %v740_v56 = vmul.f32 %v8344_v30, %v8090_v39  ;;  %v7456_v39 = vld [vmem:[%s10455_s3 + $0x28] sm:$0xff]   ;;  %v8384_v54 = vpop.permute.xlu1 %623 }
  0xca   : > { %v2188_v37 = vrot.slane %v10657_v36, 3  ;;  %v2191_v62 = vrot.slane %v10658_v2, 4  ;;  %v1163_v18 = vrot.slane %v1162_v51, 4  ;;  %1672 = vst [vmem:[#allocation2 + $0xec] sm:$0xf] %v1542_v59  ;;  %v739_v36 = vmul.f32 %v8348_v7, %v8093_v40  ;;  %10659 = vst [vmem:[#allocation23_spill] sm:$0xff] %v8384_v54 }
  0xcb   : > { %v6399_v2 = vcombine.low %v1829_v49, %v8305_v31  ;;  %v1153_v50 = vrot.slane %v1152_v52, 4  ;;  %v6716_v26 = vpack.c.bf16 %v740_v56, %v740_v56  ;;  %3865 = vmatpush1.bf16.msra.mxu1 %v7450_v53  ;;  %v8382_v51 = vld [vmem:[#allocation2 + $0x50] ss:$12 sps:$4 sm:$0xff]   ;;  %v10661_v30 = vshrl.u32 %v8350_v20, 16 }
  0xcc   : > { %v8367_v6 = vor.u32 %v2191_v62, %v2188_v37  ;;  %v6715_v25 = vpack.c.bf16 %v739_v36, %v739_v36  ;;  %3866 = vmatprep.subr.bf16.mxu1 %v8360_v32  ;;  %v7465_v37 = vld [vmem:[%s10455_s3 + $0x20] sm:$0xff]  }
  0xcd   : > { %v2161_v42 = vshrl.u32 %v6399_v2, 16  ;;  %v2164_v24 = vshll.u32 %v6399_v2, 16  ;;  %v1158_v40 = vsel %vm8186_vm9, %v1153_v50, %v1157_v4  ;;  %960 = vst [vmem:[#allocation2 + $0x108] sm:$0xf] %v6716_v26  ;;  %v1175_v31 = vshll.u32 %v6716_v26, 16  ;;  %v8391_v4 = vpop.permute.xlu0 %618 }
  0xce   : > { %v2193_v57 = vsel %vm2159_vm10, %v2184_v1, %v8367_v6  ;;  %v1179_v49 = vshrl.u32 %v6716_v26, 16  ;;  %v1547_v53 = vrot.slane %v6716_v26, 5  ;;  %1458 = vst [vmem:[#allocation2 + $0xe8] sm:$0xf] %v1158_v40  ;;  %959 = vst [vmem:[#allocation2 + $0xfc] sm:$0xf] %v6715_v25 }
  0xcf   : > { %2963 = vmatprep.mubr.bf16.mxu0 %v2193_v57  ;;  %v1165_v62 = vshll.u32 %v6715_v25, 16  ;;  %v1169_v52 = vshrl.u32 %v6715_v25, 16  ;;  %v1544_v59 = vrot.slane %v6715_v25, 5  ;;  %v2163_v1 = vrot.slane %v2161_v42, 3  ;;  %v8389_v50 = vld [vmem:[#allocation2 + $0x4c] ss:$12 sps:$4 sm:$0xff]   ;;  %3867 = vmatpush1.bf16.msra.mxu1 %v7456_v39 }
  0xd0   : > { %10660 = vst [vmem:[#allocation24_spill] sm:$0xff] %v8391_v4  ;;  %v1177_v56 = vrot.slane %v1175_v31, 5  ;;  %v1181_v26 = vrot.slane %v1179_v49, 4  ;;  %v8393_v36 = vrot.slane %v1547_v53, 4  ;;  %v2166_v2 = vrot.slane %v2164_v24, 4  ;;  %3868 = vmatprep.subr.bf16.mxu1 %v8360_v32 }
  0xd1   : > { %v1167_v57 = vrot.slane %v1165_v62, 5  ;;  %v1171_v61 = vrot.slane %v1169_v52, 4  ;;  %v1545_v40 = vsel %vm8176_vm8, %v8342_v19, %v1544_v59  ;;  %v1546_v35 = vrot.slane %v1544_v59, 4  ;;  %v7459_v52 = vld [vmem:[%s10455_s3 + $0xb8] sm:$0xff]  }
  0xd2   : > { %v1182_v25 = vor.u32 %v1181_v26, %v1177_v56  ;;  %1673 = vst [vmem:[#allocation2 + $0xf8] sm:$0xf] %v1545_v40  ;;  %v2167_v42 = vor.u32 %v2166_v2, %v2163_v1  ;;  %v2171_v31 = vrot.slane %v10661_v30, 3  ;;  %v10662_v49 = vshll.u32 %v8350_v20, 16  ;;  %v8419_v26 = vld [vmem:[#allocation2 + $0x48] ss:$12 sps:$4 sm:$0xff]   ;;  %v8429_v40 = vpop.permute.xlu0 %628 }
  0xd3   : > { %v1168_v39 = vsel %vm8186_vm9, %v1163_v18, %v1167_v57  ;;  %v1172_v24 = vor.u32 %v1171_v61, %v1167_v57  ;;  %v1548_v62 = vsel %vm8176_vm8, %v1546_v35, %v1547_v53  ;;  %v10472_v19 = vshrl.u32 %v8389_v50, 16  ;;  %v8417_v61 = vpop.permute.xlu1 %633  ;;  %3869 = vmatpush1.bf16.msra.mxu1 %v7465_v37  ;;  %v7470_v35 = vld [vmem:[%s10455_s3 + $0x18] sm:$0xff]   ;;  %10664 = vst [vmem:[#allocation26_spill] sm:$0xff] %v8429_v40 }
  0xd4   : > { %v2174_v7 = vrot.slane %v10662_v49, 4  ;;  %v8411_v59 = vrot.slane %v1182_v25, 4  ;;  %1459 = vst [vmem:[#allocation2 + $0xf4] sm:$0xf] %v1168_v39  ;;  %1674 = vst [vmem:[#allocation2 + $0x104] sm:$0xf] %v1548_v62  ;;  %v742_v57 = vmul.f32 %v8384_v54, %v8110_v55  ;;  %3870 = vmatprep.subr.bf16.mxu1 %v8360_v32  ;;  %v741_v49 = vmul.f32 %v8391_v4, %v8113_v60 }
  0xd5   : > { %v10469_v1 = vshll.u32 %v8389_v50, 16  ;;  %v10470_v18 = vshrl.u32 %v8382_v51, 16  ;;  %10663 = vst [vmem:[#allocation25_spill] sm:$0xff] %v8417_v61  ;;  %v1173_v53 = vrot.slane %v1172_v24, 4  ;;  %v2223_v2 = vrot.slane %v10472_v19, 3 }
  0xd6   : > { %v8413_v30 = vor.u32 %v2174_v7, %v2171_v31  ;;  %v10471_v7 = vshll.u32 %v8382_v51, 16  ;;  %v6718_v24 = vpack.c.bf16 %v742_v57, %v742_v57  ;;  %v8525_v4 = vld [vmem:[#allocation2 + $0x60] ss:$12 sps:$4 sm:$0xff]  }
  0xd7   : > { %v2226_v25 = vrot.slane %v10469_v1, 4  ;;  %v2232_v31 = vrot.slane %v10470_v18, 3  ;;  %v1178_v39 = vsel %vm8186_vm9, %v1173_v53, %v1177_v56  ;;  %v6717_v1 = vpack.c.bf16 %v741_v49, %v741_v49  ;;  %3871 = vmatpush1.bf16.msra.mxu1 %v7470_v35  ;;  %v7471_v56 = vld [vmem:[%s10455_s3 + $0xb0] sm:$0xff]  }
  0xd8   : > { %v2176_v37 = vsel %vm2159_vm10, %v2167_v42, %v8413_v30  ;;  %v2235_v55 = vrot.slane %v10471_v7, 4  ;;  %v744_v42 = vmul.f32 %v8417_v61, %v8116_v63  ;;  %1460 = vst [vmem:[#allocation2 + $0x100] sm:$0xf] %v1178_v39  ;;  %v743_v18 = vmul.f32 %v8429_v40, %v8119_v0  ;;  %962 = vst [vmem:[#allocation2 + $0x120] sm:$0xf] %v6718_v24  ;;  %v7477_v0 = vld [vmem:[%s10455_s3 + $0x10] sm:$0xff]  }
  0xd9   : > { %2964 = vmatmul.mubr.bf16.vlgmr.msra.gmra.mxu0 %v2176_v37  ;;  %v8446_v62 = vor.u32 %v2226_v25, %v2223_v2  ;;  %v1195_v57 = vshll.u32 %v6718_v24, 16  ;;  %v1199_v63 = vshrl.u32 %v6718_v24, 16  ;;  %v1553_v37 = vrot.slane %v6718_v24, 5  ;;  %3872 = vmatprep.subr.bf16.mxu1 %v8360_v32  ;;  %961 = vst [vmem:[#allocation2 + $0x114] sm:$0xf] %v6717_v1 }
  0xda   : > { %7185 = vmatpush3.bf16.msra.mxu0 %v7459_v52  ;;  %v8454_v53 = vor.u32 %v2235_v55, %v2232_v31  ;;  %v1185_v35 = vshll.u32 %v6717_v1, 16  ;;  %v1189_v2 = vshrl.u32 %v6717_v1, 16  ;;  %v1550_v25 = vrot.slane %v6717_v1, 5  ;;  %v7486_v1 = vld [vmem:[%s10455_s3 + $0xa8] sm:$0xff]  }
  0xdb   : > { %7186 = vmatprep.subr.bf16.mxu0 %v10656_v29  ;;  %v2228_v52 = vsel %vm2159_vm10, %v8367_v6, %v8446_v62  ;;  %v1197_v49 = vrot.slane %v1195_v57, 5  ;;  %v1201_v39 = vrot.slane %v1199_v63, 4  ;;  %v1555_v55 = vrot.slane %v1553_v37, 4  ;;  %3873 = vmatpush1.bf16.msra.mxu1 %v7477_v0  ;;  %v8492_v0 = vpop.permute.xlu0 %638 }
  0xdc   : > { %2971 = vmatprep.mubr.bf16.mxu0 %v2228_v52  ;;  %v2237_v31 = vsel %vm2159_vm10, %v8335_v48, %v8454_v53  ;;  %v1187_v24 = vrot.slane %v1185_v35, 5  ;;  %v1191_v7 = vrot.slane %v1189_v2, 4  ;;  %v1551_v19 = vsel %vm8176_vm8, %v8393_v36, %v1550_v25  ;;  %v7484_v36 = vld [vmem:[%s10455_s3 + $0x8] sm:$0xff]   ;;  %10667 = vst [vmem:[#allocation28_spill] sm:$0xff] %v8492_v0  ;;  %3874 = vmatprep.subr.bf16.mxu1 %v8360_v32 }
  0xdd   : > { %7105 = vmatmul.mubr.bf16.gmra.mxu1 %v2237_v31  ;;  %v1552_v6 = vrot.slane %v1550_v25, 4  ;;  %v1202_v52 = vor.u32 %v1201_v39, %v1197_v49  ;;  %1675 = vst [vmem:[#allocation2 + $0x110] sm:$0xf] %v1551_v19  ;;  %v6720_v60 = vpack.c.bf16 %v744_v42, %v744_v42  ;;  %v6719_v48 = vpack.c.bf16 %v743_v18, %v743_v18  ;;  %v8486_v42 = vld [vmem:[#allocation2 + $0x64] ss:$12 sps:$4 sm:$0xff]   ;;  %v8490_v25 = vpop.permute.xlu1 %643 }
  0xde   : > { %7187 = vmatpush3.bf16.msra.mxu0 %v7471_v56  ;;  %v10665_v57 = vshrl.u32 %v8419_v26, 16  ;;  %7108 = vmatprep.mubr.msk.bf16.mxu1 %vm7685_vm0, %v10656_v29  ;;  %v1188_v56 = vsel %vm8186_vm9, %v8411_v59, %v1187_v24  ;;  %v1192_v35 = vor.u32 %v1191_v7, %v1187_v24  ;;  %v8488_v2 = vld [vmem:[#allocation2 + $0x68] ss:$12 sps:$4 sm:$0xff]   ;;  %10666 = vst [vmem:[#allocation27_spill] sm:$0xff] %v8490_v25  ;;  %v7500_v18 = vld [vmem:[%s10455_s3 + $0xa0] sm:$0xff]   ;;  %v10481_v54 = vshrl.u32 %v8486_v42, 16 }
  0xdf   : > { %v1554_v19 = vsel %vm8176_vm8, %v1552_v6, %v1553_v37  ;;  %7188 = vmatprep.subr.bf16.mxu0 %v10656_v29  ;;  %v1203_v31 = vrot.slane %v1202_v52, 4  ;;  %1461 = vst [vmem:[#allocation2 + $0x10c] sm:$0xf] %v1188_v56  ;;  %964 = vst [vmem:[#allocation2 + $0x138] sm:$0xf] %v6720_v60  ;;  %v1215_v59 = vshll.u32 %v6720_v60, 16  ;;  %3875 = vmatpush1.bf16.msra.mxu1 %v7484_v36 }
  0xe0   : > { %v2214_v63 = vrot.slane %v10665_v57, 3  ;;  %1676 = vst [vmem:[#allocation2 + $0x11c] sm:$0xf] %v1554_v19  ;;  %v1219_v7 = vshrl.u32 %v6720_v60, 16  ;;  %v1559_v37 = vrot.slane %v6720_v60, 5  ;;  %v1193_v39 = vrot.slane %v1192_v35, 4  ;;  %3876 = vmatprep.subr.bf16.mxu1 %v8360_v32 }
  0xe1   : > { %963 = vst [vmem:[#allocation2 + $0x12c] sm:$0xf] %v6719_v48  ;;  %v1205_v24 = vshll.u32 %v6719_v48, 16  ;;  %v1209_v6 = vshrl.u32 %v6719_v48, 16  ;;  %v1556_v57 = vrot.slane %v6719_v48, 5  ;;  %v1217_v61 = vrot.slane %v1215_v59, 5 }
  0xe2   : > { %7189 = vmatpush3.bf16.msra.mxu0 %v7486_v1  ;;  %v1221_v40 = vrot.slane %v1219_v7, 4  ;;  %v10668_v52 = vshll.u32 %v8419_v26, 16  ;;  %v8504_v19 = vld [vmem:[%s10453_s1] ss:$0 sm:$0xff]  ;;  %v10669_v60 = vunpack.c.h.bf16 %v8261_v17  ;;  %v1198_v48 = vsel %vm8186_vm9, %v1193_v39, %v1197_v49 }
  0xe3   : > { %v7491_v1 = vld [vmem:[%s10455_s3] sm:$0xff]   ;;  %7190 = vmatprep.subr.bf16.mxu0 %v10656_v29  ;;  %v1207_v59 = vrot.slane %v1205_v24, 5  ;;  %v1211_v7 = vrot.slane %v1209_v6, 4  ;;  %1462 = vst [vmem:[#allocation2 + $0x118] sm:$0xf] %v1198_v48  ;;  %v8520_v17 = vrot.slane %v1559_v37, 4  ;;  %v8531_v6 = vpop.permute.xlu1 %653  ;;  %v8533_v48 = vpop.permute.xlu0 %648 }
  0xe4   : > { %v2217_v56 = vrot.slane %v10668_v52, 4  ;;  %v8509_v35 = vmul.f32 %v8504_v19, %v10669_v60  ;;  %v1557_v52 = vsel %vm8176_vm8, %v1555_v55, %v1556_v57  ;;  %v1558_v36 = vrot.slane %v1556_v57, 4  ;;  %10670 = vst [vmem:[#allocation29_spill] sm:$0xff] %v8531_v6  ;;  %10671 = vst [vmem:[#allocation30_spill] sm:$0xff] %v8533_v48  ;;  %3877 = vmatpush1.bf16.msra.mxu1 %v7491_v1 }
  0xe5   : > { %1677 = vst [vmem:[#allocation2 + $0x128] sm:$0xf] %v1557_v52  ;;  %v1208_v49 = vsel %vm8186_vm9, %v1203_v31, %v1207_v59  ;;  %v1212_v39 = vor.u32 %v1211_v7, %v1207_v59  ;;  %v10478_v24 = vshll.u32 %v8486_v42, 16  ;;  %v10477_v55 = vshrl.u32 %v8488_v2, 16  ;;  %v7496_v59 = vld [vmem:[%s10455_s3 + $0x78] sm:$0xff]   ;;  %3878 = vmatprep.subr.bf16.mxu1 %v8360_v32 }
  0xe6   : > { %v8522_v60 = vor.u32 %v2217_v56, %v2214_v63  ;;  %7191 = vmatpush3.bf16.msra.mxu0 %v7500_v18  ;;  %v1222_v57 = vor.u32 %v1221_v40, %v1217_v61  ;;  %1463 = vst [vmem:[#allocation2 + $0x124] sm:$0xf] %v1208_v49  ;;  %v1560_v63 = vsel %vm8176_vm8, %v1558_v36, %v1559_v37  ;;  %v2250_v31 = vrot.slane %v10481_v54, 3 }
  0xe7   : > { %7192 = vmatprep.subr.bf16.mxu0 %v10656_v29  ;;  %v1213_v18 = vrot.slane %v1212_v39, 4  ;;  %1678 = vst [vmem:[#allocation2 + $0x134] sm:$0xf] %v1560_v63  ;;  %v2253_v40 = vrot.slane %v10478_v24, 4  ;;  %v2259_v37 = vrot.slane %v10477_v55, 3  ;;  %v746_v1 = vmul.f32 %v8490_v25, %v8122_v8 }
  0xe8   : > { %v2219_v56 = vsel %vm2159_vm10, %v8413_v30, %v8522_v60  ;;  %v10479_v30 = vshll.u32 %v8488_v2, 16  ;;  %v745_v7 = vmul.f32 %v8492_v0, %v8125_v34  ;;  %v748_v52 = vmul.f32 %v8531_v6, %v8130_v3  ;;  %3879 = vmatpush2.bf16.msra.mxu1 %v7496_v59  ;;  %v8594_v6 = vld [vmem:[#allocation2 + $0x7c] ss:$12 sps:$4 sm:$0xff]   ;;  %v8618_v25 = vld [vmem:[#allocation2 + $0x80] ss:$12 sps:$4 sm:$0xff]  }
  0xe9   : > { %2972 = vmatmul.mubr.bf16.gmra.mxu0 %v2219_v56  ;;  %v747_v36 = vmul.f32 %v8533_v48, %v8133_v9  ;;  %v1218_v49 = vsel %vm8186_vm9, %v1213_v18, %v1217_v61  ;;  %v8562_v39 = vor.u32 %v2253_v40, %v2250_v31  ;;  %v10480_v56 = vshrl.u32 %v8525_v4, 16  ;;  %3880 = vmatprep.subr.bf16.mxu1 %v8360_v32  ;;  %v7505_v18 = vld [vmem:[%s10455_s3 + $0x70] sm:$0xff]  }
  0xea   : > { %v2262_v63 = vrot.slane %v10479_v30, 4  ;;  %1464 = vst [vmem:[#allocation2 + $0x130] sm:$0xf] %v1218_v49  ;;  %v6722_v8 = vpack.c.bf16 %v746_v1, %v746_v1  ;;  %v6721_v55 = vpack.c.bf16 %v745_v7, %v745_v7  ;;  %v8567_v34 = vpack.c.bf16 %v748_v52, %v748_v52 }
  0xeb   : > { %v8569_v24 = vpack.c.bf16 %v747_v36, %v747_v36  ;;  %v1223_v3 = vrot.slane %v1222_v57, 4  ;;  %v2255_v9 = vsel %vm2159_vm10, %v8446_v62, %v8562_v39  ;;  %v8578_v31 = vrot.slane %v10480_v56, 3 }
  0xec   : > { %v8574_v61 = vor.u32 %v2262_v63, %v2259_v37  ;;  %2979 = vmatprep.mubr.bf16.mxu0 %v2255_v9  ;;  %966 = vst [vmem:[#allocation2 + $0x150] sm:$0xf] %v6722_v8  ;;  %v1235_v59 = vshll.u32 %v6722_v8, 16  ;;  %v1239_v57 = vshrl.u32 %v6722_v8, 16  ;;  %v1565_v40 = vrot.slane %v6722_v8, 5  ;;  %3881 = vmatpush2.bf16.msra.mxu1 %v7505_v18  ;;  %v7512_v18 = vld [vmem:[%s10455_s3 + $0x98] sm:$0xff]  }
  0xed   : > { %965 = vst [vmem:[#allocation2 + $0x144] sm:$0xf] %v6721_v55  ;;  %v1225_v1 = vshll.u32 %v6721_v55, 16  ;;  %968 = vst [vmem:[#allocation2 + $0x168] sm:$0xf] %v8567_v34  ;;  %v1229_v37 = vshrl.u32 %v6721_v55, 16  ;;  %3882 = vmatprep.subr.bf16.mxu1 %v8360_v32  ;;  %7193 = vmatpush3.bf16.msra.mxu0 %v7512_v18 }
  0xee   : > { %967 = vst [vmem:[#allocation2 + $0x15c] sm:$0xf] %v8569_v24  ;;  %v2264_v62 = vsel %vm2159_vm10, %v8454_v53, %v8574_v61  ;;  %v1562_v7 = vrot.slane %v6721_v55, 5  ;;  %v1237_v36 = vrot.slane %v1235_v59, 5  ;;  %v1241_v49 = vrot.slane %v1239_v57, 4  ;;  %v8598_v53 = vpop.permute.xlu1 %663  ;;  %v7511_v55 = vld [vmem:[%s10455_s3 + $0x68] sm:$0xff]   ;;  %7194 = vmatprep.subr.bf16.mxu0 %v10656_v29 }
  0xef   : > { %7109 = vmatmul.mubr.bf16.gmra.mxu1 %v2264_v62  ;;  %v1227_v63 = vrot.slane %v1225_v1, 5  ;;  %v1255_v8 = vshll.u32 %v8567_v34, 16  ;;  %v1567_v9 = vrot.slane %v1565_v40, 4  ;;  %v1231_v30 = vrot.slane %v1229_v37, 4  ;;  %10672 = vst [vmem:[#allocation31_spill] sm:$0xff] %v8598_v53  ;;  %v8607_v62 = vpop.permute.xlu0 %658 }
  0xf0   : > { %v1563_v56 = vsel %vm8176_vm8, %v8520_v17, %v1562_v7  ;;  %v1564_v54 = vrot.slane %v1562_v7, 4  ;;  %7112 = vmatprep.mubr.msk.bf16.mxu1 %vm7685_vm0, %v10656_v29  ;;  %v1242_v59 = vor.u32 %v1241_v49, %v1237_v36  ;;  %v1259_v17 = vshrl.u32 %v8567_v34, 16  ;;  %10673 = vst [vmem:[#allocation32_spill] sm:$0xff] %v8607_v62  ;;  %3883 = vmatpush2.bf16.msra.mxu1 %v7511_v55 }
  0xf1   : > { %v1228_v57 = vsel %vm8186_vm9, %v1223_v3, %v1227_v63  ;;  %1679 = vst [vmem:[#allocation2 + $0x140] sm:$0xf] %v1563_v56  ;;  %v1571_v1 = vrot.slane %v8567_v34, 5  ;;  %v1232_v37 = vor.u32 %v1231_v30, %v1227_v63  ;;  %v1245_v3 = vshll.u32 %v8569_v24, 16  ;;  %3884 = vmatprep.subr.bf16.mxu1 %v8360_v32 }
  0xf2   : > { %1465 = vst [vmem:[#allocation2 + $0x13c] sm:$0xf] %v1228_v57  ;;  %v1566_v7 = vsel %vm8176_vm8, %v1564_v54, %v1565_v40  ;;  %v1249_v56 = vshrl.u32 %v8569_v24, 16  ;;  %v1243_v49 = vrot.slane %v1242_v59, 4  ;;  %v1257_v34 = vrot.slane %v1255_v8, 5  ;;  %v7517_v59 = vld [vmem:[%s10455_s3 + $0x60] sm:$0xff]  }
  0xf3   : > { %1680 = vst [vmem:[#allocation2 + $0x14c] sm:$0xf] %v1566_v7  ;;  %v1261_v52 = vrot.slane %v1259_v17, 4  ;;  %v1568_v48 = vrot.slane %v8569_v24, 5  ;;  %v1233_v0 = vrot.slane %v1232_v37, 4  ;;  %v1247_v27 = vrot.slane %v1245_v3, 5 }
  0xf4   : > { %v1251_v30 = vrot.slane %v1249_v56, 4  ;;  %v10674_v63 = vshll.u32 %v8525_v4, 16  ;;  %v8623_v54 = vrot.slane %v1571_v1, 4  ;;  %v10490_v24 = vshrl.u32 %v8594_v6, 16  ;;  %3885 = vmatpush2.bf16.msra.mxu1 %v7517_v59 }
  0xf5   : > { %v1569_v40 = vsel %vm8176_vm8, %v1567_v9, %v1568_v48  ;;  %v1570_v8 = vrot.slane %v1568_v48, 4  ;;  %v1238_v17 = vsel %vm8186_vm9, %v1233_v0, %v1237_v36  ;;  %v1248_v55 = vsel %vm8186_vm9, %v1243_v49, %v1247_v27  ;;  %v8639_v48 = vpop.permute.xlu1 %673  ;;  %v8646_v36 = vpop.permute.xlu0 %668  ;;  %3886 = vmatprep.subr.bf16.mxu1 %v8360_v32 }
  0xf6   : > { %v2244_v57 = vrot.slane %v10674_v63, 4  ;;  %v1252_v18 = vor.u32 %v1251_v30, %v1247_v27  ;;  %1681 = vst [vmem:[#allocation2 + $0x158] sm:$0xf] %v1569_v40  ;;  %10675 = vst [vmem:[#allocation33_spill] sm:$0xff] %v8639_v48  ;;  %v1262_v9 = vor.u32 %v1261_v52, %v1257_v34  ;;  %v2277_v3 = vrot.slane %v10490_v24, 3 }
  0xf7   : > { %1466 = vst [vmem:[#allocation2 + $0x148] sm:$0xf] %v1238_v17  ;;  %1467 = vst [vmem:[#allocation2 + $0x154] sm:$0xf] %v1248_v55  ;;  %v1572_v7 = vsel %vm8176_vm8, %v1570_v8, %v1571_v1  ;;  %v10489_v0 = vshll.u32 %v8594_v6, 16  ;;  %v10488_v52 = vshrl.u32 %v8618_v25, 16  ;;  %v750_v30 = vmul.f32 %v8598_v53, %v8140_v12 }
  0xf8   : > { %v8637_v37 = vor.u32 %v2244_v57, %v8578_v31  ;;  %10676 = vst [vmem:[#allocation34_spill] sm:$0xff] %v8646_v36  ;;  %v8648_v27 = vld [vmem:[#allocation2 + $0x78] ss:$12 sps:$4 sm:$0xff]   ;;  %v1253_v56 = vrot.slane %v1252_v18, 4  ;;  %1682 = vst [vmem:[#allocation2 + $0x164] sm:$0xf] %v1572_v7  ;;  %v749_v63 = vmul.f32 %v8607_v62, %v8143_v13  ;;  %v752_v57 = vmul.f32 %v8639_v48, %v8146_v14 }
  0xf9   : > { %v10487_v49 = vshll.u32 %v8618_v25, 16  ;;  %v2280_v1 = vrot.slane %v10489_v0, 4  ;;  %v2286_v40 = vrot.slane %v10488_v52, 3  ;;  %v751_v12 = vmul.f32 %v8646_v36, %v8149_v15 }
  0xfa   : > { %v2246_v31 = vsel %vm2159_vm10, %v8522_v60, %v8637_v37  ;;  %v1258_v60 = vsel %vm8186_vm9, %v1253_v56, %v1257_v34  ;;  %v6726_v13 = vpack.c.bf16 %v750_v30, %v750_v30  ;;  %v6725_v17 = vpack.c.bf16 %v749_v63, %v749_v63 }
  0xfb   : > { %2980 = vmatmul.mubr.bf16.gmra.mxu0 %v2246_v31  ;;  %v2289_v8 = vrot.slane %v10487_v49, 4  ;;  %1468 = vst [vmem:[#allocation2 + $0x160] sm:$0xf] %v1258_v60  ;;  %v8672_v59 = vor.u32 %v2280_v1, %v2277_v3  ;;  %v8674_v14 = vpack.c.bf16 %v752_v57, %v752_v57  ;;  %v1263_v55 = vrot.slane %v1262_v9, 4 }
  0xfc   : > { %v6727_v34 = vpack.c.bf16 %v751_v12, %v751_v12  ;;  %v10495_v7 = vshrl.u32 %v8648_v27, 16  ;;  %970 = vst [vmem:[#allocation2 + $0x180] sm:$0xf] %v6726_v13  ;;  %v1275_v31 = vshll.u32 %v6726_v13, 16  ;;  %v1279_v15 = vshrl.u32 %v6726_v13, 16 }
  0xfd   : > { %v8676_v18 = vor.u32 %v2289_v8, %v2286_v40  ;;  %v2282_v56 = vsel %vm2159_vm10, %v8562_v39, %v8672_v59  ;;  %v1577_v60 = vrot.slane %v6726_v13, 5  ;;  %969 = vst [vmem:[#allocation2 + $0x174] sm:$0xf] %v6725_v17  ;;  %972 = vst [vmem:[#allocation2 + $0x198] sm:$0xf] %v8674_v14  ;;  %v1265_v3 = vshll.u32 %v6725_v17, 16 }
  0xfe   : > { %2987 = vmatprep.mubr.bf16.mxu0 %v2282_v56  ;;  %v1269_v1 = vshrl.u32 %v6725_v17, 16  ;;  %v1574_v30 = vrot.slane %v6725_v17, 5  ;;  %971 = vst [vmem:[#allocation2 + $0x18c] sm:$0xf] %v6727_v34  ;;  %v1277_v63 = vrot.slane %v1275_v31, 5  ;;  %v1281_v57 = vrot.slane %v1279_v15, 4 }
  0xff   : > { %v2291_v9 = vsel %vm2159_vm10, %v8574_v61, %v8676_v18  ;;  %v1295_v39 = vshll.u32 %v8674_v14, 16  ;;  %v10491_v40 = vshll.u32 %v8648_v27, 16  ;;  %v1267_v8 = vrot.slane %v1265_v3, 5 }
 0x100   : > { %7113 = vmatmul.mubr.bf16.gmra.mxu1 %v2291_v9  ;;  %v1271_v12 = vrot.slane %v1269_v1, 4  ;;  %v1575_v13 = vsel %vm8176_vm8, %v8623_v54, %v1574_v30  ;;  %v1576_v56 = vrot.slane %v1574_v30, 4  ;;  %v1282_v61 = vor.u32 %v1281_v57, %v1277_v63  ;;  %v8695_v9 = vld [vmem:[#allocation2 + $0x94] ss:$12 sps:$4 sm:$0xff]  }
 0x101   : > { %7116 = vmatprep.mubr.msk.bf16.mxu1 %vm7685_vm0, %v10656_v29  ;;  %v1579_v17 = vrot.slane %v1577_v60, 4  ;;  %1683 = vst [vmem:[#allocation2 + $0x170] sm:$0xf] %v1575_v13  ;;  %v1299_v31 = vshrl.u32 %v8674_v14, 16  ;;  %v1583_v15 = vrot.slane %v8674_v14, 5  ;;  %v1268_v3 = vsel %vm8186_vm9, %v1263_v55, %v1267_v8  ;;  %v7525_v14 = vld [vmem:[%s10455_s3 + $0x58] sm:$0xff]  }
 0x102   : > { %v1272_v1 = vor.u32 %v1271_v12, %v1267_v8  ;;  %v1578_v54 = vsel %vm8176_vm8, %v1576_v56, %v1577_v60  ;;  %v1285_v30 = vshll.u32 %v6727_v34, 16  ;;  %v1283_v49 = vrot.slane %v1282_v61, 4  ;;  %1469 = vst [vmem:[#allocation2 + $0x16c] sm:$0xf] %v1268_v3  ;;  %v8710_v60 = vld [vmem:[#allocation2 + $0x98] ss:$12 sps:$4 sm:$0xff]   ;;  %3887 = vmatpush2.bf16.msra.mxu1 %v7525_v14 }
 0x103   : > { %1684 = vst [vmem:[#allocation2 + $0x17c] sm:$0xf] %v1578_v54  ;;  %v8701_v57 = vrot.slane %v1295_v39, 5  ;;  %v8703_v13 = vrot.slane %v1299_v31, 4  ;;  %v1289_v52 = vshrl.u32 %v6727_v34, 16  ;;  %v1580_v55 = vrot.slane %v6727_v34, 5  ;;  %3888 = vmatprep.subr.bf16.mxu1 %v8360_v32 }
 0x104   : > { %v1273_v0 = vrot.slane %v1272_v1, 4  ;;  %v1287_v24 = vrot.slane %v1285_v30, 5  ;;  %v2268_v8 = vrot.slane %v10495_v7, 3  ;;  %v8712_v12 = vrot.slane %v1583_v15, 4  ;;  %v7527_v31 = vld [vmem:[%s10455_s3 + $0x90] sm:$0xff]  }
 0x105   : > { %v1291_v56 = vrot.slane %v1289_v52, 4  ;;  %v2271_v39 = vrot.slane %v10491_v40, 4  ;;  %v10492_v61 = vshrl.u32 %v8695_v9, 16  ;;  %v1581_v52 = vsel %vm8176_vm8, %v1579_v17, %v1580_v55  ;;  %v8726_v54 = vld [vmem:[#allocation2 + $0x90] ss:$12 sps:$4 sm:$0xff]   ;;  %7195 = vmatpush3.bf16.msra.mxu0 %v7527_v31  ;;  %v8754_v31 = vpop.permute.xlu0 %678 }
 0x106   : > { %v1278_v34 = vsel %vm8186_vm9, %v1273_v0, %v1277_v63  ;;  %v1288_v3 = vsel %vm8186_vm9, %v1283_v49, %v1287_v24  ;;  %v1582_v1 = vrot.slane %v1580_v55, 4  ;;  %v1302_v30 = vor.u32 %v8703_v13, %v8701_v57  ;;  %1685 = vst [vmem:[#allocation2 + $0x188] sm:$0xf] %v1581_v52  ;;  %v8735_v49 = vpop.permute.xlu1 %683  ;;  %v6975_v63 = vld [vmem:[%s7981_s10 + $0x88] sm:$0xff]   ;;  %7196 = vmatprep.subr.bf16.mxu0 %v10656_v29 }
 0x107   : > { %1470 = vst [vmem:[#allocation2 + $0x178] sm:$0xf] %v1278_v34  ;;  %v1292_v14 = vor.u32 %v1291_v56, %v1287_v24  ;;  %1471 = vst [vmem:[#allocation2 + $0x184] sm:$0xf] %v1288_v3  ;;  %v8731_v40 = vor.u32 %v2271_v39, %v2268_v8  ;;  %v2304_v0 = vrot.slane %v10492_v61, 3  ;;  %v10493_v55 = vshll.u32 %v8695_v9, 16 }
 0x108   : > { %10677 = vst [vmem:[#allocation35_spill] sm:$0xff] %v8735_v49  ;;  %v1584_v17 = vsel %vm8176_vm8, %v1582_v1, %v1583_v15  ;;  %v10494_v13 = vshrl.u32 %v8710_v60, 16  ;;  %v10496_v24 = vshll.u32 %v8710_v60, 16  ;;  %v8750_v39 = vld [vmem:[%s10454_s2] ss:$0 sm:$0xff]  ;;  %10678 = vst [vmem:[#allocation36_spill] sm:$0xff] %v8754_v31 }
 0x109   : > { %v1293_v8 = vrot.slane %v1292_v14, 4  ;;  %1686 = vst [vmem:[#allocation2 + $0x194] sm:$0xf] %v1584_v17  ;;  %v2273_v56 = vsel %vm2159_vm10, %v8637_v37, %v8731_v40  ;;  %v508_v15 = vadd.f32 %v8750_v39, %v8509_v35  ;;  %v7658_v34 = vld [vmem:[%s7981_s10 + $0x80] sm:$0xff]   ;;  %v2307_v52 = vrot.slane %v10493_v55, 4 }
 0x10a   : > { %v6845_v3 = vunpack.c.l.bf16 %v7658_v34  ;;  %2988 = vmatmul.mubr.bf16.gmra.mxu0 %v2273_v56  ;;  %v2313_v1 = vrot.slane %v10494_v13, 3  ;;  %v2316_v37 = vrot.slane %v10496_v24, 4  ;;  %v6850_v14 = vunpack.c.h.bf16 %v6975_v63  ;;  %v8777_v36 = vpop.permute.xlu1 %693 }
 0x10b   : > { %v1298_v17 = vsel %vm8186_vm9, %v1293_v8, %v8701_v57  ;;  %v754_v35 = vmul.f32 %v8735_v49, %v508_v15  ;;  %v6849_v34 = vunpack.c.l.bf16 %v6975_v63  ;;  %v8768_v56 = vor.u32 %v2307_v52, %v2304_v0  ;;  %10679 = vst [vmem:[#allocation37_spill] sm:$0xff] %v8777_v36  ;;  %v8781_v63 = vld [vmem:[#allocation2 + $0xac] ss:$12 sps:$4 sm:$0xff]   ;;  %v7532_v0 = vld [vmem:[%s10455_s3 + $0x50] sm:$0xff]  }
 0x10c   : > { %v459_v61 = vmul.f32 %v8504_v19, %v6845_v3  ;;  %1472 = vst [vmem:[#allocation2 + $0x190] sm:$0xf] %v1298_v17  ;;  %v8770_v55 = vor.u32 %v2316_v37, %v2313_v1  ;;  %v462_v13 = vmul.f32 %v8504_v19, %v6850_v14  ;;  %v10499_v7 = vshrl.u32 %v8726_v54, 16  ;;  %v8800_v17 = vpop.permute.xlu0 %688  ;;  %3889 = vmatpush2.bf16.msra.mxu1 %v7532_v0 }
 0x10d   : > { %v8774_v24 = vpack.c.bf16 %v754_v35, %v754_v35  ;;  %v461_v57 = vmul.f32 %v8504_v19, %v6849_v34  ;;  %v10500_v8 = vshll.u32 %v8726_v54, 16  ;;  %v2309_v15 = vsel %vm2159_vm10, %v8672_v59, %v8768_v56  ;;  %10680 = vst [vmem:[#allocation38_spill] sm:$0xff] %v8800_v17  ;;  %3890 = vmatprep.subr.bf16.mxu1 %v8360_v32 }
 0x10e   : > { %v507_v48 = vadd.f32 %v8750_v39, %v459_v61  ;;  %v2318_v61 = vsel %vm2159_vm10, %v8676_v18, %v8770_v55  ;;  %v510_v3 = vadd.f32 %v8750_v39, %v462_v13  ;;  %v2295_v52 = vrot.slane %v10499_v7, 3  ;;  %2995 = vmatprep.mubr.bf16.mxu0 %v2309_v15  ;;  %v9170_v41 = vld [vmem:[#allocation2 + $0x16c] ss:$12 sps:$4 sm:$0xff]  }
 0x10f   : > { %7117 = vmatmul.mubr.bf16.gmra.mxu1 %v2318_v61  ;;  %974 = vst [vmem:[#allocation2 + $0x1b0] sm:$0xf] %v8774_v24  ;;  %v1315_v1 = vshll.u32 %v8774_v24, 16  ;;  %v1319_v37 = vshrl.u32 %v8774_v24, 16  ;;  %v1589_v14 = vrot.slane %v8774_v24, 5  ;;  %v1303_v18 = vrot.slane %v1302_v30, 4 }
 0x110   : > { %v753_v59 = vmul.f32 %v8754_v31, %v507_v48  ;;  %v756_v13 = vmul.f32 %v8777_v36, %v510_v3  ;;  %v509_v35 = vadd.f32 %v8750_v39, %v461_v57  ;;  %v2298_v34 = vrot.slane %v10500_v8, 4  ;;  %7120 = vmatprep.mubr.msk.bf16.mxu1 %vm7685_vm0, %v10656_v29  ;;  %10704 = vst [vmem:[#allocation52_spill] sm:$0xff] %v9170_v41 }
 0x111   : > { %v8808_v15 = vrot.slane %v1315_v1, 5  ;;  %v1321_v61 = vrot.slane %v1319_v37, 4  ;;  %v1591_v30 = vrot.slane %v1589_v14, 4  ;;  %v10564_v10 = vshrl.u32 %v9170_v41, 16 }
 0x112   : > { %v6729_v24 = vpack.c.bf16 %v753_v59, %v753_v59  ;;  %v8812_v7 = vpack.c.bf16 %v756_v13, %v756_v13  ;;  %v755_v57 = vmul.f32 %v8800_v17, %v509_v35  ;;  %v8815_v3 = vor.u32 %v2298_v34, %v2295_v52 }
 0x113   : > { %v1322_v8 = vor.u32 %v1321_v61, %v8808_v15  ;;  %v10681_v35 = vshrl.u32 %v8781_v63, 16  ;;  %v7536_v61 = vld [vmem:[%s10455_s3 + $0x48] sm:$0xff]  }
 0x114   : > { %973 = vst [vmem:[#allocation2 + $0x1a4] sm:$0xf] %v6729_v24  ;;  %v1305_v36 = vshll.u32 %v6729_v24, 16  ;;  %v1309_v0 = vshrl.u32 %v6729_v24, 16  ;;  %v1586_v1 = vrot.slane %v6729_v24, 5  ;;  %v1335_v37 = vshll.u32 %v8812_v7, 16  ;;  %3891 = vmatpush2.bf16.msra.mxu1 %v7536_v61 }
 0x115   : > { %976 = vst [vmem:[#allocation2 + $0x1c8] sm:$0xf] %v8812_v7  ;;  %v1339_v59 = vshrl.u32 %v8812_v7, 16  ;;  %v1595_v32 = vrot.slane %v8812_v7, 5  ;;  %v6731_v13 = vpack.c.bf16 %v755_v57, %v755_v57  ;;  %v2331_v34 = vrot.slane %v10681_v35, 3 }
 0x116   : > { %v1307_v48 = vrot.slane %v1305_v36, 5  ;;  %v1311_v49 = vrot.slane %v1309_v0, 4  ;;  %v1587_v52 = vsel %vm8176_vm8, %v8712_v12, %v1586_v1  ;;  %v1323_v24 = vrot.slane %v1322_v8, 4  ;;  %v8834_v36 = vld [vmem:[#allocation2 + $0xb0] ss:$12 sps:$4 sm:$0xff]  }
 0x117   : > { %v1588_v17 = vrot.slane %v1586_v1, 4  ;;  %1687 = vst [vmem:[#allocation2 + $0x1a0] sm:$0xf] %v1587_v52  ;;  %v8830_v31 = vrot.slane %v1335_v37, 5  ;;  %v8832_v7 = vrot.slane %v1339_v59, 4  ;;  %v1325_v0 = vshll.u32 %v6731_v13, 16 }
 0x118   : > { %975 = vst [vmem:[#allocation2 + $0x1bc] sm:$0xf] %v6731_v13  ;;  %v1308_v12 = vsel %vm8186_vm9, %v1303_v18, %v1307_v48  ;;  %v1312_v57 = vor.u32 %v1311_v49, %v1307_v48  ;;  %v1329_v35 = vshrl.u32 %v6731_v13, 16  ;;  %v8840_v1 = vrot.slane %v1595_v32, 4  ;;  %v8845_v52 = vld [vmem:[#allocation2] sm:$0xff] }
 0x119   : > { %1473 = vst [vmem:[#allocation2 + $0x19c] sm:$0xf] %v1308_v12  ;;  %v1590_v8 = vsel %vm8176_vm8, %v1588_v17, %v1589_v14  ;;  %v1592_v37 = vrot.slane %v6731_v13, 5  ;;  %v2300_v59 = vsel %vm2159_vm10, %v8731_v40, %v8815_v3  ;;  %3892 = vmatprep.subr.bf16.mxu1 %v8845_v52  ;;  %v1327_v18 = vrot.slane %v1325_v0, 5  ;;  %v6976_v14 = vld [vmem:[%s7981_s10 + $0x90] sm:$0xff]   ;;  %v7538_v17 = vld [vmem:[%s10455_s3 + $0x88] sm:$0xff]  }
 0x11a   : > { %v1313_v49 = vrot.slane %v1312_v57, 4  ;;  %1688 = vst [vmem:[#allocation2 + $0x1ac] sm:$0xf] %v1590_v8  ;;  %v1331_v48 = vrot.slane %v1329_v35, 4  ;;  %2996 = vmatmul.mubr.bf16.gmra.mxu0 %v2300_v59  ;;  %v1342_v40 = vor.u32 %v8832_v7, %v8830_v31  ;;  %v8858_v8 = vpop.permute.xlu1 %703  ;;  %v6977_v0 = vld [vmem:[%s7981_s10 + $0x98] sm:$0xff]   ;;  %v10683_v7 = vshll.u32 %v8781_v63, 16 }
 0x11b   : > { %v1593_v13 = vsel %vm8176_vm8, %v1591_v30, %v1592_v37  ;;  %v1594_v12 = vrot.slane %v1592_v37, 4  ;;  %10682 = vst [vmem:[#allocation39_spill] sm:$0xff] %v8858_v8  ;;  %v8861_v35 = vld [vmem:[#allocation2 + $0xa8] ss:$12 sps:$4 sm:$0xff]   ;;  %v1328_v61 = vsel %vm8186_vm9, %v1323_v24, %v1327_v18  ;;  %v8870_v37 = vpop.permute.xlu0 %698  ;;  %7197 = vmatpush3.bf16.msra.mxu0 %v7538_v17  ;;  %v10685_v62 = vshrl.u32 %v8834_v36, 16 }
 0x11c   : > { %v1318_v59 = vsel %vm8186_vm9, %v1313_v49, %v8808_v15  ;;  %v1332_v53 = vor.u32 %v1331_v48, %v1327_v18  ;;  %1689 = vst [vmem:[#allocation2 + $0x1b8] sm:$0xf] %v1593_v13  ;;  %v2334_v30 = vrot.slane %v10683_v7, 4  ;;  %10684 = vst [vmem:[#allocation40_spill] sm:$0xff] %v8870_v37  ;;  %v10508_v15 = vshll.u32 %v8834_v36, 16  ;;  %7198 = vmatprep.subr.bf16.mxu0 %v10656_v29 }
 0x11d   : > { %1474 = vst [vmem:[#allocation2 + $0x1a8] sm:$0xf] %v1318_v59  ;;  %1475 = vst [vmem:[#allocation2 + $0x1b4] sm:$0xf] %v1328_v61  ;;  %v1596_v57 = vsel %vm8176_vm8, %v1594_v12, %v1595_v32  ;;  %v2340_v5 = vrot.slane %v10685_v62, 3  ;;  %v6854_v49 = vunpack.c.h.bf16 %v6976_v14  ;;  %v6853_v17 = vunpack.c.l.bf16 %v6976_v14 }
 0x11e   : > { %v8877_v24 = vld [vmem:[#allocation2 + $0xc4] ss:$12 sps:$4 sm:$0xff]   ;;  %v1333_v18 = vrot.slane %v1332_v53, 4  ;;  %1690 = vst [vmem:[#allocation2 + $0x1c4] sm:$0xf] %v1596_v57  ;;  %v8880_v48 = vor.u32 %v2334_v30, %v2331_v34  ;;  %v6858_v13 = vunpack.c.h.bf16 %v6977_v0  ;;  %v2343_v61 = vrot.slane %v10508_v15, 4  ;;  %v8897_v7 = vpop.permute.xlu1 %713 }
 0x11f   : > { %v464_v32 = vmul.f32 %v8504_v19, %v6854_v49  ;;  %v6857_v12 = vunpack.c.l.bf16 %v6977_v0  ;;  %v10509_v62 = vshrl.u32 %v8861_v35, 16  ;;  %v463_v34 = vmul.f32 %v8504_v19, %v6853_v17  ;;  %10686 = vst [vmem:[#allocation41_spill] sm:$0xff] %v8897_v7 }
 0x120   : > { %v1338_v59 = vsel %vm8186_vm9, %v1333_v18, %v8830_v31  ;;  %v2336_v53 = vsel %vm2159_vm10, %v8768_v56, %v8880_v48  ;;  %v466_v14 = vmul.f32 %v8504_v19, %v6858_v13  ;;  %v8894_v57 = vor.u32 %v2343_v61, %v2340_v5  ;;  %v8904_v18 = vpop.permute.xlu0 %708  ;;  %v8908_v13 = vld [vmem:[#allocation2 + $0xc8] ss:$12 sps:$4 sm:$0xff]  }
 0x121   : > { %1476 = vst [vmem:[#allocation2 + $0x1c0] sm:$0xf] %v1338_v59  ;;  %3003 = vmatprep.mubr.bf16.mxu0 %v2336_v53  ;;  %v512_v0 = vadd.f32 %v8750_v39, %v464_v32  ;;  %v465_v30 = vmul.f32 %v8504_v19, %v6857_v12  ;;  %v2322_v31 = vrot.slane %v10509_v62, 3  ;;  %v511_v49 = vadd.f32 %v8750_v39, %v463_v34  ;;  %v7543_v59 = vld [vmem:[%s10455_s3 + $0x40] sm:$0xff]  }
 0x122   : > { %v514_v56 = vadd.f32 %v8750_v39, %v466_v14  ;;  %10687 = vst [vmem:[#allocation42_spill] sm:$0xff] %v8904_v18  ;;  %v10511_v17 = vshll.u32 %v8861_v35, 16  ;;  %v10510_v5 = vshrl.u32 %v8877_v24, 16  ;;  %v2345_v61 = vsel %vm2159_vm10, %v8770_v55, %v8894_v57  ;;  %3893 = vmatpush2.bf16.msra.mxu1 %v7543_v59 }
 0x123   : > { %v758_v19 = vmul.f32 %v8858_v8, %v512_v0  ;;  %v513_v32 = vadd.f32 %v8750_v39, %v465_v30  ;;  %v10512_v12 = vshll.u32 %v8877_v24, 16  ;;  %v1343_v53 = vrot.slane %v1342_v40, 4  ;;  %7121 = vmatmul.mubr.bf16.gmra.mxu1 %v2345_v61  ;;  %5370 = vmatprep.subr.bf16.mxu1 %v8845_v52 }
 0x124   : > { %v757_v34 = vmul.f32 %v8870_v37, %v511_v49  ;;  %v760_v14 = vmul.f32 %v8897_v7, %v514_v56  ;;  %v2325_v15 = vrot.slane %v10511_v17, 4  ;;  %v2358_v30 = vrot.slane %v10510_v5, 3  ;;  %7124 = vmatprep.mubr.msk.bf16.mxu1 %vm7685_vm0, %v10656_v29 }
 0x125   : > { %v6734_v55 = vpack.c.bf16 %v758_v19, %v758_v19  ;;  %v759_v0 = vmul.f32 %v8904_v18, %v513_v32  ;;  %v2361_v62 = vrot.slane %v10512_v12, 4 }
 0x126   : > { %v6733_v40 = vpack.c.bf16 %v757_v34, %v757_v34  ;;  %v8930_v49 = vpack.c.bf16 %v760_v14, %v760_v14  ;;  %v8932_v56 = vor.u32 %v2325_v15, %v2322_v31 }
 0x127   : > { %978 = vst [vmem:[#allocation2 + $0x1e0] sm:$0xf] %v6734_v55  ;;  %v1355_v19 = vshll.u32 %v6734_v55, 16  ;;  %v1359_v32 = vshrl.u32 %v6734_v55, 16  ;;  %v1601_v5 = vrot.slane %v6734_v55, 5  ;;  %v6735_v17 = vpack.c.bf16 %v759_v0, %v759_v0 }
 0x128   : > { %977 = vst [vmem:[#allocation2 + $0x1d4] sm:$0xf] %v6733_v40  ;;  %v1345_v12 = vshll.u32 %v6733_v40, 16  ;;  %v1349_v7 = vshrl.u32 %v6733_v40, 16  ;;  %v1598_v18 = vrot.slane %v6733_v40, 5  ;;  %v1375_v59 = vshll.u32 %v8930_v49, 16 }
 0x129   : > { %980 = vst [vmem:[#allocation2 + $0x1f8] sm:$0xf] %v8930_v49  ;;  %v1357_v34 = vrot.slane %v1355_v19, 5  ;;  %v1361_v15 = vrot.slane %v1359_v32, 4  ;;  %v1379_v31 = vshrl.u32 %v8930_v49, 16  ;;  %v1603_v8 = vrot.slane %v1601_v5, 4 }
 0x12a   : > { %979 = vst [vmem:[#allocation2 + $0x1ec] sm:$0xf] %v6735_v17  ;;  %v1347_v14 = vrot.slane %v1345_v12, 5  ;;  %v1351_v61 = vrot.slane %v1349_v7, 4  ;;  %v1599_v55 = vsel %vm8176_vm8, %v8840_v1, %v1598_v18  ;;  %v1600_v0 = vrot.slane %v1598_v18, 4 }
 0x12b   : > { %v1362_v40 = vor.u32 %v1361_v15, %v1357_v34  ;;  %1691 = vst [vmem:[#allocation2 + $0x1d0] sm:$0xf] %v1599_v55  ;;  %v1377_v37 = vrot.slane %v1375_v59, 5  ;;  %v1381_v28 = vrot.slane %v1379_v31, 4  ;;  %v1365_v12 = vshll.u32 %v6735_v17, 16 }
 0x12c   : > { %v1348_v19 = vsel %vm8186_vm9, %v1343_v53, %v1347_v14  ;;  %v1352_v32 = vor.u32 %v1351_v61, %v1347_v14  ;;  %v1602_v52 = vsel %vm8176_vm8, %v1600_v0, %v1601_v5  ;;  %v1607_v1 = vrot.slane %v8930_v49, 5  ;;  %v378_v15 = vld [vmem:[%s7981_s10 + $0xa0] sm:$0x3]  ;;  %v8958_v14 = vld [vmem:[#allocation2 + $0xdc] ss:$12 sps:$4 sm:$0xff]  }
 0x12d   : > { %v1363_v7 = vrot.slane %v1362_v40, 4  ;;  %1477 = vst [vmem:[#allocation2 + $0x1cc] sm:$0xf] %v1348_v19  ;;  %1692 = vst [vmem:[#allocation2 + $0x1dc] sm:$0xf] %v1602_v52  ;;  %v1382_v33 = vor.u32 %v1381_v28, %v1377_v37  ;;  %v1369_v18 = vshrl.u32 %v6735_v17, 16  ;;  %v2327_v53 = vsel %vm2159_vm10, %v8815_v3, %v8932_v56 }
 0x12e   : > { %v1353_v16 = vrot.slane %v1352_v32, 4  ;;  %v1367_v55 = vrot.slane %v1365_v12, 5  ;;  %v1604_v59 = vrot.slane %v6735_v17, 5  ;;  %v8952_v61 = vld [vmem:[#allocation2 + $0xc0] ss:$12 sps:$4 sm:$0xff]   ;;  %3004 = vmatmul.mubr.bf16.gmra.mxu0 %v2327_v53  ;;  %v8954_v5 = vor.u32 %v2361_v62, %v2358_v30 }
 0x12f   : > { %v1371_v31 = vrot.slane %v1369_v18, 4  ;;  %v10688_v52 = vshrl.u32 %v8908_v13, 16  ;;  %v7547_v49 = vld [vmem:[%s10455_s3 + $0x80] sm:$0xff]   ;;  %v8971_v40 = vrot.slane %v1607_v1, 4  ;;  %v419_v18 = vunpack.c.l.bf16 %v378_v15 }
 0x130   : > { %v1358_v17 = vsel %vm8186_vm9, %v1353_v16, %v1357_v34  ;;  %v1368_v3 = vsel %vm8186_vm9, %v1363_v7, %v1367_v55  ;;  %v1605_v0 = vsel %vm8176_vm8, %v1603_v8, %v1604_v59  ;;  %v1606_v62 = vrot.slane %v1604_v59, 4  ;;  %v8969_v30 = vld [vmem:[#allocation2 + $0xe0] ss:$12 sps:$4 sm:$0xff]   ;;  %v8978_v12 = vld [vmem:[#allocation2 + $0xd8] ss:$12 sps:$4 sm:$0xff]   ;;  %7199 = vmatpush3.bf16.msra.mxu0 %v7547_v49 }
 0x131   : > { %v2367_v28 = vrot.slane %v10688_v52, 3  ;;  %1478 = vst [vmem:[#allocation2 + $0x1d8] sm:$0xf] %v1358_v17  ;;  %v1372_v19 = vor.u32 %v1371_v31, %v1367_v55  ;;  %1479 = vst [vmem:[#allocation2 + $0x1e4] sm:$0xf] %v1368_v3  ;;  %v2363_v32 = vsel %vm2159_vm10, %v8880_v48, %v8954_v5  ;;  %v10689_v16 = vshll.u32 %v8908_v13, 16  ;;  %7284 = vmatprep.subr.bf16.mxu0 %v10656_v29 }
 0x132   : > { %1693 = vst [vmem:[#allocation2 + $0x1e8] sm:$0xf] %v1605_v0  ;;  %v8980_v8 = vrot.slane %v1382_v33, 4  ;;  %v1608_v7 = vsel %vm8176_vm8, %v1606_v62, %v1607_v1  ;;  %3011 = vmatprep.mubr.bf16.mxu0 %v2363_v32  ;;  %v10527_v55 = vshrl.u32 %v8952_v61, 16  ;;  %v8985_v59 = vld [vmem:[#allocation2 + $0xf4] ss:$12 sps:$4 sm:$0xff]   ;;  %v9001_v0 = vpop.permute.xlu0 %718 }
 0x133   : > { %v2370_v34 = vrot.slane %v10689_v16, 4  ;;  %v1373_v48 = vrot.slane %v1372_v19, 4  ;;  %1694 = vst [vmem:[#allocation2 + $0x1f4] sm:$0xf] %v1608_v7  ;;  %v10525_v31 = vshll.u32 %v8952_v61, 16  ;;  %v10523_v52 = vshrl.u32 %v8958_v14, 16 }
 0x134   : > { %v7660_v33 = vld [vmem:[%s10453_s1] ss:$0 sm:$0xff]  ;;  %v2349_v15 = vrot.slane %v10527_v55, 3  ;;  %v10521_v49 = vshll.u32 %v8958_v14, 16  ;;  %v10520_v17 = vshrl.u32 %v8969_v30, 16  ;;  %10690 = vst [vmem:[#allocation43_spill] sm:$0xff] %v9001_v0 }
 0x135   : > { %v2371_v53 = vor.u32 %v2370_v34, %v2367_v28  ;;  %v467_v1 = vmul.f32 %v7660_v33, %v419_v18  ;;  %v1378_v3 = vsel %vm8186_vm9, %v1373_v48, %v1377_v37  ;;  %v2352_v62 = vrot.slane %v10525_v31, 4  ;;  %v9018_v33 = vld [vmem:[#allocation2 + $0xf8] ss:$12 sps:$4 sm:$0xff]   ;;  %v9042_v55 = vld [vmem:[#allocation2 + $0x110] ss:$12 sps:$4 sm:$0xff]  }
 0x136   : > { %v2385_v19 = vrot.slane %v10523_v52, 3  ;;  %1480 = vst [vmem:[#allocation2 + $0x1f0] sm:$0xf] %v1378_v3  ;;  %v2388_v16 = vrot.slane %v10521_v49, 4  ;;  %v2394_v37 = vrot.slane %v10520_v17, 3  ;;  %v10524_v7 = vshrl.u32 %v8978_v12, 16 }
 0x137   : > { %v2372_v28 = vsel %vm2159_vm10, %v8894_v57, %v2371_v53  ;;  %v515_v32 = vadd.f32 %v8750_v39, %v467_v1  ;;  %v10522_v57 = vshll.u32 %v8969_v30, 16  ;;  %v2353_v34 = vor.u32 %v2352_v62, %v2349_v15  ;;  %v9024_v15 = vld [vmem:[#allocation2 + $0xf0] ss:$12 sps:$4 sm:$0xff]  }
 0x138   : > { %7125 = vmatmul.mubr.bf16.gmra.mxu1 %v2372_v28  ;;  %v10526_v18 = vshll.u32 %v8978_v12, 16  ;;  %v10528_v48 = vshrl.u32 %v8985_v59, 16  ;;  %v2389_v1 = vor.u32 %v2388_v16, %v2385_v19  ;;  %v10529_v28 = vshll.u32 %v8985_v59, 16 }
 0x139   : > { %7128 = vmatprep.mubr.msk.bf16.mxu1 %vm7685_vm0, %v10656_v29  ;;  %v761_v39 = vmul.f32 %v9001_v0, %v515_v32  ;;  %v2397_v3 = vrot.slane %v10522_v57, 4  ;;  %v2354_v62 = vsel %vm2159_vm10, %v8932_v56, %v2353_v34  ;;  %v2376_v17 = vrot.slane %v10524_v7, 3 }
 0x13a   : > { %v2379_v49 = vrot.slane %v10526_v18, 4  ;;  %v2412_v32 = vrot.slane %v10528_v48, 3  ;;  %3012 = vmatmul.mubr.bf16.gmra.mxu0 %v2354_v62  ;;  %v2390_v16 = vsel %vm2159_vm10, %v8954_v5, %v2389_v1  ;;  %v2415_v52 = vrot.slane %v10529_v28, 4  ;;  %v9040_v18 = vld [vmem:[#allocation2 + $0x10c] ss:$12 sps:$4 sm:$0xff]  }
 0x13b   : > { %v6737_v19 = vpack.c.bf16 %v761_v39, %v761_v39  ;;  %v2398_v57 = vor.u32 %v2397_v3, %v2394_v37  ;;  %3019 = vmatprep.mubr.bf16.mxu0 %v2390_v16  ;;  %v10533_v7 = vshrl.u32 %v9018_v33, 16  ;;  %v10532_v31 = vshll.u32 %v9018_v33, 16 }
 0x13c   : > { %v2380_v56 = vor.u32 %v2379_v49, %v2376_v17  ;;  %v10545_v5 = vshrl.u32 %v9024_v15, 16  ;;  %v2416_v3 = vor.u32 %v2415_v52, %v2412_v32  ;;  %v10542_v52 = vshll.u32 %v9024_v15, 16 }
 0x13d   : > { %981 = vst [vmem:[#allocation2 + $0x204] sm:$0x3] %v6737_v19  ;;  %v1385_v39 = vshll.u32 %v6737_v19, 16  ;;  %v1389_v62 = vshrl.u32 %v6737_v19, 16  ;;  %v1610_v48 = vrot.slane %v6737_v19, 5  ;;  %v2399_v37 = vsel %vm2159_vm10, %v2371_v53, %v2398_v57 }
 0x13e   : > { %v2421_v49 = vrot.slane %v10533_v7, 3  ;;  %v2424_v17 = vrot.slane %v10532_v31, 4  ;;  %v2381_v19 = vsel %vm2159_vm10, %v2353_v34, %v2380_v56  ;;  %v10535_v44 = vshrl.u32 %v9040_v18, 16  ;;  %v1485_v34 = vld [vmem:[#allocation2 + $0x208] sm:$0x3] }
 0x13f   : > { %v1387_v16 = vrot.slane %v1385_v39, 5  ;;  %v1391_v28 = vrot.slane %v1389_v62, 4  ;;  %v1611_v0 = vsel %vm8176_vm8, %v8971_v40, %v1610_v48  ;;  %v1612_v47 = vrot.slane %v1610_v48, 4  ;;  %v9062_v48 = vld [vmem:[#allocation2 + $0x108] ss:$12 sps:$4 sm:$0xff]  }
 0x140   : > { %7129 = vmatmul.mubr.bf16.gmra.mxu1 %v2399_v37  ;;  %1695 = vst [vmem:[#allocation2 + $0x200] sm:$0xf] %v1611_v0  ;;  %v2425_v53 = vor.u32 %v2424_v17, %v2421_v49  ;;  %v10534_v40 = vshll.u32 %v9040_v18, 16  ;;  %v2403_v43 = vrot.slane %v10545_v5, 3  ;;  %v2417_v37 = vsel %vm2159_vm10, %v2389_v1, %v2416_v3 }
 0x141   : > { %7132 = vmatprep.mubr.msk.bf16.mxu1 %vm7685_vm0, %v10656_v29  ;;  %v1388_v32 = vsel %vm8186_vm9, %v8980_v8, %v1387_v16  ;;  %v1392_v39 = vor.u32 %v1391_v28, %v1387_v16  ;;  %1696 = vst [vmem:[#allocation2 + $0x20c] sm:$0x1] %v1612_v47  ;;  %v2406_v47 = vrot.slane %v10542_v52, 4  ;;  %v10537_v8 = vshrl.u32 %v9042_v55, 16  ;;  %v9081_v16 = vld [vmem:[#allocation2 + $0x124] ss:$12 sps:$4 sm:$0xff]  }
 0x142   : > { %1481 = vst [vmem:[#allocation2 + $0x1fc] sm:$0xf] %v1388_v32  ;;  %v10536_v28 = vshll.u32 %v9042_v55, 16  ;;  %3020 = vmatmul.mubr.bf16.gmra.mxu0 %v2381_v19  ;;  %v2439_v49 = vrot.slane %v10535_v44, 3  ;;  %v2442_v17 = vrot.slane %v10534_v40, 4  ;;  %v10538_v31 = vshrl.u32 %v9062_v48, 16 }
 0x143   : > { %v1393_v62 = vrot.slane %v1392_v39, 4  ;;  %3027 = vmatprep.mubr.bf16.mxu0 %v2417_v37  ;;  %v10539_v7 = vshll.u32 %v9062_v48, 16  ;;  %v2426_v19 = vsel %vm2159_vm10, %v2398_v57, %v2425_v53  ;;  %v2407_v1 = vor.u32 %v2406_v47, %v2403_v43  ;;  %v9092_v44 = vld [vmem:[#allocation2 + $0x128] ss:$12 sps:$4 sm:$0xff]   ;;  %v9102_v47 = vld [vmem:[#allocation2 + $0x120] ss:$12 sps:$4 sm:$0xff]  }
 0x144   : > { %v2448_v39 = vrot.slane %v10537_v8, 3  ;;  %v2451_v40 = vrot.slane %v10536_v28, 4  ;;  %10693 = vst [vmem:[#allocation44_spill] sm:$0xff] %v9092_v44  ;;  %v2443_v37 = vor.u32 %v2442_v17, %v2439_v49  ;;  %v10540_v0 = vshrl.u32 %v9081_v16, 16  ;;  %10694 = vst [vmem:[#allocation45_spill] sm:$0xff] %v9102_v47 }
 0x145   : > { %v1486_v32 = vsel %vm9066_vm13, %v1393_v62, %v1485_v34  ;;  %v10541_v34 = vshll.u32 %v9081_v16, 16  ;;  %v2430_v57 = vrot.slane %v10538_v31, 3  ;;  %v2433_v43 = vrot.slane %v10539_v7, 4  ;;  %v9112_v31 = vld [vmem:[#allocation2 + $0x13c] ss:$12 sps:$4 sm:$0xff]  }
 0x146   : > { %1487 = vst [vmem:[#allocation2 + $0x208] sm:$0x3] %v1486_v32  ;;  %v2408_v62 = vsel %vm2159_vm10, %v2380_v56, %v2407_v1  ;;  %v2452_v32 = vor.u32 %v2451_v40, %v2448_v39  ;;  %v10544_v49 = vshrl.u32 %v9092_v44, 16  ;;  %v10543_v17 = vshll.u32 %v9092_v44, 16  ;;  %10695 = vst [vmem:[#allocation46_spill] sm:$0xff] %v9112_v31 }
 0x147   : > { %v2466_v28 = vrot.slane %v10540_v0, 3  ;;  %v2469_v8 = vrot.slane %v10541_v34, 4  ;;  %v2434_v7 = vor.u32 %v2433_v43, %v2430_v57  ;;  %v10546_v56 = vshrl.u32 %v9102_v47, 16  ;;  %v9121_v0 = vld [vmem:[#allocation2 + $0x140] ss:$12 sps:$4 sm:$0xff]  }
 0x148   : > { %7133 = vmatmul.mubr.bf16.gmra.mxu1 %v2426_v19  ;;  %v2444_v19 = vsel %vm2159_vm10, %v2416_v3, %v2443_v37  ;;  %v2453_v40 = vsel %vm2159_vm10, %v2425_v53, %v2452_v32  ;;  %v2475_v39 = vrot.slane %v10544_v49, 3  ;;  %v2478_v3 = vrot.slane %v10543_v17, 4  ;;  %10696 = vst [vmem:[#allocation47_spill] sm:$0xff] %v9121_v0 }
 0x149   : > { %7136 = vmatprep.mubr.msk.bf16.mxu1 %vm7685_vm0, %v10656_v29  ;;  %v2470_v34 = vor.u32 %v2469_v8, %v2466_v28  ;;  %v10549_v52 = vshrl.u32 %v9112_v31, 16  ;;  %v10550_v57 = vshll.u32 %v9112_v31, 16  ;;  %v2435_v53 = vsel %vm2159_vm10, %v2407_v1, %v2434_v7 }
 0x14a   : > { %3028 = vmatmul.mubr.bf16.gmra.mxu0 %v2408_v62  ;;  %v10547_v62 = vshll.u32 %v9102_v47, 16  ;;  %v2457_v43 = vrot.slane %v10546_v56, 3  ;;  %v2479_v17 = vor.u32 %v2478_v3, %v2475_v39  ;;  %v9141_v56 = vld [vmem:[#allocation2 + $0x154] ss:$12 sps:$4 sm:$0xff]  }
 0x14b   : > { %3035 = vmatprep.mubr.bf16.mxu0 %v2444_v19  ;;  %v9130_v19 = vld [vmem:[#allocation2 + $0x138] ss:$12 sps:$4 sm:$0xff]   ;;  %v2493_v5 = vrot.slane %v10549_v52, 3  ;;  %v2496_v1 = vrot.slane %v10550_v57, 4  ;;  %10698 = vst [vmem:[#allocation49_spill] sm:$0xff] %v9141_v56  ;;  %v10556_v21 = vshrl.u32 %v9141_v56, 16 }
 0x14c   : > { %10697 = vst [vmem:[#allocation48_spill] sm:$0xff] %v9130_v19  ;;  %v2460_v49 = vrot.slane %v10547_v62, 4  ;;  %v10552_v39 = vshrl.u32 %v9130_v19, 16  ;;  %v10555_v3 = vshll.u32 %v9130_v19, 16  ;;  %v2480_v62 = vsel %vm2159_vm10, %v2452_v32, %v2479_v17  ;;  %v9150_v52 = vld [vmem:[#allocation2 + $0x158] ss:$12 sps:$4 sm:$0xff]  }
 0x14d   : > { %10701 = vst [vmem:[#allocation50_spill] sm:$0xff] %v9150_v52  ;;  %v2497_v57 = vor.u32 %v2496_v1, %v2493_v5  ;;  %v10559_v5 = vshrl.u32 %v9150_v52, 16 }
 0x14e   : > { %v2461_v8 = vor.u32 %v2460_v49, %v2457_v43  ;;  %v2484_v32 = vrot.slane %v10552_v39, 3  ;;  %v2487_v49 = vrot.slane %v10555_v3, 4  ;;  %v9160_v43 = vld [vmem:[#allocation2 + $0x150] ss:$12 sps:$4 sm:$0xff]   ;;  %v10703_v39 = vshll.u32 %v9141_v56, 16 }
 0x14f   : > { %10702 = vst [vmem:[#allocation51_spill] sm:$0xff] %v9160_v43  ;;  %v2498_v1 = vsel %vm2159_vm10, %v2470_v34, %v2497_v57 }
 0x150   : > { %7137 = vmatmul.mubr.bf16.gmra.mxu1 %v2453_v40  ;;  %v2471_v40 = vsel %vm2159_vm10, %v2443_v37, %v2470_v34  ;;  %v10700_v37 = vshll.u32 %v9121_v0, 16  ;;  %v2523_v38 = vrot.slane %v10703_v39, 4  ;;  %v2488_v3 = vor.u32 %v2487_v49, %v2484_v32 }
 0x151   : > { %7140 = vmatprep.mubr.msk.bf16.mxu1 %vm7685_vm0, %v10656_v29  ;;  %v2547_v32 = vrot.slane %v10564_v10, 3  ;;  %v9208_v10 = vld [vmem:[#allocation2 + $0x188] ss:$12 sps:$4 sm:$0xff]  }
 0x152   : > { %3036 = vmatmul.mubr.bf16.gmra.mxu0 %v2435_v53  ;;  %v10699_v53 = vshrl.u32 %v9121_v0, 16  ;;  %v2505_v23 = vrot.slane %v10700_v37, 4  ;;  %10711 = vst [vmem:[#allocation56_spill] sm:$0xff] %v9208_v10 }
 0x153   : > { %3043 = vmatprep.mubr.bf16.mxu0 %v2471_v40  ;;  %v2520_v40 = vrot.slane %v10556_v21, 3  ;;  %v9179_v21 = vld [vmem:[#allocation2 + $0x170] ss:$12 sps:$4 sm:$0xff]  }
 0x154   : > { %v2502_v28 = vrot.slane %v10699_v53, 3  ;;  %v2462_v53 = vsel %vm2159_vm10, %v2434_v7, %v2461_v8  ;;  %v10561_v7 = vshrl.u32 %v9160_v43, 16  ;;  %10705 = vst [vmem:[#allocation53_spill] sm:$0xff] %v9179_v21 }
 0x155   : > { %v2524_v39 = vor.u32 %v2523_v38, %v2520_v40 }
 0x156   : > { %v2506_v37 = vor.u32 %v2505_v23, %v2502_v28  ;;  %v2529_v28 = vrot.slane %v10559_v5, 3  ;;  %v2511_v49 = vrot.slane %v10561_v7, 3  ;;  %v9199_v7 = vld [vmem:[#allocation2 + $0x184] ss:$12 sps:$4 sm:$0xff]  }
 0x157   : > { %10708 = vst [vmem:[#allocation55_spill] sm:$0xff] %v9199_v7  ;;  %v10572_v46 = vshrl.u32 %v9199_v7, 16 }
 0x158   : > { %7141 = vmatmul.mubr.bf16.gmra.mxu1 %v2480_v62  ;;  %v10558_v62 = vshll.u32 %v9150_v52, 16  ;;  %v2507_v23 = vsel %vm2159_vm10, %v2479_v17, %v2506_v37  ;;  %v2489_v17 = vsel %vm2159_vm10, %v2461_v8, %v2488_v3  ;;  %v10707_v8 = vshll.u32 %v9170_v41, 16 }
 0x159   : > { %7144 = vmatprep.mubr.msk.bf16.mxu1 %vm7685_vm0, %v10656_v29 }
 0x15a   : > { %3044 = vmatmul.mubr.bf16.gmra.mxu0 %v2462_v53  ;;  %v2532_v34 = vrot.slane %v10558_v62, 4  ;;  %v10562_v53 = vshll.u32 %v9160_v43, 16  ;;  %v2550_v45 = vrot.slane %v10707_v8, 4 }
 0x15b   : > { %3051 = vmatprep.mubr.bf16.mxu0 %v2498_v1  ;;  %v9188_v1 = vld [vmem:[#allocation2 + $0x168] ss:$12 sps:$4 sm:$0xff]  }
 0x15c   : > { %10706 = vst [vmem:[#allocation54_spill] sm:$0xff] %v9188_v1  ;;  %v2533_v62 = vor.u32 %v2532_v34, %v2529_v28  ;;  %v2514_v5 = vrot.slane %v10562_v53, 4  ;;  %v10566_v28 = vshrl.u32 %v9188_v1, 16  ;;  %v10571_v34 = vshll.u32 %v9188_v1, 16  ;;  %v9228_v1 = vld [vmem:[#allocation2 + $0x19c] ss:$12 sps:$4 sm:$0xff]  }
 0x15d   : > { %v2551_v8 = vor.u32 %v2550_v45, %v2547_v32  ;;  %v10576_v45 = vshrl.u32 %v9208_v10, 16  ;;  %10714 = vst [vmem:[#allocation58_spill] sm:$0xff] %v9228_v1 }
 0x15e   : > { %v2534_v53 = vsel %vm2159_vm10, %v2506_v37, %v2533_v62  ;;  %v2515_v38 = vor.u32 %v2514_v5, %v2511_v49  ;;  %v2538_v37 = vrot.slane %v10566_v28, 3  ;;  %v2541_v5 = vrot.slane %v10571_v34, 4  ;;  %v9218_v49 = vld [vmem:[#allocation2 + $0x180] ss:$12 sps:$4 sm:$0xff]  }
 0x15f   : > { %10712 = vst [vmem:[#allocation57_spill] sm:$0xff] %v9218_v49  ;;  %v2552_v32 = vsel %vm2159_vm10, %v2524_v39, %v2551_v8  ;;  %v10713_v28 = vshll.u32 %v9199_v7, 16  ;;  %v10583_v7 = vshrl.u32 %v9228_v1, 16 }
 0x160   : > { %7145 = vmatmul.mubr.bf16.gmra.mxu1 %v2507_v23  ;;  %v2525_v23 = vsel %vm2159_vm10, %v2497_v57, %v2524_v39  ;;  %v10710_v57 = vshll.u32 %v9179_v21, 16  ;;  %v2542_v34 = vor.u32 %v2541_v5, %v2538_v37 }
 0x161   : > { %7148 = vmatprep.mubr.msk.bf16.mxu1 %vm7685_vm0, %v10656_v29  ;;  %v2601_v37 = vrot.slane %v10583_v7, 3  ;;  %v9266_v7 = vld [vmem:[#allocation2 + $0x1b8] ss:$12 sps:$4 sm:$0xff]  }
 0x162   : > { %3052 = vmatmul.mubr.bf16.gmra.mxu0 %v2489_v17  ;;  %v10709_v17 = vshrl.u32 %v9179_v21, 16  ;;  %v2559_v11 = vrot.slane %v10710_v57, 4  ;;  %v2577_v21 = vrot.slane %v10713_v28, 4  ;;  %10721 = vst [vmem:[#allocation62_spill] sm:$0xff] %v9266_v7 }
 0x163   : > { %3059 = vmatprep.mubr.bf16.mxu0 %v2525_v23  ;;  %v2574_v23 = vrot.slane %v10572_v46, 3  ;;  %v9237_v46 = vld [vmem:[#allocation2 + $0x1a0] ss:$12 sps:$4 sm:$0xff]  }
 0x164   : > { %v2556_v40 = vrot.slane %v10709_v17, 3  ;;  %v2516_v17 = vsel %vm2159_vm10, %v2488_v3, %v2515_v38  ;;  %v10579_v3 = vshrl.u32 %v9218_v49, 16  ;;  %10715 = vst [vmem:[#allocation59_spill] sm:$0xff] %v9237_v46 }
 0x165   : > { %v2578_v28 = vor.u32 %v2577_v21, %v2574_v23 }
 0x166   : > { %v2560_v57 = vor.u32 %v2559_v11, %v2556_v40  ;;  %v2583_v40 = vrot.slane %v10576_v45, 3  ;;  %v2565_v5 = vrot.slane %v10579_v3, 3  ;;  %v9257_v3 = vld [vmem:[#allocation2 + $0x1b4] ss:$12 sps:$4 sm:$0xff]  }
 0x167   : > { %10718 = vst [vmem:[#allocation61_spill] sm:$0xff] %v9257_v3 }
 0x168   : > { %7149 = vmatmul.mubr.bf16.gmra.mxu1 %v2534_v53  ;;  %v10575_v53 = vshll.u32 %v9208_v10, 16  ;;  %v2561_v11 = vsel %vm2159_vm10, %v2533_v62, %v2560_v57  ;;  %v2543_v62 = vsel %vm2159_vm10, %v2515_v38, %v2542_v34  ;;  %v10717_v38 = vshll.u32 %v9228_v1, 16 }
 0x169   : > { %7152 = vmatprep.mubr.msk.bf16.mxu1 %vm7685_vm0, %v10656_v29  ;;  %v10592_v1 = vshrl.u32 %v9257_v3, 16 }
 0x16a   : > { %3060 = vmatmul.mubr.bf16.gmra.mxu0 %v2516_v17  ;;  %v2586_v39 = vrot.slane %v10575_v53, 4  ;;  %v10580_v17 = vshll.u32 %v9218_v49, 16  ;;  %v2604_v10 = vrot.slane %v10717_v38, 4 }
 0x16b   : > { %3067 = vmatprep.mubr.bf16.mxu0 %v2552_v32  ;;  %v9246_v32 = vld [vmem:[#allocation2 + $0x198] ss:$12 sps:$4 sm:$0xff]  }
 0x16c   : > { %10716 = vst [vmem:[#allocation60_spill] sm:$0xff] %v9246_v32  ;;  %v2587_v53 = vor.u32 %v2586_v39, %v2583_v40  ;;  %v2568_v45 = vrot.slane %v10580_v17, 4  ;;  %v10586_v40 = vshrl.u32 %v9246_v32, 16  ;;  %v10591_v39 = vshll.u32 %v9246_v32, 16  ;;  %v9286_v32 = vld [vmem:[#allocation2 + $0x1cc] ss:$12 sps:$4 sm:$0xff]  }
 0x16d   : > { %v2605_v38 = vor.u32 %v2604_v10, %v2601_v37  ;;  %v10596_v10 = vshrl.u32 %v9266_v7, 16  ;;  %10724 = vst [vmem:[#allocation64_spill] sm:$0xff] %v9286_v32  ;;  %v10727_v52 = vshrl.u32 %v9286_v32, 16 }
 0x16e   : > { %v2588_v17 = vsel %vm2159_vm10, %v2560_v57, %v2587_v53  ;;  %v2569_v21 = vor.u32 %v2568_v45, %v2565_v5  ;;  %v2592_v57 = vrot.slane %v10586_v40, 3  ;;  %v2595_v45 = vrot.slane %v10591_v39, 4  ;;  %v9276_v5 = vld [vmem:[#allocation2 + $0x1b0] ss:$12 sps:$4 sm:$0xff]  }
 0x16f   : > { %10722 = vst [vmem:[#allocation63_spill] sm:$0xff] %v9276_v5  ;;  %v2606_v37 = vsel %vm2159_vm10, %v2578_v28, %v2605_v38  ;;  %v10723_v40 = vshll.u32 %v9257_v3, 16  ;;  %v1832_v3 = vld [vmem:[#allocation2 + $0x1f4] sm:$0xf]  ;;  %v2655_v41 = vrot.slane %v10727_v52, 3 }
 0x170   : > { %7153 = vmatmul.mubr.bf16.gmra.mxu1 %v2561_v11  ;;  %v2579_v11 = vsel %vm2159_vm10, %v2551_v8, %v2578_v28  ;;  %v10720_v8 = vshll.u32 %v9237_v46, 16  ;;  %v2596_v39 = vor.u32 %v2595_v45, %v2592_v57  ;;  %v1831_v45 = vld [vmem:[#allocation2 + $0x1ec] sm:$0xff]  ;;  %v1777_v57 = vld [vmem:[#allocation2 + $0x1e0] sm:$0xff] }
 0x171   : > { %7156 = vmatprep.mubr.msk.bf16.mxu1 %vm7685_vm0, %v10656_v29 }
 0x172   : > { %3068 = vmatmul.mubr.bf16.gmra.mxu0 %v2543_v62  ;;  %v10719_v62 = vshrl.u32 %v9237_v46, 16  ;;  %v2613_v49 = vrot.slane %v10720_v8, 4  ;;  %v2631_v46 = vrot.slane %v10723_v40, 4 }
 0x173   : > { %3075 = vmatprep.mubr.bf16.mxu0 %v2579_v11  ;;  %v2628_v11 = vrot.slane %v10592_v1, 3  ;;  %v9295_v1 = vld [vmem:[#allocation2 + $0x1d0] ss:$12 sps:$4 sm:$0xff]  }
 0x174   : > { %v2610_v23 = vrot.slane %v10719_v62, 3  ;;  %v2570_v62 = vsel %vm2159_vm10, %v2542_v34, %v2569_v21  ;;  %v10605_v34 = vshrl.u32 %v9276_v5, 16  ;;  %10725 = vst [vmem:[#allocation65_spill] sm:$0xff] %v9295_v1  ;;  %v10730_v0 = vshll.u32 %v9295_v1, 16 }
 0x175   : > { %v2632_v40 = vor.u32 %v2631_v46, %v2628_v11 }
 0x176   : > { %v2614_v8 = vor.u32 %v2613_v49, %v2610_v23  ;;  %v2637_v23 = vrot.slane %v10596_v10, 3  ;;  %v2667_v52 = vrot.slane %v10730_v0, 4  ;;  %v7539_v0 = vld [vmem:[#allocation2 + $0x1fc] ss:$12 sps:$4 sm:$0x3f]  }
 0x178   : > { %7157 = vmatmul.mubr.bf16.gmra.mxu1 %v2588_v17  ;;  %v10595_v17 = vshll.u32 %v9266_v7, 16  ;;  %v2615_v49 = vsel %vm2159_vm10, %v2587_v53, %v2614_v8  ;;  %v9301_v53 = vld [vmem:[#allocation2 + $0x1c8] ss:$12 sps:$4 sm:$0xff]   ;;  %v2633_v7 = vsel %vm2159_vm10, %v2605_v38, %v2632_v40 }
 0x179   : > { %7160 = vmatprep.mubr.msk.bf16.mxu1 %vm7685_vm0, %v10656_v29  ;;  %10726 = vst [vmem:[#allocation66_spill] sm:$0xff] %v9301_v53 }
 0x17a   : > { %3076 = vmatmul.mubr.bf16.gmra.mxu0 %v2570_v62  ;;  %v2640_v28 = vrot.slane %v10595_v17, 4  ;;  %v10606_v62 = vshll.u32 %v9276_v5, 16  ;;  %v2619_v17 = vrot.slane %v10605_v34, 3  ;;  %v6457_v34 = vcombine.high %v1777_v57, %v1831_v45 }
 0x17b   : > { %3083 = vmatprep.mubr.bf16.mxu0 %v2606_v37  ;;  %v2597_v37 = vsel %vm2159_vm10, %v2569_v21, %v2596_v39  ;;  %v10728_v21 = vshll.u32 %v9286_v32, 16 }
 0x17c   : > { %v2641_v10 = vor.u32 %v2640_v28, %v2637_v23  ;;  %v10619_v23 = vshrl.u32 %v9301_v53, 16  ;;  %v10624_v28 = vshll.u32 %v9301_v53, 16  ;;  %v2683_v56 = vshll.u32 %v6457_v34, 16 }
 0x17d   : > { %v2658_v43 = vrot.slane %v10728_v21, 4  ;;  %v2680_v21 = vshrl.u32 %v6457_v34, 16 }
 0x17e   : > { %v2642_v11 = vsel %vm2159_vm10, %v2614_v8, %v2641_v10  ;;  %v2685_v34 = vrot.slane %v2683_v56, 4 }
 0x17f   : > { %v2659_v32 = vor.u32 %v2658_v43, %v2655_v41  ;;  %v2682_v43 = vrot.slane %v2680_v21, 3 }
 0x180   : > { %7161 = vmatmul.mubr.bf16.gmra.mxu1 %v2615_v49  ;;  %v2622_v49 = vrot.slane %v10606_v62, 4  ;;  %v1778_v62 = vld [vmem:[#allocation2 + $0x1e8] sm:$0xf] }
 0x181   : > { %7164 = vmatprep.mubr.msk.bf16.mxu1 %vm7685_vm0, %v10656_v29  ;;  %v6458_v46 = vcombine.low %v1778_v62, %v1832_v3  ;;  %v2649_v3 = vrot.slane %v10624_v28, 4  ;;  %v6456_v62 = vcombine.low %v1777_v57, %v1831_v45  ;;  %v2660_v41 = vsel %vm2159_vm10, %v2632_v40, %v2659_v32 }
 0x182   : > { %3084 = vmatmul.mubr.bf16.gmra.mxu0 %v2597_v37  ;;  %v2623_v5 = vor.u32 %v2622_v49, %v2619_v17  ;;  %v10729_v37 = vshrl.u32 %v9295_v1, 16  ;;  %v2707_v57 = vshrl.u32 %v7539_v0, 16  ;;  %v2710_v45 = vshll.u32 %v7539_v0, 16  ;;  %v1697_v0 = vld [vmem:[#allocation2] sm:$0xcc] }
 0x183   : > { %3091 = vmatprep.mubr.bf16.mxu0 %v2633_v7  ;;  %v2646_v7 = vrot.slane %v10619_v23, 3  ;;  %v2689_v8 = vshrl.u32 %v6458_v46, 16  ;;  %v2692_v17 = vshll.u32 %v6458_v46, 16  ;;  %v2671_v44 = vshrl.u32 %v6456_v62, 16 }
 0x184   : > { %v2664_v38 = vrot.slane %v10729_v37, 3  ;;  %v2624_v49 = vsel %vm2159_vm10, %v2596_v39, %v2623_v5  ;;  %v2674_v53 = vshll.u32 %v6456_v62, 16  ;;  %v7541_v39 = vld [vmem:[#allocation2 + $0x200] ss:$12 sps:$4 sm:$0x3f]  }
 0x185   : > { %v2650_v1 = vor.u32 %v2649_v3, %v2646_v7  ;;  %v2691_v19 = vrot.slane %v2689_v8, 3  ;;  %v2694_v23 = vrot.slane %v2692_v17, 4  ;;  %v2673_v21 = vrot.slane %v2671_v44, 3  ;;  %v7542_v3 = vld [vmem:[#allocation2 + $0x1f8] ss:$12 sps:$4 sm:$0x3f]  }
 0x186   : > { %v2668_v37 = vor.u32 %v2667_v52, %v2664_v38  ;;  %v2686_v38 = vor.u32 %v2685_v34, %v2682_v43  ;;  %v2676_v7 = vrot.slane %v2674_v53, 4  ;;  %v2709_v17 = vrot.slane %v2707_v57, 3  ;;  %v1701_v53 = vld [vmem:[#allocation2 + $0x18] sm:$0xff] }
 0x187   : > { %v2651_v56 = vsel %vm2159_vm10, %v2623_v5, %v2650_v1  ;;  %v2695_v40 = vor.u32 %v2694_v23, %v2691_v19  ;;  %v2716_v62 = vshrl.u32 %v7541_v39, 16  ;;  %v2698_v34 = vshrl.u32 %v7542_v3, 16  ;;  %v9336_v23 = vld [vmem:[#allocation2] sm:$0xff] }
 0x188   : > { %7165 = vmatmul.mubr.bf16.gmra.mxu1 %v2642_v11  ;;  %v3165_v11 = vpop.f32.mrf.mxu1  ;;  %v2669_v46 = vsel %vm2159_vm10, %v2641_v10, %v2668_v37  ;;  %v2719_v10 = vshll.u32 %v7541_v39, 16  ;;  %v2677_v43 = vor.u32 %v2676_v7, %v2673_v21  ;;  %v2701_v44 = vshll.u32 %v7542_v3, 16 }
 0x189   : > { %7168 = vmatprep.mubr.msk.bf16.mxu1 %vm7685_vm0, %v10656_v29  ;;  %v2718_v5 = vrot.slane %v2716_v62, 3  ;;  %v6487_v57 = vcombine.high %v1697_v0, %v9336_v23 }
 0x18a   : > { %3092 = vmatmul.mubr.bf16.gmra.mxu0 %v2624_v49  ;;  %v7102_v28 = vpop.f32.mrf.mxu1  ;;  %v2687_v49 = vsel %vm2159_vm10, %v2659_v32, %v2686_v38  ;;  %v2721_v19 = vrot.slane %v2719_v10, 4  ;;  %v2700_v32 = vrot.slane %v2698_v34, 3  ;;  %v2703_v7 = vrot.slane %v2701_v44, 4 }
 0x18b   : > { %3099 = vmatprep.mubr.bf16.mxu0 %v2660_v41  ;;  %v2712_v28 = vrot.slane %v2710_v45, 4  ;;  %v2696_v41 = vsel %vm2159_vm10, %v2668_v37, %v2695_v40  ;;  %v7662_v45 = vld [vmem:[#allocation2 + $0x24] sm:$0xff]  ;;  %v2678_v37 = vsel %vm2159_vm10, %v2650_v1, %v2677_v43  ;;  %v3379_v3 = vshrl.u32 %v6487_v57, 16 }
 0x18c   : > { %v3168_v52 = vpop.f32.mrf.mxu1  ;;  %v6490_v39 = vcombine.high %v1701_v53, %v7662_v45  ;;  %v2722_v21 = vor.u32 %v2721_v19, %v2718_v5  ;;  %v2704_v1 = vor.u32 %v2703_v7, %v2700_v32 }
 0x18e   : > { %v7103_v8 = vpop.f32.mrf.mxu1  ;;  %v2723_v34 = vsel %vm2159_vm10, %v2695_v40, %v2722_v21  ;;  %v7663_v40 = vld [vmem:[#allocation2 + $0x2c] sm:$0xf]  ;;  %v2705_v7 = vsel %vm2159_vm10, %v2677_v43, %v2704_v1 }
 0x18f   : > { %v3382_v8 = vshll.u32 %v6487_v57, 16 }
 0x190   : > { %7169 = vmatmul.mubr.bf16.gmra.mxu1 %v2669_v46  ;;  %v2713_v46 = vor.u32 %v2712_v28, %v2709_v17  ;;  %v3387_v17 = vshrl.u32 %v6490_v39, 16  ;;  %v3390_v28 = vshll.u32 %v6490_v39, 16 }
 0x191   : > { %7172 = vmatprep.mubr.msk.bf16.mxu1 %vm7685_vm0, %v10656_v29  ;;  %v3384_v5 = vrot.slane %v3382_v8, 3 }
 0x192   : > { %3100 = vmatmul.mubr.bf16.gmra.mxu0 %v2651_v56  ;;  %v2714_v56 = vsel %vm2159_vm10, %v2686_v38, %v2713_v46  ;;  %v3381_v38 = vrot.slane %v3379_v3, 2  ;;  %v3389_v19 = vrot.slane %v3387_v17, 2  ;;  %v3392_v44 = vrot.slane %v3390_v28, 3  ;;  %v7548_v3 = vld [vmem:[#allocation2 + $0x8] ss:$12 sps:$4 sm:$0xfc]  }
 0x193   : > { %3107 = vmatprep.mubr.bf16.mxu0 %v2687_v49  ;;  %v6486_v49 = vcombine.low %v1697_v0, %v9336_v23 }
 0x194   : > { %v3385_v17 = vor.u32 %v3384_v5, %v3381_v38  ;;  %v3393_v28 = vor.u32 %v3392_v44, %v3389_v19  ;;  %v10734_v38 = vshll.u32 %v8313_v22, 16 }
 0x195   : > { %v3365_v0 = vshll.u32 %v6486_v49, 16 }
 0x196   : > { %v3394_v43 = vsel %vm3360_vm14, %v3385_v17, %v3393_v28 }
 0x198   : > { %7173 = vmatmul.mubr.bf16.gmra.mxu1 %v2696_v41  ;;  %v6489_v41 = vcombine.low %v1701_v53, %v7662_v45 }
 0x199   : > { %7176 = vmatprep.mubr.msk.bf16.mxu1 %vm7685_vm0, %v10656_v29  ;;  %v2965_v62 = vpop.f32.mrf.mxu0 }
 0x19a   : > { %3108 = vmatmul.mubr.bf16.gmra.mxu0 %v2678_v37  ;;  %v9343_v10 = vadd.f32 %v3165_v11, %v2965_v62  ;;  %v1702_v11 = vld [vmem:[#allocation2 + $0x20] sm:$0xf]  ;;  %v3370_v53 = vshrl.u32 %v6489_v41, 16 }
 0x19b   : > { %3115 = vmatprep.mubr.bf16.mxu0 %v2714_v56  ;;  %v2967_v31 = vpop.f32.mrf.mxu0  ;;  %v3362_v56 = vshrl.u32 %v6486_v49, 16  ;;  %v6491_v32 = vcombine.low %v1702_v11, %v7663_v40  ;;  %v3396_v49 = vshrl.u32 %v7548_v3, 16  ;;  %v10733_v11 = vshrl.u32 %v8313_v22, 16 }
 0x19c   : > { %10731 = vst [vmem:[#allocation67_spill] sm:$0xff] %v9343_v10  ;;  %v3373_v31 = vshll.u32 %v6489_v41, 16  ;;  %v3399_v10 = vshll.u32 %v7548_v3, 16 }
 0x19d   : > { %v2968_v37 = vpop.f32.mrf.mxu0  ;;  %v3173_v57 = vpop.f32.mrf.mxu1  ;;  %v3404_v41 = vshrl.u32 %v6491_v32, 16  ;;  %v3416_v40 = vrot.slane %v10733_v11, 2  ;;  %v3398_v44 = vrot.slane %v3396_v49, 2  ;;  %v10738_v49 = vshll.u32 %v8389_v50, 16 }
 0x19e   : > { %v9349_v39 = vadd.f32 %v3168_v52, %v2968_v37  ;;  %v3364_v52 = vrot.slane %v3362_v56, 2  ;;  %v3372_v37 = vrot.slane %v3370_v53, 2  ;;  %v3401_v56 = vrot.slane %v3399_v10, 3 }
 0x19f   : > { %v2970_v45 = vpop.f32.mrf.mxu0  ;;  %v7106_v8 = vpop.f32.mrf.mxu1 }
 0x1a0   : > { %7177 = vmatmul.mubr.bf16.gmra.mxu1 %v2723_v34  ;;  %10732 = vst [vmem:[#allocation68_spill] sm:$0xff] %v9349_v39  ;;  %v3367_v34 = vrot.slane %v3365_v0, 3  ;;  %v3375_v39 = vrot.slane %v3373_v31, 3  ;;  %v3407_v45 = vshll.u32 %v6491_v32, 16  ;;  %v3406_v0 = vrot.slane %v3404_v41, 2 }
 0x1a1   : > { %7180 = vmatprep.mubr.msk.bf16.mxu1 %vm7685_vm0, %v10656_v29  ;;  %v3176_v62 = vpop.f32.mrf.mxu1  ;;  %v3402_v3 = vor.u32 %v3401_v56, %v3398_v44  ;;  %v3429_v41 = vrot.slane %v10738_v49, 3 }
 0x1a2   : > { %3116 = vmatmul.mubr.bf16.gmra.mxu0 %v2705_v7  ;;  %v3368_v5 = vor.u32 %v3367_v34, %v3364_v52  ;;  %v3376_v19 = vor.u32 %v3375_v39, %v3372_v37  ;;  %v3409_v53 = vrot.slane %v3407_v45, 3  ;;  %v10735_v7 = vshrl.u32 %v8350_v20, 16 }
 0x1a3   : > { %3123 = vmatprep.mubr.bf16.mxu0 %v2713_v46  ;;  %v7107_v47 = vpop.f32.mrf.mxu1  ;;  %v3417_v46 = vrot.slane %v10734_v38, 3  ;;  %v10737_v34 = vshrl.u32 %v8389_v50, 16 }
 0x1a4   : > { %v3412_v39 = vrot.slane %v10735_v7, 2  ;;  %v3377_v10 = vsel %vm3360_vm14, %v3368_v5, %v3376_v19  ;;  %v3410_v8 = vor.u32 %v3409_v53, %v3406_v0  ;;  %v7550_v0 = vld [vmem:[%s10455_s3 + $0x1a8] sm:$0xff]  }
 0x1a5   : > { %v3418_v32 = vor.u32 %v3417_v46, %v3416_v40  ;;  %v3428_v37 = vrot.slane %v10737_v34, 2  ;;  %v10740_v46 = vshll.u32 %v8280_v58, 16 }
 0x1a6   : > { %v3411_v40 = vsel %vm3360_vm14, %v3402_v3, %v3410_v8 }
 0x1a7   : > { %v3419_v52 = vsel %vm3360_vm14, %v3393_v28, %v3418_v32  ;;  %v7551_v28 = vld [vmem:[%s10455_s3 + $0x238] sm:$0xff]   ;;  %v3421_v5 = vrot.slane %v10740_v46, 3  ;;  %v3430_v44 = vor.u32 %v3429_v41, %v3428_v37  ;;  %v10746_v41 = vshll.u32 %v8382_v51, 16 }
 0x1a8   : > { %7181 = vmatmul.mubr.bf16.gmra.mxu1 %v2722_v21  ;;  %v7546_v21 = vld [vmem:[%s10455_s3 + $0x1b8] sm:$0xff]  }
 0x1a9   : > { %3894 = vmatprep.mubr.bf16.mxu1 %v3394_v43  ;;  %v2973_v31 = vpop.f32.mrf.mxu0  ;;  %v7549_v43 = vld [vmem:[%s10455_s3 + $0x1b0] sm:$0xff]   ;;  %v3431_v3 = vsel %vm3360_vm14, %v3418_v32, %v3430_v44 }
 0x1aa   : > { %3124 = vmatmul.mubr.bf16.gmra.mxu0 %v2704_v1  ;;  %v9357_v47 = vadd.f32 %v3173_v57, %v2973_v31  ;;  %v10736_v1 = vshll.u32 %v8350_v20, 16 }
 0x1ab   : > { %7200 = vmatprep.mubr.msk.bf16.mxu0 %vm7685_vm0, %v10656_v29  ;;  %v2975_v22 = vpop.f32.mrf.mxu0 }
 0x1ac   : > { %v3413_v17 = vrot.slane %v10736_v1, 3  ;;  %v10741_v22 = vshrl.u32 %v8419_v26, 16  ;;  %v10743_v1 = vshrl.u32 %v8486_v42, 16 }
 0x1ad   : > { %v2976_v57 = vpop.f32.mrf.mxu0 }
 0x1ae   : > { %v9374_v45 = vadd.f32 %v3176_v62, %v2976_v57  ;;  %v3414_v50 = vor.u32 %v3413_v17, %v3412_v39  ;;  %v10739_v62 = vshrl.u32 %v8280_v58, 16  ;;  %v7554_v58 = vld [vmem:[%s10455_s3 + $0x230] sm:$0xff]   ;;  %v3424_v7 = vrot.slane %v10741_v22, 2 }
 0x1af   : > { %v2978_v20 = vpop.f32.mrf.mxu0  ;;  %v3181_v11 = vpop.f32.mrf.mxu1  ;;  %v10742_v39 = vshll.u32 %v8419_v26, 16  ;;  %v3440_v17 = vrot.slane %v10743_v1, 2  ;;  %v10744_v57 = vshll.u32 %v8486_v42, 16  ;;  %v7557_v26 = vld [vmem:[%s10455_s3 + $0x228] sm:$0xff]   ;;  %v10745_v42 = vshrl.u32 %v8382_v51, 16  ;;  %v7560_v51 = vld [vmem:[%s10455_s3 + $0x220] sm:$0xff]  }
 0x1b0   : > { %3895 = vmatmul.mubr.bf16.vlgmr.msra.gmra.mxu1 %v3377_v10  ;;  %v3420_v38 = vrot.slane %v10739_v62, 2  ;;  %v3415_v31 = vsel %vm3360_vm14, %v3376_v19, %v3414_v50  ;;  %v7552_v19 = vld [vmem:[%s10455_s3 + $0x1a0] sm:$0xff]  }
 0x1b1   : > { %5371 = vmatpush1.bf16.msra.mxu1 %v7546_v21  ;;  %3902 = vmatprep.mubr.bf16.mxu1 %v3419_v52  ;;  %v7110_v56 = vpop.f32.mrf.mxu1  ;;  %v3425_v10 = vrot.slane %v10742_v39, 3  ;;  %v3441_v52 = vrot.slane %v10744_v57, 3  ;;  %v3432_v49 = vrot.slane %v10745_v42, 2  ;;  %v10751_v57 = vshrl.u32 %v8488_v2, 16 }
 0x1b2   : > { %5372 = vmatprep.subr.bf16.mxu1 %v9336_v23  ;;  %7201 = vmatmul.mubr.bf16.vlgmr.msra.gmra.mxu0 %v3411_v40  ;;  %v3422_v21 = vor.u32 %v3421_v5, %v3420_v38  ;;  %v10747_v5 = vshrl.u32 %v8525_v4, 16 }
 0x1b3   : > { %7204 = vmatprep.mubr.msk.bf16.mxu0 %vm7685_vm0, %v10656_v29  ;;  %7285 = vmatpush3.bf16.msra.mxu0 %v7551_v28  ;;  %v3184_v53 = vpop.f32.mrf.mxu1  ;;  %v3426_v37 = vor.u32 %v3425_v10, %v3424_v7  ;;  %v3442_v20 = vor.u32 %v3441_v52, %v3440_v17  ;;  %v10750_v7 = vshll.u32 %v8594_v6, 16  ;;  %v10752_v52 = vshll.u32 %v8488_v2, 16  ;;  %v7566_v2 = vld [vmem:[%s10455_s3 + $0x210] sm:$0xff]  }
 0x1b4   : > { %7286 = vmatprep.subr.bf16.mxu0 %v10656_v29  ;;  %v3423_v32 = vsel %vm3360_vm14, %v3410_v8, %v3422_v21  ;;  %v7553_v8 = vld [vmem:[%s10455_s3 + $0x198] sm:$0xff]   ;;  %v3436_v56 = vrot.slane %v10747_v5, 2  ;;  %v10756_v5 = vshll.u32 %v8695_v9, 16 }
 0x1b5   : > { %5373 = vmatpush1.bf16.msra.mxu1 %v7549_v43  ;;  %v7111_v34 = vpop.f32.mrf.mxu1  ;;  %v3433_v43 = vrot.slane %v10746_v41, 3  ;;  %v3427_v38 = vsel %vm3360_vm14, %v3414_v50, %v3426_v37  ;;  %v3453_v39 = vrot.slane %v10750_v7, 3  ;;  %v10753_v41 = vshrl.u32 %v8648_v27, 16 }
 0x1b6   : > { %5374 = vmatprep.subr.bf16.mxu1 %v9336_v23  ;;  %v3445_v34 = vrot.slane %v10752_v52, 3 }
 0x1b7   : > { %7287 = vmatpush3.bf16.msra.mxu0 %v7554_v58  ;;  %v3434_v46 = vor.u32 %v3433_v43, %v3432_v49  ;;  %v3448_v43 = vrot.slane %v10753_v41, 2 }
 0x1b8   : > { %3903 = vmatmul.mubr.bf16.gmra.mxu1 %v3415_v31  ;;  %7288 = vmatprep.subr.bf16.mxu0 %v10656_v29  ;;  %v10749_v31 = vshrl.u32 %v8594_v6, 16 }
 0x1b9   : > { %3910 = vmatprep.mubr.bf16.mxu1 %v3431_v3  ;;  %5375 = vmatpush1.bf16.msra.mxu1 %v7550_v0  ;;  %v10748_v0 = vshll.u32 %v8525_v4, 16  ;;  %v7555_v4 = vld [vmem:[%s10455_s3 + $0x190] sm:$0xff]   ;;  %v3435_v6 = vsel %vm3360_vm14, %v3422_v21, %v3434_v46  ;;  %v7556_v21 = vld [vmem:[%s10455_s3 + $0x188] sm:$0xff]  }
 0x1ba   : > { %5376 = vmatprep.subr.bf16.mxu1 %v9336_v23  ;;  %7205 = vmatmul.mubr.bf16.gmra.mxu0 %v3423_v32  ;;  %v3452_v22 = vrot.slane %v10749_v31, 2  ;;  %v10758_v31 = vshll.u32 %v8618_v25, 16 }
 0x1bb   : > { %v2981_v28 = vpop.f32.mrf.mxu0  ;;  %7208 = vmatprep.mubr.msk.bf16.mxu0 %vm7685_vm0, %v10656_v29  ;;  %7289 = vmatpush3.bf16.msra.mxu0 %v7557_v26  ;;  %v3437_v58 = vrot.slane %v10748_v0, 3 }
 0x1bc   : > { %v9426_v40 = vadd.f32 %v3181_v11, %v2981_v28  ;;  %7290 = vmatprep.subr.bf16.mxu0 %v10656_v29  ;;  %v3443_v11 = vsel %vm3360_vm14, %v3430_v44, %v3442_v20  ;;  %v7563_v44 = vld [vmem:[%s10455_s3 + $0x218] sm:$0xff]   ;;  %v10754_v28 = vshll.u32 %v8648_v27, 16  ;;  %v7570_v27 = vld [vmem:[%s10455_s3 + $0x208] sm:$0xff]  }
 0x1bd   : > { %5377 = vmatpush1.bf16.msra.mxu1 %v7552_v19  ;;  %v2983_v62 = vpop.f32.mrf.mxu0  ;;  %v3438_v17 = vor.u32 %v3437_v58, %v3436_v56  ;;  %v3454_v19 = vor.u32 %v3453_v39, %v3452_v22  ;;  %v3465_v56 = vrot.slane %v10756_v5, 3  ;;  %v3457_v22 = vrot.slane %v10758_v31, 3 }
 0x1be   : > { %5378 = vmatprep.subr.bf16.mxu1 %v9336_v23  ;;  %v10768_v31 = vshll.u32 %v8877_v24, 16 }
 0x1bf   : > { %v2984_v10 = vpop.f32.mrf.mxu0  ;;  %7291 = vmatpush3.bf16.msra.mxu0 %v7560_v51  ;;  %v3439_v42 = vsel %vm3360_vm14, %v3426_v37, %v3438_v17  ;;  %v3455_v62 = vsel %vm3360_vm14, %v3442_v20, %v3454_v19  ;;  %v10755_v51 = vshrl.u32 %v8695_v9, 16  ;;  %v7558_v37 = vld [vmem:[%s10455_s3 + $0x180] sm:$0xff]   ;;  %v10757_v9 = vshrl.u32 %v8618_v25, 16 }
 0x1c0   : > { %3911 = vmatmul.mubr.bf16.gmra.mxu1 %v3427_v38  ;;  %v9443_v50 = vadd.f32 %v3184_v53, %v2984_v10  ;;  %v3189_v3 = vpop.f32.mrf.mxu1  ;;  %v3444_v53 = vrot.slane %v10751_v57, 2  ;;  %7292 = vmatprep.subr.bf16.mxu0 %v10656_v29 }
 0x1c1   : > { %3918 = vmatprep.mubr.bf16.mxu1 %v3443_v11  ;;  %5379 = vmatpush1.bf16.msra.mxu1 %v7553_v8  ;;  %v2986_v1 = vpop.f32.mrf.mxu0  ;;  %v3449_v8 = vrot.slane %v10754_v28, 3  ;;  %v3464_v38 = vrot.slane %v10755_v51, 2  ;;  %v3456_v11 = vrot.slane %v10757_v9, 2  ;;  %v10767_v9 = vshrl.u32 %v8877_v24, 16 }
 0x1c2   : > { %5380 = vmatprep.subr.bf16.mxu1 %v9336_v23  ;;  %7209 = vmatmul.mubr.bf16.gmra.mxu0 %v3435_v6  ;;  %v7114_v26 = vpop.f32.mrf.mxu1  ;;  %v3446_v49 = vor.u32 %v3445_v34, %v3444_v53  ;;  %v10759_v1 = vshrl.u32 %v8726_v54, 16  ;;  %v10760_v6 = vshll.u32 %v8726_v54, 16  ;;  %v7561_v54 = vld [vmem:[%s10455_s3 + $0x1f0] sm:$0xff]  }
 0x1c3   : > { %7212 = vmatprep.mubr.msk.bf16.mxu0 %vm7685_vm0, %v10656_v29  ;;  %7293 = vmatpush3.bf16.msra.mxu0 %v7563_v44  ;;  %v3450_v58 = vor.u32 %v3449_v8, %v3448_v43  ;;  %v3466_v7 = vor.u32 %v3465_v56, %v3464_v38  ;;  %v10762_v26 = vshll.u32 %v8781_v63, 16  ;;  %v10763_v43 = vshrl.u32 %v8710_v60, 16 }
 0x1c4   : > { %v3192_v32 = vpop.f32.mrf.mxu1  ;;  %7294 = vmatprep.subr.bf16.mxu0 %v10656_v29  ;;  %v3447_v20 = vsel %vm3360_vm14, %v3434_v46, %v3446_v49  ;;  %v7559_v46 = vld [vmem:[%s10455_s3 + $0x1f8] sm:$0xff]   ;;  %v3460_v44 = vrot.slane %v10759_v1, 2  ;;  %v3461_v57 = vrot.slane %v10760_v6, 3  ;;  %v10770_v1 = vshll.u32 %v8834_v36, 16 }
 0x1c5   : > { %5381 = vmatpush1.bf16.msra.mxu1 %v7555_v4  ;;  %v3451_v25 = vsel %vm3360_vm14, %v3438_v17, %v3450_v58  ;;  %v3458_v4 = vor.u32 %v3457_v22, %v3456_v11  ;;  %v3467_v52 = vsel %vm3360_vm14, %v3454_v19, %v3466_v7  ;;  %v3468_v28 = vrot.slane %v10763_v43, 2 }
 0x1c6   : > { %5382 = vmatprep.subr.bf16.mxu1 %v9336_v23  ;;  %v7115_v0 = vpop.f32.mrf.mxu1  ;;  %v3462_v41 = vor.u32 %v3461_v57, %v3460_v44  ;;  %v3488_v11 = vrot.slane %v10767_v9, 2  ;;  %v3489_v22 = vrot.slane %v10768_v31, 3  ;;  %v3481_v44 = vrot.slane %v10770_v1, 3 }
 0x1c7   : > { %7295 = vmatpush3.bf16.msra.mxu0 %v7566_v2  ;;  %v3459_v19 = vsel %vm3360_vm14, %v3446_v49, %v3458_v4  ;;  %v10774_v43 = vshll.u32 %v8958_v14, 16  ;;  %v10779_v31 = vshrl.u32 %v8985_v59, 16 }
 0x1c8   : > { %3919 = vmatmul.mubr.bf16.gmra.mxu1 %v3439_v42  ;;  %7296 = vmatprep.subr.bf16.mxu0 %v10656_v29  ;;  %v3463_v5 = vsel %vm3360_vm14, %v3450_v58, %v3462_v41  ;;  %v7564_v58 = vld [vmem:[%s10455_s3 + $0x1e0] sm:$0xff]   ;;  %v3490_v6 = vor.u32 %v3489_v22, %v3488_v11 }
 0x1c9   : > { %3926 = vmatprep.mubr.bf16.mxu1 %v3455_v62  ;;  %5383 = vmatpush1.bf16.msra.mxu1 %v7556_v21  ;;  %v3477_v21 = vrot.slane %v10762_v26, 3  ;;  %v3512_v22 = vrot.slane %v10779_v31, 2 }
 0x1ca   : > { %5384 = vmatprep.subr.bf16.mxu1 %v9336_v23  ;;  %7213 = vmatmul.mubr.bf16.gmra.mxu0 %v3447_v20  ;;  %v2989_v39 = vpop.f32.mrf.mxu0 }
 0x1cb   : > { %7216 = vmatprep.mubr.msk.bf16.mxu0 %vm7685_vm0, %v10656_v29  ;;  %v9496_v10 = vadd.f32 %v3189_v3, %v2989_v39  ;;  %7297 = vmatpush3.bf16.msra.mxu0 %v7570_v27  ;;  %v10761_v3 = vshrl.u32 %v8781_v63, 16  ;;  %v10764_v63 = vshll.u32 %v8710_v60, 16  ;;  %v10765_v60 = vshrl.u32 %v8861_v35, 16 }
 0x1cc   : > { %v2991_v53 = vpop.f32.mrf.mxu0  ;;  %7298 = vmatprep.subr.bf16.mxu0 %v10656_v29 }
 0x1cd   : > { %5385 = vmatpush1.bf16.msra.mxu1 %v7558_v37  ;;  %v3476_v34 = vrot.slane %v10761_v3, 2  ;;  %v3469_v8 = vrot.slane %v10764_v63, 3  ;;  %v3472_v0 = vrot.slane %v10765_v60, 2  ;;  %v10766_v37 = vshll.u32 %v8861_v35, 16  ;;  %v7582_v35 = vld [vmem:[%s10455_s3 + $0x200] sm:$0xff]   ;;  %v7569_v60 = vld [vmem:[%s10455_s3 + $0x1c8] sm:$0xff]  }
 0x1ce   : > { %5386 = vmatprep.subr.bf16.mxu1 %v9336_v23  ;;  %v2992_v17 = vpop.f32.mrf.mxu0 }
 0x1cf   : > { %v3197_v2 = vpop.f32.mrf.mxu1  ;;  %v9513_v42 = vadd.f32 %v3192_v32, %v2992_v17  ;;  %v3478_v51 = vor.u32 %v3477_v21, %v3476_v34  ;;  %v7562_v32 = vld [vmem:[%s10455_s3 + $0x1e8] sm:$0xff]   ;;  %v3470_v56 = vor.u32 %v3469_v8, %v3468_v28  ;;  %v3473_v27 = vrot.slane %v10766_v37, 3  ;;  %7299 = vmatpush3.bf16.msra.mxu0 %v7582_v35 }
 0x1d0   : > { %3927 = vmatmul.mubr.bf16.gmra.mxu1 %v3451_v25  ;;  %v2994_v62 = vpop.f32.mrf.mxu0  ;;  %v10769_v25 = vshrl.u32 %v8834_v36, 16  ;;  %v10771_v34 = vshrl.u32 %v8952_v61, 16  ;;  %v10772_v21 = vshll.u32 %v8952_v61, 16  ;;  %v3501_v28 = vrot.slane %v10774_v43, 3 }
 0x1d1   : > { %3934 = vmatprep.mubr.bf16.mxu1 %v3467_v52  ;;  %5387 = vmatpush2.bf16.msra.mxu1 %v7559_v46  ;;  %v7118_v38 = vpop.f32.mrf.mxu1  ;;  %v3479_v20 = vsel %vm3360_vm14, %v3466_v7, %v3478_v51  ;;  %v3471_v7 = vsel %vm3360_vm14, %v3458_v4, %v3470_v56  ;;  %v3474_v46 = vor.u32 %v3473_v27, %v3472_v0  ;;  %v7565_v4 = vld [vmem:[%s10455_s3 + $0x1d8] sm:$0xff]   ;;  %v10777_v27 = vshrl.u32 %v8978_v12, 16 }
 0x1d2   : > { %5388 = vmatprep.subr.bf16.mxu1 %v9336_v23  ;;  %7217 = vmatmul.mubr.bf16.gmra.mxu0 %v3459_v19  ;;  %v3480_v24 = vrot.slane %v10769_v25, 2  ;;  %v3484_v26 = vrot.slane %v10771_v34, 2  ;;  %v3485_v17 = vrot.slane %v10772_v21, 3  ;;  %v10775_v38 = vshrl.u32 %v8908_v13, 16 }
 0x1d3   : > { %7220 = vmatprep.mubr.msk.bf16.mxu0 %vm7685_vm0, %v10656_v29  ;;  %v3200_v49 = vpop.f32.mrf.mxu1  ;;  %v3475_v36 = vsel %vm3360_vm14, %v3462_v41, %v3474_v46  ;;  %v7567_v41 = vld [vmem:[%s10455_s3 + $0x1d0] sm:$0xff]  }
 0x1d4   : > { %v3482_v3 = vor.u32 %v3481_v44, %v3480_v24  ;;  %v10781_v24 = vshrl.u32 %v8969_v30, 16  ;;  %v10782_v44 = vshll.u32 %v8969_v30, 16 }
 0x1d5   : > { %5389 = vmatpush2.bf16.msra.mxu1 %v7561_v54  ;;  %v7119_v39 = vpop.f32.mrf.mxu1  ;;  %v3491_v54 = vsel %vm3360_vm14, %v3478_v51, %v3490_v6  ;;  %v3486_v51 = vor.u32 %v3485_v17, %v3484_v26  ;;  %v10785_v26 = vshrl.u32 %v9040_v18, 16  ;;  %v10786_v17 = vshll.u32 %v9040_v18, 16 }
 0x1d6   : > { %5390 = vmatprep.subr.bf16.mxu1 %v9336_v23  ;;  %v3483_v62 = vsel %vm3360_vm14, %v3470_v56, %v3482_v3  ;;  %v10780_v39 = vshll.u32 %v8985_v59, 16  ;;  %v3504_v1 = vrot.slane %v10781_v24, 2  ;;  %v3505_v59 = vrot.slane %v10782_v44, 3 }
 0x1d7   : > { %v3487_v56 = vsel %vm3360_vm14, %v3474_v46, %v3486_v51  ;;  %v3524_v21 = vrot.slane %v10785_v26, 2 }
 0x1d8   : > { %3935 = vmatmul.mubr.bf16.gmra.mxu1 %v3463_v5 }
 0x1d9   : > { %3942 = vmatprep.mubr.bf16.mxu1 %v3479_v20  ;;  %5391 = vmatpush2.bf16.msra.mxu1 %v7562_v32  ;;  %v3492_v32 = vrot.slane %v10775_v38, 2  ;;  %v10778_v20 = vshll.u32 %v8978_v12, 16 }
 0x1da   : > { %5392 = vmatprep.subr.bf16.mxu1 %v9336_v23  ;;  %7221 = vmatmul.mubr.bf16.gmra.mxu0 %v3471_v7  ;;  %v2997_v57 = vpop.f32.mrf.mxu0  ;;  %v7573_v7 = vld [vmem:[%s10455_s3 + $0x1c0] sm:$0xff]  }
 0x1db   : > { %7224 = vmatprep.mubr.msk.bf16.mxu0 %vm7685_vm0, %v10656_v29  ;;  %v9551_v53 = vadd.f32 %v3197_v2, %v2997_v57  ;;  %v10773_v2 = vshrl.u32 %v8958_v14, 16  ;;  %v10776_v14 = vshll.u32 %v8908_v13, 16  ;;  %v3496_v13 = vrot.slane %v10777_v27, 2 }
 0x1dc   : > { %v2999_v52 = vpop.f32.mrf.mxu0  ;;  %v3497_v9 = vrot.slane %v10778_v20, 3  ;;  %v10791_v27 = vshrl.u32 %v9081_v16, 16  ;;  %v10792_v20 = vshll.u32 %v9081_v16, 16 }
 0x1dd   : > { %5393 = vmatpush2.bf16.msra.mxu1 %v7564_v58  ;;  %v3500_v19 = vrot.slane %v10773_v2, 2  ;;  %v3493_v5 = vrot.slane %v10776_v14, 3  ;;  %v3513_v58 = vrot.slane %v10780_v39, 3  ;;  %v10783_v52 = vshrl.u32 %v9024_v15, 16 }
 0x1de   : > { %5394 = vmatprep.subr.bf16.mxu1 %v9336_v23  ;;  %v3000_v63 = vpop.f32.mrf.mxu0  ;;  %v3498_v25 = vor.u32 %v3497_v9, %v3496_v13  ;;  %v3536_v13 = vrot.slane %v10791_v27, 2  ;;  %v3537_v9 = vrot.slane %v10792_v20, 3  ;;  %v10793_v39 = vshrl.u32 %v9042_v55, 16 }
 0x1df   : > { %v9567_v8 = vadd.f32 %v3200_v49, %v3000_v63  ;;  %v3502_v49 = vor.u32 %v3501_v28, %v3500_v19  ;;  %v3494_v37 = vor.u32 %v3493_v5, %v3492_v32 }
 0x1e0   : > { %3943 = vmatmul.mubr.bf16.gmra.mxu1 %v3475_v36  ;;  %v3002_v61 = vpop.f32.mrf.mxu0  ;;  %v3508_v36 = vrot.slane %v10783_v52, 2 }
 0x1e1   : > { %3950 = vmatprep.mubr.bf16.mxu1 %v3491_v54  ;;  %5395 = vmatpush2.bf16.msra.mxu1 %v7565_v4  ;;  %v3503_v11 = vsel %vm3360_vm14, %v3490_v6, %v3502_v49  ;;  %v3495_v12 = vsel %vm3360_vm14, %v3482_v3, %v3494_v37  ;;  %v3514_v6 = vor.u32 %v3513_v58, %v3512_v22  ;;  %v10784_v3 = vshll.u32 %v9024_v15, 16 }
 0x1e2   : > { %5396 = vmatprep.subr.bf16.mxu1 %v9336_v23  ;;  %7225 = vmatmul.mubr.bf16.gmra.mxu0 %v3483_v62  ;;  %v3506_v4 = vor.u32 %v3505_v59, %v3504_v1  ;;  %v3525_v54 = vrot.slane %v10786_v17, 3  ;;  %v10787_v15 = vshrl.u32 %v9018_v33, 16  ;;  %v10788_v61 = vshll.u32 %v9018_v33, 16  ;;  %v10795_v59 = vld [vmem:[#allocation45_spill] sm:$0xff] }
 0x1e3   : > { %7228 = vmatprep.mubr.msk.bf16.mxu0 %vm7685_vm0, %v10656_v29  ;;  %v3205_v0 = vpop.f32.mrf.mxu1  ;;  %v3509_v34 = vrot.slane %v10784_v3, 3  ;;  %v3515_v30 = vsel %vm3360_vm14, %v3502_v49, %v3514_v6  ;;  %v10789_v49 = vshrl.u32 %v9062_v48, 16  ;;  %v3528_v58 = vrot.slane %v10793_v39, 2  ;;  %v10798_v3 = vld [vmem:[#allocation46_spill] sm:$0xff] }
 0x1e4   : > { %v3507_v43 = vsel %vm3360_vm14, %v3494_v37, %v3506_v4  ;;  %v3517_v62 = vrot.slane %v10788_v61, 3  ;;  %v10800_v26 = vshll.u32 %v10798_v3, 16 }
 0x1e5   : > { %5397 = vmatpush2.bf16.msra.mxu1 %v7567_v41  ;;  %v7122_v35 = vpop.f32.mrf.mxu1  ;;  %v3510_v63 = vor.u32 %v3509_v34, %v3508_v36  ;;  %v3516_v41 = vrot.slane %v10787_v15, 2  ;;  %v10799_v34 = vshrl.u32 %v10798_v3, 16 }
 0x1e6   : > { %5398 = vmatprep.subr.bf16.mxu1 %v9336_v23 }
 0x1e7   : > { %v3208_v46 = vpop.f32.mrf.mxu1  ;;  %v3511_v32 = vsel %vm3360_vm14, %v3498_v25, %v3510_v63  ;;  %v3518_v5 = vor.u32 %v3517_v62, %v3516_v41 }
 0x1e8   : > { %3951 = vmatmul.mubr.bf16.gmra.mxu1 %v3487_v56 }
 0x1e9   : > { %3958 = vmatprep.mubr.bf16.mxu1 %v3503_v11  ;;  %5399 = vmatpush2.bf16.msra.mxu1 %v7569_v60  ;;  %v7123_v57 = vpop.f32.mrf.mxu1  ;;  %v3520_v60 = vrot.slane %v10789_v49, 2  ;;  %v3519_v31 = vsel %vm3360_vm14, %v3506_v4, %v3518_v5 }
 0x1ea   : > { %5400 = vmatprep.subr.bf16.mxu1 %v9336_v23  ;;  %7229 = vmatmul.mubr.bf16.gmra.mxu0 %v3495_v12  ;;  %v3499_v23 = vsel %vm3360_vm14, %v3486_v51, %v3498_v25  ;;  %v3526_v51 = vor.u32 %v3525_v54, %v3524_v21  ;;  %v3538_v12 = vor.u32 %v3537_v9, %v3536_v13  ;;  %v3549_v21 = vrot.slane %v10800_v26, 3 }
 0x1eb   : > { %7232 = vmatprep.mubr.msk.bf16.mxu0 %vm7685_vm0, %v10656_v29 }
 0x1ec   : > { %v3527_v37 = vsel %vm3360_vm14, %v3514_v6, %v3526_v51  ;;  %v10796_v6 = vshrl.u32 %v10795_v59, 16  ;;  %v3539_v36 = vsel %vm3360_vm14, %v3526_v51, %v3538_v12 }
 0x1ed   : > { %5401 = vmatpush2.bf16.msra.mxu1 %v7573_v7 }
 0x1ee   : > { %7384 = vmatprep.subr.bf16.mxu1 %v10656_v29  ;;  %v3005_v2 = vpop.f32.mrf.mxu0  ;;  %v3532_v57 = vrot.slane %v10796_v6, 2 }
 0x1ef   : > { %v9616_v19 = vadd.f32 %v3205_v0, %v3005_v2  ;;  %v10790_v0 = vshll.u32 %v9062_v48, 16  ;;  %v10794_v48 = vshll.u32 %v9042_v55, 16  ;;  %v10797_v55 = vshll.u32 %v10795_v59, 16 }
 0x1f0   : > { %3959 = vmatmul.mubr.bf16.gmra.mxu1 %v3499_v23  ;;  %v3007_v28 = vpop.f32.mrf.mxu0 }
 0x1f1   : > { %3966 = vmatprep.mubr.bf16.mxu1 %v3515_v30  ;;  %v3521_v56 = vrot.slane %v10790_v0, 3  ;;  %v3529_v35 = vrot.slane %v10794_v48, 3  ;;  %v3533_v23 = vrot.slane %v10797_v55, 3  ;;  %v3548_v30 = vrot.slane %v10799_v34, 2 }
 0x1f2   : > { %7233 = vmatmul.mubr.bf16.gmra.mxu0 %v3507_v43  ;;  %v3008_v38 = vpop.f32.mrf.mxu0 }
 0x1f3   : > { %7236 = vmatprep.mubr.msk.bf16.mxu0 %vm7685_vm0, %v10656_v29  ;;  %v9625_v18 = vadd.f32 %v3208_v46, %v3008_v38  ;;  %v3522_v22 = vor.u32 %v3521_v56, %v3520_v60  ;;  %v3530_v44 = vor.u32 %v3529_v35, %v3528_v58  ;;  %v3534_v28 = vor.u32 %v3533_v23, %v3532_v57  ;;  %v10804_v56 = vld [vmem:[#allocation48_spill] sm:$0xff] }
 0x1f4   : > { %v3010_v14 = vpop.f32.mrf.mxu0  ;;  %v10806_v27 = vshll.u32 %v10804_v56, 16 }
 0x1f5   : > { %v3523_v1 = vsel %vm3360_vm14, %v3510_v63, %v3522_v22  ;;  %v3531_v43 = vsel %vm3360_vm14, %v3518_v5, %v3530_v44  ;;  %v10801_v63 = vld [vmem:[#allocation44_spill] sm:$0xff]  ;;  %v3535_v5 = vsel %vm3360_vm14, %v3522_v22, %v3534_v28 }
 0x1f6   : > { %v10802_v15 = vshrl.u32 %v10801_v63, 16  ;;  %v10803_v61 = vshll.u32 %v10801_v63, 16  ;;  %v3545_v13 = vrot.slane %v10806_v27, 3 }
 0x1f8   : > { %v3213_v33 = vpop.f32.mrf.mxu1  ;;  %3967 = vmatmul.mubr.bf16.gmra.mxu1 %v3511_v32  ;;  %v3540_v41 = vrot.slane %v10802_v15, 2  ;;  %v3541_v62 = vrot.slane %v10803_v61, 3  ;;  %v3550_v32 = vor.u32 %v3549_v21, %v3548_v30  ;;  %v10813_v30 = vld [vmem:[#allocation51_spill] sm:$0xff] }
 0x1f9   : > { %3974 = vmatprep.mubr.bf16.mxu1 %v3527_v37  ;;  %v10814_v26 = vshrl.u32 %v10813_v30, 16 }
 0x1fa   : > { %v7126_v11 = vpop.f32.mrf.mxu1  ;;  %v3013_v46 = vpop.f32.mrf.mxu0  ;;  %7237 = vmatmul.mubr.bf16.gmra.mxu0 %v3519_v31  ;;  %v3542_v0 = vor.u32 %v3541_v62, %v3540_v41  ;;  %v10807_v31 = vld [vmem:[#allocation49_spill] sm:$0xff]  ;;  %v10816_v41 = vld [vmem:[#allocation52_spill] sm:$0xff] }
 0x1fb   : > { %v9642_v25 = vadd.f32 %v3213_v33, %v3013_v46  ;;  %7240 = vmatprep.mubr.msk.bf16.mxu0 %vm7685_vm0, %v10656_v29  ;;  %v10805_v33 = vshrl.u32 %v10804_v56, 16  ;;  %v3551_v11 = vsel %vm3360_vm14, %v3538_v12, %v3550_v32  ;;  %v10808_v39 = vshrl.u32 %v10807_v31, 16 }
 0x1fc   : > { %v3216_v7 = vpop.f32.mrf.mxu1  ;;  %v3015_v24 = vpop.f32.mrf.mxu0  ;;  %v10809_v48 = vshll.u32 %v10807_v31, 16  ;;  %v3556_v21 = vrot.slane %v10814_v26, 2  ;;  %v10817_v61 = vshrl.u32 %v10816_v41, 16 }
 0x1fd   : > { %v3544_v37 = vrot.slane %v10805_v33, 2  ;;  %v3560_v58 = vrot.slane %v10808_v39, 2  ;;  %v10819_v33 = vld [vmem:[#allocation50_spill] sm:$0xff] }
 0x1fe   : > { %v7127_v16 = vpop.f32.mrf.mxu1  ;;  %v3016_v52 = vpop.f32.mrf.mxu0  ;;  %v3561_v35 = vrot.slane %v10809_v48, 3  ;;  %v3572_v62 = vrot.slane %v10817_v61, 2 }
 0x1ff   : > { %v9656_v17 = vadd.f32 %v3216_v7, %v3016_v52  ;;  %v3543_v16 = vsel %vm3360_vm14, %v3530_v44, %v3542_v0  ;;  %v3546_v24 = vor.u32 %v3545_v13, %v3544_v37  ;;  %v10820_v37 = vshrl.u32 %v10819_v33, 16 }
 0x200   : > { %v3221_v4 = vpop.f32.mrf.mxu1  ;;  %3975 = vmatmul.mubr.bf16.gmra.mxu1 %v3523_v1  ;;  %v3018_v2 = vpop.f32.mrf.mxu0  ;;  %v10810_v1 = vld [vmem:[#allocation47_spill] sm:$0xff]  ;;  %v10821_v13 = vshll.u32 %v10819_v33, 16 }
 0x201   : > { %3982 = vmatprep.mubr.bf16.mxu1 %v3539_v36  ;;  %v10811_v59 = vshrl.u32 %v10810_v1, 16  ;;  %v10812_v57 = vshll.u32 %v10810_v1, 16  ;;  %v3547_v44 = vsel %vm3360_vm14, %v3534_v28, %v3546_v24  ;;  %v3564_v27 = vrot.slane %v10820_v37, 2 }
 0x202   : > { %v7130_v54 = vpop.f32.mrf.mxu1  ;;  %v3021_v38 = vpop.f32.mrf.mxu0  ;;  %7241 = vmatmul.mubr.bf16.gmra.mxu0 %v3531_v43 }
 0x203   : > { %v9663_v14 = vadd.f32 %v3221_v4, %v3021_v38  ;;  %7244 = vmatprep.mubr.msk.bf16.mxu0 %vm7685_vm0, %v10656_v29  ;;  %v3552_v6 = vrot.slane %v10811_v59, 2  ;;  %v3553_v12 = vrot.slane %v10812_v57, 3  ;;  %v3562_v4 = vor.u32 %v3561_v35, %v3560_v58  ;;  %v10822_v35 = vld [vmem:[#allocation54_spill] sm:$0xff] }
 0x204   : > { %v3224_v51 = vpop.f32.mrf.mxu1  ;;  %v3023_v60 = vpop.f32.mrf.mxu0  ;;  %v10815_v54 = vshll.u32 %v10813_v30, 16 }
 0x205   : > { %v3554_v34 = vor.u32 %v3553_v12, %v3552_v6  ;;  %v3563_v15 = vsel %vm3360_vm14, %v3550_v32, %v3562_v4  ;;  %v3565_v32 = vrot.slane %v10821_v13, 3  ;;  %v10825_v12 = vld [vmem:[#allocation55_spill] sm:$0xff] }
 0x206   : > { %v7131_v49 = vpop.f32.mrf.mxu1  ;;  %v3024_v9 = vpop.f32.mrf.mxu0  ;;  %v3557_v2 = vrot.slane %v10815_v54, 3  ;;  %v10828_v54 = vld [vmem:[#allocation53_spill] sm:$0xff] }
 0x207   : > { %v9677_v7 = vadd.f32 %v3224_v51, %v3024_v9  ;;  %v10818_v51 = vshll.u32 %v10816_v41, 16  ;;  %v3566_v48 = vor.u32 %v3565_v32, %v3564_v27 }
 0x208   : > { %v3229_v20 = vpop.f32.mrf.mxu1  ;;  %3983 = vmatmul.mubr.bf16.gmra.mxu1 %v3535_v5  ;;  %v3026_v46 = vpop.f32.mrf.mxu0  ;;  %v3555_v5 = vsel %vm3360_vm14, %v3542_v0, %v3554_v34  ;;  %v3558_v56 = vor.u32 %v3557_v2, %v3556_v21  ;;  %v10829_v2 = vshrl.u32 %v10828_v54, 16 }
 0x209   : > { %3990 = vmatprep.mubr.bf16.mxu1 %v3551_v11  ;;  %v3573_v38 = vrot.slane %v10818_v51, 3  ;;  %v3567_v26 = vsel %vm3360_vm14, %v3554_v34, %v3566_v48 }
 0x20a   : > { %v7134_v22 = vpop.f32.mrf.mxu1  ;;  %v3029_v23 = vpop.f32.mrf.mxu0  ;;  %7245 = vmatmul.mubr.bf16.gmra.mxu0 %v3543_v16  ;;  %v3559_v0 = vsel %vm3360_vm14, %v3546_v24, %v3558_v56  ;;  %v10824_v16 = vshll.u32 %v10822_v35, 16 }
 0x20b   : > { %v9684_v52 = vadd.f32 %v3229_v20, %v3029_v23  ;;  %7248 = vmatprep.mubr.msk.bf16.mxu0 %vm7685_vm0, %v10656_v29  ;;  %v3574_v11 = vor.u32 %v3573_v38, %v3572_v62  ;;  %v10823_v22 = vshrl.u32 %v10822_v35, 16 }
 0x20c   : > { %v3232_v55 = vpop.f32.mrf.mxu1  ;;  %v3031_v3 = vpop.f32.mrf.mxu0  ;;  %v3569_v1 = vrot.slane %v10824_v16, 3 }
 0x20d   : > { %v3568_v46 = vrot.slane %v10823_v22, 2  ;;  %v3575_v57 = vsel %vm3360_vm14, %v3562_v4, %v3574_v11 }
 0x20e   : > { %v7135_v36 = vpop.f32.mrf.mxu1  ;;  %v3032_v63 = vpop.f32.mrf.mxu0 }
 0x20f   : > { %v9698_v49 = vadd.f32 %v3232_v55, %v3032_v63  ;;  %v10826_v55 = vshrl.u32 %v10825_v12, 16  ;;  %v10827_v36 = vshll.u32 %v10825_v12, 16  ;;  %v3570_v21 = vor.u32 %v3569_v1, %v3568_v46 }
 0x210   : > { %v3237_v43 = vpop.f32.mrf.mxu1  ;;  %3991 = vmatmul.mubr.bf16.gmra.mxu1 %v3547_v44  ;;  %v3034_v60 = vpop.f32.mrf.mxu0  ;;  %v10830_v63 = vshll.u32 %v10828_v54, 16  ;;  %v10840_v54 = vld [vmem:[#allocation60_spill] sm:$0xff] }
 0x211   : > { %3998 = vmatprep.mubr.bf16.mxu1 %v3563_v15  ;;  %v3584_v23 = vrot.slane %v10826_v55, 2  ;;  %v3585_v3 = vrot.slane %v10827_v36, 3  ;;  %v3571_v34 = vsel %vm3360_vm14, %v3558_v56, %v3570_v21  ;;  %v10831_v60 = vld [vmem:[#allocation57_spill] sm:$0xff] }
 0x212   : > { %v7138_v28 = vpop.f32.mrf.mxu1  ;;  %v3037_v9 = vpop.f32.mrf.mxu0  ;;  %7249 = vmatmul.mubr.bf16.gmra.mxu0 %v3555_v5  ;;  %v3577_v4 = vrot.slane %v10830_v63, 3  ;;  %v10832_v5 = vshrl.u32 %v10831_v60, 16  ;;  %v10833_v37 = vshll.u32 %v10831_v60, 16  ;;  %v10842_v63 = vshll.u32 %v10840_v54, 16 }
 0x213   : > { %v9705_v31 = vadd.f32 %v3237_v43, %v3037_v9  ;;  %7252 = vmatprep.mubr.msk.bf16.mxu0 %vm7685_vm0, %v10656_v29  ;;  %v3576_v43 = vrot.slane %v10829_v2, 2  ;;  %v3586_v61 = vor.u32 %v3585_v3, %v3584_v23  ;;  %v10834_v9 = vld [vmem:[#allocation58_spill] sm:$0xff]  ;;  %v10841_v2 = vshrl.u32 %v10840_v54, 16 }
 0x214   : > { %v3240_v20 = vpop.f32.mrf.mxu1  ;;  %v3039_v58 = vpop.f32.mrf.mxu0  ;;  %v3580_v33 = vrot.slane %v10832_v5, 2  ;;  %v3581_v27 = vrot.slane %v10833_v37, 3 }
 0x215   : > { %v3578_v28 = vor.u32 %v3577_v4, %v3576_v43  ;;  %v3592_v43 = vrot.slane %v10841_v2, 2  ;;  %v3593_v4 = vrot.slane %v10842_v63, 3  ;;  %v10852_v2 = vld [vmem:[#allocation64_spill] sm:$0xff] }
 0x216   : > { %v7139_v39 = vpop.f32.mrf.mxu1  ;;  %v3040_v6 = vpop.f32.mrf.mxu0  ;;  %v3582_v1 = vor.u32 %v3581_v27, %v3580_v33 }
 0x217   : > { %v9719_v44 = vadd.f32 %v3240_v20, %v3040_v6  ;;  %v3587_v20 = vsel %vm3360_vm14, %v3574_v11, %v3586_v61  ;;  %v10835_v39 = vshrl.u32 %v10834_v9, 16  ;;  %v3579_v16 = vsel %vm3360_vm14, %v3566_v48, %v3578_v28 }
 0x218   : > { %v3245_v59 = vpop.f32.mrf.mxu1  ;;  %3999 = vmatmul.mubr.bf16.gmra.mxu1 %v3559_v0  ;;  %v3042_v30 = vpop.f32.mrf.mxu0  ;;  %v10836_v0 = vshll.u32 %v10834_v9, 16  ;;  %v3583_v48 = vsel %vm3360_vm14, %v3570_v21, %v3582_v1 }
 0x219   : > { %4006 = vmatprep.mubr.bf16.mxu1 %v3575_v57  ;;  %v3596_v58 = vrot.slane %v10835_v39, 2 }
 0x21a   : > { %v7142_v24 = vpop.f32.mrf.mxu1  ;;  %v3045_v41 = vpop.f32.mrf.mxu0  ;;  %7253 = vmatmul.mubr.bf16.gmra.mxu0 %v3567_v26  ;;  %v3597_v35 = vrot.slane %v10836_v0, 3 }
 0x21b   : > { %v9726_v62 = vadd.f32 %v3245_v59, %v3045_v41  ;;  %7256 = vmatprep.mubr.msk.bf16.mxu0 %vm7685_vm0, %v10656_v29  ;;  %v10837_v59 = vld [vmem:[#allocation56_spill] sm:$0xff] }
 0x21c   : > { %v3248_v15 = vpop.f32.mrf.mxu1  ;;  %v3047_v38 = vpop.f32.mrf.mxu0  ;;  %v10838_v6 = vshrl.u32 %v10837_v59, 16  ;;  %v10839_v12 = vshll.u32 %v10837_v59, 16  ;;  %v3598_v36 = vor.u32 %v3597_v35, %v3596_v58 }
 0x21d   : > { %v10843_v38 = vld [vmem:[#allocation61_spill] sm:$0xff] }
 0x21e   : > { %v7143_v51 = vpop.f32.mrf.mxu1  ;;  %v3048_v32 = vpop.f32.mrf.mxu0  ;;  %v3588_v57 = vrot.slane %v10838_v6, 2  ;;  %v3589_v11 = vrot.slane %v10839_v12, 3  ;;  %v10845_v5 = vshll.u32 %v10843_v38, 16  ;;  %v10849_v12 = vld [vmem:[#allocation63_spill] sm:$0xff] }
 0x21f   : > { %v9740_v22 = vadd.f32 %v3248_v15, %v3048_v32  ;;  %v3599_v51 = vsel %vm3360_vm14, %v3586_v61, %v3598_v36  ;;  %v3594_v32 = vor.u32 %v3593_v4, %v3592_v43  ;;  %v10853_v43 = vshrl.u32 %v10852_v2, 16 }
 0x220   : > { %v3253_v13 = vpop.f32.mrf.mxu1  ;;  %4007 = vmatmul.mubr.bf16.gmra.mxu1 %v3571_v34  ;;  %v3050_v46 = vpop.f32.mrf.mxu0  ;;  %v3590_v26 = vor.u32 %v3589_v11, %v3588_v57  ;;  %v10844_v34 = vshrl.u32 %v10843_v38, 16  ;;  %v3609_v33 = vrot.slane %v10845_v5, 3  ;;  %v10850_v11 = vshrl.u32 %v10849_v12, 16 }
 0x221   : > { %4014 = vmatprep.mubr.bf16.mxu1 %v3587_v20  ;;  %v10846_v20 = vld [vmem:[#allocation59_spill] sm:$0xff]  ;;  %v3620_v63 = vrot.slane %v10853_v43, 2  ;;  %v10854_v4 = vshll.u32 %v10852_v2, 16 }
 0x222   : > { %v7146_v56 = vpop.f32.mrf.mxu1  ;;  %v3053_v23 = vpop.f32.mrf.mxu0  ;;  %7257 = vmatmul.mubr.bf16.gmra.mxu0 %v3579_v16  ;;  %v3608_v60 = vrot.slane %v10844_v34, 2  ;;  %v10847_v9 = vshrl.u32 %v10846_v20, 16  ;;  %v10848_v58 = vshll.u32 %v10846_v20, 16  ;;  %v1779_v16 = vld [vmem:[#allocation2 + $0x1ec] sm:$0x11] }
 0x223   : > { %v9747_v3 = vadd.f32 %v3253_v13, %v3053_v23  ;;  %7260 = vmatprep.mubr.msk.bf16.mxu0 %vm7685_vm0, %v10656_v29  ;;  %v3591_v13 = vsel %vm3360_vm14, %v3578_v28, %v3590_v26  ;;  %v3595_v28 = vsel %vm3360_vm14, %v3582_v1, %v3594_v32  ;;  %v10851_v23 = vshll.u32 %v10849_v12, 16 }
 0x224   : > { %v3256_v55 = vpop.f32.mrf.mxu1  ;;  %v3055_v30 = vpop.f32.mrf.mxu0  ;;  %v3600_v39 = vrot.slane %v10847_v9, 2  ;;  %v3601_v61 = vrot.slane %v10848_v58, 3  ;;  %v3610_v56 = vor.u32 %v3609_v33, %v3608_v60  ;;  %v10855_v33 = vld [vmem:[#allocation62_spill] sm:$0xff] }
 0x226   : > { %v7147_v24 = vpop.f32.mrf.mxu1  ;;  %v3056_v41 = vpop.f32.mrf.mxu0  ;;  %v3602_v57 = vor.u32 %v3601_v61, %v3600_v39  ;;  %v3611_v54 = vsel %vm3360_vm14, %v3598_v36, %v3610_v56  ;;  %v10857_v36 = vshll.u32 %v10855_v33, 16 }
 0x227   : > { %v9761_v37 = vadd.f32 %v3256_v55, %v3056_v41  ;;  %v3604_v55 = vrot.slane %v10850_v11, 2  ;;  %v3605_v24 = vrot.slane %v10851_v23, 3  ;;  %v7664_v41 = vld [vmem:[#allocation2 + $0x1e0] sm:$0xff] }
 0x228   : > { %v3261_v15 = vpop.f32.mrf.mxu1  ;;  %4015 = vmatmul.mubr.bf16.gmra.mxu1 %v3583_v48  ;;  %v3058_v27 = vpop.f32.mrf.mxu0  ;;  %v6493_v1 = vcombine.high %v7664_v41, %v1779_v16  ;;  %v3603_v60 = vsel %vm3360_vm14, %v3590_v26, %v3602_v57 }
 0x229   : > { %4022 = vmatprep.mubr.bf16.mxu1 %v3599_v51  ;;  %v3606_v5 = vor.u32 %v3605_v24, %v3604_v55  ;;  %v6492_v24 = vcombine.low %v7664_v41, %v1779_v16 }
 0x22a   : > { %v7150_v21 = vpop.f32.mrf.mxu1  ;;  %v3061_v35 = vpop.f32.mrf.mxu0  ;;  %7261 = vmatmul.mubr.bf16.gmra.mxu0 %v3591_v13  ;;  %v3613_v13 = vrot.slane %v10857_v36, 3  ;;  %v3638_v58 = vshrl.u32 %v6493_v1, 16  ;;  %v3641_v61 = vshll.u32 %v6493_v1, 16 }
 0x22b   : > { %v9768_v46 = vadd.f32 %v3261_v15, %v3061_v35  ;;  %7264 = vmatprep.mubr.msk.bf16.mxu0 %vm7685_vm0, %v10656_v29  ;;  %v3621_v15 = vrot.slane %v10854_v4, 3  ;;  %v10856_v21 = vshrl.u32 %v10855_v33, 16  ;;  %v3607_v55 = vsel %vm3360_vm14, %v3594_v32, %v3606_v5 }
 0x22c   : > { %v3264_v0 = vpop.f32.mrf.mxu1  ;;  %v3063_v6 = vpop.f32.mrf.mxu0  ;;  %v3640_v2 = vrot.slane %v3638_v58, 2  ;;  %v3643_v43 = vrot.slane %v3641_v61, 3 }
 0x22d   : > { %v3612_v27 = vrot.slane %v10856_v21, 2  ;;  %v3622_v39 = vor.u32 %v3621_v15, %v3620_v63  ;;  %v1780_v63 = vld [vmem:[#allocation2 + $0x1f4] sm:$0x1]  ;;  %v3629_v21 = vshrl.u32 %v6492_v24, 16 }
 0x22e   : > { %v7151_v59 = vpop.f32.mrf.mxu1  ;;  %v3064_v48 = vpop.f32.mrf.mxu0 }
 0x22f   : > { %v9782_v51 = vadd.f32 %v3264_v0, %v3064_v48  ;;  %v10858_v59 = vld [vmem:[#allocation66_spill] sm:$0xff]  ;;  %v3614_v23 = vor.u32 %v3613_v13, %v3612_v27  ;;  %v3632_v27 = vshll.u32 %v6492_v24, 16 }
 0x230   : > { %v3269_v30 = vpop.f32.mrf.mxu1  ;;  %4023 = vmatmul.mubr.bf16.gmra.mxu1 %v3595_v28  ;;  %v3066_v34 = vpop.f32.mrf.mxu0  ;;  %v10859_v6 = vshrl.u32 %v10858_v59, 16  ;;  %v10860_v12 = vshll.u32 %v10858_v59, 16 }
 0x231   : > { %4030 = vmatprep.mubr.bf16.mxu1 %v3611_v54  ;;  %v10861_v34 = vld [vmem:[#allocation65_spill] sm:$0xff]  ;;  %v3615_v41 = vsel %vm3360_vm14, %v3602_v57, %v3614_v23  ;;  %v3634_v57 = vrot.slane %v3632_v27, 3 }
 0x232   : > { %v7154_v38 = vpop.f32.mrf.mxu1  ;;  %v3069_v9 = vpop.f32.mrf.mxu0  ;;  %7265 = vmatmul.mubr.bf16.gmra.mxu0 %v3603_v60  ;;  %v3616_v28 = vrot.slane %v10859_v6, 2  ;;  %v3617_v11 = vrot.slane %v10860_v12, 3  ;;  %v10862_v60 = vshrl.u32 %v10861_v34, 16  ;;  %v10863_v32 = vshll.u32 %v10861_v34, 16 }
 0x233   : > { %v9789_v0 = vadd.f32 %v3269_v30, %v3069_v9  ;;  %7268 = vmatprep.mubr.msk.bf16.mxu0 %vm7685_vm0, %v10656_v29  ;;  %v3623_v30 = vsel %vm3360_vm14, %v3610_v56, %v3622_v39  ;;  %v7665_v56 = vld [vmem:[#allocation2 + $0x1e8] sm:$0xf]  ;;  %v3631_v6 = vrot.slane %v3629_v21, 2 }
 0x234   : > { %v3272_v20 = vpop.f32.mrf.mxu1  ;;  %v3071_v26 = vpop.f32.mrf.mxu0  ;;  %v3618_v38 = vor.u32 %v3617_v11, %v3616_v28  ;;  %v3624_v33 = vrot.slane %v10862_v60, 2  ;;  %v3625_v16 = vrot.slane %v10863_v32, 3  ;;  %v6494_v36 = vcombine.low %v7665_v56, %v1780_v63  ;;  %v9815_v60 = vld [vmem:[#allocation2 + $0x58] ss:$12 sps:$4 sm:$0xff]  }
 0x235   : > { %v3635_v63 = vor.u32 %v3634_v57, %v3631_v6  ;;  %v4682_v56 = vshll.u32 %v9815_v60, 16  ;;  %v9826_v6 = vld [vmem:[#allocation2 + $0x54] ss:$12 sps:$4 sm:$0xff]  }
 0x236   : > { %v7155_v35 = vpop.f32.mrf.mxu1  ;;  %v3072_v54 = vpop.f32.mrf.mxu0  ;;  %v3619_v26 = vsel %vm3360_vm14, %v3606_v5, %v3618_v38  ;;  %v3626_v59 = vor.u32 %v3625_v16, %v3624_v33  ;;  %v3647_v28 = vshrl.u32 %v6494_v36, 16  ;;  %v3650_v12 = vshll.u32 %v6494_v36, 16 }
 0x237   : > { %v9799_v4 = vadd.f32 %v3272_v20, %v3072_v54  ;;  %v3644_v20 = vor.u32 %v3643_v43, %v3640_v2  ;;  %v7576_v2 = vld [vmem:[#allocation2 + $0x40] ss:$12 sps:$4 sm:$0xff]  }
 0x238   : > { %v3277_v48 = vpop.f32.mrf.mxu1  ;;  %4031 = vmatmul.mubr.bf16.gmra.mxu1 %v3607_v55  ;;  %v3074_v1 = vpop.f32.mrf.mxu0  ;;  %v3627_v43 = vsel %vm3360_vm14, %v3614_v23, %v3626_v59  ;;  %v3649_v5 = vrot.slane %v3647_v28, 2  ;;  %v4677_v16 = vshll.u32 %v7576_v2, 16 }
 0x239   : > { %4038 = vmatprep.mubr.bf16.mxu1 %v3623_v30  ;;  %v3645_v24 = vsel %vm3360_vm14, %v3622_v39, %v3644_v20 }
 0x23a   : > { %v7158_v15 = vpop.f32.mrf.mxu1  ;;  %v3077_v9 = vpop.f32.mrf.mxu0  ;;  %7269 = vmatmul.mubr.bf16.gmra.mxu0 %v3615_v41  ;;  %v3636_v41 = vsel %vm3360_vm14, %v3618_v38, %v3635_v63  ;;  %v4675_v38 = vshrl.u32 %v7576_v2, 16 }
 0x23b   : > { %v9806_v58 = vadd.f32 %v3277_v48, %v3077_v9  ;;  %7272 = vmatprep.mubr.msk.bf16.mxu0 %vm7685_vm0, %v10656_v29  ;;  %v3652_v15 = vrot.slane %v3650_v12, 3  ;;  %v4684_v12 = vrot.slane %v4682_v56, 1 }
 0x23c   : > { %v3280_v13 = vpop.f32.mrf.mxu1  ;;  %v3079_v35 = vpop.f32.mrf.mxu0 }
 0x23d   : > { %v3653_v21 = vor.u32 %v3652_v15, %v3649_v5  ;;  %v4679_v35 = vrot.slane %v4677_v16, 1  ;;  %v9835_v5 = vld [vmem:[#allocation2 + $0x5c] ss:$12 sps:$4 sm:$0xff]  }
 0x23e   : > { %v7159_v61 = vpop.f32.mrf.mxu1  ;;  %v3080_v55 = vpop.f32.mrf.mxu0 }
 0x23f   : > { %v9812_v54 = vadd.f32 %v3280_v13, %v3080_v55  ;;  %v7574_v13 = vld [vmem:[#allocation2 + $0x3c] ss:$12 sps:$4 sm:$0xff]  }
 0x240   : > { %v3285_v11 = vpop.f32.mrf.mxu1  ;;  %4039 = vmatmul.mubr.bf16.gmra.mxu1 %v3619_v26  ;;  %v3082_v30 = vpop.f32.mrf.mxu0  ;;  %v3654_v26 = vsel %vm3360_vm14, %v3626_v59, %v3653_v21  ;;  %v4670_v59 = vshll.u32 %v9826_v6, 16 }
 0x241   : > { %4046 = vmatprep.mubr.bf16.mxu1 %v3645_v24  ;;  %v4665_v24 = vshll.u32 %v7574_v13, 16 }
 0x242   : > { %v7162_v48 = vpop.f32.mrf.mxu1  ;;  %v3085_v34 = vpop.f32.mrf.mxu0  ;;  %7273 = vmatmul.mubr.bf16.gmra.mxu0 %v3627_v43  ;;  %v4680_v43 = vor.u32 %v4679_v35, %v4675_v38  ;;  %v4672_v56 = vrot.slane %v4670_v59, 1  ;;  %v9845_v38 = vld [vmem:[#allocation2 + $0x88] ss:$12 sps:$4 sm:$0xff]  }
 0x243   : > { %v9817_v33 = vadd.f32 %v3285_v11, %v3085_v34  ;;  %7276 = vmatprep.mubr.msk.bf16.mxu0 %vm7685_vm0, %v10656_v29  ;;  %v9828_v11 = vld [vmem:[#allocation2 + $0x70] ss:$12 sps:$4 sm:$0xff]  }
 0x244   : > { %v3288_v1 = vpop.f32.mrf.mxu1  ;;  %v3087_v32 = vpop.f32.mrf.mxu0  ;;  %v4710_v34 = vshll.u32 %v9828_v11, 16 }
 0x245   : > { %v4667_v32 = vrot.slane %v4665_v24, 1 }
 0x246   : > { %v7163_v39 = vpop.f32.mrf.mxu1  ;;  %v3088_v27 = vpop.f32.mrf.mxu0 }
 0x247   : > { %v9823_v36 = vadd.f32 %v3288_v1, %v3088_v27  ;;  %v4685_v1 = vsel %vm4661_vm15, %v4680_v43, %v4684_v12  ;;  %v4663_v27 = vshrl.u32 %v7574_v13, 16 }
 0x248   : > { %v3293_v23 = vpop.f32.mrf.mxu1  ;;  %4047 = vmatmul.mubr.bf16.gmra.mxu1 %v3636_v41  ;;  %v3090_v61 = vpop.f32.mrf.mxu0 }
 0x249   : > { %4054 = vmatprep.mubr.bf16.mxu1 %v3644_v20  ;;  %v7583_v20 = vld [vmem:[#allocation2 + $0x44] ss:$12 sps:$4 sm:$0xff]   ;;  %v9842_v61 = vld [vmem:[#allocation2 + $0x6c] ss:$12 sps:$4 sm:$0xff]   ;;  %v4668_v24 = vor.u32 %v4667_v32, %v4663_v27 }
 0x24a   : > { %v7166_v9 = vpop.f32.mrf.mxu1  ;;  %v3093_v28 = vpop.f32.mrf.mxu0  ;;  %7277 = vmatmul.mubr.bf16.gmra.mxu0 %v3654_v26  ;;  %v4689_v16 = vshll.u32 %v7583_v20, 16  ;;  %v4706_v26 = vshrl.u32 %v9815_v60, 16  ;;  %v9853_v60 = vld [vmem:[#allocation2 + $0x74] ss:$12 sps:$4 sm:$0xff]  }
 0x24b   : > { %v9830_v55 = vadd.f32 %v3293_v23, %v3093_v28  ;;  %7280 = vmatprep.mubr.msk.bf16.mxu0 %vm7685_vm0, %v10656_v29  ;;  %v4694_v9 = vshll.u32 %v9835_v5, 16  ;;  %v4712_v28 = vrot.slane %v4710_v34, 1  ;;  %v4673_v59 = vsel %vm4661_vm15, %v4668_v24, %v4672_v56 }
 0x24c   : > { %v3296_v57 = vpop.f32.mrf.mxu1  ;;  %v3095_v30 = vpop.f32.mrf.mxu0  ;;  %v4691_v13 = vrot.slane %v4689_v16, 1  ;;  %v4708_v43 = vor.u32 %v4706_v26, %v4684_v12  ;;  %v7666_v16 = vld [vmem:[%s10455_s3 + $0x238] sm:$0xff]   ;;  %v4718_v24 = vshll.u32 %v9853_v60, 16 }
 0x24e   : > { %v7167_v48 = vpop.f32.mrf.mxu1  ;;  %v3096_v2 = vpop.f32.mrf.mxu0  ;;  %v4713_v32 = vsel %vm4661_vm15, %v4708_v43, %v4712_v28 }
 0x24f   : > { %v9839_v39 = vadd.f32 %v3296_v57, %v3096_v2  ;;  %v4687_v2 = vshrl.u32 %v7583_v20, 16 }
 0x250   : > { %v3301_v15 = vpop.f32.mrf.mxu1  ;;  %4055 = vmatmul.mubr.bf16.gmra.mxu1 %v3635_v63  ;;  %v3098_v23 = vpop.f32.mrf.mxu0 }
 0x251   : > { %5402 = vmatprep.mubr.bf16.mxu1 %v4685_v1  ;;  %v4696_v1 = vrot.slane %v4694_v9, 1  ;;  %v4692_v20 = vor.u32 %v4691_v13, %v4687_v2  ;;  %v9869_v13 = vld [vmem:[#allocation2 + $0xa0] ss:$12 sps:$4 sm:$0xff]  }
 0x252   : > { %v7170_v41 = vpop.f32.mrf.mxu1  ;;  %v3101_v63 = vpop.f32.mrf.mxu0  ;;  %7281 = vmatmul.mubr.bf16.gmra.mxu0 %v3653_v21  ;;  %v4702_v21 = vshll.u32 %v9842_v61, 16 }
 0x253   : > { %v9847_v57 = vadd.f32 %v3301_v15, %v3101_v63  ;;  %7300 = vmatprep.mubr.msk.bf16.mxu0 %vm7685_vm0, %v10656_v29  ;;  %v4734_v41 = vshll.u32 %v9845_v38, 16  ;;  %v4697_v9 = vsel %vm4661_vm15, %v4692_v20, %v4696_v1  ;;  %v4698_v63 = vshrl.u32 %v9826_v6, 16  ;;  %v7667_v6 = vld [vmem:[%s10455_s3 + $0x230] sm:$0xff]   ;;  %v9882_v20 = vld [vmem:[#allocation2 + $0x8c] ss:$12 sps:$4 sm:$0xff]  }
 0x254   : > { %v3304_v35 = vpop.f32.mrf.mxu1  ;;  %v3103_v30 = vpop.f32.mrf.mxu0  ;;  %v4704_v26 = vrot.slane %v4702_v21, 1 }
 0x256   : > { %v7171_v48 = vpop.f32.mrf.mxu1  ;;  %v3104_v15 = vpop.f32.mrf.mxu0 }
 0x257   : > { %v9860_v12 = vadd.f32 %v3304_v35, %v3104_v15  ;;  %v9866_v48 = vld [vmem:[#allocation2 + $0x84] ss:$12 sps:$4 sm:$0xff]   ;;  %v4730_v35 = vshrl.u32 %v9828_v11, 16  ;;  %v4700_v15 = vor.u32 %v4698_v63, %v4672_v56  ;;  %v4758_v63 = vshll.u32 %v9869_v13, 16 }
 0x258   : > { %v3309_v34 = vpop.f32.mrf.mxu1  ;;  %5403 = vmatmul.mubr.bf16.vlgmr.msra.gmra.mxu1 %v4673_v59  ;;  %v3106_v27 = vpop.f32.mrf.mxu0  ;;  %v4736_v59 = vrot.slane %v4734_v41, 1  ;;  %v4714_v41 = vshrl.u32 %v9835_v5, 16  ;;  %v4726_v56 = vshll.u32 %v9866_v48, 16  ;;  %v7668_v5 = vld [vmem:[%s10455_s3 + $0x228] sm:$0xff]  }
 0x259   : > { %7392 = vmatpush3.bf16.msra.mxu1 %v7666_v16  ;;  %5410 = vmatprep.mubr.bf16.mxu1 %v4713_v32  ;;  %v4732_v16 = vor.u32 %v4730_v35, %v4712_v28  ;;  %v4705_v11 = vsel %vm4661_vm15, %v4700_v15, %v4704_v26 }
 0x25a   : > { %v7174_v23 = vpop.f32.mrf.mxu1  ;;  %7385 = vmatprep.subr.bf16.mxu1 %v10656_v29  ;;  %v3109_v43 = vpop.f32.mrf.mxu0  ;;  %7301 = vmatmul.mubr.bf16.vlgmr.msra.gmra.mxu0 %v4697_v9  ;;  %v4716_v28 = vor.u32 %v4714_v41, %v4696_v1  ;;  %v4760_v41 = vrot.slane %v4758_v63, 1  ;;  %v4738_v63 = vshrl.u32 %v9853_v60, 16  ;;  %v7670_v60 = vld [vmem:[%s10455_s3 + $0x218] sm:$0xff]  }
 0x25b   : > { %v9871_v2 = vadd.f32 %v3309_v34, %v3109_v43  ;;  %7304 = vmatprep.mubr.msk.bf16.mxu0 %vm7685_vm0, %v10656_v29  ;;  %v4720_v34 = vrot.slane %v4718_v24, 1  ;;  %v4737_v9 = vsel %vm4661_vm15, %v4732_v16, %v4736_v59 }
 0x25c   : > { %v3312_v30 = vpop.f32.mrf.mxu1  ;;  %v3111_v32 = vpop.f32.mrf.mxu0 }
 0x25d   : > { %10864 = vst [vmem:[#allocation45_spill] sm:$0xff] %v9871_v2  ;;  %7393 = vmatpush3.bf16.msra.mxu1 %v7667_v6  ;;  %v4721_v15 = vsel %vm4661_vm15, %v4716_v28, %v4720_v34  ;;  %v4722_v6 = vshrl.u32 %v9842_v61, 16  ;;  %v4742_v32 = vshll.u32 %v9882_v20, 16  ;;  %v7669_v61 = vld [vmem:[%s10455_s3 + $0x220] sm:$0xff]  }
 0x25e   : > { %v7175_v21 = vpop.f32.mrf.mxu1  ;;  %7386 = vmatprep.subr.bf16.mxu1 %v10656_v29  ;;  %v3112_v27 = vpop.f32.mrf.mxu0 }
 0x25f   : > { %v9886_v43 = vadd.f32 %v3312_v30, %v3112_v27  ;;  %v4728_v21 = vrot.slane %v4726_v56, 1  ;;  %v9895_v30 = vld [vmem:[#allocation2 + $0x9c] ss:$12 sps:$4 sm:$0xff]   ;;  %v9898_v27 = vld [vmem:[#allocation2 + $0xb8] ss:$12 sps:$4 sm:$0xff]  }
 0x260   : > { %v3317_v23 = vpop.f32.mrf.mxu1  ;;  %5411 = vmatmul.mubr.bf16.gmra.mxu1 %v4705_v11  ;;  %v3114_v35 = vpop.f32.mrf.mxu0  ;;  %v4754_v11 = vshrl.u32 %v9845_v38, 16 }
 0x261   : > { %10865 = vst [vmem:[#allocation46_spill] sm:$0xff] %v9886_v43  ;;  %5418 = vmatprep.mubr.bf16.mxu1 %v4737_v9  ;;  %7394 = vmatpush3.bf16.msra.mxu1 %v7668_v5  ;;  %v4724_v5 = vor.u32 %v4722_v6, %v4704_v26  ;;  %v4750_v26 = vshll.u32 %v9895_v30, 16  ;;  %v9911_v35 = vld [vmem:[#allocation2 + $0xa4] ss:$12 sps:$4 sm:$0xff]  }
 0x262   : > { %v7178_v24 = vpop.f32.mrf.mxu1  ;;  %7387 = vmatprep.subr.bf16.mxu1 %v10656_v29  ;;  %v3117_v1 = vpop.f32.mrf.mxu0  ;;  %7305 = vmatmul.mubr.bf16.gmra.mxu0 %v4721_v15 }
 0x263   : > { %v9900_v9 = vadd.f32 %v3317_v23, %v3117_v1  ;;  %7308 = vmatprep.mubr.msk.bf16.mxu0 %vm7685_vm0, %v10656_v29  ;;  %v4756_v24 = vor.u32 %v4754_v11, %v4736_v59  ;;  %v4729_v38 = vsel %vm4661_vm15, %v4724_v5, %v4728_v21  ;;  %v4744_v23 = vrot.slane %v4742_v32, 1 }
 0x264   : > { %v3320_v16 = vpop.f32.mrf.mxu1  ;;  %v3119_v28 = vpop.f32.mrf.mxu0  ;;  %v4740_v59 = vor.u32 %v4738_v63, %v4720_v34  ;;  %v4778_v63 = vshrl.u32 %v9869_v13, 16 }
 0x265   : > { %10866 = vst [vmem:[#allocation44_spill] sm:$0xff] %v9900_v9  ;;  %7395 = vmatpush3.bf16.msra.mxu1 %v7669_v61  ;;  %v4761_v1 = vsel %vm4661_vm15, %v4756_v24, %v4760_v41  ;;  %v4782_v61 = vshll.u32 %v9898_v27, 16  ;;  %v4746_v28 = vshrl.u32 %v9866_v48, 16  ;;  %v4752_v24 = vrot.slane %v4750_v26, 1  ;;  %v7671_v48 = vld [vmem:[%s10455_s3 + $0x210] sm:$0xff]  }
 0x266   : > { %v7179_v56 = vpop.f32.mrf.mxu1  ;;  %7388 = vmatprep.subr.bf16.mxu1 %v10656_v29  ;;  %v3120_v6 = vpop.f32.mrf.mxu0  ;;  %v4745_v5 = vsel %vm4661_vm15, %v4740_v59, %v4744_v23 }
 0x267   : > { %v9915_v56 = vadd.f32 %v3320_v16, %v3120_v6  ;;  %v9924_v16 = vld [vmem:[#allocation2 + $0xb4] ss:$12 sps:$4 sm:$0xff]  }
 0x268   : > { %v3325_v15 = vpop.f32.mrf.mxu1  ;;  %5419 = vmatmul.mubr.bf16.gmra.mxu1 %v4729_v38  ;;  %v3122_v11 = vpop.f32.mrf.mxu0  ;;  %v4766_v38 = vshll.u32 %v9911_v35, 16 }
 0x269   : > { %10867 = vst [vmem:[#allocation48_spill] sm:$0xff] %v9915_v56  ;;  %5426 = vmatprep.mubr.bf16.mxu1 %v4761_v1  ;;  %7396 = vmatpush3.bf16.msra.mxu1 %v7670_v60  ;;  %v4784_v1 = vrot.slane %v4782_v61, 1  ;;  %v9927_v60 = vld [vmem:[#allocation2 + $0xd0] ss:$12 sps:$4 sm:$0xff]   ;;  %v4748_v11 = vor.u32 %v4746_v28, %v4728_v21  ;;  %v4762_v61 = vshrl.u32 %v9882_v20, 16  ;;  %v4774_v21 = vshll.u32 %v9924_v16, 16 }
 0x26a   : > { %v7182_v32 = vpop.f32.mrf.mxu1  ;;  %7389 = vmatprep.subr.bf16.mxu1 %v10656_v29  ;;  %v3125_v34 = vpop.f32.mrf.mxu0  ;;  %7309 = vmatmul.mubr.bf16.gmra.mxu0 %v4745_v5  ;;  %v9940_v5 = vld [vmem:[#allocation2 + $0xbc] ss:$12 sps:$4 sm:$0xff]   ;;  %v9952_v56 = vld [vmem:[#allocation2 + $0xcc] ss:$12 sps:$4 sm:$0xff]  }
 0x26b   : > { %v9929_v32 = vadd.f32 %v3325_v15, %v3125_v34  ;;  %7312 = vmatprep.mubr.msk.bf16.mxu0 %vm7685_vm0, %v10656_v29  ;;  %v4753_v13 = vsel %vm4661_vm15, %v4748_v11, %v4752_v24  ;;  %v4768_v15 = vrot.slane %v4766_v38, 1  ;;  %v7672_v20 = vld [vmem:[%s10455_s3 + $0x208] sm:$0xff]  }
 0x26c   : > { %v3328_v6 = vpop.f32.mrf.mxu1  ;;  %v3127_v59 = vpop.f32.mrf.mxu0 }
 0x26d   : > { %10868 = vst [vmem:[#allocation49_spill] sm:$0xff] %v9929_v32  ;;  %7397 = vmatpush3.bf16.msra.mxu1 %v7671_v48  ;;  %v4780_v6 = vor.u32 %v4778_v63, %v4760_v41  ;;  %v4806_v48 = vshll.u32 %v9927_v60, 16  ;;  %v4764_v63 = vor.u32 %v4762_v61, %v4744_v23  ;;  %v4802_v61 = vshrl.u32 %v9898_v27, 16 }
 0x26e   : > { %v7183_v26 = vpop.f32.mrf.mxu1  ;;  %7390 = vmatprep.subr.bf16.mxu1 %v10656_v29  ;;  %v3128_v34 = vpop.f32.mrf.mxu0 }
 0x26f   : > { %v4785_v32 = vsel %vm4661_vm15, %v4780_v6, %v4784_v1  ;;  %v10869_v26 = vld [vmem:[#allocation67_spill] sm:$0xff]  ;;  %v4769_v59 = vsel %vm4661_vm15, %v4764_v63, %v4768_v15  ;;  %v4776_v6 = vrot.slane %v4774_v21, 1  ;;  %v4790_v34 = vshll.u32 %v9940_v5, 16 }
 0x270   : > { %v3896_v28 = vpop.f32.mrf.mxu1  ;;  %5427 = vmatmul.mubr.bf16.gmra.mxu1 %v4753_v13  ;;  %v3129_v11 = vpop.f32.mrf.mxu0  ;;  %v4770_v13 = vshrl.u32 %v9895_v30, 16  ;;  %v7673_v30 = vld [vmem:[%s10455_s3 + $0x200] sm:$0xff]   ;;  %v4804_v9 = vor.u32 %v4802_v61, %v4784_v1 }
 0x271   : > { %v3897_v41 = vadd.f32 %v3896_v28, %v10869_v26  ;;  %5434 = vmatprep.mubr.bf16.mxu1 %v4785_v32  ;;  %7398 = vmatpush3.bf16.msra.mxu1 %v7672_v20  ;;  %v4808_v28 = vrot.slane %v4806_v48, 1  ;;  %v9955_v26 = vld [vmem:[#allocation2 + $0xe8] ss:$12 sps:$4 sm:$0xff]   ;;  %v10870_v20 = vld [vmem:[#allocation68_spill] sm:$0xff]  ;;  %v4786_v48 = vshrl.u32 %v9911_v35, 16  ;;  %v4792_v43 = vrot.slane %v4790_v34, 1 }
 0x272   : > { %v3898_v38 = vpop.f32.mrf.mxu1  ;;  %7391 = vmatprep.subr.bf16.mxu1 %v10656_v29  ;;  %v4096_v23 = vpop.f32.mrf.mxu0  ;;  %7313 = vmatmul.mubr.bf16.gmra.mxu0 %v4769_v59  ;;  %v4772_v63 = vor.u32 %v4770_v13, %v4752_v24 }
 0x273   : > { %v9958_v11 = vadd.f32 %v4096_v23, %v3897_v41  ;;  %7316 = vmatprep.mubr.msk.bf16.mxu0 %vm7685_vm0, %v10656_v29  ;;  %v4798_v41 = vshll.u32 %v9952_v56, 16  ;;  %v4809_v23 = vsel %vm4661_vm15, %v4804_v9, %v4808_v28  ;;  %v4788_v1 = vor.u32 %v4786_v48, %v4768_v15 }
 0x274   : > { %v3899_v32 = vpop.f32.mrf.mxu1  ;;  %v7202_v59 = vpop.f32.mrf.mxu0  ;;  %v4777_v27 = vsel %vm4661_vm15, %v4772_v63, %v4776_v6  ;;  %v4794_v63 = vshrl.u32 %v9924_v16, 16 }
 0x275   : > { %v3900_v38 = vadd.f32 %v3899_v32, %v10870_v20  ;;  %10871 = vst [vmem:[#allocation47_spill] sm:$0xff] %v9958_v11  ;;  %7399 = vmatpush3.bf16.msra.mxu1 %v7673_v30  ;;  %v9968_v32 = vld [vmem:[#allocation2 + $0xd4] ss:$12 sps:$4 sm:$0xff]   ;;  %v4830_v20 = vshll.u32 %v9955_v26, 16  ;;  %v4793_v34 = vsel %vm4661_vm15, %v4788_v1, %v4792_v43  ;;  %v4800_v59 = vrot.slane %v4798_v41, 1 }
 0x276   : > { %v3901_v21 = vpop.f32.mrf.mxu1  ;;  %v4099_v13 = vpop.f32.mrf.mxu0  ;;  %v9978_v11 = vld [vmem:[#allocation2 + $0xe4] ss:$12 sps:$4 sm:$0xff]  }
 0x277   : > { %v9973_v21 = vadd.f32 %v4099_v13, %v3900_v38  ;;  %v4832_v38 = vrot.slane %v4830_v20, 1  ;;  %v4796_v13 = vor.u32 %v4794_v63, %v4776_v6  ;;  %v9991_v20 = vld [vmem:[#allocation2 + $0xec] ss:$12 sps:$4 sm:$0xff]  }
 0x278   : > { %v3904_v24 = vpop.f32.mrf.mxu1  ;;  %5435 = vmatmul.mubr.bf16.gmra.mxu1 %v4777_v27  ;;  %v7203_v35 = vpop.f32.mrf.mxu0  ;;  %v4814_v27 = vshll.u32 %v9968_v32, 16 }
 0x279   : > { %v3905_v30 = vadd.f32 %v3904_v24, %v9357_v47  ;;  %5442 = vmatprep.mubr.bf16.mxu1 %v4809_v23  ;;  %v4826_v47 = vshrl.u32 %v9927_v60, 16  ;;  %v9981_v24 = vld [vmem:[#allocation2 + $0x100] ss:$12 sps:$4 sm:$0xff]   ;;  %v4801_v1 = vsel %vm4661_vm15, %v4796_v13, %v4800_v59  ;;  %v4822_v60 = vshll.u32 %v9978_v11, 16 }
 0x27a   : > { %v3906_v61 = vpop.f32.mrf.mxu1  ;;  %v4104_v2 = vpop.f32.mrf.mxu0  ;;  %7317 = vmatmul.mubr.bf16.gmra.mxu0 %v4793_v34  ;;  %v4816_v35 = vrot.slane %v4814_v27, 1  ;;  %v4854_v6 = vshll.u32 %v9981_v24, 16 }
 0x27b   : > { %v9984_v48 = vadd.f32 %v4104_v2, %v3905_v30  ;;  %7320 = vmatprep.mubr.msk.bf16.mxu0 %vm7685_vm0, %v10656_v29  ;;  %v4828_v23 = vor.u32 %v4826_v47, %v4808_v28  ;;  %v4810_v61 = vshrl.u32 %v9940_v5, 16  ;;  %v4818_v47 = vshrl.u32 %v9952_v56, 16 }
 0x27c   : > { %v3907_v9 = vpop.f32.mrf.mxu1  ;;  %v7206_v41 = vpop.f32.mrf.mxu0  ;;  %v4824_v13 = vrot.slane %v4822_v60, 1 }
 0x27d   : > { %v3908_v15 = vadd.f32 %v3907_v9, %v9374_v45  ;;  %v4833_v2 = vsel %vm4661_vm15, %v4828_v23, %v4832_v38  ;;  %v4812_v28 = vor.u32 %v4810_v61, %v4792_v43  ;;  %v10001_v41 = vld [vmem:[#allocation2 + $0xfc] ss:$12 sps:$4 sm:$0xff]  }
 0x27e   : > { %v3909_v16 = vpop.f32.mrf.mxu1  ;;  %v4107_v45 = vpop.f32.mrf.mxu0 }
 0x27f   : > { %v9996_v63 = vadd.f32 %v4107_v45, %v3908_v15  ;;  %v4817_v27 = vsel %vm4661_vm15, %v4812_v28, %v4816_v35  ;;  %v4838_v16 = vshll.u32 %v9991_v20, 16  ;;  %v4856_v15 = vrot.slane %v4854_v6, 1  ;;  %v10014_v6 = vld [vmem:[#allocation2 + $0x104] ss:$12 sps:$4 sm:$0xff]  }
 0x280   : > { %v3912_v34 = vpop.f32.mrf.mxu1  ;;  %5443 = vmatmul.mubr.bf16.gmra.mxu1 %v4801_v1  ;;  %v7207_v5 = vpop.f32.mrf.mxu0  ;;  %v4820_v45 = vor.u32 %v4818_v47, %v4800_v59 }
 0x281   : > { %v3913_v30 = vadd.f32 %v3912_v34, %v9426_v40  ;;  %5450 = vmatprep.mubr.bf16.mxu1 %v4833_v2  ;;  %v4850_v40 = vshrl.u32 %v9955_v26, 16  ;;  %v10004_v34 = vld [vmem:[#allocation2 + $0x118] ss:$12 sps:$4 sm:$0xff]   ;;  %v4840_v5 = vrot.slane %v4838_v16, 1  ;;  %v4846_v26 = vshll.u32 %v10001_v41, 16 }
 0x282   : > { %v3914_v9 = vpop.f32.mrf.mxu1  ;;  %v4112_v1 = vpop.f32.mrf.mxu0  ;;  %7321 = vmatmul.mubr.bf16.gmra.mxu0 %v4817_v27  ;;  %v4825_v28 = vsel %vm4661_vm15, %v4820_v45, %v4824_v13 }
 0x283   : > { %v10007_v61 = vadd.f32 %v4112_v1, %v3913_v30  ;;  %7324 = vmatprep.mubr.msk.bf16.mxu0 %vm7685_vm0, %v10656_v29  ;;  %v4852_v2 = vor.u32 %v4850_v40, %v4832_v38  ;;  %v4834_v9 = vshrl.u32 %v9968_v32, 16  ;;  %v4878_v30 = vshll.u32 %v10004_v34, 16 }
 0x284   : > { %v3915_v23 = vpop.f32.mrf.mxu1  ;;  %v7210_v60 = vpop.f32.mrf.mxu0  ;;  %v4842_v40 = vshrl.u32 %v9978_v11, 16  ;;  %v4848_v45 = vrot.slane %v4846_v26, 1 }
 0x285   : > { %v3916_v43 = vadd.f32 %v3915_v23, %v9443_v50  ;;  %v4857_v59 = vsel %vm4661_vm15, %v4852_v2, %v4856_v15  ;;  %v4836_v38 = vor.u32 %v4834_v9, %v4816_v35  ;;  %v10024_v60 = vld [vmem:[#allocation2 + $0x114] ss:$12 sps:$4 sm:$0xff]  }
 0x286   : > { %v3917_v56 = vpop.f32.mrf.mxu1  ;;  %v4115_v50 = vpop.f32.mrf.mxu0 }
 0x287   : > { %v10019_v23 = vadd.f32 %v4115_v50, %v3916_v43  ;;  %v4841_v16 = vsel %vm4661_vm15, %v4836_v38, %v4840_v5  ;;  %v4862_v56 = vshll.u32 %v10014_v6, 16  ;;  %v4880_v43 = vrot.slane %v4878_v30, 1  ;;  %v10037_v30 = vld [vmem:[#allocation2 + $0x11c] ss:$12 sps:$4 sm:$0xff]  }
 0x288   : > { %v3920_v27 = vpop.f32.mrf.mxu1  ;;  %5451 = vmatmul.mubr.bf16.gmra.mxu1 %v4825_v28  ;;  %v7211_v32 = vpop.f32.mrf.mxu0  ;;  %v4844_v50 = vor.u32 %v4842_v40, %v4824_v13 }
 0x289   : > { %v3921_v47 = vadd.f32 %v3920_v27, %v9496_v10  ;;  %5458 = vmatprep.mubr.bf16.mxu1 %v4857_v59  ;;  %v4874_v10 = vshrl.u32 %v9981_v24, 16  ;;  %v10027_v27 = vld [vmem:[#allocation2 + $0x130] ss:$12 sps:$4 sm:$0xff]   ;;  %v4864_v32 = vrot.slane %v4862_v56, 1  ;;  %v4870_v24 = vshll.u32 %v10024_v60, 16 }
 0x28a   : > { %v3922_v1 = vpop.f32.mrf.mxu1  ;;  %v4120_v28 = vpop.f32.mrf.mxu0  ;;  %7325 = vmatmul.mubr.bf16.gmra.mxu0 %v4841_v16  ;;  %v4849_v38 = vsel %vm4661_vm15, %v4844_v50, %v4848_v45 }
 0x28b   : > { %v10030_v9 = vadd.f32 %v4120_v28, %v3921_v47  ;;  %7328 = vmatprep.mubr.msk.bf16.mxu0 %vm7685_vm0, %v10656_v29  ;;  %v4876_v59 = vor.u32 %v4874_v10, %v4856_v15  ;;  %v4858_v1 = vshrl.u32 %v9991_v20, 16  ;;  %v4902_v47 = vshll.u32 %v10027_v27, 16 }
 0x28c   : > { %v3923_v2 = vpop.f32.mrf.mxu1  ;;  %v7214_v26 = vpop.f32.mrf.mxu0  ;;  %v4866_v10 = vshrl.u32 %v10001_v41, 16  ;;  %v4872_v50 = vrot.slane %v4870_v24, 1 }
 0x28d   : > { %v3924_v35 = vadd.f32 %v3923_v2, %v9513_v42  ;;  %v4881_v13 = vsel %vm4661_vm15, %v4876_v59, %v4880_v43  ;;  %v4860_v15 = vor.u32 %v4858_v1, %v4840_v5  ;;  %v10047_v26 = vld [vmem:[#allocation2 + $0x12c] ss:$12 sps:$4 sm:$0xff]  }
 0x28e   : > { %v3925_v11 = vpop.f32.mrf.mxu1  ;;  %v4123_v42 = vpop.f32.mrf.mxu0 }
 0x28f   : > { %v10042_v2 = vadd.f32 %v4123_v42, %v3924_v35  ;;  %v4865_v56 = vsel %vm4661_vm15, %v4860_v15, %v4864_v32  ;;  %v4886_v11 = vshll.u32 %v10037_v30, 16  ;;  %v4904_v35 = vrot.slane %v4902_v47, 1  ;;  %v10060_v47 = vld [vmem:[#allocation2 + $0x134] ss:$12 sps:$4 sm:$0xff]  }
 0x290   : > { %v3928_v16 = vpop.f32.mrf.mxu1  ;;  %5459 = vmatmul.mubr.bf16.gmra.mxu1 %v4849_v38  ;;  %v7215_v20 = vpop.f32.mrf.mxu0  ;;  %v4868_v42 = vor.u32 %v4866_v10, %v4848_v45 }
 0x291   : > { %v3929_v40 = vadd.f32 %v3928_v16, %v9551_v53  ;;  %5466 = vmatprep.mubr.bf16.mxu1 %v4881_v13  ;;  %v4898_v53 = vshrl.u32 %v10004_v34, 16  ;;  %v10050_v16 = vld [vmem:[#allocation2 + $0x148] ss:$12 sps:$4 sm:$0xff]   ;;  %v4888_v20 = vrot.slane %v4886_v11, 1  ;;  %v4894_v34 = vshll.u32 %v10047_v26, 16 }
 0x292   : > { %v3930_v28 = vpop.f32.mrf.mxu1  ;;  %v4128_v38 = vpop.f32.mrf.mxu0  ;;  %7329 = vmatmul.mubr.bf16.gmra.mxu0 %v4865_v56  ;;  %v4873_v15 = vsel %vm4661_vm15, %v4868_v42, %v4872_v50 }
 0x293   : > { %v10053_v1 = vadd.f32 %v4128_v38, %v3929_v40  ;;  %7332 = vmatprep.mubr.msk.bf16.mxu0 %vm7685_vm0, %v10656_v29  ;;  %v4900_v13 = vor.u32 %v4898_v53, %v4880_v43  ;;  %v4882_v28 = vshrl.u32 %v10014_v6, 16  ;;  %v4926_v40 = vshll.u32 %v10050_v16, 16 }
 0x294   : > { %v3931_v59 = vpop.f32.mrf.mxu1  ;;  %v7218_v24 = vpop.f32.mrf.mxu0  ;;  %v4890_v53 = vshrl.u32 %v10024_v60, 16  ;;  %v4896_v42 = vrot.slane %v4894_v34, 1 }
 0x295   : > { %v3932_v5 = vadd.f32 %v3931_v59, %v9567_v8  ;;  %v4905_v45 = vsel %vm4661_vm15, %v4900_v13, %v4904_v35  ;;  %v4884_v43 = vor.u32 %v4882_v28, %v4864_v32  ;;  %v10070_v24 = vld [vmem:[#allocation2 + $0x144] ss:$12 sps:$4 sm:$0xff]  }
 0x296   : > { %v3933_v41 = vpop.f32.mrf.mxu1  ;;  %v4131_v8 = vpop.f32.mrf.mxu0 }
 0x297   : > { %v10065_v59 = vadd.f32 %v4131_v8, %v3932_v5  ;;  %v4889_v11 = vsel %vm4661_vm15, %v4884_v43, %v4888_v20  ;;  %v4910_v41 = vshll.u32 %v10060_v47, 16  ;;  %v4928_v5 = vrot.slane %v4926_v40, 1  ;;  %v10083_v40 = vld [vmem:[#allocation2 + $0x14c] ss:$12 sps:$4 sm:$0xff]  }
 0x298   : > { %v3936_v56 = vpop.f32.mrf.mxu1  ;;  %5467 = vmatmul.mubr.bf16.gmra.mxu1 %v4873_v15  ;;  %v7219_v6 = vpop.f32.mrf.mxu0  ;;  %v4892_v8 = vor.u32 %v4890_v53, %v4872_v50 }
 0x299   : > { %v3937_v10 = vadd.f32 %v3936_v56, %v9616_v19  ;;  %5474 = vmatprep.mubr.bf16.mxu1 %v4905_v45  ;;  %v4922_v19 = vshrl.u32 %v10027_v27, 16  ;;  %v10073_v56 = vld [vmem:[#allocation2 + $0x160] ss:$12 sps:$4 sm:$0xff]   ;;  %v4912_v6 = vrot.slane %v4910_v41, 1  ;;  %v4918_v27 = vshll.u32 %v10070_v24, 16 }
 0x29a   : > { %v3938_v38 = vpop.f32.mrf.mxu1  ;;  %v4136_v15 = vpop.f32.mrf.mxu0  ;;  %7333 = vmatmul.mubr.bf16.gmra.mxu0 %v4889_v11  ;;  %v4897_v43 = vsel %vm4661_vm15, %v4892_v8, %v4896_v42 }
 0x29b   : > { %v10076_v28 = vadd.f32 %v4136_v15, %v3937_v10  ;;  %7336 = vmatprep.mubr.msk.bf16.mxu0 %vm7685_vm0, %v10656_v29  ;;  %v4924_v45 = vor.u32 %v4922_v19, %v4904_v35  ;;  %v4906_v38 = vshrl.u32 %v10037_v30, 16  ;;  %v4950_v10 = vshll.u32 %v10073_v56, 16 }
 0x29c   : > { %v3939_v13 = vpop.f32.mrf.mxu1  ;;  %v7222_v34 = vpop.f32.mrf.mxu0  ;;  %v4914_v19 = vshrl.u32 %v10047_v26, 16  ;;  %v4920_v8 = vrot.slane %v4918_v27, 1 }
 0x29d   : > { %v3940_v32 = vadd.f32 %v3939_v13, %v9625_v18  ;;  %v4929_v50 = vsel %vm4661_vm15, %v4924_v45, %v4928_v5  ;;  %v4908_v35 = vor.u32 %v4906_v38, %v4888_v20  ;;  %v10093_v34 = vld [vmem:[#allocation2 + $0x15c] ss:$12 sps:$4 sm:$0xff]  }
 0x29e   : > { %v3941_v60 = vpop.f32.mrf.mxu1  ;;  %v4139_v18 = vpop.f32.mrf.mxu0 }
 0x29f   : > { %v10088_v13 = vadd.f32 %v4139_v18, %v3940_v32  ;;  %v4913_v41 = vsel %vm4661_vm15, %v4908_v35, %v4912_v6  ;;  %v4934_v60 = vshll.u32 %v10083_v40, 16  ;;  %v4952_v32 = vrot.slane %v4950_v10, 1  ;;  %v10106_v10 = vld [vmem:[#allocation2 + $0x164] ss:$12 sps:$4 sm:$0xff]  }
 0x2a0   : > { %v3944_v11 = vpop.f32.mrf.mxu1  ;;  %5475 = vmatmul.mubr.bf16.gmra.mxu1 %v4897_v43  ;;  %v7223_v30 = vpop.f32.mrf.mxu0  ;;  %v4916_v18 = vor.u32 %v4914_v19, %v4896_v42 }
 0x2a1   : > { %v3945_v53 = vadd.f32 %v3944_v11, %v9642_v25  ;;  %5482 = vmatprep.mubr.bf16.mxu1 %v4929_v50  ;;  %v4946_v25 = vshrl.u32 %v10050_v16, 16  ;;  %v10096_v11 = vld [vmem:[#allocation2 + $0x178] ss:$12 sps:$4 sm:$0xff]   ;;  %v4936_v30 = vrot.slane %v4934_v60, 1  ;;  %v4942_v16 = vshll.u32 %v10093_v34, 16 }
 0x2a2   : > { %v3946_v15 = vpop.f32.mrf.mxu1  ;;  %v4144_v43 = vpop.f32.mrf.mxu0  ;;  %7337 = vmatmul.mubr.bf16.gmra.mxu0 %v4913_v41  ;;  %v4921_v35 = vsel %vm4661_vm15, %v4916_v18, %v4920_v8 }
 0x2a3   : > { %v10099_v38 = vadd.f32 %v4144_v43, %v3945_v53  ;;  %7340 = vmatprep.mubr.msk.bf16.mxu0 %vm7685_vm0, %v10656_v29  ;;  %v4948_v50 = vor.u32 %v4946_v25, %v4928_v5  ;;  %v4930_v15 = vshrl.u32 %v10060_v47, 16  ;;  %v4974_v53 = vshll.u32 %v10096_v11, 16 }
 0x2a4   : > { %v3947_v45 = vpop.f32.mrf.mxu1  ;;  %v7226_v27 = vpop.f32.mrf.mxu0  ;;  %v4938_v25 = vshrl.u32 %v10070_v24, 16  ;;  %v4944_v18 = vrot.slane %v4942_v16, 1 }
 0x2a5   : > { %v3948_v20 = vadd.f32 %v3947_v45, %v9656_v17  ;;  %v4953_v42 = vsel %vm4661_vm15, %v4948_v50, %v4952_v32  ;;  %v4932_v5 = vor.u32 %v4930_v15, %v4912_v6  ;;  %v10116_v27 = vld [vmem:[#allocation2 + $0x174] ss:$12 sps:$4 sm:$0xff]  }
 0x2a6   : > { %v3949_v26 = vpop.f32.mrf.mxu1  ;;  %v4147_v17 = vpop.f32.mrf.mxu0 }
 0x2a7   : > { %v10111_v45 = vadd.f32 %v4147_v17, %v3948_v20  ;;  %v4937_v60 = vsel %vm4661_vm15, %v4932_v5, %v4936_v30  ;;  %v4958_v26 = vshll.u32 %v10106_v10, 16  ;;  %v4976_v20 = vrot.slane %v4974_v53, 1  ;;  %v10129_v53 = vld [vmem:[#allocation2 + $0x17c] ss:$12 sps:$4 sm:$0xff]  }
 0x2a8   : > { %v3952_v41 = vpop.f32.mrf.mxu1  ;;  %5483 = vmatmul.mubr.bf16.gmra.mxu1 %v4921_v35  ;;  %v7227_v47 = vpop.f32.mrf.mxu0  ;;  %v4940_v17 = vor.u32 %v4938_v25, %v4920_v8 }
 0x2a9   : > { %v3953_v19 = vadd.f32 %v3952_v41, %v9663_v14  ;;  %5490 = vmatprep.mubr.bf16.mxu1 %v4953_v42  ;;  %v4970_v14 = vshrl.u32 %v10073_v56, 16  ;;  %v10119_v41 = vld [vmem:[#allocation2 + $0x190] ss:$12 sps:$4 sm:$0xff]   ;;  %v4960_v47 = vrot.slane %v4958_v26, 1  ;;  %v4966_v56 = vshll.u32 %v10116_v27, 16 }
 0x2aa   : > { %v3954_v43 = vpop.f32.mrf.mxu1  ;;  %v4152_v35 = vpop.f32.mrf.mxu0  ;;  %7341 = vmatmul.mubr.bf16.gmra.mxu0 %v4937_v60  ;;  %v4945_v5 = vsel %vm4661_vm15, %v4940_v17, %v4944_v18 }
 0x2ab   : > { %v10122_v15 = vadd.f32 %v4152_v35, %v3953_v19  ;;  %7344 = vmatprep.mubr.msk.bf16.mxu0 %vm7685_vm0, %v10656_v29  ;;  %v4972_v42 = vor.u32 %v4970_v14, %v4952_v32  ;;  %v4954_v43 = vshrl.u32 %v10083_v40, 16  ;;  %v4998_v19 = vshll.u32 %v10119_v41, 16 }
 0x2ac   : > { %v3955_v50 = vpop.f32.mrf.mxu1  ;;  %v7230_v16 = vpop.f32.mrf.mxu0  ;;  %v4962_v14 = vshrl.u32 %v10093_v34, 16  ;;  %v4968_v17 = vrot.slane %v4966_v56, 1 }
 0x2ad   : > { %v3956_v6 = vadd.f32 %v3955_v50, %v9677_v7  ;;  %v4977_v8 = vsel %vm4661_vm15, %v4972_v42, %v4976_v20  ;;  %v4956_v32 = vor.u32 %v4954_v43, %v4936_v30  ;;  %v10139_v16 = vld [vmem:[#allocation2 + $0x18c] ss:$12 sps:$4 sm:$0xff]  }
 0x2ae   : > { %v3957_v24 = vpop.f32.mrf.mxu1  ;;  %v4155_v7 = vpop.f32.mrf.mxu0 }
 0x2af   : > { %v10134_v50 = vadd.f32 %v4155_v7, %v3956_v6  ;;  %v4961_v26 = vsel %vm4661_vm15, %v4956_v32, %v4960_v47  ;;  %v4982_v24 = vshll.u32 %v10129_v53, 16  ;;  %v5000_v6 = vrot.slane %v4998_v19, 1  ;;  %v10152_v19 = vld [vmem:[#allocation2 + $0x194] ss:$12 sps:$4 sm:$0xff]  }
 0x2b0   : > { %v3960_v60 = vpop.f32.mrf.mxu1  ;;  %5491 = vmatmul.mubr.bf16.gmra.mxu1 %v4945_v5  ;;  %v7231_v40 = vpop.f32.mrf.mxu0  ;;  %v4964_v7 = vor.u32 %v4962_v14, %v4944_v18 }
 0x2b1   : > { %v3961_v25 = vadd.f32 %v3960_v60, %v9684_v52  ;;  %5498 = vmatprep.mubr.bf16.mxu1 %v4977_v8  ;;  %v4994_v52 = vshrl.u32 %v10096_v11, 16  ;;  %v10142_v60 = vld [vmem:[#allocation2 + $0x1a8] ss:$12 sps:$4 sm:$0xff]   ;;  %v4984_v40 = vrot.slane %v4982_v24, 1  ;;  %v4990_v11 = vshll.u32 %v10139_v16, 16 }
 0x2b2   : > { %v3962_v35 = vpop.f32.mrf.mxu1  ;;  %v4160_v5 = vpop.f32.mrf.mxu0  ;;  %7345 = vmatmul.mubr.bf16.gmra.mxu0 %v4961_v26  ;;  %v4969_v32 = vsel %vm4661_vm15, %v4964_v7, %v4968_v17 }
 0x2b3   : > { %v10145_v43 = vadd.f32 %v4160_v5, %v3961_v25  ;;  %7348 = vmatprep.mubr.msk.bf16.mxu0 %vm7685_vm0, %v10656_v29  ;;  %v4996_v8 = vor.u32 %v4994_v52, %v4976_v20  ;;  %v4978_v35 = vshrl.u32 %v10106_v10, 16  ;;  %v5022_v25 = vshll.u32 %v10142_v60, 16 }
 0x2b4   : > { %v3963_v42 = vpop.f32.mrf.mxu1  ;;  %v7234_v56 = vpop.f32.mrf.mxu0  ;;  %v4986_v52 = vshrl.u32 %v10116_v27, 16  ;;  %v4992_v7 = vrot.slane %v4990_v11, 1 }
 0x2b5   : > { %v3964_v30 = vadd.f32 %v3963_v42, %v9698_v49  ;;  %v5001_v18 = vsel %vm4661_vm15, %v4996_v8, %v5000_v6  ;;  %v4980_v20 = vor.u32 %v4978_v35, %v4960_v47  ;;  %v10162_v56 = vld [vmem:[#allocation2 + $0x1a4] ss:$12 sps:$4 sm:$0xff]  }
 0x2b6   : > { %v3965_v34 = vpop.f32.mrf.mxu1  ;;  %v4163_v49 = vpop.f32.mrf.mxu0 }
 0x2b7   : > { %v10157_v42 = vadd.f32 %v4163_v49, %v3964_v30  ;;  %v4985_v24 = vsel %vm4661_vm15, %v4980_v20, %v4984_v40  ;;  %v5006_v34 = vshll.u32 %v10152_v19, 16  ;;  %v5024_v30 = vrot.slane %v5022_v25, 1  ;;  %v10175_v25 = vld [vmem:[#allocation2 + $0x1ac] ss:$12 sps:$4 sm:$0xff]  }
 0x2b8   : > { %v3968_v26 = vpop.f32.mrf.mxu1  ;;  %5499 = vmatmul.mubr.bf16.gmra.mxu1 %v4969_v32  ;;  %v7235_v10 = vpop.f32.mrf.mxu0  ;;  %v4988_v49 = vor.u32 %v4986_v52, %v4968_v17 }
 0x2b9   : > { %v3969_v14 = vadd.f32 %v3968_v26, %v9705_v31  ;;  %5506 = vmatprep.mubr.bf16.mxu1 %v5001_v18  ;;  %v5018_v31 = vshrl.u32 %v10119_v41, 16  ;;  %v10165_v26 = vld [vmem:[#allocation2 + $0x1c0] ss:$12 sps:$4 sm:$0xff]   ;;  %v5008_v10 = vrot.slane %v5006_v34, 1  ;;  %v5014_v41 = vshll.u32 %v10162_v56, 16 }
 0x2ba   : > { %v3970_v5 = vpop.f32.mrf.mxu1  ;;  %v4168_v32 = vpop.f32.mrf.mxu0  ;;  %7349 = vmatmul.mubr.bf16.gmra.mxu0 %v4985_v24  ;;  %v4993_v20 = vsel %vm4661_vm15, %v4988_v49, %v4992_v7 }
 0x2bb   : > { %v10168_v35 = vadd.f32 %v4168_v32, %v3969_v14  ;;  %7352 = vmatprep.mubr.msk.bf16.mxu0 %vm7685_vm0, %v10656_v29  ;;  %v5020_v18 = vor.u32 %v5018_v31, %v5000_v6  ;;  %v5002_v5 = vshrl.u32 %v10129_v53, 16  ;;  %v5046_v14 = vshll.u32 %v10165_v26, 16 }
 0x2bc   : > { %v3971_v8 = vpop.f32.mrf.mxu1  ;;  %v7238_v11 = vpop.f32.mrf.mxu0  ;;  %v5010_v31 = vshrl.u32 %v10139_v16, 16  ;;  %v5016_v49 = vrot.slane %v5014_v41, 1 }
 0x2bd   : > { %v3972_v47 = vadd.f32 %v3971_v8, %v9719_v44  ;;  %v5025_v17 = vsel %vm4661_vm15, %v5020_v18, %v5024_v30  ;;  %v5004_v6 = vor.u32 %v5002_v5, %v4984_v40  ;;  %v10185_v11 = vld [vmem:[#allocation2 + $0x1bc] ss:$12 sps:$4 sm:$0xff]  }
 0x2be   : > { %v3973_v27 = vpop.f32.mrf.mxu1  ;;  %v4171_v44 = vpop.f32.mrf.mxu0 }
 0x2bf   : > { %v10180_v8 = vadd.f32 %v4171_v44, %v3972_v47  ;;  %v5009_v34 = vsel %vm4661_vm15, %v5004_v6, %v5008_v10  ;;  %v5030_v27 = vshll.u32 %v10175_v25, 16  ;;  %v5048_v47 = vrot.slane %v5046_v14, 1  ;;  %v10198_v14 = vld [vmem:[#allocation2 + $0x1c4] ss:$12 sps:$4 sm:$0xff]  }
 0x2c0   : > { %v3976_v24 = vpop.f32.mrf.mxu1  ;;  %5507 = vmatmul.mubr.bf16.gmra.mxu1 %v4993_v20  ;;  %v7239_v53 = vpop.f32.mrf.mxu0  ;;  %v5012_v44 = vor.u32 %v5010_v31, %v4992_v7 }
 0x2c1   : > { %v3977_v52 = vadd.f32 %v3976_v24, %v9726_v62  ;;  %5514 = vmatprep.mubr.bf16.mxu1 %v5025_v17  ;;  %v5042_v62 = vshrl.u32 %v10142_v60, 16  ;;  %v10188_v24 = vld [vmem:[#allocation2 + $0x1d8] ss:$12 sps:$4 sm:$0xff]   ;;  %v5032_v53 = vrot.slane %v5030_v27, 1  ;;  %v5038_v60 = vshll.u32 %v10185_v11, 16 }
 0x2c2   : > { %v3978_v32 = vpop.f32.mrf.mxu1  ;;  %v4176_v20 = vpop.f32.mrf.mxu0  ;;  %7353 = vmatmul.mubr.bf16.gmra.mxu0 %v5009_v34  ;;  %v5017_v6 = vsel %vm4661_vm15, %v5012_v44, %v5016_v49 }
 0x2c3   : > { %v10191_v5 = vadd.f32 %v4176_v20, %v3977_v52  ;;  %7356 = vmatprep.mubr.msk.bf16.mxu0 %vm7685_vm0, %v10656_v29  ;;  %v5044_v17 = vor.u32 %v5042_v62, %v5024_v30  ;;  %v5026_v32 = vshrl.u32 %v10152_v19, 16  ;;  %v5070_v52 = vshll.u32 %v10188_v24, 16 }
 0x2c4   : > { %v3979_v18 = vpop.f32.mrf.mxu1  ;;  %v7242_v41 = vpop.f32.mrf.mxu0  ;;  %v5034_v62 = vshrl.u32 %v10162_v56, 16  ;;  %v5040_v44 = vrot.slane %v5038_v60, 1 }
 0x2c5   : > { %v3980_v40 = vadd.f32 %v3979_v18, %v9740_v22  ;;  %v5049_v7 = vsel %vm4661_vm15, %v5044_v17, %v5048_v47  ;;  %v5028_v30 = vor.u32 %v5026_v32, %v5008_v10  ;;  %v10208_v41 = vld [vmem:[#allocation2 + $0x1d4] ss:$12 sps:$4 sm:$0xff]  }
 0x2c6   : > { %v3981_v16 = vpop.f32.mrf.mxu1  ;;  %v4179_v22 = vpop.f32.mrf.mxu0 }
 0x2c7   : > { %v10203_v18 = vadd.f32 %v4179_v22, %v3980_v40  ;;  %v5033_v27 = vsel %vm4661_vm15, %v5028_v30, %v5032_v53  ;;  %v5054_v16 = vshll.u32 %v10198_v14, 16  ;;  %v5072_v40 = vrot.slane %v5070_v52, 1  ;;  %v10221_v52 = vld [vmem:[#allocation2 + $0x1dc] ss:$12 sps:$4 sm:$0xff]  }
 0x2c8   : > { %v3984_v34 = vpop.f32.mrf.mxu1  ;;  %5515 = vmatmul.mubr.bf16.gmra.mxu1 %v5017_v6  ;;  %v7243_v19 = vpop.f32.mrf.mxu0  ;;  %v5036_v22 = vor.u32 %v5034_v62, %v5016_v49 }
 0x2c9   : > { %v3985_v31 = vadd.f32 %v3984_v34, %v9747_v3  ;;  %5522 = vmatprep.mubr.bf16.mxu1 %v5049_v7  ;;  %v5066_v3 = vshrl.u32 %v10165_v26, 16  ;;  %v10211_v34 = vld [vmem:[#allocation2 + $0x1f0] ss:$12 sps:$4 sm:$0xff]   ;;  %v5056_v19 = vrot.slane %v5054_v16, 1  ;;  %v5062_v26 = vshll.u32 %v10208_v41, 16 }
 0x2ca   : > { %v3986_v20 = vpop.f32.mrf.mxu1  ;;  %v4184_v6 = vpop.f32.mrf.mxu0  ;;  %7357 = vmatmul.mubr.bf16.gmra.mxu0 %v5033_v27  ;;  %v5041_v30 = vsel %vm4661_vm15, %v5036_v22, %v5040_v44  ;;  %v5058_v22 = vshrl.u32 %v10185_v11, 16 }
 0x2cb   : > { %v10214_v32 = vadd.f32 %v4184_v6, %v3985_v31  ;;  %7360 = vmatprep.mubr.msk.bf16.mxu0 %vm7685_vm0, %v10656_v29  ;;  %v5068_v7 = vor.u32 %v5066_v3, %v5048_v47  ;;  %v5050_v20 = vshrl.u32 %v10175_v25, 16  ;;  %v5094_v31 = vshll.u32 %v10211_v34, 16  ;;  %v4338_v6 = vld [vmem:[#allocation2 + $0x204] sm:$0xff] }
 0x2cc   : > { %v3987_v17 = vpop.f32.mrf.mxu1  ;;  %v7246_v60 = vpop.f32.mrf.mxu0 }
 0x2cd   : > { %v3988_v10 = vadd.f32 %v3987_v17, %v9761_v37  ;;  %10872 = vst [vmem:[#allocation51_spill] sm:$0xff] %v10214_v32  ;;  %v5073_v49 = vsel %vm4661_vm15, %v5068_v7, %v5072_v40  ;;  %v5052_v47 = vor.u32 %v5050_v20, %v5032_v53  ;;  %v5078_v60 = vshll.u32 %v10221_v52, 16 }
 0x2ce   : > { %v3989_v56 = vpop.f32.mrf.mxu1  ;;  %v4187_v37 = vpop.f32.mrf.mxu0 }
 0x2cf   : > { %v10226_v17 = vadd.f32 %v4187_v37, %v3988_v10  ;;  %v5057_v3 = vsel %vm4661_vm15, %v5052_v47, %v5056_v19  ;;  %v5064_v56 = vrot.slane %v5062_v26, 1  ;;  %v5096_v10 = vrot.slane %v5094_v31, 1 }
 0x2d0   : > { %v3992_v27 = vpop.f32.mrf.mxu1  ;;  %5523 = vmatmul.mubr.bf16.gmra.mxu1 %v5041_v30  ;;  %v7247_v16 = vpop.f32.mrf.mxu0  ;;  %v10231_v30 = vld [vmem:[#allocation2 + $0x1ec] ss:$12 sps:$4 sm:$0xff]  }
 0x2d1   : > { %v3993_v62 = vadd.f32 %v3992_v27, %v9768_v46  ;;  %10873 = vst [vmem:[#allocation52_spill] sm:$0xff] %v10226_v17  ;;  %5530 = vmatprep.mubr.bf16.mxu1 %v5073_v49  ;;  %v5090_v46 = vshrl.u32 %v10188_v24, 16  ;;  %v7674_v27 = vld [vmem:[#allocation2] sm:$0xff]  ;;  %v5060_v49 = vor.u32 %v5058_v22, %v5040_v44  ;;  %v5074_v16 = vshrl.u32 %v10198_v14, 16 }
 0x2d2   : > { %v3994_v25 = vpop.f32.mrf.mxu1  ;;  %v4192_v32 = vpop.f32.mrf.mxu0  ;;  %7361 = vmatmul.mubr.bf16.gmra.mxu0 %v5057_v3  ;;  %v10234_v53 = vcombine.high %v4338_v6, %v7674_v27  ;;  %v5080_v24 = vrot.slane %v5078_v60, 1  ;;  %v5086_v31 = vshll.u32 %v10231_v30, 16  ;;  %v10244_v3 = vld [vmem:[#allocation2 + $0x1f4] ss:$12 sps:$4 sm:$0xff]  }
 0x2d3   : > { %v10237_v37 = vadd.f32 %v4192_v32, %v3993_v62  ;;  %7364 = vmatprep.mubr.msk.bf16.mxu0 %vm7685_vm0, %v10656_v29  ;;  %v5092_v47 = vor.u32 %v5090_v46, %v5072_v40  ;;  %v5065_v25 = vsel %vm4661_vm15, %v5060_v49, %v5064_v56  ;;  %v5076_v40 = vor.u32 %v5074_v16, %v5056_v19 }
 0x2d4   : > { %v3995_v7 = vpop.f32.mrf.mxu1  ;;  %v7250_v26 = vpop.f32.mrf.mxu0  ;;  %v5118_v32 = vshll.u32 %v10234_v53, 16  ;;  %v5082_v46 = vshrl.u32 %v10208_v41, 16 }
 0x2d5   : > { %v3996_v20 = vadd.f32 %v3995_v7, %v9782_v51  ;;  %10874 = vst [vmem:[#allocation50_spill] sm:$0xff] %v10237_v37  ;;  %v5097_v44 = vsel %vm4661_vm15, %v5092_v47, %v5096_v10  ;;  %v4342_v7 = vld [vmem:[#allocation2 + $0x21c] sm:$0x77]  ;;  %v5081_v49 = vsel %vm4661_vm15, %v5076_v40, %v5080_v24  ;;  %v5102_v26 = vshll.u32 %v10244_v3, 16 }
 0x2d6   : > { %v3997_v11 = vpop.f32.mrf.mxu1  ;;  %v4195_v51 = vpop.f32.mrf.mxu0  ;;  %v5084_v41 = vor.u32 %v5082_v46, %v5064_v56 }
 0x2d7   : > { %v10249_v22 = vadd.f32 %v4195_v51, %v3996_v20  ;;  %v5088_v11 = vrot.slane %v5086_v31, 1  ;;  %v10257_v20 = vcombine.high %v4342_v7, %v4342_v7  ;;  %v5104_v40 = vrot.slane %v5102_v26, 1 }
 0x2d8   : > { %v4000_v17 = vpop.f32.mrf.mxu1  ;;  %5531 = vmatmul.mubr.bf16.gmra.mxu1 %v5065_v25  ;;  %v7251_v60 = vpop.f32.mrf.mxu0  ;;  %v10254_v25 = vcombine.low %v4338_v6, %v7674_v27  ;;  %v5138_v26 = vshrl.u32 %v10234_v53, 16 }
 0x2d9   : > { %v4001_v62 = vadd.f32 %v4000_v17, %v9789_v0  ;;  %5538 = vmatprep.mubr.bf16.mxu1 %v5097_v44  ;;  %v5114_v0 = vshrl.u32 %v10211_v34, 16  ;;  %v5120_v17 = vrot.slane %v5118_v32, 1  ;;  %v5089_v27 = vsel %vm4661_vm15, %v5084_v41, %v5088_v11  ;;  %v10267_v32 = vld [vmem:[#allocation2 + $0x20c] ss:$12 sps:$4 sm:$0xff]  }
 0x2da   : > { %v4002_v14 = vpop.f32.mrf.mxu1  ;;  %v4200_v37 = vpop.f32.mrf.mxu0  ;;  %7365 = vmatmul.mubr.bf16.gmra.mxu0 %v5081_v49  ;;  %v5098_v44 = vshrl.u32 %v10221_v52, 16  ;;  %v5110_v34 = vshll.u32 %v10254_v25, 16  ;;  %v5106_v49 = vshrl.u32 %v10231_v30, 16  ;;  %v5126_v41 = vshll.u32 %v10267_v32, 16 }
 0x2db   : > { %v10260_v16 = vadd.f32 %v4200_v37, %v4001_v62  ;;  %7368 = vmatprep.mubr.msk.bf16.mxu0 %vm7685_vm0, %v10656_v29  ;;  %v5116_v6 = vor.u32 %v5114_v0, %v5096_v10  ;;  %v5142_v37 = vshll.u32 %v10257_v20, 16  ;;  %v5122_v30 = vshrl.u32 %v10244_v3, 16 }
 0x2dc   : > { %v4003_v47 = vpop.f32.mrf.mxu1  ;;  %v7254_v51 = vpop.f32.mrf.mxu0  ;;  %v5100_v10 = vor.u32 %v5098_v44, %v5080_v24  ;;  %v5112_v0 = vrot.slane %v5110_v34, 1  ;;  %v5108_v44 = vor.u32 %v5106_v49, %v5088_v11  ;;  %v5157_v3 = vshrl.u32 %v10257_v20, 16 }
 0x2dd   : > { %v4004_v19 = vadd.f32 %v4003_v47, %v9799_v4  ;;  %v5121_v56 = vsel %vm4661_vm15, %v5116_v6, %v5120_v17 }
 0x2de   : > { %v4005_v31 = vpop.f32.mrf.mxu1  ;;  %v4203_v4 = vpop.f32.mrf.mxu0  ;;  %v5105_v47 = vsel %vm4661_vm15, %v5100_v10, %v5104_v40 }
 0x2df   : > { %v10272_v60 = vadd.f32 %v4203_v4, %v4004_v19  ;;  %v6627_v31 = vcombine.low %v4342_v7, %v4342_v7  ;;  %v5144_v19 = vrot.slane %v5142_v37, 1  ;;  %v5124_v7 = vor.u32 %v5122_v30, %v5104_v40 }
 0x2e0   : > { %v4008_v14 = vpop.f32.mrf.mxu1  ;;  %5539 = vmatmul.mubr.bf16.gmra.mxu1 %v5089_v27  ;;  %v7255_v52 = vpop.f32.mrf.mxu0  ;;  %v5128_v4 = vrot.slane %v5126_v41, 1 }
 0x2e1   : > { %v4009_v62 = vadd.f32 %v4008_v14, %v9806_v58  ;;  %5546 = vmatprep.mubr.bf16.mxu1 %v5121_v56  ;;  %v5140_v58 = vor.u32 %v5138_v26, %v5120_v17  ;;  %v5113_v14 = vsel %vm4661_vm15, %v5108_v44, %v5112_v0  ;;  %v5134_v56 = vshll.u32 %v6627_v31, 16 }
 0x2e2   : > { %v4010_v46 = vpop.f32.mrf.mxu1  ;;  %v4208_v6 = vpop.f32.mrf.mxu0  ;;  %7369 = vmatmul.mubr.bf16.gmra.mxu0 %v5105_v47  ;;  %v5129_v40 = vsel %vm4661_vm15, %v5124_v7, %v5128_v4  ;;  %v5154_v30 = vshrl.u32 %v6627_v31, 16  ;;  %v7654_v7 = vld [vmem:[#allocation2 + $0x224] ss:$0 sps:$4 sm:$0x77]  }
 0x2e3   : > { %v10279_v24 = vadd.f32 %v4208_v6, %v4009_v62  ;;  %7372 = vmatprep.mubr.msk.bf16.mxu0 %vm7685_vm0, %v10656_v29  ;;  %v5130_v62 = vshrl.u32 %v10254_v25, 16  ;;  %v5136_v26 = vrot.slane %v5134_v56, 1 }
 0x2e4   : > { %v4011_v51 = vpop.f32.mrf.mxu1  ;;  %v7258_v34 = vpop.f32.mrf.mxu0 }
 0x2e5   : > { %v4012_v27 = vadd.f32 %v4011_v51, %v9812_v54  ;;  %v5145_v54 = vsel %vm4661_vm15, %v5140_v58, %v5144_v19  ;;  %v5132_v49 = vor.u32 %v5130_v62, %v5112_v0  ;;  %v5150_v62 = vshll.u32 %v7654_v7, 16 }
 0x2e6   : > { %v4013_v53 = vpop.f32.mrf.mxu1  ;;  %v4211_v17 = vpop.f32.mrf.mxu0 }
 0x2e7   : > { %v10287_v11 = vadd.f32 %v4211_v17, %v4012_v27  ;;  %v5137_v25 = vsel %vm4661_vm15, %v5132_v49, %v5136_v26 }
 0x2e8   : > { %v4016_v10 = vpop.f32.mrf.mxu1  ;;  %5547 = vmatmul.mubr.bf16.gmra.mxu1 %v5113_v14  ;;  %v7259_v52 = vpop.f32.mrf.mxu0 }
 0x2e9   : > { %v4017_v37 = vadd.f32 %v4016_v10, %v9817_v33  ;;  %5554 = vmatprep.mubr.bf16.mxu1 %v5145_v54  ;;  %v5159_v33 = vor.u32 %v5157_v3, %v5144_v19  ;;  %v5156_v10 = vor.u32 %v5154_v30, %v5136_v26  ;;  %v5152_v26 = vrot.slane %v5150_v62, 1 }
 0x2ea   : > { %v4018_v46 = vpop.f32.mrf.mxu1  ;;  %v4216_v41 = vpop.f32.mrf.mxu0  ;;  %7373 = vmatmul.mubr.bf16.gmra.mxu0 %v5129_v40 }
 0x2eb   : > { %v10293_v6 = vadd.f32 %v4216_v41, %v4017_v37 }
 0x2ec   : > { %v4019_v47 = vpop.f32.mrf.mxu1  ;;  %v7262_v27 = vpop.f32.mrf.mxu0 }
 0x2ed   : > { %v4020_v51 = vadd.f32 %v4019_v47, %v9823_v36 }
 0x2ee   : > { %v4021_v58 = vpop.f32.mrf.mxu1  ;;  %v4219_v20 = vpop.f32.mrf.mxu0 }
 0x2ef   : > { %v10297_v0 = vadd.f32 %v4219_v20, %v4020_v51  ;;  %v10875_v20 = vld [vmem:[#allocation45_spill] sm:$0xff] }
 0x2f0   : > { %v4024_v44 = vpop.f32.mrf.mxu1  ;;  %5555 = vmatmul.mubr.bf16.gmra.mxu1 %v5137_v25  ;;  %v7263_v14 = vpop.f32.mrf.mxu0 }
 0x2f1   : > { %v4025_v53 = vadd.f32 %v4024_v44, %v9830_v55  ;;  %5562 = vmatprep.mubr.bf16.mxu1 %v5159_v33  ;;  %v5146_v55 = vshrl.u32 %v10267_v32, 16  ;;  %v5160_v44 = vshrl.u32 %v7654_v7, 16 }
 0x2f2   : > { %v4026_v34 = vpop.f32.mrf.mxu1  ;;  %v4224_v56 = vpop.f32.mrf.mxu0 }
 0x2f3   : > { %v10300_v17 = vadd.f32 %v4224_v56, %v4025_v53  ;;  %v10876_v56 = vld [vmem:[#allocation46_spill] sm:$0xff] }
 0x2f4   : > { %v4027_v36 = vpop.f32.mrf.mxu1  ;;  %v7266_v37 = vpop.f32.mrf.mxu0 }
 0x2f5   : > { %v4028_v19 = vadd.f32 %v4027_v36, %v9839_v39  ;;  %v5148_v39 = vor.u32 %v5146_v55, %v5128_v4  ;;  %v5162_v36 = vor.u32 %v5160_v44, %v5152_v26 }
 0x2f6   : > { %v4029_v54 = vpop.f32.mrf.mxu1  ;;  %v4227_v31 = vpop.f32.mrf.mxu0 }
 0x2f7   : > { %v10304_v52 = vadd.f32 %v4227_v31, %v4028_v19  ;;  %v5153_v32 = vsel %vm4661_vm15, %v5148_v39, %v5152_v26  ;;  %v10878_v39 = vld [vmem:[#allocation48_spill] sm:$0xff] }
 0x2f8   : > { %v4032_v3 = vpop.f32.mrf.mxu1  ;;  %5563 = vmatmul.mubr.bf16.gmra.mxu1 %v5156_v10  ;;  %v7267_v49 = vpop.f32.mrf.mxu0 }
 0x2f9   : > { %v4033_v46 = vadd.f32 %v4032_v3, %v9847_v57  ;;  %7376 = vmatprep.mubr.msk.bf16.mxu1 %vm7685_vm0, %v10656_v29  ;;  %v10877_v3 = vld [vmem:[#allocation44_spill] sm:$0xff] }
 0x2fa   : > { %v4034_v40 = vpop.f32.mrf.mxu1  ;;  %v4232_v41 = vpop.f32.mrf.mxu0 }
 0x2fb   : > { %v10309_v33 = vadd.f32 %v4232_v41, %v4033_v46 }
 0x2fc   : > { %v4035_v47 = vpop.f32.mrf.mxu1  ;;  %v7270_v27 = vpop.f32.mrf.mxu0 }
 0x2fd   : > { %v4036_v51 = vadd.f32 %v4035_v47, %v9860_v12 }
 0x2fe   : > { %v4037_v58 = vpop.f32.mrf.mxu1  ;;  %v4235_v25 = vpop.f32.mrf.mxu0 }
 0x2ff   : > { %v10313_v53 = vadd.f32 %v4235_v25, %v4036_v51 }
 0x300   : > { %v4040_v57 = vpop.f32.mrf.mxu1  ;;  %7377 = vmatmul.mubr.bf16.vlgmr.msra.gmra.mxu1 %v5153_v32  ;;  %v7271_v34 = vpop.f32.mrf.mxu0  ;;  %v10879_v32 = vld [vmem:[#allocation49_spill] sm:$0xff] }
 0x301   : > { %v4041_v30 = vadd.f32 %v4040_v57, %v10875_v20  ;;  %7380 = vmatprep.mubr.msk.bf16.mxu1 %vm7685_vm0, %v10656_v29  ;;  %vm6097_vm0 = vcmask 1043456  }
 0x302   : > { %v4042_v4 = vpop.f32.mrf.mxu1  ;;  %v4240_v14 = vpop.f32.mrf.mxu0 }
 0x303   : > { %v10318_v19 = vadd.f32 %v4240_v14, %v4041_v30 }
 0x304   : > { %v4043_v12 = vpop.f32.mrf.mxu1  ;;  %v7274_v37 = vpop.f32.mrf.mxu0 }
 0x305   : > { %v4044_v10 = vadd.f32 %v4043_v12, %v10876_v56 }
 0x306   : > { %v4045_v54 = vpop.f32.mrf.mxu1  ;;  %v4243_v7 = vpop.f32.mrf.mxu0 }
 0x307   : > { %v10321_v55 = vadd.f32 %v4243_v7, %v4044_v10 }
 0x308   : > { %v4048_v62 = vpop.f32.mrf.mxu1  ;;  %7381 = vmatmul.mubr.bf16.gmra.mxu1 %v5162_v36  ;;  %v7275_v29 = vpop.f32.mrf.mxu0 }
 0x309   : > { %v4049_v31 = vadd.f32 %v4048_v62, %v10877_v3 }
 0x30a   : > { %v4050_v46 = vpop.f32.mrf.mxu1  ;;  %v4248_v49 = vpop.f32.mrf.mxu0 }
 0x30b   : > { %v10324_v26 = vadd.f32 %v4248_v49, %v4049_v31  ;;  %v10880_v46 = vld [vmem:[#allocation47_spill] sm:$0xff] }
 0x30c   : > { %v4051_v40 = vpop.f32.mrf.mxu1  ;;  %v7278_v51 = vpop.f32.mrf.mxu0 }
 0x30d   : > { %v4052_v47 = vadd.f32 %v4051_v40, %v10878_v39  ;;  %v10881_v51 = vld [vmem:[#allocation4_spill] sm:$0xff] }
 0x30e   : > { %v4053_v41 = vpop.f32.mrf.mxu1  ;;  %v4251_v27 = vpop.f32.mrf.mxu0 }
 0x30f   : > { %v10327_v25 = vadd.f32 %v4251_v27, %v4052_v47 }
 0x310   : > { %v4056_v58 = vpop.f32.mrf.mxu1  ;;  %v7279_v20 = vpop.f32.mrf.mxu0 }
 0x311   : > { %v4057_v57 = vadd.f32 %v4056_v58, %v10879_v32  ;;  %v10882_v20 = vld [vmem:[#allocation6_spill] sm:$0xff] }
 0x312   : > { %v4058_v44 = vpop.f32.mrf.mxu1  ;;  %v4256_v4 = vpop.f32.mrf.mxu0 }
 0x313   : > { %v10329_v34 = vadd.f32 %v4256_v4, %v4057_v57 }
 0x314   : > { %v4059_v30 = vpop.f32.mrf.mxu1  ;;  %v7282_v14 = vpop.f32.mrf.mxu0 }
 0x316   : > { %v4060_v12 = vpop.f32.mrf.mxu1  ;;  %v4259_v56 = vpop.f32.mrf.mxu0 }
 0x318   : > { %v5404_v36 = vpop.f32.mrf.mxu1  ;;  %v7283_v54 = vpop.f32.mrf.mxu0 }
 0x31a   : > { %v5406_v10 = vpop.f32.mrf.mxu1  ;;  %v5604_v62 = vpop.f32.mrf.mxu0 }
 0x31b   : > { %v5605_v7 = vadd.f32 %v5604_v62, %v5404_v36 }
 0x31c   : > { %v5407_v37 = vpop.f32.mrf.mxu1  ;;  %v7302_v31 = vpop.f32.mrf.mxu0 }
 0x31d   : > { %v5770_v29 = vadd.f32 %v5605_v7, %v10880_v46  ;;  %v10883_v7 = vld [vmem:[#allocation3_spill] sm:$0xff] }
 0x31e   : > { %v5409_v3 = vpop.f32.mrf.mxu1  ;;  %v5607_v49 = vpop.f32.mrf.mxu0 }
 0x31f   : > { %v5608_v39 = vadd.f32 %v5607_v49, %v5407_v37  ;;  %v6017_v58 = vmul.f32 %v5770_v29, %v10881_v51 }
 0x320   : > { %v5412_v40 = vpop.f32.mrf.mxu1  ;;  %v7303_v41 = vpop.f32.mrf.mxu0 }
 0x321   : > { %v5771_v27 = vadd.f32 %v5608_v39, %v9973_v21  ;;  %v6107_v36 = vmul.f32 %v6017_v58, %v6017_v58 }
 0x322   : > { %v5414_v47 = vpop.f32.mrf.mxu1  ;;  %v5612_v57 = vpop.f32.mrf.mxu0 }
 0x323   : > { %v6862_v44 = vpack.c.bf16 %v5771_v27, %v5770_v29  ;;  %v6018_v30 = vmul.f32 %v5771_v27, %v10882_v20  ;;  %v5613_v4 = vadd.f32 %v5612_v57, %v5412_v40  ;;  %v10884_v27 = vld [vmem:[#allocation5_spill] sm:$0xff] }
 0x324   : > { %v5415_v32 = vpop.f32.mrf.mxu1  ;;  %v7306_v14 = vpop.f32.mrf.mxu0 }
 0x325   : > { %6863 = vst [vmem:[%s10339_s17] sm:$0xff] %v6862_v44   ;;  %v6058_v56 = vadd.f32 %v6018_v30, %v6017_v58  ;;  %v6108_v10 = vmul.f32 %v6018_v30, %v6018_v30  ;;  %v5772_v21 = vadd.f32 %v5613_v4, %v9984_v48 }
 0x326   : > { %v5417_v12 = vpop.f32.mrf.mxu1  ;;  %v5615_v37 = vpop.f32.mrf.mxu0 }
 0x327   : > { %v6148_v62 = vadd.f32 %v6108_v10, %v6107_v36  ;;  %v6019_v3 = vmul.f32 %v5772_v21, %v10883_v7  ;;  %v5616_v31 = vadd.f32 %v5615_v37, %v5415_v32 }
 0x328   : > { %v5420_v54 = vpop.f32.mrf.mxu1  ;;  %v7307_v29 = vpop.f32.mrf.mxu0 }
 0x329   : > { %v6059_v49 = vadd.f32 %v6058_v56, %v6019_v3  ;;  %v6109_v39 = vmul.f32 %v6019_v3, %v6019_v3  ;;  %v5773_v40 = vadd.f32 %v5616_v31, %v9996_v63  ;;  %v10885_v56 = vld [vmem:[#allocation8_spill] sm:$0xff] }
 0x32a   : > { %v5422_v46 = vpop.f32.mrf.mxu1  ;;  %v5620_v41 = vpop.f32.mrf.mxu0 }
 0x32b   : > { %v6149_v51 = vadd.f32 %v6148_v62, %v6109_v39  ;;  %v6867_v58 = vpack.c.bf16 %v5773_v40, %v5772_v21  ;;  %v6020_v57 = vmul.f32 %v5773_v40, %v10884_v27  ;;  %v5621_v48 = vadd.f32 %v5620_v41, %v5420_v54 }
 0x32c   : > { %v5423_v47 = vpop.f32.mrf.mxu1  ;;  %v7310_v20 = vpop.f32.mrf.mxu0 }
 0x32d   : > { %6978 = vst [vmem:[%s10339_s17 + $0x8] sm:$0xff] %v6867_v58   ;;  %v6060_v30 = vadd.f32 %v6059_v49, %v6020_v57  ;;  %v6110_v4 = vmul.f32 %v6020_v57, %v6020_v57  ;;  %v5774_v32 = vadd.f32 %v5621_v48, %v10007_v61  ;;  %v10886_v49 = vld [vmem:[#allocation7_spill] sm:$0xff] }
 0x32e   : > { %v5425_v44 = vpop.f32.mrf.mxu1  ;;  %v5623_v14 = vpop.f32.mrf.mxu0 }
 0x32f   : > { %v6150_v36 = vadd.f32 %v6149_v51, %v6110_v4  ;;  %v6021_v63 = vmul.f32 %v5774_v32, %v10885_v56  ;;  %v5624_v10 = vadd.f32 %v5623_v14, %v5423_v47  ;;  %v10887_v44 = vld [vmem:[#allocation10_spill] sm:$0xff] }
 0x330   : > { %v5428_v12 = vpop.f32.mrf.mxu1  ;;  %v7311_v62 = vpop.f32.mrf.mxu0 }
 0x331   : > { %v6061_v21 = vadd.f32 %v6060_v30, %v6021_v63  ;;  %v6111_v7 = vmul.f32 %v6021_v63, %v6021_v63  ;;  %v5775_v54 = vadd.f32 %v5624_v10, %v10019_v23 }
 0x332   : > { %v5430_v37 = vpop.f32.mrf.mxu1  ;;  %v5628_v31 = vpop.f32.mrf.mxu0 }
 0x333   : > { %v6151_v46 = vadd.f32 %v6150_v36, %v6111_v7  ;;  %v6872_v29 = vpack.c.bf16 %v5775_v54, %v5774_v32  ;;  %v6022_v39 = vmul.f32 %v5775_v54, %v10886_v49  ;;  %v5629_v61 = vadd.f32 %v5628_v31, %v5428_v12  ;;  %v10888_v37 = vld [vmem:[#allocation9_spill] sm:$0xff] }
 0x334   : > { %v5431_v3 = vpop.f32.mrf.mxu1  ;;  %v7314_v41 = vpop.f32.mrf.mxu0 }
 0x335   : > { %6979 = vst [vmem:[%s10339_s17 + $0x10] sm:$0xff] %v6872_v29   ;;  %v6062_v51 = vadd.f32 %v6061_v21, %v6022_v39  ;;  %v6112_v58 = vmul.f32 %v6022_v39, %v6022_v39  ;;  %v5776_v47 = vadd.f32 %v5629_v61, %v10030_v9  ;;  %v10889_v39 = vld [vmem:[#allocation12_spill] sm:$0xff] }
 0x336   : > { %v5433_v40 = vpop.f32.mrf.mxu1  ;;  %v5631_v57 = vpop.f32.mrf.mxu0 }
 0x337   : > { %v6152_v48 = vadd.f32 %v6151_v46, %v6112_v58  ;;  %v6023_v23 = vmul.f32 %v5776_v47, %v10887_v44  ;;  %v5632_v20 = vadd.f32 %v5631_v57, %v5431_v3 }
 0x338   : > { %v5436_v27 = vpop.f32.mrf.mxu1  ;;  %v7315_v4 = vpop.f32.mrf.mxu0 }
 0x339   : > { %v6063_v32 = vadd.f32 %v6062_v51, %v6023_v23  ;;  %v6113_v14 = vmul.f32 %v6023_v23, %v6023_v23  ;;  %v5777_v12 = vadd.f32 %v5632_v20, %v10042_v2  ;;  %v10890_v23 = vld [vmem:[#allocation11_spill] sm:$0xff] }
 0x33a   : > { %v5438_v30 = vpop.f32.mrf.mxu1  ;;  %v5636_v56 = vpop.f32.mrf.mxu0 }
 0x33b   : > { %v6153_v63 = vadd.f32 %v6152_v48, %v6113_v14  ;;  %v6877_v10 = vpack.c.bf16 %v5777_v12, %v5776_v47  ;;  %v6024_v62 = vmul.f32 %v5777_v12, %v10888_v37  ;;  %v5637_v9 = vadd.f32 %v5636_v56, %v5436_v27 }
 0x33c   : > { %v5439_v36 = vpop.f32.mrf.mxu1  ;;  %v7318_v7 = vpop.f32.mrf.mxu0 }
 0x33d   : > { %6980 = vst [vmem:[%s10339_s17 + $0x18] sm:$0xff] %v6877_v10   ;;  %v6064_v54 = vadd.f32 %v6063_v32, %v6024_v62  ;;  %v6114_v31 = vmul.f32 %v6024_v62, %v6024_v62  ;;  %v5778_v3 = vadd.f32 %v5637_v9, %v10053_v1  ;;  %v10891_v10 = vld [vmem:[#allocation14_spill] sm:$0xff] }
 0x33e   : > { %v5441_v21 = vpop.f32.mrf.mxu1  ;;  %v5639_v29 = vpop.f32.mrf.mxu0 }
 0x33f   : > { %v6154_v49 = vadd.f32 %v6153_v63, %v6114_v31  ;;  %v6025_v2 = vmul.f32 %v5778_v3, %v10889_v39  ;;  %v5640_v61 = vadd.f32 %v5639_v29, %v5439_v36 }
 0x340   : > { %v5444_v46 = vpop.f32.mrf.mxu1  ;;  %v7319_v41 = vpop.f32.mrf.mxu0 }
 0x341   : > { %v6065_v51 = vadd.f32 %v6064_v54, %v6025_v2  ;;  %v6115_v58 = vmul.f32 %v6025_v2, %v6025_v2  ;;  %v5779_v47 = vadd.f32 %v5640_v61, %v10065_v59 }
 0x342   : > { %v5446_v40 = vpop.f32.mrf.mxu1  ;;  %v5644_v57 = vpop.f32.mrf.mxu0 }
 0x343   : > { %v6155_v48 = vadd.f32 %v6154_v49, %v6115_v58  ;;  %v6882_v44 = vpack.c.bf16 %v5779_v47, %v5778_v3  ;;  %v6026_v20 = vmul.f32 %v5779_v47, %v10890_v23  ;;  %v5645_v1 = vadd.f32 %v5644_v57, %v5444_v46  ;;  %v10892_v49 = vld [vmem:[#allocation13_spill] sm:$0xff]  ;;  %v10893_v57 = vld [vmem:[#allocation16_spill] sm:$0xff] }
 0x344   : > { %v5447_v27 = vpop.f32.mrf.mxu1  ;;  %v7322_v4 = vpop.f32.mrf.mxu0 }
 0x345   : > { %6981 = vst [vmem:[%s10339_s17 + $0x20] sm:$0xff] %v6882_v44   ;;  %v6066_v32 = vadd.f32 %v6065_v51, %v6026_v20  ;;  %v6116_v14 = vmul.f32 %v6026_v20, %v6026_v20  ;;  %v5780_v12 = vadd.f32 %v5645_v1, %v10076_v28 }
 0x346   : > { %v5449_v30 = vpop.f32.mrf.mxu1  ;;  %v5647_v56 = vpop.f32.mrf.mxu0 }
 0x347   : > { %v6156_v63 = vadd.f32 %v6155_v48, %v6116_v14  ;;  %v6027_v59 = vmul.f32 %v5780_v12, %v10891_v10  ;;  %v5648_v37 = vadd.f32 %v5647_v56, %v5447_v27 }
 0x348   : > { %v5452_v36 = vpop.f32.mrf.mxu1  ;;  %v7323_v9 = vpop.f32.mrf.mxu0 }
 0x349   : > { %v6067_v21 = vadd.f32 %v6066_v32, %v6027_v59  ;;  %v6117_v7 = vmul.f32 %v6027_v59, %v6027_v59  ;;  %v5781_v54 = vadd.f32 %v5648_v37, %v10088_v13 }
 0x34a   : > { %v5454_v62 = vpop.f32.mrf.mxu1  ;;  %v5652_v3 = vpop.f32.mrf.mxu0 }
 0x34b   : > { %v6157_v46 = vadd.f32 %v6156_v63, %v6117_v7  ;;  %v6887_v29 = vpack.c.bf16 %v5781_v54, %v5780_v12  ;;  %v6028_v39 = vmul.f32 %v5781_v54, %v10892_v49  ;;  %v5653_v28 = vadd.f32 %v5652_v3, %v5452_v36  ;;  %v10894_v36 = vld [vmem:[#allocation15_spill] sm:$0xff]  ;;  %v10895_v54 = vld [vmem:[#allocation18_spill] sm:$0xff] }
 0x34c   : > { %v5455_v31 = vpop.f32.mrf.mxu1  ;;  %v7326_v61 = vpop.f32.mrf.mxu0 }
 0x34d   : > { %6982 = vst [vmem:[%s10339_s17 + $0x28] sm:$0xff] %v6887_v29   ;;  %v6068_v40 = vadd.f32 %v6067_v21, %v6028_v39  ;;  %v6118_v41 = vmul.f32 %v6028_v39, %v6028_v39  ;;  %v5782_v51 = vadd.f32 %v5653_v28, %v10099_v38 }
 0x34e   : > { %v5457_v2 = vpop.f32.mrf.mxu1  ;;  %v5655_v47 = vpop.f32.mrf.mxu0 }
 0x34f   : > { %v6158_v27 = vadd.f32 %v6157_v46, %v6118_v41  ;;  %v6029_v13 = vmul.f32 %v5782_v51, %v10893_v57  ;;  %v5656_v48 = vadd.f32 %v5655_v47, %v5455_v31  ;;  %v10896_v41 = vld [vmem:[#allocation17_spill] sm:$0xff] }
 0x350   : > { %v5460_v58 = vpop.f32.mrf.mxu1  ;;  %v7327_v23 = vpop.f32.mrf.mxu0 }
 0x351   : > { %v6069_v20 = vadd.f32 %v6068_v40, %v6029_v13  ;;  %v6119_v1 = vmul.f32 %v6029_v13, %v6029_v13  ;;  %v5783_v30 = vadd.f32 %v5656_v48, %v10111_v45 }
 0x352   : > { %v5462_v44 = vpop.f32.mrf.mxu1  ;;  %v5660_v32 = vpop.f32.mrf.mxu0 }
 0x353   : > { %v6159_v14 = vadd.f32 %v6158_v27, %v6119_v1  ;;  %v6892_v12 = vpack.c.bf16 %v5783_v30, %v5782_v51  ;;  %v6030_v56 = vmul.f32 %v5783_v30, %v10894_v36  ;;  %v5661_v38 = vadd.f32 %v5660_v32, %v5460_v58 }
 0x354   : > { %v5463_v4 = vpop.f32.mrf.mxu1  ;;  %v7330_v10 = vpop.f32.mrf.mxu0 }
 0x355   : > { %6983 = vst [vmem:[%s10339_s17 + $0x30] sm:$0xff] %v6892_v12   ;;  %v6070_v59 = vadd.f32 %v6069_v20, %v6030_v56  ;;  %v6120_v37 = vmul.f32 %v6030_v56, %v6030_v56  ;;  %v5784_v62 = vadd.f32 %v5661_v38, %v10122_v15  ;;  %v10897_v20 = vld [vmem:[#allocation20_spill] sm:$0xff]  ;;  %v10898_v10 = vld [vmem:[#allocation19_spill] sm:$0xff] }
 0x356   : > { %v5465_v63 = vpop.f32.mrf.mxu1  ;;  %v5663_v21 = vpop.f32.mrf.mxu0 }
 0x357   : > { %v6160_v7 = vadd.f32 %v6159_v14, %v6120_v37  ;;  %v6031_v45 = vmul.f32 %v5784_v62, %v10895_v54  ;;  %v5664_v31 = vadd.f32 %v5663_v21, %v5463_v4 }
 0x358   : > { %v5468_v9 = vpop.f32.mrf.mxu1  ;;  %v7331_v46 = vpop.f32.mrf.mxu0 }
 0x359   : > { %v6071_v29 = vadd.f32 %v6070_v59, %v6031_v45  ;;  %v6121_v49 = vmul.f32 %v6031_v45, %v6031_v45  ;;  %v5785_v39 = vadd.f32 %v5664_v31, %v10134_v50 }
 0x35a   : > { %v5470_v3 = vpop.f32.mrf.mxu1  ;;  %v5668_v2 = vpop.f32.mrf.mxu0 }
 0x35b   : > { %v6161_v61 = vadd.f32 %v6160_v7, %v6121_v49  ;;  %v6897_v40 = vpack.c.bf16 %v5785_v39, %v5784_v62  ;;  %v6032_v51 = vmul.f32 %v5785_v39, %v10896_v41  ;;  %v5669_v15 = vadd.f32 %v5668_v2, %v5468_v9  ;;  %v10899_v3 = vld [vmem:[#allocation22_spill] sm:$0xff] }
 0x35c   : > { %v5471_v28 = vpop.f32.mrf.mxu1  ;;  %v7334_v47 = vpop.f32.mrf.mxu0 }
 0x35d   : > { %6984 = vst [vmem:[%s10339_s17 + $0x38] sm:$0xff] %v6897_v40   ;;  %v6072_v27 = vadd.f32 %v6071_v29, %v6032_v51  ;;  %v6122_v57 = vmul.f32 %v6032_v51, %v6032_v51  ;;  %v5786_v13 = vadd.f32 %v5669_v15, %v10145_v43  ;;  %v10900_v15 = vld [vmem:[#allocation21_spill] sm:$0xff] }
 0x35e   : > { %v5473_v58 = vpop.f32.mrf.mxu1  ;;  %v5671_v44 = vpop.f32.mrf.mxu0 }
 0x35f   : > { %v6162_v23 = vadd.f32 %v6161_v61, %v6122_v57  ;;  %v6033_v50 = vmul.f32 %v5786_v13, %v10897_v20  ;;  %v5672_v1 = vadd.f32 %v5671_v44, %v5471_v28 }
 0x360   : > { %v5476_v48 = vpop.f32.mrf.mxu1  ;;  %v7335_v4 = vpop.f32.mrf.mxu0 }
 0x361   : > { %v6073_v32 = vadd.f32 %v6072_v27, %v6033_v50  ;;  %v6123_v14 = vmul.f32 %v6033_v50, %v6033_v50  ;;  %v5787_v12 = vadd.f32 %v5672_v1, %v10157_v42  ;;  %v10901_v50 = vld [vmem:[#allocation24_spill] sm:$0xff] }
 0x362   : > { %v5478_v30 = vpop.f32.mrf.mxu1  ;;  %v5676_v56 = vpop.f32.mrf.mxu0 }
 0x363   : > { %v6163_v38 = vadd.f32 %v6162_v23, %v6123_v14  ;;  %v6902_v63 = vpack.c.bf16 %v5787_v12, %v5786_v13  ;;  %v6034_v59 = vmul.f32 %v5787_v12, %v10898_v10  ;;  %v5677_v43 = vadd.f32 %v5676_v56, %v5476_v48  ;;  %v10902_v10 = vld [vmem:[#allocation23_spill] sm:$0xff] }
 0x364   : > { %v5479_v36 = vpop.f32.mrf.mxu1  ;;  %v7338_v62 = vpop.f32.mrf.mxu0 }
 0x365   : > { %6985 = vst [vmem:[%s10339_s17 + $0x40] sm:$0xff] %v6902_v63   ;;  %v6074_v9 = vadd.f32 %v6073_v32, %v6034_v59  ;;  %v6124_v21 = vmul.f32 %v6034_v59, %v6034_v59  ;;  %v5788_v7 = vadd.f32 %v5677_v43, %v10168_v35 }
 0x366   : > { %v5481_v37 = vpop.f32.mrf.mxu1  ;;  %v5679_v45 = vpop.f32.mrf.mxu0 }
 0x367   : > { %v6164_v31 = vadd.f32 %v6163_v38, %v6124_v21  ;;  %v6035_v42 = vmul.f32 %v5788_v7, %v10899_v3  ;;  %v5680_v46 = vadd.f32 %v5679_v45, %v5479_v36  ;;  %v10903_v21 = vld [vmem:[#allocation51_spill] sm:$0xff]  ;;  %v10904_v3 = vld [vmem:[#allocation26_spill] sm:$0xff] }
 0x368   : > { %v5484_v54 = vpop.f32.mrf.mxu1  ;;  %v7339_v49 = vpop.f32.mrf.mxu0 }
 0x369   : > { %v6075_v39 = vadd.f32 %v6074_v9, %v6035_v42  ;;  %v6125_v28 = vmul.f32 %v6035_v42, %v6035_v42  ;;  %v5789_v2 = vadd.f32 %v5680_v46, %v10180_v8 }
 0x36a   : > { %v5486_v29 = vpop.f32.mrf.mxu1  ;;  %v5684_v40 = vpop.f32.mrf.mxu0 }
 0x36b   : > { %v6165_v41 = vadd.f32 %v6164_v31, %v6125_v28  ;;  %v6907_v51 = vpack.c.bf16 %v5789_v2, %v5788_v7  ;;  %v6036_v58 = vmul.f32 %v5789_v2, %v10900_v15  ;;  %v5685_v35 = vadd.f32 %v5684_v40, %v5484_v54  ;;  %v10905_v28 = vld [vmem:[#allocation52_spill] sm:$0xff]  ;;  %v10906_v15 = vld [vmem:[#allocation25_spill] sm:$0xff] }
 0x36c   : > { %v5487_v61 = vpop.f32.mrf.mxu1  ;;  %v7342_v27 = vpop.f32.mrf.mxu0 }
 0x36d   : > { %6986 = vst [vmem:[%s10339_s17 + $0x48] sm:$0xff] %v6907_v51   ;;  %v6076_v57 = vadd.f32 %v6075_v39, %v6036_v58  ;;  %v6126_v13 = vmul.f32 %v6036_v58, %v6036_v58  ;;  %v5790_v48 = vadd.f32 %v5685_v35, %v10191_v5 }
 0x36e   : > { %v5489_v47 = vpop.f32.mrf.mxu1  ;;  %v5687_v23 = vpop.f32.mrf.mxu0 }
 0x36f   : > { %v6166_v20 = vadd.f32 %v6165_v41, %v6126_v13  ;;  %v6037_v8 = vmul.f32 %v5790_v48, %v10901_v50  ;;  %v5688_v1 = vadd.f32 %v5687_v23, %v5487_v61 }
 0x370   : > { %v5492_v44 = vpop.f32.mrf.mxu1  ;;  %v7343_v4 = vpop.f32.mrf.mxu0 }
 0x371   : > { %v6077_v32 = vadd.f32 %v6076_v57, %v6037_v8  ;;  %v6127_v14 = vmul.f32 %v6037_v8, %v6037_v8  ;;  %v5791_v12 = vadd.f32 %v5688_v1, %v10203_v18  ;;  %v10908_v8 = vld [vmem:[#allocation28_spill] sm:$0xff] }
 0x372   : > { %v5494_v30 = vpop.f32.mrf.mxu1  ;;  %v5692_v56 = vpop.f32.mrf.mxu0 }
 0x373   : > { %v6167_v38 = vadd.f32 %v6166_v20, %v6127_v14  ;;  %v6912_v63 = vpack.c.bf16 %v5791_v12, %v5790_v48  ;;  %v6038_v59 = vmul.f32 %v5791_v12, %v10902_v10  ;;  %v5693_v5 = vadd.f32 %v5692_v56, %v5492_v44  ;;  %v10907_v48 = vld [vmem:[#allocation50_spill] sm:$0xff] }
 0x374   : > { %v5495_v36 = vpop.f32.mrf.mxu1  ;;  %v7346_v37 = vpop.f32.mrf.mxu0 }
 0x375   : > { %6987 = vst [vmem:[%s10339_s17 + $0x50] sm:$0xff] %v6912_v63   ;;  %v6078_v62 = vadd.f32 %v6077_v32, %v6038_v59  ;;  %v6128_v9 = vmul.f32 %v6038_v59, %v6038_v59  ;;  %v5792_v7 = vadd.f32 %v5693_v5, %v10903_v21  ;;  %v10909_v59 = vld [vmem:[#allocation27_spill] sm:$0xff] }
 0x376   : > { %v5497_v43 = vpop.f32.mrf.mxu1  ;;  %v5695_v45 = vpop.f32.mrf.mxu0 }
 0x377   : > { %v6168_v31 = vadd.f32 %v6167_v38, %v6128_v9  ;;  %v6039_v18 = vmul.f32 %v5792_v7, %v10904_v3  ;;  %v5696_v42 = vadd.f32 %v5695_v45, %v5495_v36  ;;  %v10910_v3 = vld [vmem:[#allocation30_spill] sm:$0xff] }
 0x378   : > { %v5500_v54 = vpop.f32.mrf.mxu1  ;;  %v7347_v29 = vpop.f32.mrf.mxu0 }
 0x379   : > { %v6079_v49 = vadd.f32 %v6078_v62, %v6039_v18  ;;  %v6129_v39 = vmul.f32 %v6039_v18, %v6039_v18  ;;  %v5793_v2 = vadd.f32 %v5696_v42, %v10905_v28 }
 0x37a   : > { %v5502_v46 = vpop.f32.mrf.mxu1  ;;  %v5700_v40 = vpop.f32.mrf.mxu0 }
 0x37b   : > { %v6169_v41 = vadd.f32 %v6168_v31, %v6129_v39  ;;  %v6917_v51 = vpack.c.bf16 %v5793_v2, %v5792_v7  ;;  %v6040_v58 = vmul.f32 %v5793_v2, %v10906_v15  ;;  %v5701_v35 = vadd.f32 %v5700_v40, %v5500_v54 }
 0x37c   : > { %v5503_v61 = vpop.f32.mrf.mxu1  ;;  %v7350_v27 = vpop.f32.mrf.mxu0 }
 0x37d   : > { %6988 = vst [vmem:[%s10339_s17 + $0x58] sm:$0xff] %v6917_v51   ;;  %v6080_v57 = vadd.f32 %v6079_v49, %v6040_v58  ;;  %v6130_v13 = vmul.f32 %v6040_v58, %v6040_v58  ;;  %v5794_v44 = vadd.f32 %v5701_v35, %v10907_v48 }
 0x37e   : > { %v5505_v47 = vpop.f32.mrf.mxu1  ;;  %v5703_v20 = vpop.f32.mrf.mxu0 }
 0x37f   : > { %v6170_v50 = vadd.f32 %v6169_v41, %v6130_v13  ;;  %v6041_v1 = vmul.f32 %v5794_v44, %v10908_v8  ;;  %v5704_v30 = vadd.f32 %v5703_v20, %v5503_v61  ;;  %v10911_v41 = vld [vmem:[#allocation29_spill] sm:$0xff] }
 0x380   : > { %v5508_v23 = vpop.f32.mrf.mxu1  ;;  %v7351_v32 = vpop.f32.mrf.mxu0 }
 0x381   : > { %v6081_v14 = vadd.f32 %v6080_v57, %v6041_v1  ;;  %v6131_v12 = vmul.f32 %v6041_v1, %v6041_v1  ;;  %v5795_v36 = vadd.f32 %v5704_v30, %v10249_v22 }
 0x382   : > { %v5510_v4 = vpop.f32.mrf.mxu1  ;;  %v5708_v38 = vpop.f32.mrf.mxu0 }
 0x383   : > { %v6171_v63 = vadd.f32 %v6170_v50, %v6131_v12  ;;  %v6922_v10 = vpack.c.bf16 %v5795_v36, %v5794_v44  ;;  %v6042_v5 = vmul.f32 %v5795_v36, %v10909_v59  ;;  %v5709_v43 = vadd.f32 %v5708_v38, %v5508_v23  ;;  %v10912_v44 = vld [vmem:[#allocation32_spill] sm:$0xff]  ;;  %v10913_v36 = vld [vmem:[#allocation31_spill] sm:$0xff] }
 0x384   : > { %v5511_v56 = vpop.f32.mrf.mxu1  ;;  %v7354_v62 = vpop.f32.mrf.mxu0 }
 0x385   : > { %6989 = vst [vmem:[%s10339_s17 + $0x60] sm:$0xff] %v6922_v10   ;;  %v6082_v9 = vadd.f32 %v6081_v14, %v6042_v5  ;;  %v6132_v21 = vmul.f32 %v6042_v5, %v6042_v5  ;;  %v5796_v7 = vadd.f32 %v5709_v43, %v10260_v16 }
 0x386   : > { %v5513_v37 = vpop.f32.mrf.mxu1  ;;  %v5711_v45 = vpop.f32.mrf.mxu0 }
 0x387   : > { %v6172_v31 = vadd.f32 %v6171_v63, %v6132_v21  ;;  %v6043_v22 = vmul.f32 %v5796_v7, %v10910_v3  ;;  %v5712_v18 = vadd.f32 %v5711_v45, %v5511_v56 }
 0x388   : > { %v5516_v54 = vpop.f32.mrf.mxu1  ;;  %v7355_v46 = vpop.f32.mrf.mxu0 }
 0x389   : > { %v6083_v29 = vadd.f32 %v6082_v9, %v6043_v22  ;;  %v6133_v49 = vmul.f32 %v6043_v22, %v6043_v22  ;;  %v5797_v39 = vadd.f32 %v5712_v18, %v10272_v60  ;;  %v10914_v9 = vld [vmem:[#allocation34_spill] sm:$0xff] }
 0x38a   : > { %v5518_v42 = vpop.f32.mrf.mxu1  ;;  %v5716_v2 = vpop.f32.mrf.mxu0 }
 0x38b   : > { %v6173_v61 = vadd.f32 %v6172_v31, %v6133_v49  ;;  %v6927_v40 = vpack.c.bf16 %v5797_v39, %v5796_v7  ;;  %v6044_v51 = vmul.f32 %v5797_v39, %v10911_v41  ;;  %v5717_v16 = vadd.f32 %v5716_v2, %v5516_v54 }
 0x38c   : > { %v5519_v28 = vpop.f32.mrf.mxu1  ;;  %v7358_v58 = vpop.f32.mrf.mxu0 }
 0x38d   : > { %6990 = vst [vmem:[%s10339_s17 + $0x68] sm:$0xff] %v6927_v40   ;;  %v6084_v35 = vadd.f32 %v6083_v29, %v6044_v51  ;;  %v6134_v47 = vmul.f32 %v6044_v51, %v6044_v51  ;;  %v5798_v27 = vadd.f32 %v5717_v16, %v10279_v24  ;;  %v10915_v29 = vld [vmem:[#allocation33_spill] sm:$0xff] }
 0x38e   : > { %v5521_v15 = vpop.f32.mrf.mxu1  ;;  %v5719_v13 = vpop.f32.mrf.mxu0 }
 0x38f   : > { %v6174_v48 = vadd.f32 %v6173_v61, %v6134_v47  ;;  %v6045_v60 = vmul.f32 %v5798_v27, %v10912_v44  ;;  %v5720_v23 = vadd.f32 %v5719_v13, %v5519_v28  ;;  %v10916_v15 = vld [vmem:[#allocation36_spill] sm:$0xff] }
 0x390   : > { %v5524_v57 = vpop.f32.mrf.mxu1  ;;  %v7359_v50 = vpop.f32.mrf.mxu0 }
 0x391   : > { %v6085_v8 = vadd.f32 %v6084_v35, %v6045_v60  ;;  %v6135_v1 = vmul.f32 %v6045_v60, %v6045_v60  ;;  %v5799_v30 = vadd.f32 %v5720_v23, %v10287_v11 }
 0x392   : > { %v5526_v20 = vpop.f32.mrf.mxu1  ;;  %v5724_v32 = vpop.f32.mrf.mxu0 }
 0x393   : > { %v6175_v14 = vadd.f32 %v6174_v48, %v6135_v1  ;;  %v6932_v12 = vpack.c.bf16 %v5799_v30, %v5798_v27  ;;  %v6046_v56 = vmul.f32 %v5799_v30, %v10913_v36  ;;  %v5725_v24 = vadd.f32 %v5724_v32, %v5524_v57  ;;  %v10917_v20 = vld [vmem:[#allocation35_spill] sm:$0xff] }
 0x394   : > { %v5527_v4 = vpop.f32.mrf.mxu1  ;;  %v7362_v63 = vpop.f32.mrf.mxu0 }
 0x395   : > { %6991 = vst [vmem:[%s10339_s17 + $0x70] sm:$0xff] %v6932_v12   ;;  %v6086_v10 = vadd.f32 %v6085_v8, %v6046_v56  ;;  %v6136_v59 = vmul.f32 %v6046_v56, %v6046_v56  ;;  %v5800_v5 = vadd.f32 %v5725_v24, %v10293_v6  ;;  %v10918_v56 = vld [vmem:[#allocation38_spill] sm:$0xff] }
 0x396   : > { %v5529_v38 = vpop.f32.mrf.mxu1  ;;  %v5727_v37 = vpop.f32.mrf.mxu0 }
 0x397   : > { %v6176_v62 = vadd.f32 %v6175_v14, %v6136_v59  ;;  %v6047_v11 = vmul.f32 %v5800_v5, %v10914_v9  ;;  %v5728_v21 = vadd.f32 %v5727_v37, %v5527_v4 }
 0x398   : > { %v5532_v43 = vpop.f32.mrf.mxu1  ;;  %v7363_v54 = vpop.f32.mrf.mxu0 }
 0x399   : > { %v6087_v45 = vadd.f32 %v6086_v10, %v6047_v11  ;;  %v6137_v31 = vmul.f32 %v6047_v11, %v6047_v11  ;;  %v5801_v3 = vadd.f32 %v5728_v21, %v10297_v0  ;;  %v10919_v11 = vld [vmem:[#allocation37_spill] sm:$0xff] }
 0x39a   : > { %v5534_v7 = vpop.f32.mrf.mxu1  ;;  %v5732_v18 = vpop.f32.mrf.mxu0 }
 0x39b   : > { %v6177_v42 = vadd.f32 %v6176_v62, %v6137_v31  ;;  %v6937_v46 = vpack.c.bf16 %v5801_v3, %v5800_v5  ;;  %v6048_v49 = vmul.f32 %v5801_v3, %v10915_v29  ;;  %v5733_v6 = vadd.f32 %v5732_v18, %v5532_v43 }
 0x39c   : > { %v5535_v22 = vpop.f32.mrf.mxu1  ;;  %v7366_v28 = vpop.f32.mrf.mxu0 }
 0x39d   : > { %6992 = vst [vmem:[%s10339_s17 + $0x78] sm:$0xff] %v6937_v46   ;;  %v6088_v2 = vadd.f32 %v6087_v45, %v6048_v49  ;;  %v6138_v61 = vmul.f32 %v6048_v49, %v6048_v49  ;;  %v5802_v40 = vadd.f32 %v5733_v6, %v10300_v17  ;;  %v10920_v46 = vld [vmem:[#allocation40_spill] sm:$0xff] }
 0x39e   : > { %v5537_v39 = vpop.f32.mrf.mxu1  ;;  %v5735_v51 = vpop.f32.mrf.mxu0 }
 0x39f   : > { %v6178_v16 = vadd.f32 %v6177_v42, %v6138_v61  ;;  %v6049_v0 = vmul.f32 %v5802_v40, %v10916_v15  ;;  %v5736_v58 = vadd.f32 %v5735_v51, %v5535_v22  ;;  %v10921_v51 = vld [vmem:[#allocation39_spill] sm:$0xff] }
 0x3a0   : > { %v5540_v41 = vpop.f32.mrf.mxu1  ;;  %v7367_v47 = vpop.f32.mrf.mxu0 }
 0x3a1   : > { %v6089_v27 = vadd.f32 %v6088_v2, %v6049_v0  ;;  %v6139_v57 = vmul.f32 %v6049_v0, %v6049_v0  ;;  %v5803_v13 = vadd.f32 %v5736_v58, %v10304_v52 }
 0x3a2   : > { %v5542_v35 = vpop.f32.mrf.mxu1  ;;  %v5740_v44 = vpop.f32.mrf.mxu0 }
 0x3a3   : > { %v6179_v60 = vadd.f32 %v6178_v16, %v6139_v57  ;;  %v6942_v23 = vpack.c.bf16 %v5803_v13, %v5802_v40  ;;  %v6050_v50 = vmul.f32 %v5803_v13, %v10917_v20  ;;  %v5741_v17 = vadd.f32 %v5740_v44, %v5540_v41 }
 0x3a4   : > { %v5543_v48 = vpop.f32.mrf.mxu1  ;;  %v7370_v1 = vpop.f32.mrf.mxu0 }
 0x3a5   : > { %6993 = vst [vmem:[%s10339_s17 + $0x80] sm:$0xff] %v6942_v23   ;;  %v6090_v30 = vadd.f32 %v6089_v27, %v6050_v50  ;;  %v6140_v4 = vmul.f32 %v6050_v50, %v6050_v50  ;;  %v5804_v32 = vadd.f32 %v5741_v17, %v10309_v33  ;;  %v10922_v23 = vld [vmem:[#allocation42_spill] sm:$0xff] }
 0x3a6   : > { %v5545_v8 = vpop.f32.mrf.mxu1  ;;  %v5743_v12 = vpop.f32.mrf.mxu0 }
 0x3a7   : > { %v6180_v36 = vadd.f32 %v6179_v60, %v6140_v4  ;;  %v6051_v52 = vmul.f32 %v5804_v32, %v10918_v56  ;;  %v5744_v24 = vadd.f32 %v5743_v12, %v5543_v48  ;;  %v10923_v12 = vld [vmem:[#allocation41_spill] sm:$0xff] }
 0x3a8   : > { %v5548_v14 = vpop.f32.mrf.mxu1  ;;  %v7371_v63 = vpop.f32.mrf.mxu0 }
 0x3a9   : > { %v6091_v10 = vadd.f32 %v6090_v30, %v6051_v52  ;;  %v6141_v59 = vmul.f32 %v6051_v52, %v6051_v52  ;;  %v5805_v5 = vadd.f32 %v5744_v24, %v10313_v53 }
 0x3aa   : > { %v5550_v38 = vpop.f32.mrf.mxu1  ;;  %v5748_v37 = vpop.f32.mrf.mxu0 }
 0x3ab   : > { %v6181_v62 = vadd.f32 %v6180_v36, %v6141_v59  ;;  %v6947_v9 = vpack.c.bf16 %v5805_v5, %v5804_v32  ;;  %v6052_v21 = vmul.f32 %v5805_v5, %v10919_v11  ;;  %v5749_v33 = vadd.f32 %v5748_v37, %v5548_v14  ;;  %v10924_v5 = vld [vmem:[#allocation43_spill] sm:$0xff] }
 0x3ac   : > { %v5551_v43 = vpop.f32.mrf.mxu1  ;;  %v7374_v54 = vpop.f32.mrf.mxu0 }
 0x3ad   : > { %6994 = vst [vmem:[%s10339_s17 + $0x88] sm:$0xff] %v6947_v9   ;;  %v6092_v45 = vadd.f32 %v6091_v10, %v6052_v21  ;;  %v6142_v31 = vmul.f32 %v6052_v21, %v6052_v21  ;;  %v5806_v3 = vadd.f32 %v5749_v33, %v10318_v19 }
 0x3ae   : > { %v5553_v7 = vpop.f32.mrf.mxu1  ;;  %v5751_v18 = vpop.f32.mrf.mxu0 }
 0x3af   : > { %v6182_v42 = vadd.f32 %v6181_v62, %v6142_v31  ;;  %v6053_v53 = vmul.f32 %v5806_v3, %v10920_v46  ;;  %v5752_v29 = vadd.f32 %v5751_v18, %v5551_v43 }
 0x3b0   : > { %v5556_v22 = vpop.f32.mrf.mxu1  ;;  %v7375_v6 = vpop.f32.mrf.mxu0 }
 0x3b1   : > { %v6093_v39 = vadd.f32 %v6092_v45, %v6053_v53  ;;  %v6143_v28 = vmul.f32 %v6053_v53, %v6053_v53  ;;  %v5807_v2 = vadd.f32 %v5752_v29, %v10321_v55 }
 0x3b2   : > { %v5558_v49 = vpop.f32.mrf.mxu1 }
 0x3b3   : > { %v6183_v40 = vadd.f32 %v6182_v42, %v6143_v28  ;;  %v6952_v41 = vpack.c.bf16 %v5807_v2, %v5806_v3  ;;  %v6054_v16 = vmul.f32 %v5807_v2, %v10921_v51 }
 0x3b4   : > { %v5559_v61 = vpop.f32.mrf.mxu1 }
 0x3b5   : > { %6995 = vst [vmem:[%s10339_s17 + $0x90] sm:$0xff] %v6952_v41   ;;  %v6094_v19 = vadd.f32 %v6093_v39, %v6054_v16  ;;  %v6144_v0 = vmul.f32 %v6054_v16, %v6054_v16 }
 0x3b6   : > { %v5561_v15 = vpop.f32.mrf.mxu1 }
 0x3b7   : > { %v6184_v35 = vadd.f32 %v6183_v40, %v6144_v0 }
 0x3b8   : > { %v5564_v58 = vpop.f32.mrf.mxu1 }
 0x3ba   : > { %v5566_v47 = vpop.f32.mrf.mxu1 }
 0x3bc   : > { %v5567_v27 = vpop.f32.mrf.mxu1 }
 0x3be   : > { %v5568_v57 = vpop.f32.mrf.mxu1 }
 0x3c0   : > { %v5756_v13 = vpop.f32.mrf.mxu1 }
 0x3c1   : > { %v5757_v48 = vadd.f32 %v5756_v13, %v5556_v22 }
 0x3c2   : > { %v7378_v44 = vpop.f32.mrf.mxu1 }
 0x3c3   : > { %v5808_v55 = vadd.f32 %v5757_v48, %v10324_v26 }
 0x3c4   : > { %v5759_v60 = vpop.f32.mrf.mxu1 }
 0x3c5   : > { %v6055_v20 = vmul.f32 %v5808_v55, %v10922_v23  ;;  %v5760_v50 = vadd.f32 %v5759_v60, %v5559_v61 }
 0x3c6   : > { %v7379_v17 = vpop.f32.mrf.mxu1 }
 0x3c7   : > { %v6095_v8 = vadd.f32 %v6094_v19, %v6055_v20  ;;  %v6145_v1 = vmul.f32 %v6055_v20, %v6055_v20  ;;  %v5809_v30 = vadd.f32 %v5760_v50, %v10327_v25 }
 0x3c8   : > { %v5764_v4 = vpop.f32.mrf.mxu1 }
 0x3c9   : > { %v6185_v32 = vadd.f32 %v6184_v35, %v6145_v1  ;;  %v6957_v14 = vpack.c.bf16 %v5809_v30, %v5808_v55  ;;  %v6056_v36 = vmul.f32 %v5809_v30, %v10923_v12  ;;  %v5765_v56 = vadd.f32 %v5764_v4, %v5564_v58 }
 0x3ca   : > { %v7382_v52 = vpop.f32.mrf.mxu1 }
 0x3cb   : > { %6996 = vst [vmem:[%s10339_s17 + $0x98] sm:$0xff] %v6957_v14   ;;  %v6096_v24 = vadd.f32 %v6095_v8, %v6056_v36  ;;  %v6146_v26 = vmul.f32 %v6056_v36, %v6056_v36  ;;  %v5810_v38 = vadd.f32 %v5765_v56, %v10329_v34 }
 0x3cc   : > { %v5767_v63 = vpop.f32.mrf.mxu1 }
 0x3cd   : > { %v6186_v10 = vadd.f32 %v6185_v32, %v6146_v26  ;;  %v6778_v59 = vpack.c.bf16 %v5810_v38, %v5810_v38  ;;  %v6057_v43 = vmul.f32 %v5810_v38, %v10924_v5 }
 0x3ce   : > { %v7383_v25 = vpop.f32.mrf.mxu1 }
 0x3cf   : > { %6016 = vst [vmem:[%s10339_s17 + $0xa0] sm:$0x3] %v6778_v59  ;;  %v6098_v37 = vsel %vm6097_vm0, %v6057_v43, 0.0  ;;  %v6147_v62 = vmul.f32 %v6057_v43, %v6057_v43 }
 0x3d0   : > { %v6099_v9 = vadd.f32 %v6098_v37, %v6096_v24 }
 0x3d1   : > { %v6187_v11 = vsel %vm6097_vm0, %v6147_v62, 0.0 }
 0x3d2   : > { %v6100_v21 = vrot.slane %v6099_v9, 4  ;;  %v6188_v33 = vadd.f32 %v6187_v11, %v6186_v10 }
 0x3d4   : > { %v6101_v7 = vadd.f32 %v6100_v21, %v6099_v9  ;;  %v6189_v54 = vrot.slane %v6188_v33, 4 }
 0x3d6   : > { %v6102_v45 = vrot.slane %v6101_v7, 2  ;;  %v6190_v34 = vadd.f32 %v6189_v54, %v6188_v33 }
 0x3d8   : > { %v6103_v31 = vadd.f32 %v6102_v45, %v6101_v7  ;;  %v6191_v3 = vrot.slane %v6190_v34, 2 }
 0x3da   : > { %v6104_v22 = vrot.slane %v6103_v31, 1  ;;  %v6192_v18 = vadd.f32 %v6191_v3, %v6190_v34 }
 0x3dc   : > { %v6105_v42 = vadd.f32 %v6104_v22, %v6103_v31  ;;  %v6193_v46 = vrot.slane %v6192_v18, 1 }
 0x3de   : > { %6106 = vst [vmem:[%s292_s19] sm:$0x1] %v6105_v42  ;;  %v6194_v53 = vadd.f32 %v6193_v46, %v6192_v18 }
 0x3e0   : > { %6195 = vst [vmem:[%s295_s22] sm:$0x1] %v6194_v53 }
 0x3e1 PF: > { %s18_s24 = sadd.s32 1, %s7681_s24  }
 0x3e2   : > { %p15_p4 = scmp.ge.s32.totalorder %s18_s24, 4  }
 0x3e4   :  { %17 = sbr.rel (!%p15_p4) target bundleno = 1 (0x1), region = 96 }

</bundles_post_ra>
